<compile_context>
chip_gen: v7x
topology: tpu7x:2x2x1
jax: 0.10.0
libtpu: 0.0.40
codegen_flags: <defaults>
</compile_context>

<pallas_src>
import functools

import jax
import jax.numpy as jnp
from jax.experimental import pallas as pl
from jax.experimental.pallas import tpu as pltpu

N_DIM_VOICE_QUAL = 200
N_RFFT = 80001
DEFAULT_TK = 8192  # 10 grid steps over K; fits 32 MiB scoped VMEM on all gens.


def _round_up(x, m):
    return ((x + m - 1) // m) * m


def _encoder_kernel(x_ref, w1_ref, b1_ref, w2_ref, b2_ref, out_ref, acc_ref):
    k = pl.program_id(0)

    @pl.when(k == 0)
    def _():
        acc_ref[...] = jnp.zeros_like(acc_ref)

    # First Linear: reduction over N_RFFT, tiled along the grid.
    acc_ref[...] += jnp.dot(
        x_ref[...], w1_ref[...], preferred_element_type=jnp.float32
    )

    @pl.when(k == pl.num_programs(0) - 1)
    def _():
        h = acc_ref[...] + b1_ref[...]  # bias of first Linear (200 wide)
        # Second Linear (200 -> n_classes, padded to 128 lanes), fused.
        out_ref[...] = (
            jnp.dot(h, w2_ref[...], preferred_element_type=jnp.float32)
            + b2_ref[...]
        ).astype(out_ref.dtype)


def preprocess_params(w1, b1, w2, b2, *, tk=DEFAULT_TK):
    """One-time weight prep: transpose + zero-pad. Call ONCE, reuse per call.

    w1: (200, N_RFFT); b1: (200,); w2: (C, 200); b2: (C,)
    Returns (w1t, b1_p, w2t, b2_p) with:
      w1t: (K_pad, 200)   -- K padded to a multiple of tk, hidden dim unpadded
      b1_p: (1, 200)
      w2t: (200, C_pad)   -- classes padded to a lane multiple (128)
      b2_p: (1, C_pad)
    """
    H, K = w1.shape
    C = w2.shape[0]
    K_pad = _round_up(K, tk)
    C_pad = _round_up(C, 128)

    w1t = jnp.zeros((K_pad, H), jnp.float32).at[:K, :].set(w1.T)
    b1_p = b1.astype(jnp.float32).reshape(1, H)
    w2t = jnp.zeros((H, C_pad), jnp.float32).at[:, :C].set(w2.T)
    b2_p = jnp.zeros((1, C_pad), jnp.float32).at[0, :C].set(b2)
    return w1t, b1_p, w2t, b2_p


def pad_input(x, *, tk=DEFAULT_TK):
    """Zero-pad x (B, N_RFFT) -> (B_pad, K_pad). Padding contributes 0."""
    B, K = x.shape
    B_pad = _round_up(B, 8)
    K_pad = _round_up(K, tk)
    return jnp.zeros((B_pad, K_pad), jnp.float32).at[:B, :K].set(x)


@functools.partial(jax.jit, static_argnames=("tk",))
def voice_qual_encoder_padded(x_p, w1t, b1_p, w2t, b2_p, *, tk=DEFAULT_TK):
    """Core call on pre-padded operands. Returns (B_pad, C_pad) logits."""
    B_pad, K_pad = x_p.shape
    H = w1t.shape[1]          # 200 (unpadded hidden dim)
    C_pad = w2t.shape[1]
    n_k = K_pad // tk

    return pl.pallas_call(
        _encoder_kernel,
        out_shape=jax.ShapeDtypeStruct((B_pad, C_pad), jnp.float32),
        grid_spec=pltpu.PrefetchScalarGridSpec(
            num_scalar_prefetch=0,
            grid=(n_k,),
            in_specs=[
                pl.BlockSpec((B_pad, tk), lambda k: (0, k)),   # x tile
                pl.BlockSpec((tk, H), lambda k: (k, 0)),       # W1^T tile (200 wide)
                pl.BlockSpec((1, H), lambda k: (0, 0)),        # b1
                pl.BlockSpec((H, C_pad), lambda k: (0, 0)),    # W2^T (resident)
                pl.BlockSpec((1, C_pad), lambda k: (0, 0)),    # b2
            ],
            out_specs=pl.BlockSpec((B_pad, C_pad), lambda k: (0, 0)),
            scratch_shapes=[pltpu.VMEM((B_pad, H), jnp.float32)],
        ),
        compiler_params=pltpu.CompilerParams(
            dimension_semantics=("arbitrary",),
            vmem_limit_bytes=32 * 1024 * 1024,
        ),
    )(x_p, w1t, b1_p, w2t, b2_p)


def voice_qual_encoder(x, w1t, b1_p, w2t, b2_p, n_classes, *, tk=DEFAULT_TK):
    """Convenience wrapper: pads x per call, slices the valid output."""
    B = x.shape[0]
    out = voice_qual_encoder_padded(
        pad_input(x, tk=tk), w1t, b1_p, w2t, b2_p, tk=tk
    )
    return out[:B, :n_classes]


def init_params(key, n_classes):
    """Deterministic synthetic init (PyTorch-Linear-like uniform scaling)."""
    k1, k2, k3, k4 = jax.random.split(key, 4)
    s1 = 1.0 / jnp.sqrt(jnp.float32(N_RFFT))
    s2 = 1.0 / jnp.sqrt(jnp.float32(N_DIM_VOICE_QUAL))
    w1 = jax.random.uniform(
        k1, (N_DIM_VOICE_QUAL, N_RFFT), jnp.float32, -s1, s1
    )
    b1 = jax.random.uniform(k2, (N_DIM_VOICE_QUAL,), jnp.float32, -s1, s1)
    w2 = jax.random.uniform(
        k3, (n_classes, N_DIM_VOICE_QUAL), jnp.float32, -s2, s2
    )
    b2 = jax.random.uniform(k4, (n_classes,), jnp.float32, -s2, s2)
    return w1, b1, w2, b2


if __name__ == "__main__":
    key = jax.random.PRNGKey(0)
    kx, kp = jax.random.split(key)

    B = 2
    n_classes = 10

    x = jax.random.normal(kx, (B, N_RFFT), jnp.float32)
    w1, b1, w2, b2 = init_params(kp, n_classes)

    # One-time preprocessing, hoisted out of the per-call path.
    w1t, b1_p, w2t, b2_p = preprocess_params(w1, b1, w2, b2)
    x_p = pad_input(x)
    x_p, w1t, b1_p, w2t, b2_p = jax.block_until_ready(
        (x_p, w1t, b1_p, w2t, b2_p)
    )

    out_pad = voice_qual_encoder_padded(x_p, w1t, b1_p, w2t, b2_p)
    out_pad = jax.block_until_ready(out_pad)
    out = out_pad[:B, :n_classes]

    # Reference check in plain JAX.
    ref = (x @ w1.T + b1) @ w2.T + b2
    assert out.shape == (B, n_classes)
    assert jnp.allclose(out, ref, atol=1e-2, rtol=1e-3), "mismatch vs reference"

    print("KERNEL_OK")
</pallas_src>

<mosaic_0001>
module attributes {stable_mosaic.version = 11 : i64} {
  func.func @_encoder_kernel(%arg0: i32, %arg1: memref<8x8192xf32, #tpu.memory_space<vmem>>, %arg2: memref<8192x200xf32, #tpu.memory_space<vmem>>, %arg3: memref<1x200xf32, #tpu.memory_space<vmem>>, %arg4: memref<200x128xf32, #tpu.memory_space<vmem>>, %arg5: memref<1x128xf32, #tpu.memory_space<vmem>>, %arg6: memref<8x128xf32, #tpu.memory_space<vmem>>, %arg7: memref<8x200xf32, #tpu.memory_space<vmem>>) attributes {dimension_semantics = [#tpu.dimension_semantics<arbitrary>], iteration_bounds = array<i64: 10>, scalar_prefetch = 0 : i64, scratch_operands = 1 : i64, tpu.core_type = #tpu.core_type<tc>, window_params = [{transform_indices = @transform_0, window_bounds = array<i64: 8, 8192>}, {transform_indices = @transform_1, window_bounds = array<i64: 8192, 200>}, {pipeline_mode = #tpu.pipeline_mode<synchronous>, transform_indices = @transform_2, window_bounds = array<i64: 1, 200>}, {pipeline_mode = #tpu.pipeline_mode<synchronous>, transform_indices = @transform_3, window_bounds = array<i64: 200, 128>}, {pipeline_mode = #tpu.pipeline_mode<synchronous>, transform_indices = @transform_4, window_bounds = array<i64: 1, 128>}, {pipeline_mode = #tpu.pipeline_mode<synchronous>, transform_indices = @transform_5, window_bounds = array<i64: 8, 128>}]} {
    %c0_i32 = arith.constant 0 : i32
    %0 = arith.cmpi eq, %arg0, %c0_i32 : i32
    %1 = arith.extui %0 : i1 to i32
    %c0_i32_0 = arith.constant 0 : i32
    %2 = arith.cmpi ne, %1, %c0_i32_0 : i32
    scf.if %2 {
      %cst_9 = arith.constant 0.000000e+00 : f32
      %12 = vector.broadcast %cst_9 : f32 to vector<8x200xf32>
      %c0_10 = arith.constant 0 : index
      %c0_11 = arith.constant 0 : index
      %13 = vector.load %arg7[%c0_10, %c0_11] : memref<8x200xf32, #tpu.memory_space<vmem>>, vector<8x200xf32>
      tpu.vector_store %arg7[%c0_10, %c0_11], %12 {strides = array<i32>} : memref<8x200xf32, #tpu.memory_space<vmem>>, vector<8x200xf32>,
    } else {
    }
    %c0 = arith.constant 0 : index
    %c0_1 = arith.constant 0 : index
    %3 = vector.load %arg7[%c0, %c0_1] : memref<8x200xf32, #tpu.memory_space<vmem>>, vector<8x200xf32>
    %c0_2 = arith.constant 0 : index
    %c0_3 = arith.constant 0 : index
    %4 = vector.load %arg1[%c0_2, %c0_3] : memref<8x8192xf32, #tpu.memory_space<vmem>>, vector<8x8192xf32>
    %c0_4 = arith.constant 0 : index
    %c0_5 = arith.constant 0 : index
    %5 = vector.load %arg2[%c0_4, %c0_5] : memref<8192x200xf32, #tpu.memory_space<vmem>>, vector<8192x200xf32>
    %cst = arith.constant dense<0.000000e+00> : vector<8x200xf32>
    %6 = tpu.matmul %4, %5, %cst {dimension_numbers = #tpu.dot_dimension_numbers<[1], [0], [0], [1], [0, 0, 1, 1], [], []>} : vector<8x8192xf32>, vector<8192x200xf32>, vector<8x200xf32> -> vector<8x200xf32>
    %7 = arith.addf %3, %6 : vector<8x200xf32>
    %c0_6 = arith.constant 0 : index
    %c0_7 = arith.constant 0 : index
    %8 = vector.load %arg7[%c0_6, %c0_7] : memref<8x200xf32, #tpu.memory_space<vmem>>, vector<8x200xf32>
    tpu.vector_store %arg7[%c0_6, %c0_7], %7 {strides = array<i32>} : memref<8x200xf32, #tpu.memory_space<vmem>>, vector<8x200xf32>,
    %c9_i32 = arith.constant 9 : i32
    %9 = arith.cmpi eq, %arg0, %c9_i32 : i32
    %10 = arith.extui %9 : i1 to i32
    %c0_i32_8 = arith.constant 0 : i32
    %11 = arith.cmpi ne, %10, %c0_i32_8 : i32
    scf.if %11 {
      %c0_9 = arith.constant 0 : index
      %c0_10 = arith.constant 0 : index
      %12 = vector.load %arg7[%c0_9, %c0_10] : memref<8x200xf32, #tpu.memory_space<vmem>>, vector<8x200xf32>
      %c0_11 = arith.constant 0 : index
      %c0_12 = arith.constant 0 : index
      %13 = vector.load %arg3[%c0_11, %c0_12] : memref<1x200xf32, #tpu.memory_space<vmem>>, vector<1x200xf32>
      %14 = vector.broadcast %13 : vector<1x200xf32> to vector<8x200xf32>
      %15 = arith.addf %12, %14 : vector<8x200xf32>
      %c0_13 = arith.constant 0 : index
      %c0_14 = arith.constant 0 : index
      %16 = vector.load %arg4[%c0_13, %c0_14] : memref<200x128xf32, #tpu.memory_space<vmem>>, vector<200x128xf32>
      %cst_15 = arith.constant dense<0.000000e+00> : vector<8x128xf32>
      %17 = tpu.matmul %15, %16, %cst_15 {dimension_numbers = #tpu.dot_dimension_numbers<[1], [0], [0], [1], [0, 0, 1, 1], [], []>} : vector<8x200xf32>, vector<200x128xf32>, vector<8x128xf32> -> vector<8x128xf32>
      %c0_16 = arith.constant 0 : index
      %c0_17 = arith.constant 0 : index
      %18 = vector.load %arg5[%c0_16, %c0_17] : memref<1x128xf32, #tpu.memory_space<vmem>>, vector<1x128xf32>
      %19 = vector.broadcast %18 : vector<1x128xf32> to vector<8x128xf32>
      %20 = arith.addf %17, %19 : vector<8x128xf32>
      %c0_18 = arith.constant 0 : index
      %c0_19 = arith.constant 0 : index
      %21 = vector.load %arg6[%c0_18, %c0_19] : memref<8x128xf32, #tpu.memory_space<vmem>>, vector<8x128xf32>
      tpu.vector_store %arg6[%c0_18, %c0_19], %20 {strides = array<i32>} : memref<8x128xf32, #tpu.memory_space<vmem>>, vector<8x128xf32>,
    } else {
    }
    return
  }
  func.func @transform_0(%arg0: i32) -> (i32, i32) {
    %c0_i32 = arith.constant 0 : i32
    %c0_i32_0 = arith.constant 0 : i32
    return %c0_i32, %arg0 : i32, i32
  }
  func.func @transform_1(%arg0: i32) -> (i32, i32) {
    %c0_i32 = arith.constant 0 : i32
    %c0_i32_0 = arith.constant 0 : i32
    return %arg0, %c0_i32 : i32, i32
  }
  func.func @transform_2(%arg0: i32) -> (i32, i32) {
    %c0_i32 = arith.constant 0 : i32
    %c0_i32_0 = arith.constant 0 : i32
    %c0_i32_1 = arith.constant 0 : i32
    return %c0_i32, %c0_i32_0 : i32, i32
  }
  func.func @transform_3(%arg0: i32) -> (i32, i32) {
    %c0_i32 = arith.constant 0 : i32
    %c0_i32_0 = arith.constant 0 : i32
    %c0_i32_1 = arith.constant 0 : i32
    return %c0_i32, %c0_i32_0 : i32, i32
  }
  func.func @transform_4(%arg0: i32) -> (i32, i32) {
    %c0_i32 = arith.constant 0 : i32
    %c0_i32_0 = arith.constant 0 : i32
    %c0_i32_1 = arith.constant 0 : i32
    return %c0_i32, %c0_i32_0 : i32, i32
  }
  func.func @transform_5(%arg0: i32) -> (i32, i32) {
    %c0_i32 = arith.constant 0 : i32
    %c0_i32_0 = arith.constant 0 : i32
    %c0_i32_1 = arith.constant 0 : i32
    return %c0_i32, %c0_i32_0 : i32, i32
  }
}

</mosaic_0001>

<bundles_post_ra>
// kernel: voice_qual_encoder_padded.1
= control target key start
LH: loop header
LB: loop body
LE: loop exit
PB: predicated region body
PF: predicated region fallthrough
CT: control target
= control target key end

     0   :  { %10 = vsyncpa [#allocation4], 0  ;;  %s9542_s0 = inlined_call_operand.vmem [shape: f32[8,81920], index: 0, kind: input, shape index: {}]   ;;  %s9543_s1 = inlined_call_operand.hbm [shape: f32[81920,200], index: 1, kind: input, shape index: {}]   ;;  %s9544_s2 = inlined_call_operand.vmem [shape: f32[1,200], index: 2, kind: input, shape index: {}]   ;;  %s9545_s3 = inlined_call_operand.vmem [shape: f32[200,128], index: 3, kind: input, shape index: {}]   ;;  %s9546_s4 = inlined_call_operand.vmem [shape: f32[1,128], index: 4, kind: input, shape index: {}]   ;;  %s9547_s5 = inlined_call_operand.hbm [shape: f32[8,128], index: 5, kind: output, shape index: {}]  }
   0x1   :  { %12 = vsyncpa [#allocation4 + $0x1], 0 }
   0x2   :  { %13 = vsyncpa [#allocation5], 0  ;;  %s7199_s18 = smov 0   ;;  %s7201_s19 = smov 0  }
   0x3   :  { %s7203_s20 = smov 0   ;;  %s7205_s21 = smov 0  }
   0x4 LB: > { %s7218_s22 = sadd.s32 4294967295, %s7160_s21   ;;  %s7221_s23 = sadd.s32 1, %s7160_s21   ;;  %s7160_s21 = sphi %s7205_s21, %s9554_s21   ;;  %s7156_s20 = sphi %s7203_s20, %s9553_s20   ;;  %s7152_s19 = sphi %s7201_s19, %s9552_s19   ;;  %s7148_s18 = sphi %s7199_s18, %s9551_s18  }
   0x5   : > { %s49_s24 = ssub.s32 %s7160_s21, %s7221_s23  ;;  %s52_s25 = sadd.s32 1, %s7156_s20 }
   0x6   : > { %p50_p0 = scmp.eq.s32.totalorder %s49_s24, 0  ;;  %p59_p1 = scmp.ne.s32.totalorder %s7156_s20, %s7152_s19 }
   0x7   : > { %p60_p2 = scmp.eq.s32.totalorder %s7160_s21, 0  ;;  %p65_p3 = scmp.ne.s32.totalorder %s7152_s19, %s7148_s18 }
   0x8   : > { %s7231_s26 = scalar_select %p50_p0, %s7156_s20, %s52_s25  }
   0x9   : > { %p61_p4 = por %p60_p2, %p59_p1  ;;  %p66_p5 = scmp.eq.s32.totalorder %s7218_s22, 0 }
   0xa   : > { %p7025_p6 = scmp.lt.s32.totalorder %s7160_s21, 10  ;;  %s191_s28 = sand.u32 1, %s7156_s20  }
   0xb   : > { %p7235_p7 = por %p66_p5, %p65_p3  ;;  %s4851_s29 = sshll.u32 %s191_s28, 14 }
   0xc   : > { %s4868_s30 = sshll.u32 %s7160_s21, 18  ;;  %s195_s9 = scalar_lea.vmem [#allocation3], %s4851_s29 }
   0xd   : > { %s7244_s8 = scalar_lea.hbm %s9543_s1, %s4868_s30  ;;  %s203_s10 = sshll.u32 %s195_s9, 4  ;;  %s7246_s10 = int_to_ptr.vmem [resolvable:$true] %s203_s10 }
   0xe   : > { %p7248_p8 = pnand %p7025_p6, %p61_p4  ;;  %s7253_s12 = scalar_lea.sflag [#allocation4], %s191_s28 }
   0xf   : > { %s7066_s13 = scalar_lea.hbm %s7244_s8, 262144  ;;  %s7071_s16 = scalar_lea.hbm %s9543_s1, 2621440 }
  0x10   : > { %p7067_p10 = scmp.ne.s32.totalorder %s7244_s8, %s7066_s13  ;;  %p7068_p11 = pneg %p7248_p8 }
  0x11   : > { %p7072_p0 = scmp.lt.u32.totalorder %s7244_s8, %s9543_s1  ;;  %p7073_p1 = scmp.lt.u32.totalorder %s7071_s16, %s7066_s13 }
  0x12   : > { %p7069_p12 = pnand %p7068_p11, %p7067_p10  ;;  %p7075_p3 = scmp.lt.u32.totalorder %s7066_s13, %s7244_s8 }
  0x13   : > { %p7074_p2 = por %p7073_p1, %p7072_p0 }
  0x14   : > { %p7070_p13 = pneg %p7069_p12 }
  0x15   : > { %p7076_p4 = por %p7075_p3, %p7074_p2 }
  0x17   : > { %p7077_p5 = pnand %p7076_p4, %p7070_p13 }
  0x19   : > { %7080 = shalt.err (!%p7077_p5)
}
  0x1a   : > { %s7081_s24 = scalar_lea.vmem %s7246_s10, 262144  ;;  %s7162_s25 = smov [#allocation3]  }
  0x1b   : > { %p7082_p6 = scmp.ne.s32.totalorder %s7246_s10, %s7081_s24  ;;  %s7086_s28 = sshll.u32 %s7162_s25, 4  ;;  %s7087_s28 = int_to_ptr.vmem [resolvable:$false] %s7086_s28 }
  0x1c   : > { %s7088_s29 = scalar_lea.vmem %s7087_s28, 524288  ;;  %p7089_p9 = scmp.lt.s32.totalorder %s7246_s10, %s7087_s28 }
  0x1d   : > { %p7084_p10 = pnand %p7082_p6, %p7068_p11  ;;  %p7090_p0 = scmp.lt.s32.totalorder %s7088_s29, %s7081_s24 }
  0x1f   : > { %p7085_p12 = pneg %p7084_p10  ;;  %p7091_p1 = por %p7090_p0, %p7089_p9 }
  0x21   : > { %p7092_p2 = pnand %p7091_p1, %p7085_p12 }
  0x23   : > { %7095 = shalt.err (!%p7092_p2)
}
  0x24   : > { %s7163_s30 = smov 256   ;;  %s7164_s6 = smov 16  }
  0x25   : > { %7024 = dma.hbm_to_vmem [thread:$0]  (!%p7248_p8), %s7244_s8, 262144, %s7246_s10, %s7253_s12, %s7163_s30, %s7163_s30, %s7164_s6  }
  0x26   : > { %p211_p11 = scmp.lt.s32.totalorder %s7160_s21, 11  ;;  %p9550_p13 = scmp.ge.s32.totalorder %s7160_s21, 1 }
  0x28   : > { %p212_p3 = pnand %p9550_p13, %p211_p11 }
  0x29   : > { %s217_s7 = sand.u32 (!%p212_p3), 1, %s7152_s19  }
  0x2a   : > { %215 = sbr.rel (%p212_p3) target bundleno = 1555 (0x613), region = 40  ;;  %s4856_s9 = sshll.u32 (!%p212_p3), %s217_s7, 14 }
  0x2b   : > { %s218_s13 = scalar_lea.sflag (!%p212_p3), [#allocation4], %s217_s7  ;;  %s7285_s14 = scalar_lea.vmem (!%p212_p3), [#allocation3], %s4856_s9 }
  0x31   : > { %7139 = dma.done.wait (%p7235_p7), %s218_s13, 262144  }
  0x32   : > { %7141 = vsyncadd (%p7235_p7), %s218_s13, 4294705152  ;;  %s4857_s15 = sshll.u32 %s7218_s22, 6  ;;  %p4859_p8 = scmp.ne.s32.totalorder %s7218_s22, 0 }
  0x33   : > { %p249_p9 = scmp.lt.s32.totalorder %s4857_s15, 639  ;;  %vm260_vm0 = vcmask (!%p4859_p8), 588800   ;;  %v7165_v0 = vmov (!%p4859_p8), 0.0  }
  0x34   : > { %258 = sbr.rel (%p4859_p8) target bundleno = 59 (0x3b), region = 48  ;;  %259 = vst [vmem:[#allocation2] sm:$0xff] (!%p4859_p8), %v7165_v0  ;;  %261 = vst.msk [vmem:[#allocation2 + $0x8] sm:$0xff] (!%p4859_p8), %vm260_vm0, %v7165_v0 }
  0x35   : > { %s9556_s15 = smov (!%p249_p9, %s4857_s15), 639 }
  0x36   : > { %s4858_s8 = sshll.u32 %s9556_s15, 3 }
  0x37   : > { %s7295_s11 = scalar_lea.vmem %s9542_s0, %s4858_s8 }
  0x3b PF: > { %v329_v1 = vld [vmem:[%s7285_s14 + $0x8] sm:$0xff]  ;;  %v331_v2 = vld [vmem:[%s7285_s14 + $0x18] sm:$0xff]  ;;  %v328_v6 = vld [vmem:[%s7285_s14] sm:$0xff]  ;;  %vm4651_vm1 = vcmask 588800   ;;  %p4860_p7 = scmp.ne.s32.totalorder %s7218_s22, 9 }
  0x3c   : > { %v1353_v3 = vld [vmem:[%s7285_s14 + $0x2008] sm:$0xff]  ;;  %v4869_v4 = vpack.c.bf16 %v331_v2, %v329_v1  ;;  %v1355_v5 = vld [vmem:[%s7285_s14 + $0x2018] sm:$0xff]  ;;  %v330_v7 = vld [vmem:[%s7285_s14 + $0x10] sm:$0xff] }
  0x3d   : > { %v5893_v8 = vpack.c.bf16 %v1355_v5, %v1353_v3  ;;  %v4871_v9 = vpack.c.bf16 %v330_v7, %v328_v6  ;;  %v1352_v10 = vld [vmem:[%s7285_s14 + $0x2000] sm:$0xff]  ;;  %v1354_v11 = vld [vmem:[%s7285_s14 + $0x2010] sm:$0xff]  ;;  %v333_v12 = vld [vmem:[%s7285_s14 + $0x28] sm:$0xff] }
  0x3e   : > { %4870 = vmatprep.subr.bf16.mxu1 %v4869_v4  ;;  %v5895_v13 = vpack.c.bf16 %v1354_v11, %v1352_v10  ;;  %v335_v14 = vld [vmem:[%s7285_s14 + $0x38] sm:$0xff]  ;;  %v1357_v15 = vld [vmem:[%s7285_s14 + $0x2028] sm:$0xff]  ;;  %v332_v19 = vld [vmem:[%s7285_s14 + $0x20] sm:$0xff] }
  0x3f   : > { %v1359_v16 = vld [vmem:[%s7285_s14 + $0x2038] sm:$0xff]  ;;  %5894 = vmatprep.subr.bf16.mxu0 %v5893_v8  ;;  %4872 = vmatpush1.bf16.msra.mxu1 %v4871_v9  ;;  %v4873_v17 = vpack.c.bf16 %v335_v14, %v333_v12  ;;  %v334_v20 = vld [vmem:[%s7285_s14 + $0x30] sm:$0xff]  ;;  %v1356_v21 = vld [vmem:[%s7285_s14 + $0x2020] sm:$0xff] }
  0x40   : > { %v5897_v18 = vpack.c.bf16 %v1359_v16, %v1357_v15  ;;  %5896 = vmatpush1.bf16.msra.mxu0 %v5895_v13  ;;  %v4875_v22 = vpack.c.bf16 %v334_v20, %v332_v19  ;;  %v1358_v23 = vld [vmem:[%s7285_s14 + $0x2030] sm:$0xff]  ;;  %v337_v24 = vld [vmem:[%s7285_s14 + $0x48] sm:$0xff]  ;;  %v339_v25 = vld [vmem:[%s7285_s14 + $0x58] sm:$0xff] }
  0x41   : > { %4874 = vmatprep.subr.bf16.mxu1 %v4873_v17  ;;  %v5899_v26 = vpack.c.bf16 %v1358_v23, %v1356_v21  ;;  %v4877_v27 = vpack.c.bf16 %v339_v25, %v337_v24  ;;  %v1361_v28 = vld [vmem:[%s7285_s14 + $0x2048] sm:$0xff]  ;;  %v1363_v29 = vld [vmem:[%s7285_s14 + $0x2058] sm:$0xff]  ;;  %v336_v30 = vld [vmem:[%s7285_s14 + $0x40] sm:$0xff] }
  0x42   : > { %5898 = vmatprep.subr.bf16.mxu0 %v5897_v18  ;;  %v5901_v31 = vpack.c.bf16 %v1363_v29, %v1361_v28  ;;  %v338_v32 = vld [vmem:[%s7285_s14 + $0x50] sm:$0xff]  ;;  %v1360_v33 = vld [vmem:[%s7285_s14 + $0x2040] sm:$0xff]  ;;  %v341_v36 = vld [vmem:[%s7285_s14 + $0x68] sm:$0xff] }
  0x43   : > { %v1362_v34 = vld [vmem:[%s7285_s14 + $0x2050] sm:$0xff]  ;;  %4876 = vmatpush1.bf16.msra.mxu1 %v4875_v22  ;;  %v4879_v35 = vpack.c.bf16 %v338_v32, %v336_v30  ;;  %v343_v37 = vld [vmem:[%s7285_s14 + $0x78] sm:$0xff]  ;;  %v1365_v38 = vld [vmem:[%s7285_s14 + $0x2068] sm:$0xff] }
  0x44   : > { %5900 = vmatpush1.bf16.msra.mxu0 %v5899_v26  ;;  %4878 = vmatprep.subr.bf16.mxu1 %v4877_v27  ;;  %v5903_v39 = vpack.c.bf16 %v1362_v34, %v1360_v33  ;;  %v4881_v40 = vpack.c.bf16 %v343_v37, %v341_v36  ;;  %v1367_v41 = vld [vmem:[%s7285_s14 + $0x2078] sm:$0xff]  ;;  %v340_v42 = vld [vmem:[%s7285_s14 + $0x60] sm:$0xff]  ;;  %v342_v43 = vld [vmem:[%s7285_s14 + $0x70] sm:$0xff] }
  0x45   : > { %5902 = vmatprep.subr.bf16.mxu0 %v5901_v31  ;;  %v5905_v44 = vpack.c.bf16 %v1367_v41, %v1365_v38  ;;  %v1364_v45 = vld [vmem:[%s7285_s14 + $0x2060] sm:$0xff]  ;;  %v1366_v46 = vld [vmem:[%s7285_s14 + $0x2070] sm:$0xff]  ;;  %v345_v47 = vld [vmem:[%s7285_s14 + $0x88] sm:$0xff]  ;;  %v4883_v51 = vpack.c.bf16 %v342_v43, %v340_v42 }
  0x46   : > { %v347_v48 = vld [vmem:[%s7285_s14 + $0x98] sm:$0xff]  ;;  %v1369_v49 = vld [vmem:[%s7285_s14 + $0x2088] sm:$0xff]  ;;  %v5907_v52 = vpack.c.bf16 %v1366_v46, %v1364_v45  ;;  %v344_v54 = vld [vmem:[%s7285_s14 + $0x80] sm:$0xff] }
  0x47   : > { %v1371_v50 = vld [vmem:[%s7285_s14 + $0x2098] sm:$0xff]  ;;  %4880 = vmatpush1.bf16.msra.mxu1 %v4879_v35  ;;  %v4885_v53 = vpack.c.bf16 %v347_v48, %v345_v47  ;;  %v346_v55 = vld [vmem:[%s7285_s14 + $0x90] sm:$0xff]  ;;  %v1368_v56 = vld [vmem:[%s7285_s14 + $0x2080] sm:$0xff] }
  0x48   : > { %5904 = vmatpush1.bf16.msra.mxu0 %v5903_v39  ;;  %4882 = vmatprep.subr.bf16.mxu1 %v4881_v40  ;;  %v5909_v57 = vpack.c.bf16 %v1371_v50, %v1369_v49  ;;  %v1370_v58 = vld [vmem:[%s7285_s14 + $0x2090] sm:$0xff]  ;;  %v349_v59 = vld [vmem:[%s7285_s14 + $0xa8] sm:$0xff]  ;;  %v351_v60 = vld [vmem:[%s7285_s14 + $0xb8] sm:$0xff]  ;;  %v4887_v63 = vpack.c.bf16 %v346_v55, %v344_v54 }
  0x49   : > { %5906 = vmatprep.subr.bf16.mxu0 %v5905_v44  ;;  %v1373_v61 = vld [vmem:[%s7285_s14 + $0x20a8] sm:$0xff]  ;;  %v1375_v62 = vld [vmem:[%s7285_s14 + $0x20b8] sm:$0xff]  ;;  %v5911_v0 = vpack.c.bf16 %v1370_v58, %v1368_v56  ;;  %v4889_v1 = vpack.c.bf16 %v351_v60, %v349_v59  ;;  %v348_v2 = vld [vmem:[%s7285_s14 + $0xa0] sm:$0xff] }
  0x4a   : > { %v350_v3 = vld [vmem:[%s7285_s14 + $0xb0] sm:$0xff]  ;;  %v1372_v4 = vld [vmem:[%s7285_s14 + $0x20a0] sm:$0xff]  ;;  %v5913_v5 = vpack.c.bf16 %v1375_v62, %v1373_v61  ;;  %v353_v7 = vld [vmem:[%s7285_s14 + $0xc8] sm:$0xff] }
  0x4b   : > { %4884 = vmatpush1.bf16.msra.mxu1 %v4883_v51  ;;  %v1374_v6 = vld [vmem:[%s7285_s14 + $0x20b0] sm:$0xff]  ;;  %v355_v8 = vld [vmem:[%s7285_s14 + $0xd8] sm:$0xff]  ;;  %v1377_v9 = vld [vmem:[%s7285_s14 + $0x20c8] sm:$0xff]  ;;  %v4891_v11 = vpack.c.bf16 %v350_v3, %v348_v2 }
  0x4c   : > { %5908 = vmatpush1.bf16.msra.mxu0 %v5907_v52  ;;  %4886 = vmatprep.subr.bf16.mxu1 %v4885_v53  ;;  %v1379_v10 = vld [vmem:[%s7285_s14 + $0x20d8] sm:$0xff]  ;;  %v5915_v12 = vpack.c.bf16 %v1374_v6, %v1372_v4  ;;  %v4893_v13 = vpack.c.bf16 %v355_v8, %v353_v7  ;;  %v352_v14 = vld [vmem:[%s7285_s14 + $0xc0] sm:$0xff]  ;;  %v354_v15 = vld [vmem:[%s7285_s14 + $0xd0] sm:$0xff] }
  0x4d   : > { %5910 = vmatprep.subr.bf16.mxu0 %v5909_v57  ;;  %v1376_v16 = vld [vmem:[%s7285_s14 + $0x20c0] sm:$0xff]  ;;  %v5917_v17 = vpack.c.bf16 %v1379_v10, %v1377_v9  ;;  %v1378_v18 = vld [vmem:[%s7285_s14 + $0x20d0] sm:$0xff]  ;;  %v357_v19 = vld [vmem:[%s7285_s14 + $0xe8] sm:$0xff]  ;;  %v4895_v23 = vpack.c.bf16 %v354_v15, %v352_v14 }
  0x4e   : > { %v359_v20 = vld [vmem:[%s7285_s14 + $0xf8] sm:$0xff]  ;;  %v1381_v21 = vld [vmem:[%s7285_s14 + $0x20e8] sm:$0xff]  ;;  %v5919_v24 = vpack.c.bf16 %v1378_v18, %v1376_v16  ;;  %v356_v26 = vld [vmem:[%s7285_s14 + $0xe0] sm:$0xff] }
  0x4f   : > { %4888 = vmatpush1.bf16.msra.mxu1 %v4887_v63  ;;  %v1383_v22 = vld [vmem:[%s7285_s14 + $0x20f8] sm:$0xff]  ;;  %v4897_v25 = vpack.c.bf16 %v359_v20, %v357_v19  ;;  %v358_v27 = vld [vmem:[%s7285_s14 + $0xf0] sm:$0xff]  ;;  %v1380_v28 = vld [vmem:[%s7285_s14 + $0x20e0] sm:$0xff] }
  0x50   : > { %5912 = vmatpush1.bf16.msra.mxu0 %v5911_v0  ;;  %4890 = vmatprep.subr.bf16.mxu1 %v4889_v1  ;;  %v5921_v29 = vpack.c.bf16 %v1383_v22, %v1381_v21  ;;  %v1382_v30 = vld [vmem:[%s7285_s14 + $0x20f0] sm:$0xff]  ;;  %v361_v31 = vld [vmem:[%s7285_s14 + $0x108] sm:$0xff]  ;;  %v363_v32 = vld [vmem:[%s7285_s14 + $0x118] sm:$0xff]  ;;  %v4899_v35 = vpack.c.bf16 %v358_v27, %v356_v26 }
  0x51   : > { %5914 = vmatprep.subr.bf16.mxu0 %v5913_v5  ;;  %v1385_v33 = vld [vmem:[%s7285_s14 + $0x2108] sm:$0xff]  ;;  %v1387_v34 = vld [vmem:[%s7285_s14 + $0x2118] sm:$0xff]  ;;  %v5923_v36 = vpack.c.bf16 %v1382_v30, %v1380_v28  ;;  %v4901_v37 = vpack.c.bf16 %v363_v32, %v361_v31  ;;  %v360_v38 = vld [vmem:[%s7285_s14 + $0x100] sm:$0xff] }
  0x52   : > { %v362_v39 = vld [vmem:[%s7285_s14 + $0x110] sm:$0xff]  ;;  %v1384_v40 = vld [vmem:[%s7285_s14 + $0x2100] sm:$0xff]  ;;  %v5925_v41 = vpack.c.bf16 %v1387_v34, %v1385_v33  ;;  %v365_v43 = vld [vmem:[%s7285_s14 + $0x128] sm:$0xff] }
  0x53   : > { %4892 = vmatpush1.bf16.msra.mxu1 %v4891_v11  ;;  %v1386_v42 = vld [vmem:[%s7285_s14 + $0x2110] sm:$0xff]  ;;  %v367_v44 = vld [vmem:[%s7285_s14 + $0x138] sm:$0xff]  ;;  %v1389_v45 = vld [vmem:[%s7285_s14 + $0x2128] sm:$0xff]  ;;  %v4903_v47 = vpack.c.bf16 %v362_v39, %v360_v38 }
  0x54   : > { %5916 = vmatpush1.bf16.msra.mxu0 %v5915_v12  ;;  %4894 = vmatprep.subr.bf16.mxu1 %v4893_v13  ;;  %v1391_v46 = vld [vmem:[%s7285_s14 + $0x2138] sm:$0xff]  ;;  %v5927_v48 = vpack.c.bf16 %v1386_v42, %v1384_v40  ;;  %v4905_v49 = vpack.c.bf16 %v367_v44, %v365_v43  ;;  %v364_v50 = vld [vmem:[%s7285_s14 + $0x120] sm:$0xff]  ;;  %v366_v51 = vld [vmem:[%s7285_s14 + $0x130] sm:$0xff] }
  0x55   : > { %5918 = vmatprep.subr.bf16.mxu0 %v5917_v17  ;;  %v1388_v52 = vld [vmem:[%s7285_s14 + $0x2120] sm:$0xff]  ;;  %v5929_v53 = vpack.c.bf16 %v1391_v46, %v1389_v45  ;;  %v1390_v54 = vld [vmem:[%s7285_s14 + $0x2130] sm:$0xff]  ;;  %v369_v55 = vld [vmem:[%s7285_s14 + $0x148] sm:$0xff]  ;;  %v4907_v59 = vpack.c.bf16 %v366_v51, %v364_v50 }
  0x56   : > { %v371_v56 = vld [vmem:[%s7285_s14 + $0x158] sm:$0xff]  ;;  %v1393_v57 = vld [vmem:[%s7285_s14 + $0x2148] sm:$0xff]  ;;  %v5931_v60 = vpack.c.bf16 %v1390_v54, %v1388_v52  ;;  %v368_v62 = vld [vmem:[%s7285_s14 + $0x140] sm:$0xff] }
  0x57   : > { %4896 = vmatpush1.bf16.msra.mxu1 %v4895_v23  ;;  %v1395_v58 = vld [vmem:[%s7285_s14 + $0x2158] sm:$0xff]  ;;  %v4909_v61 = vpack.c.bf16 %v371_v56, %v369_v55  ;;  %v370_v63 = vld [vmem:[%s7285_s14 + $0x150] sm:$0xff]  ;;  %v1392_v0 = vld [vmem:[%s7285_s14 + $0x2140] sm:$0xff] }
  0x58   : > { %5920 = vmatpush1.bf16.msra.mxu0 %v5919_v24  ;;  %4898 = vmatprep.subr.bf16.mxu1 %v4897_v25  ;;  %v5933_v1 = vpack.c.bf16 %v1395_v58, %v1393_v57  ;;  %v1394_v2 = vld [vmem:[%s7285_s14 + $0x2150] sm:$0xff]  ;;  %v373_v3 = vld [vmem:[%s7285_s14 + $0x168] sm:$0xff]  ;;  %v375_v4 = vld [vmem:[%s7285_s14 + $0x178] sm:$0xff]  ;;  %v4911_v7 = vpack.c.bf16 %v370_v63, %v368_v62 }
  0x59   : > { %5922 = vmatprep.subr.bf16.mxu0 %v5921_v29  ;;  %v1397_v5 = vld [vmem:[%s7285_s14 + $0x2168] sm:$0xff]  ;;  %v1399_v6 = vld [vmem:[%s7285_s14 + $0x2178] sm:$0xff]  ;;  %v372_v8 = vld [vmem:[%s7285_s14 + $0x160] sm:$0xff]  ;;  %v5935_v9 = vpack.c.bf16 %v1394_v2, %v1392_v0  ;;  %v4913_v10 = vpack.c.bf16 %v375_v4, %v373_v3 }
  0x5a   : > { %v374_v11 = vld [vmem:[%s7285_s14 + $0x170] sm:$0xff]  ;;  %v1396_v12 = vld [vmem:[%s7285_s14 + $0x2160] sm:$0xff]  ;;  %v5937_v14 = vpack.c.bf16 %v1399_v6, %v1397_v5  ;;  %v377_v15 = vld [vmem:[%s7285_s14 + $0x188] sm:$0xff] }
  0x5b   : > { %4900 = vmatpush1.bf16.msra.mxu1 %v4899_v35  ;;  %v1398_v13 = vld [vmem:[%s7285_s14 + $0x2170] sm:$0xff]  ;;  %v379_v16 = vld [vmem:[%s7285_s14 + $0x198] sm:$0xff]  ;;  %v1401_v18 = vld [vmem:[%s7285_s14 + $0x2188] sm:$0xff]  ;;  %v4915_v21 = vpack.c.bf16 %v374_v11, %v372_v8 }
  0x5c   : > { %5924 = vmatpush1.bf16.msra.mxu0 %v5923_v36  ;;  %4902 = vmatprep.subr.bf16.mxu1 %v4901_v37  ;;  %v265_v17 = vld [vmem:[%s7295_s11 + $0x8] sm:$0xff]  ;;  %v5939_v22 = vpack.c.bf16 %v1398_v13, %v1396_v12  ;;  %v4917_v23 = vpack.c.bf16 %v379_v16, %v377_v15  ;;  %v376_v24 = vld [vmem:[%s7285_s14 + $0x180] sm:$0xff]  ;;  %v378_v25 = vld [vmem:[%s7285_s14 + $0x190] sm:$0xff] }
  0x5d   : > { %5926 = vmatprep.subr.bf16.mxu0 %v5925_v41  ;;  %v1403_v19 = vld [vmem:[%s7285_s14 + $0x2198] sm:$0xff]  ;;  %2440 = vmatprep.mubr.f32.mxu1 %v265_v17  ;;  %v1400_v26 = vld [vmem:[%s7285_s14 + $0x2180] sm:$0xff]  ;;  %v1402_v28 = vld [vmem:[%s7285_s14 + $0x2190] sm:$0xff]  ;;  %v4919_v33 = vpack.c.bf16 %v378_v25, %v376_v24 }
  0x5e   : > { %v297_v20 = vld [vmem:[%s7295_s11 + $0x108] sm:$0xff]  ;;  %v5941_v27 = vpack.c.bf16 %v1403_v19, %v1401_v18  ;;  %v381_v29 = vld [vmem:[%s7285_s14 + $0x1a8] sm:$0xff]  ;;  %v5943_v34 = vpack.c.bf16 %v1402_v28, %v1400_v26  ;;  %v380_v36 = vld [vmem:[%s7285_s14 + $0x1a0] sm:$0xff] }
  0x5f   : > { %4904 = vmatpush1.bf16.msra.mxu1 %v4903_v47  ;;  %3576 = vmatprep.mubr.f32.mxu0 %v297_v20  ;;  %v383_v30 = vld [vmem:[%s7285_s14 + $0x1b8] sm:$0xff]  ;;  %v1405_v31 = vld [vmem:[%s7285_s14 + $0x21a8] sm:$0xff]  ;;  %v382_v37 = vld [vmem:[%s7285_s14 + $0x1b0] sm:$0xff] }
  0x60   : > { %5928 = vmatpush1.bf16.msra.mxu0 %v5927_v48  ;;  %4906 = vmatprep.subr.bf16.mxu1 %v4905_v49  ;;  %v1407_v32 = vld [vmem:[%s7285_s14 + $0x21b8] sm:$0xff]  ;;  %v4921_v35 = vpack.c.bf16 %v383_v30, %v381_v29  ;;  %v1404_v38 = vld [vmem:[%s7285_s14 + $0x21a0] sm:$0xff]  ;;  %v1406_v40 = vld [vmem:[%s7285_s14 + $0x21b0] sm:$0xff]  ;;  %v4923_v45 = vpack.c.bf16 %v382_v37, %v380_v36 }
  0x61   : > { %5930 = vmatprep.subr.bf16.mxu0 %v5929_v53  ;;  %v5945_v39 = vpack.c.bf16 %v1407_v32, %v1405_v31  ;;  %v385_v41 = vld [vmem:[%s7285_s14 + $0x1c8] sm:$0xff]  ;;  %v387_v42 = vld [vmem:[%s7285_s14 + $0x1d8] sm:$0xff]  ;;  %v5947_v46 = vpack.c.bf16 %v1406_v40, %v1404_v38  ;;  %v384_v48 = vld [vmem:[%s7285_s14 + $0x1c0] sm:$0xff] }
  0x62   : > { %v1409_v43 = vld [vmem:[%s7285_s14 + $0x21c8] sm:$0xff]  ;;  %v1411_v44 = vld [vmem:[%s7285_s14 + $0x21d8] sm:$0xff]  ;;  %v4925_v47 = vpack.c.bf16 %v387_v42, %v385_v41  ;;  %v386_v49 = vld [vmem:[%s7285_s14 + $0x1d0] sm:$0xff] }
  0x63   : > { %4908 = vmatpush1.bf16.msra.mxu1 %v4907_v59  ;;  %v1408_v50 = vld [vmem:[%s7285_s14 + $0x21c0] sm:$0xff]  ;;  %v5949_v51 = vpack.c.bf16 %v1411_v44, %v1409_v43  ;;  %v1410_v52 = vld [vmem:[%s7285_s14 + $0x21d0] sm:$0xff]  ;;  %v389_v53 = vld [vmem:[%s7285_s14 + $0x1e8] sm:$0xff]  ;;  %v4927_v57 = vpack.c.bf16 %v386_v49, %v384_v48 }
  0x64   : > { %5932 = vmatpush1.bf16.msra.mxu0 %v5931_v60  ;;  %4910 = vmatprep.subr.bf16.mxu1 %v4909_v61  ;;  %v391_v54 = vld [vmem:[%s7285_s14 + $0x1f8] sm:$0xff]  ;;  %v1413_v55 = vld [vmem:[%s7285_s14 + $0x21e8] sm:$0xff]  ;;  %v5951_v58 = vpack.c.bf16 %v1410_v52, %v1408_v50  ;;  %v388_v60 = vld [vmem:[%s7285_s14 + $0x1e0] sm:$0xff] }
  0x65   : > { %5934 = vmatprep.subr.bf16.mxu0 %v5933_v1  ;;  %v1415_v56 = vld [vmem:[%s7285_s14 + $0x21f8] sm:$0xff]  ;;  %v4929_v59 = vpack.c.bf16 %v391_v54, %v389_v53  ;;  %v390_v61 = vld [vmem:[%s7285_s14 + $0x1f0] sm:$0xff]  ;;  %v1412_v62 = vld [vmem:[%s7285_s14 + $0x21e0] sm:$0xff] }
  0x66   : > { %v5953_v63 = vpack.c.bf16 %v1415_v56, %v1413_v55  ;;  %v1414_v0 = vld [vmem:[%s7285_s14 + $0x21f0] sm:$0xff]  ;;  %v393_v1 = vld [vmem:[%s7285_s14 + $0x208] sm:$0xff]  ;;  %v395_v2 = vld [vmem:[%s7285_s14 + $0x218] sm:$0xff]  ;;  %v4931_v5 = vpack.c.bf16 %v390_v61, %v388_v60 }
  0x67   : > { %4912 = vmatpush1.bf16.msra.mxu1 %v4911_v7  ;;  %v1417_v3 = vld [vmem:[%s7285_s14 + $0x2208] sm:$0xff]  ;;  %v1419_v4 = vld [vmem:[%s7285_s14 + $0x2218] sm:$0xff]  ;;  %v5955_v6 = vpack.c.bf16 %v1414_v0, %v1412_v62  ;;  %v4933_v7 = vpack.c.bf16 %v395_v2, %v393_v1  ;;  %v392_v8 = vld [vmem:[%s7285_s14 + $0x200] sm:$0xff] }
  0x68   : > { %5936 = vmatpush1.bf16.msra.mxu0 %v5935_v9  ;;  %4914 = vmatprep.subr.bf16.mxu1 %v4913_v10  ;;  %v394_v9 = vld [vmem:[%s7285_s14 + $0x210] sm:$0xff]  ;;  %v1416_v10 = vld [vmem:[%s7285_s14 + $0x2200] sm:$0xff]  ;;  %v5957_v11 = vpack.c.bf16 %v1419_v4, %v1417_v3  ;;  %v397_v13 = vld [vmem:[%s7285_s14 + $0x228] sm:$0xff] }
  0x69   : > { %5938 = vmatprep.subr.bf16.mxu0 %v5937_v14  ;;  %v1418_v12 = vld [vmem:[%s7285_s14 + $0x2210] sm:$0xff]  ;;  %v399_v14 = vld [vmem:[%s7285_s14 + $0x238] sm:$0xff]  ;;  %v1421_v15 = vld [vmem:[%s7285_s14 + $0x2228] sm:$0xff]  ;;  %v4935_v18 = vpack.c.bf16 %v394_v9, %v392_v8 }
  0x6a   : > { %v1423_v16 = vld [vmem:[%s7285_s14 + $0x2238] sm:$0xff]  ;;  %v264_v17 = vld [vmem:[%s7295_s11] sm:$0xff]  ;;  %v5959_v20 = vpack.c.bf16 %v1418_v12, %v1416_v10  ;;  %v1420_v24 = vld [vmem:[%s7285_s14 + $0x2220] sm:$0xff] }
  0x6b   : > { %4916 = vmatpush1.bf16.msra.mxu1 %v4915_v21  ;;  %v296_v19 = vld [vmem:[%s7295_s11 + $0x100] sm:$0xff]  ;;  %v4937_v21 = vpack.c.bf16 %v399_v14, %v397_v13  ;;  %v5961_v25 = vpack.c.bf16 %v1423_v16, %v1421_v15  ;;  %v403_v28 = vld [vmem:[%s7285_s14 + $0x258] sm:$0xff]  ;;  %v1425_v29 = vld [vmem:[%s7285_s14 + $0x2248] sm:$0xff] }
  0x6c   : > { %5940 = vmatpush1.bf16.msra.mxu0 %v5939_v22  ;;  %4918 = vmatprep.subr.bf16.mxu1 %v4917_v23  ;;  %v396_v22 = vld [vmem:[%s7285_s14 + $0x220] sm:$0xff]  ;;  %v398_v23 = vld [vmem:[%s7285_s14 + $0x230] sm:$0xff]  ;;  %v1427_v30 = vld [vmem:[%s7285_s14 + $0x2258] sm:$0xff] }
  0x6d   : > { %5942 = vmatprep.subr.bf16.mxu0 %v5941_v27  ;;  %v1422_v26 = vld [vmem:[%s7285_s14 + $0x2230] sm:$0xff]  ;;  %v401_v27 = vld [vmem:[%s7285_s14 + $0x248] sm:$0xff]  ;;  %v4939_v31 = vpack.c.bf16 %v398_v23, %v396_v22  ;;  %v1424_v36 = vld [vmem:[%s7285_s14 + $0x2240] sm:$0xff]  ;;  %v5965_v37 = vpack.c.bf16 %v1427_v30, %v1425_v29 }
  0x6e   : > { %v5963_v32 = vpack.c.bf16 %v1422_v26, %v1420_v24  ;;  %v1426_v38 = vld [vmem:[%s7285_s14 + $0x2250] sm:$0xff]  ;;  %v407_v40 = vld [vmem:[%s7285_s14 + $0x278] sm:$0xff]  ;;  %v1429_v41 = vld [vmem:[%s7285_s14 + $0x2268] sm:$0xff] }
  0x6f   : > { %4920 = vmatpush1.bf16.msra.mxu1 %v4919_v33  ;;  %v4941_v33 = vpack.c.bf16 %v403_v28, %v401_v27  ;;  %v1431_v42 = vld [vmem:[%s7285_s14 + $0x2278] sm:$0xff]  ;;  %v5967_v44 = vpack.c.bf16 %v1426_v38, %v1424_v36  ;;  %v1428_v48 = vld [vmem:[%s7285_s14 + $0x2260] sm:$0xff]  ;;  %v1430_v50 = vld [vmem:[%s7285_s14 + $0x2270] sm:$0xff] }
  0x70   : > { %5944 = vmatpush1.bf16.msra.mxu0 %v5943_v34  ;;  %4922 = vmatprep.subr.bf16.mxu1 %v4921_v35  ;;  %v400_v34 = vld [vmem:[%s7285_s14 + $0x240] sm:$0xff]  ;;  %v402_v35 = vld [vmem:[%s7285_s14 + $0x250] sm:$0xff]  ;;  %v5969_v49 = vpack.c.bf16 %v1431_v42, %v1429_v41  ;;  %v411_v52 = vld [vmem:[%s7285_s14 + $0x298] sm:$0xff]  ;;  %v5971_v56 = vpack.c.bf16 %v1430_v50, %v1428_v48 }
  0x71   : > { %5946 = vmatprep.subr.bf16.mxu0 %v5945_v39  ;;  %v405_v39 = vld [vmem:[%s7285_s14 + $0x268] sm:$0xff]  ;;  %v4943_v43 = vpack.c.bf16 %v402_v35, %v400_v34  ;;  %v1435_v54 = vld [vmem:[%s7285_s14 + $0x2298] sm:$0xff]  ;;  %v1432_v60 = vld [vmem:[%s7285_s14 + $0x2280] sm:$0xff] }
  0x72   : > { %v1433_v53 = vld [vmem:[%s7285_s14 + $0x2288] sm:$0xff]  ;;  %v1434_v62 = vld [vmem:[%s7285_s14 + $0x2290] sm:$0xff]  ;;  %v415_v0 = vld [vmem:[%s7285_s14 + $0x2b8] sm:$0xff] }
  0x73   : > { %4924 = vmatpush1.bf16.msra.mxu1 %v4923_v45  ;;  %v4945_v45 = vpack.c.bf16 %v407_v40, %v405_v39  ;;  %v5973_v61 = vpack.c.bf16 %v1435_v54, %v1433_v53  ;;  %v1437_v1 = vld [vmem:[%s7285_s14 + $0x22a8] sm:$0xff]  ;;  %v1439_v2 = vld [vmem:[%s7285_s14 + $0x22b8] sm:$0xff]  ;;  %v5975_v4 = vpack.c.bf16 %v1434_v62, %v1432_v60  ;;  %v1436_v8 = vld [vmem:[%s7285_s14 + $0x22a0] sm:$0xff] }
  0x74   : > { %5948 = vmatpush1.bf16.msra.mxu0 %v5947_v46  ;;  %4926 = vmatprep.subr.bf16.mxu1 %v4925_v47  ;;  %v404_v46 = vld [vmem:[%s7285_s14 + $0x260] sm:$0xff]  ;;  %v406_v47 = vld [vmem:[%s7285_s14 + $0x270] sm:$0xff]  ;;  %v5977_v9 = vpack.c.bf16 %v1439_v2, %v1437_v1  ;;  %v419_v12 = vld [vmem:[%s7285_s14 + $0x2d8] sm:$0xff] }
  0x75   : > { %5950 = vmatprep.subr.bf16.mxu0 %v5949_v51  ;;  %v409_v51 = vld [vmem:[%s7285_s14 + $0x288] sm:$0xff]  ;;  %v4947_v55 = vpack.c.bf16 %v406_v47, %v404_v46  ;;  %v1438_v10 = vld [vmem:[%s7285_s14 + $0x22b0] sm:$0xff]  ;;  %v1443_v14 = vld [vmem:[%s7285_s14 + $0x22d8] sm:$0xff] }
  0x76   : > { %v1441_v13 = vld [vmem:[%s7285_s14 + $0x22c8] sm:$0xff]  ;;  %v416_v16 = vld [vmem:[%s7285_s14 + $0x2c0] sm:$0xff]  ;;  %v423_v24 = vld [vmem:[%s7285_s14 + $0x2f8] sm:$0xff] }
  0x77   : > { %4928 = vmatpush1.bf16.msra.mxu1 %v4927_v57  ;;  %v4949_v57 = vpack.c.bf16 %v411_v52, %v409_v51  ;;  %v5981_v22 = vpack.c.bf16 %v1443_v14, %v1441_v13  ;;  %v421_v23 = vld [vmem:[%s7285_s14 + $0x2e8] sm:$0xff]  ;;  %v1447_v27 = vld [vmem:[%s7285_s14 + $0x22f8] sm:$0xff]  ;;  %v1444_v34 = vld [vmem:[%s7285_s14 + $0x22e0] sm:$0xff] }
  0x78   : > { %5952 = vmatpush1.bf16.msra.mxu0 %v5951_v58  ;;  %4930 = vmatprep.subr.bf16.mxu1 %v4929_v59  ;;  %v408_v58 = vld [vmem:[%s7285_s14 + $0x280] sm:$0xff]  ;;  %v410_v59 = vld [vmem:[%s7285_s14 + $0x290] sm:$0xff]  ;;  %v1445_v26 = vld [vmem:[%s7285_s14 + $0x22e8] sm:$0xff] }
  0x79   : > { %5954 = vmatprep.subr.bf16.mxu0 %v5953_v63  ;;  %v413_v63 = vld [vmem:[%s7285_s14 + $0x2a8] sm:$0xff]  ;;  %v4951_v3 = vpack.c.bf16 %v410_v59, %v408_v58  ;;  %v5985_v35 = vpack.c.bf16 %v1447_v27, %v1445_v26  ;;  %v1446_v36 = vld [vmem:[%s7285_s14 + $0x22f0] sm:$0xff]  ;;  %v427_v38 = vld [vmem:[%s7285_s14 + $0x318] sm:$0xff] }
  0x7a   : > { %v299_v28 = vld [vmem:[%s7295_s11 + $0x118] sm:$0xff]  ;;  %v1451_v40 = vld [vmem:[%s7285_s14 + $0x2318] sm:$0xff]  ;;  %v5987_v42 = vpack.c.bf16 %v1446_v36, %v1444_v34  ;;  %v1448_v46 = vld [vmem:[%s7285_s14 + $0x2300] sm:$0xff] }
  0x7b   : > { %4932 = vmatpush1.bf16.msra.mxu1 %v4931_v5  ;;  %v4953_v5 = vpack.c.bf16 %v415_v0, %v413_v63  ;;  %v1449_v39 = vld [vmem:[%s7285_s14 + $0x2308] sm:$0xff]  ;;  %v1450_v48 = vld [vmem:[%s7285_s14 + $0x2310] sm:$0xff]  ;;  %v431_v50 = vld [vmem:[%s7285_s14 + $0x338] sm:$0xff] }
  0x7c   : > { %5956 = vmatpush1.bf16.msra.mxu0 %v5955_v6  ;;  %4934 = vmatprep.subr.bf16.mxu1 %v4933_v7  ;;  %v412_v6 = vld [vmem:[%s7285_s14 + $0x2a0] sm:$0xff]  ;;  %v414_v7 = vld [vmem:[%s7285_s14 + $0x2b0] sm:$0xff]  ;;  %v5989_v47 = vpack.c.bf16 %v1451_v40, %v1449_v39  ;;  %v1453_v51 = vld [vmem:[%s7285_s14 + $0x2328] sm:$0xff]  ;;  %v5991_v54 = vpack.c.bf16 %v1450_v48, %v1448_v46 }
  0x7d   : > { %5958 = vmatprep.subr.bf16.mxu0 %v5957_v11  ;;  %v417_v11 = vld [vmem:[%s7285_s14 + $0x2c8] sm:$0xff]  ;;  %v4955_v15 = vpack.c.bf16 %v414_v7, %v412_v6  ;;  %v1455_v52 = vld [vmem:[%s7285_s14 + $0x2338] sm:$0xff]  ;;  %v1452_v58 = vld [vmem:[%s7285_s14 + $0x2320] sm:$0xff] }
  0x7e   : > { %2441 = vmatmul.mubr.f32.vlgmr.msra.gmra.mrb[0].mxu1 %v264_v17  ;;  %v5979_v17 = vpack.c.bf16 %v1438_v10, %v1436_v8  ;;  %v5993_v59 = vpack.c.bf16 %v1455_v52, %v1453_v51  ;;  %v1454_v60 = vld [vmem:[%s7285_s14 + $0x2330] sm:$0xff]  ;;  %v435_v62 = vld [vmem:[%s7285_s14 + $0x358] sm:$0xff]  ;;  %v1457_v63 = vld [vmem:[%s7285_s14 + $0x2348] sm:$0xff] }
  0x7f   : > { %4936 = vmatpush1.bf16.msra.mxu1 %v4935_v18  ;;  %3577 = vmatmul.mubr.f32.vlgmr.msra.gmra.mrb[0].mxu0 %v296_v19  ;;  %v4957_v18 = vpack.c.bf16 %v419_v12, %v417_v11  ;;  %v418_v19 = vld [vmem:[%s7285_s14 + $0x2d0] sm:$0xff]  ;;  %v1459_v0 = vld [vmem:[%s7285_s14 + $0x2358] sm:$0xff]  ;;  %v5995_v2 = vpack.c.bf16 %v1454_v60, %v1452_v58  ;;  %v1456_v6 = vld [vmem:[%s7285_s14 + $0x2340] sm:$0xff] }
  0x80   : > { %5960 = vmatpush1.bf16.msra.mxu0 %v5959_v20  ;;  %4938 = vmatprep.subr.bf16.mxu1 %v4937_v21  ;;  %v1440_v20 = vld [vmem:[%s7285_s14 + $0x22c0] sm:$0xff]  ;;  %v1442_v21 = vld [vmem:[%s7285_s14 + $0x22d0] sm:$0xff]  ;;  %v4959_v29 = vpack.c.bf16 %v418_v19, %v416_v16  ;;  %v5997_v7 = vpack.c.bf16 %v1459_v0, %v1457_v63  ;;  %v439_v10 = vld [vmem:[%s7285_s14 + $0x378] sm:$0xff] }
  0x81   : > { %5962 = vmatprep.subr.bf16.mxu0 %v5961_v25  ;;  %v267_v25 = vld [vmem:[%s7295_s11 + $0x18] sm:$0xff]  ;;  %3647 = vmatprep.mubr.f32.mxu0 %v299_v28  ;;  %v5983_v30 = vpack.c.bf16 %v1442_v21, %v1440_v20  ;;  %v1458_v8 = vld [vmem:[%s7285_s14 + $0x2350] sm:$0xff]  ;;  %v1463_v12 = vld [vmem:[%s7285_s14 + $0x2378] sm:$0xff] }
  0x82   : > { %2511 = vmatprep.mubr.f32.mxu1 %v267_v25  ;;  %v1461_v11 = vld [vmem:[%s7285_s14 + $0x2368] sm:$0xff]  ;;  %v5999_v14 = vpack.c.bf16 %v1458_v8, %v1456_v6  ;;  %v436_v16 = vld [vmem:[%s7285_s14 + $0x360] sm:$0xff]  ;;  %v1462_v20 = vld [vmem:[%s7285_s14 + $0x2370] sm:$0xff] }
  0x83   : > { %4940 = vmatpush1.bf16.msra.mxu1 %v4939_v31  ;;  %v4961_v31 = vpack.c.bf16 %v423_v24, %v421_v23  ;;  %v6001_v19 = vpack.c.bf16 %v1463_v12, %v1461_v11  ;;  %v441_v21 = vld [vmem:[%s7285_s14 + $0x388] sm:$0xff]  ;;  %v1467_v24 = vld [vmem:[%s7285_s14 + $0x2398] sm:$0xff]  ;;  %v440_v28 = vld [vmem:[%s7285_s14 + $0x380] sm:$0xff] }
  0x84   : > { %5964 = vmatpush1.bf16.msra.mxu0 %v5963_v32  ;;  %4942 = vmatprep.subr.bf16.mxu1 %v4941_v33  ;;  %v420_v32 = vld [vmem:[%s7285_s14 + $0x2e0] sm:$0xff]  ;;  %v422_v33 = vld [vmem:[%s7285_s14 + $0x2f0] sm:$0xff]  ;;  %v1465_v23 = vld [vmem:[%s7285_s14 + $0x2388] sm:$0xff] }
  0x85   : > { %5966 = vmatprep.subr.bf16.mxu0 %v5965_v37  ;;  %v425_v37 = vld [vmem:[%s7285_s14 + $0x308] sm:$0xff]  ;;  %v4963_v41 = vpack.c.bf16 %v422_v33, %v420_v32  ;;  %v1466_v32 = vld [vmem:[%s7285_s14 + $0x2390] sm:$0xff]  ;;  %v447_v34 = vld [vmem:[%s7285_s14 + $0x3b8] sm:$0xff] }
  0x86   : > { %v445_v33 = vld [vmem:[%s7285_s14 + $0x3a8] sm:$0xff]  ;;  %v1471_v36 = vld [vmem:[%s7285_s14 + $0x23b8] sm:$0xff]  ;;  %v444_v40 = vld [vmem:[%s7285_s14 + $0x3a0] sm:$0xff] }
  0x87   : > { %4944 = vmatpush1.bf16.msra.mxu1 %v4943_v43  ;;  %v4965_v43 = vpack.c.bf16 %v427_v38, %v425_v37  ;;  %v4985_v39 = vpack.c.bf16 %v447_v34, %v445_v33  ;;  %v451_v46 = vld [vmem:[%s7285_s14 + $0x3d8] sm:$0xff]  ;;  %v448_v52 = vld [vmem:[%s7285_s14 + $0x3c0] sm:$0xff]  ;;  %v1489_v33 = vld [vmem:[%s7285_s14 + $0x2448] sm:$0xff] }
  0x88   : > { %5968 = vmatpush1.bf16.msra.mxu0 %v5967_v44  ;;  %4946 = vmatprep.subr.bf16.mxu1 %v4945_v45  ;;  %v424_v44 = vld [vmem:[%s7285_s14 + $0x300] sm:$0xff]  ;;  %v426_v45 = vld [vmem:[%s7285_s14 + $0x310] sm:$0xff]  ;;  %v1475_v48 = vld [vmem:[%s7285_s14 + $0x23d8] sm:$0xff] }
  0x89   : > { %5970 = vmatprep.subr.bf16.mxu0 %v5969_v49  ;;  %v429_v49 = vld [vmem:[%s7285_s14 + $0x328] sm:$0xff]  ;;  %v4967_v53 = vpack.c.bf16 %v426_v45, %v424_v44  ;;  %v1470_v44 = vld [vmem:[%s7285_s14 + $0x23b0] sm:$0xff]  ;;  %v455_v58 = vld [vmem:[%s7285_s14 + $0x3f8] sm:$0xff] }
  0x8a   : > { %v449_v45 = vld [vmem:[%s7285_s14 + $0x3c8] sm:$0xff]  ;;  %v1479_v60 = vld [vmem:[%s7285_s14 + $0x23f8] sm:$0xff]  ;;  %v452_v0 = vld [vmem:[%s7285_s14 + $0x3e0] sm:$0xff] }
  0x8b   : > { %4948 = vmatpush1.bf16.msra.mxu1 %v4947_v55  ;;  %v4969_v55 = vpack.c.bf16 %v431_v50, %v429_v49  ;;  %v4989_v51 = vpack.c.bf16 %v451_v46, %v449_v45  ;;  %v459_v6 = vld [vmem:[%s7285_s14 + $0x418] sm:$0xff]  ;;  %v456_v12 = vld [vmem:[%s7285_s14 + $0x400] sm:$0xff]  ;;  %v469_v45 = vld [vmem:[%s7285_s14 + $0x468] sm:$0xff] }
  0x8c   : > { %5972 = vmatpush1.bf16.msra.mxu0 %v5971_v56  ;;  %4950 = vmatprep.subr.bf16.mxu1 %v4949_v57  ;;  %v428_v56 = vld [vmem:[%s7285_s14 + $0x320] sm:$0xff]  ;;  %v430_v57 = vld [vmem:[%s7285_s14 + $0x330] sm:$0xff]  ;;  %v1483_v8 = vld [vmem:[%s7285_s14 + $0x2418] sm:$0xff] }
  0x8d   : > { %5974 = vmatprep.subr.bf16.mxu0 %v5973_v61  ;;  %v433_v61 = vld [vmem:[%s7285_s14 + $0x348] sm:$0xff]  ;;  %v4971_v1 = vpack.c.bf16 %v430_v57, %v428_v56  ;;  %v1474_v56 = vld [vmem:[%s7285_s14 + $0x23d0] sm:$0xff]  ;;  %v1491_v34 = vld [vmem:[%s7285_s14 + $0x2458] sm:$0xff] }
  0x8e   : > { %v453_v57 = vld [vmem:[%s7285_s14 + $0x3e8] sm:$0xff]  ;;  %v471_v46 = vld [vmem:[%s7285_s14 + $0x478] sm:$0xff] }
  0x8f   : > { %4952 = vmatpush1.bf16.msra.mxu1 %v4951_v3  ;;  %v4973_v3 = vpack.c.bf16 %v435_v62, %v433_v61  ;;  %v4993_v63 = vpack.c.bf16 %v455_v58, %v453_v57  ;;  %v473_v57 = vld [vmem:[%s7285_s14 + $0x488] sm:$0xff]  ;;  %v475_v58 = vld [vmem:[%s7285_s14 + $0x498] sm:$0xff] }
  0x90   : > { %5976 = vmatpush1.bf16.msra.mxu0 %v5975_v4  ;;  %4954 = vmatprep.subr.bf16.mxu1 %v4953_v5  ;;  %v432_v4 = vld [vmem:[%s7285_s14 + $0x340] sm:$0xff]  ;;  %v434_v5 = vld [vmem:[%s7285_s14 + $0x350] sm:$0xff] }
  0x91   : > { %5978 = vmatprep.subr.bf16.mxu0 %v5977_v9  ;;  %v437_v9 = vld [vmem:[%s7285_s14 + $0x368] sm:$0xff]  ;;  %v4975_v13 = vpack.c.bf16 %v434_v5, %v432_v4  ;;  %v1478_v4 = vld [vmem:[%s7285_s14 + $0x23f0] sm:$0xff] }
  0x92   : > { %v457_v5 = vld [vmem:[%s7285_s14 + $0x408] sm:$0xff] }
  0x93   : > { %4956 = vmatpush1.bf16.msra.mxu1 %v4955_v15  ;;  %v4977_v15 = vpack.c.bf16 %v439_v10, %v437_v9  ;;  %v4997_v11 = vpack.c.bf16 %v459_v6, %v457_v5  ;;  %v477_v5 = vld [vmem:[%s7285_s14 + $0x4a8] sm:$0xff]  ;;  %v479_v6 = vld [vmem:[%s7285_s14 + $0x4b8] sm:$0xff] }
  0x94   : > { %5980 = vmatpush1.bf16.msra.mxu0 %v5979_v17  ;;  %4958 = vmatprep.subr.bf16.mxu1 %v4957_v18  ;;  %v438_v17 = vld [vmem:[%s7285_s14 + $0x370] sm:$0xff]  ;;  %v1460_v18 = vld [vmem:[%s7285_s14 + $0x2360] sm:$0xff] }
  0x95   : > { %5982 = vmatprep.subr.bf16.mxu0 %v5981_v22  ;;  %v443_v22 = vld [vmem:[%s7285_s14 + $0x398] sm:$0xff]  ;;  %v4979_v25 = vpack.c.bf16 %v438_v17, %v436_v16  ;;  %v6003_v26 = vpack.c.bf16 %v1462_v20, %v1460_v18  ;;  %v1482_v16 = vld [vmem:[%s7285_s14 + $0x2410] sm:$0xff]  ;;  %v461_v17 = vld [vmem:[%s7285_s14 + $0x428] sm:$0xff] }
  0x96   : > { %v4981_v27 = vpack.c.bf16 %v443_v22, %v441_v21  ;;  %v463_v18 = vld [vmem:[%s7285_s14 + $0x438] sm:$0xff]  ;;  %v266_v21 = vld [vmem:[%s7295_s11 + $0x10] sm:$0xff] }
  0x97   : > { %4960 = vmatpush1.bf16.msra.mxu1 %v4959_v29  ;;  %v442_v29 = vld [vmem:[%s7285_s14 + $0x390] sm:$0xff]  ;;  %v1487_v20 = vld [vmem:[%s7285_s14 + $0x2438] sm:$0xff] }
  0x98   : > { %5984 = vmatpush1.bf16.msra.mxu0 %v5983_v30  ;;  %4962 = vmatprep.subr.bf16.mxu1 %v4961_v31  ;;  %v1464_v30 = vld [vmem:[%s7285_s14 + $0x2380] sm:$0xff]  ;;  %v6005_v31 = vpack.c.bf16 %v1467_v24, %v1465_v23  ;;  %v4983_v37 = vpack.c.bf16 %v442_v29, %v440_v28 }
  0x99   : > { %5986 = vmatprep.subr.bf16.mxu0 %v5985_v35  ;;  %v1469_v35 = vld [vmem:[%s7285_s14 + $0x23a8] sm:$0xff]  ;;  %v6007_v38 = vpack.c.bf16 %v1466_v32, %v1464_v30  ;;  %v298_v23 = vld [vmem:[%s7295_s11 + $0x110] sm:$0xff]  ;;  %v1486_v30 = vld [vmem:[%s7285_s14 + $0x2430] sm:$0xff] }
  0x9a   : > { %v1484_v28 = vld [vmem:[%s7285_s14 + $0x2420] sm:$0xff]  ;;  %v467_v32 = vld [vmem:[%s7285_s14 + $0x458] sm:$0xff] }
  0x9b   : > { %4964 = vmatpush1.bf16.msra.mxu1 %v4963_v41  ;;  %v446_v41 = vld [vmem:[%s7285_s14 + $0x3b0] sm:$0xff] }
  0x9c   : > { %5988 = vmatpush1.bf16.msra.mxu0 %v5987_v42  ;;  %4966 = vmatprep.subr.bf16.mxu1 %v4965_v43  ;;  %v1468_v42 = vld [vmem:[%s7285_s14 + $0x23a0] sm:$0xff]  ;;  %v6009_v43 = vpack.c.bf16 %v1471_v36, %v1469_v35  ;;  %v4987_v49 = vpack.c.bf16 %v446_v41, %v444_v40  ;;  %v269_v35 = vld [vmem:[%s7295_s11 + $0x28] sm:$0xff]  ;;  %v466_v41 = vld [vmem:[%s7285_s14 + $0x450] sm:$0xff] }
  0x9d   : > { %5990 = vmatprep.subr.bf16.mxu0 %v5989_v47  ;;  %v1473_v47 = vld [vmem:[%s7285_s14 + $0x23c8] sm:$0xff]  ;;  %v6011_v50 = vpack.c.bf16 %v1470_v44, %v1468_v42  ;;  %v464_v40 = vld [vmem:[%s7285_s14 + $0x440] sm:$0xff]  ;;  %v1490_v44 = vld [vmem:[%s7285_s14 + $0x2450] sm:$0xff] }
  0x9e   : > { %v1488_v42 = vld [vmem:[%s7285_s14 + $0x2440] sm:$0xff] }
  0x9f   : > { %4968 = vmatpush1.bf16.msra.mxu1 %v4967_v53  ;;  %v450_v53 = vld [vmem:[%s7285_s14 + $0x3d0] sm:$0xff] }
  0xa0   : > { %5992 = vmatpush1.bf16.msra.mxu0 %v5991_v54  ;;  %4970 = vmatprep.subr.bf16.mxu1 %v4969_v55  ;;  %v1472_v54 = vld [vmem:[%s7285_s14 + $0x23c0] sm:$0xff]  ;;  %v6013_v55 = vpack.c.bf16 %v1475_v48, %v1473_v47  ;;  %v4991_v61 = vpack.c.bf16 %v450_v53, %v448_v52  ;;  %v1493_v47 = vld [vmem:[%s7285_s14 + $0x2468] sm:$0xff]  ;;  %v1495_v48 = vld [vmem:[%s7285_s14 + $0x2478] sm:$0xff] }
  0xa1   : > { %5994 = vmatprep.subr.bf16.mxu0 %v5993_v59  ;;  %v1477_v59 = vld [vmem:[%s7285_s14 + $0x23e8] sm:$0xff]  ;;  %v6015_v62 = vpack.c.bf16 %v1474_v56, %v1472_v54  ;;  %v468_v52 = vld [vmem:[%s7285_s14 + $0x460] sm:$0xff]  ;;  %v470_v53 = vld [vmem:[%s7285_s14 + $0x470] sm:$0xff] }
  0xa2   : > { %v1492_v54 = vld [vmem:[%s7285_s14 + $0x2460] sm:$0xff]  ;;  %v1494_v56 = vld [vmem:[%s7285_s14 + $0x2470] sm:$0xff] }
  0xa3   : > { %4972 = vmatpush1.bf16.msra.mxu1 %v4971_v1  ;;  %v454_v1 = vld [vmem:[%s7285_s14 + $0x3f0] sm:$0xff] }
  0xa4   : > { %5996 = vmatpush1.bf16.msra.mxu0 %v5995_v2  ;;  %4974 = vmatprep.subr.bf16.mxu1 %v4973_v3  ;;  %v1476_v2 = vld [vmem:[%s7285_s14 + $0x23e0] sm:$0xff]  ;;  %v6017_v3 = vpack.c.bf16 %v1479_v60, %v1477_v59  ;;  %v4995_v9 = vpack.c.bf16 %v454_v1, %v452_v0  ;;  %v1497_v59 = vld [vmem:[%s7285_s14 + $0x2488] sm:$0xff]  ;;  %v1499_v60 = vld [vmem:[%s7285_s14 + $0x2498] sm:$0xff] }
  0xa5   : > { %5998 = vmatprep.subr.bf16.mxu0 %v5997_v7  ;;  %v1481_v7 = vld [vmem:[%s7285_s14 + $0x2408] sm:$0xff]  ;;  %v6019_v10 = vpack.c.bf16 %v1478_v4, %v1476_v2  ;;  %v472_v0 = vld [vmem:[%s7285_s14 + $0x480] sm:$0xff]  ;;  %v474_v1 = vld [vmem:[%s7285_s14 + $0x490] sm:$0xff] }
  0xa6   : > { %v1496_v2 = vld [vmem:[%s7285_s14 + $0x2480] sm:$0xff]  ;;  %v1498_v4 = vld [vmem:[%s7285_s14 + $0x2490] sm:$0xff] }
  0xa7   : > { %4976 = vmatpush1.bf16.msra.mxu1 %v4975_v13  ;;  %v458_v13 = vld [vmem:[%s7285_s14 + $0x410] sm:$0xff] }
  0xa8   : > { %6000 = vmatpush1.bf16.msra.mxu0 %v5999_v14  ;;  %4978 = vmatprep.subr.bf16.mxu1 %v4977_v15  ;;  %v1480_v14 = vld [vmem:[%s7285_s14 + $0x2400] sm:$0xff]  ;;  %v6021_v15 = vpack.c.bf16 %v1483_v8, %v1481_v7  ;;  %v4999_v22 = vpack.c.bf16 %v458_v13, %v456_v12  ;;  %v1501_v7 = vld [vmem:[%s7285_s14 + $0x24a8] sm:$0xff]  ;;  %v1503_v8 = vld [vmem:[%s7285_s14 + $0x24b8] sm:$0xff] }
  0xa9   : > { %6002 = vmatprep.subr.bf16.mxu0 %v6001_v19  ;;  %v1485_v19 = vld [vmem:[%s7285_s14 + $0x2428] sm:$0xff]  ;;  %v6023_v24 = vpack.c.bf16 %v1482_v16, %v1480_v14  ;;  %v476_v12 = vld [vmem:[%s7285_s14 + $0x4a0] sm:$0xff]  ;;  %v478_v13 = vld [vmem:[%s7285_s14 + $0x4b0] sm:$0xff] }
  0xaa   : > { %v6025_v29 = vpack.c.bf16 %v1487_v20, %v1485_v19  ;;  %v1500_v14 = vld [vmem:[%s7285_s14 + $0x24a0] sm:$0xff]  ;;  %v1502_v16 = vld [vmem:[%s7285_s14 + $0x24b0] sm:$0xff]  ;;  %v1505_v19 = vld [vmem:[%s7285_s14 + $0x24c8] sm:$0xff] }
  0xab   : > { %4980 = vmatpush1.bf16.msra.mxu1 %v4979_v25  ;;  %v5001_v25 = vpack.c.bf16 %v463_v18, %v461_v17  ;;  %v481_v17 = vld [vmem:[%s7285_s14 + $0x4c8] sm:$0xff]  ;;  %v483_v18 = vld [vmem:[%s7285_s14 + $0x4d8] sm:$0xff] }
  0xac   : > { %6004 = vmatpush1.bf16.msra.mxu0 %v6003_v26  ;;  %4982 = vmatprep.subr.bf16.mxu1 %v4981_v27  ;;  %v460_v26 = vld [vmem:[%s7285_s14 + $0x420] sm:$0xff]  ;;  %v462_v27 = vld [vmem:[%s7285_s14 + $0x430] sm:$0xff]  ;;  %v1507_v20 = vld [vmem:[%s7285_s14 + $0x24d8] sm:$0xff] }
  0xad   : > { %6006 = vmatprep.subr.bf16.mxu0 %v6005_v31  ;;  %v465_v31 = vld [vmem:[%s7285_s14 + $0x448] sm:$0xff]  ;;  %v5003_v36 = vpack.c.bf16 %v462_v27, %v460_v26  ;;  %v1504_v26 = vld [vmem:[%s7285_s14 + $0x24c0] sm:$0xff]  ;;  %v6045_v27 = vpack.c.bf16 %v1507_v20, %v1505_v19 }
  0xae   : > { %v500_v20 = vld [vmem:[%s7285_s14 + $0x560] sm:$0xff] }
  0xaf   : > { %4984 = vmatpush1.bf16.msra.mxu1 %v4983_v37  ;;  %v301_v37 = vld [vmem:[%s7295_s11 + $0x128] sm:$0xff] }
  0xb0   : > { %6008 = vmatpush1.bf16.msra.mxu0 %v6007_v38  ;;  %4986 = vmatprep.subr.bf16.mxu1 %v4985_v39  ;;  %v6027_v38 = vpack.c.bf16 %v1486_v30, %v1484_v28  ;;  %v5005_v39 = vpack.c.bf16 %v467_v32, %v465_v31  ;;  %v1506_v28 = vld [vmem:[%s7285_s14 + $0x24d0] sm:$0xff]  ;;  %v487_v30 = vld [vmem:[%s7285_s14 + $0x4f8] sm:$0xff]  ;;  %v1509_v31 = vld [vmem:[%s7285_s14 + $0x24e8] sm:$0xff] }
  0xb1   : > { %6010 = vmatprep.subr.bf16.mxu0 %v6009_v43  ;;  %v6029_v43 = vpack.c.bf16 %v1491_v34, %v1489_v33  ;;  %v1511_v32 = vld [vmem:[%s7285_s14 + $0x24f8] sm:$0xff]  ;;  %v6047_v34 = vpack.c.bf16 %v1506_v28, %v1504_v26 }
  0xb2   : > { %v507_v26 = vld [vmem:[%s7285_s14 + $0x598] sm:$0xff] }
  0xb3   : > { %4988 = vmatpush1.bf16.msra.mxu1 %v4987_v49  ;;  %v5007_v49 = vpack.c.bf16 %v466_v41, %v464_v40  ;;  %v1510_v40 = vld [vmem:[%s7285_s14 + $0x24f0] sm:$0xff]  ;;  %v489_v41 = vld [vmem:[%s7285_s14 + $0x508] sm:$0xff]  ;;  %v1531_v28 = vld [vmem:[%s7285_s14 + $0x2598] sm:$0xff] }
  0xb4   : > { %6012 = vmatpush1.bf16.msra.mxu0 %v6011_v50  ;;  %4990 = vmatprep.subr.bf16.mxu1 %v4989_v51  ;;  %v6031_v50 = vpack.c.bf16 %v1490_v44, %v1488_v42  ;;  %v5009_v51 = vpack.c.bf16 %v471_v46, %v469_v45  ;;  %v491_v42 = vld [vmem:[%s7285_s14 + $0x518] sm:$0xff] }
  0xb5   : > { %6014 = vmatprep.subr.bf16.mxu0 %v6013_v55  ;;  %v6033_v55 = vpack.c.bf16 %v1495_v48, %v1493_v47  ;;  %v1515_v44 = vld [vmem:[%s7285_s14 + $0x2518] sm:$0xff]  ;;  %v5029_v47 = vpack.c.bf16 %v491_v42, %v489_v41  ;;  %v488_v48 = vld [vmem:[%s7285_s14 + $0x500] sm:$0xff] }
  0xb7   : > { %4992 = vmatpush1.bf16.msra.mxu1 %v4991_v61  ;;  %v5011_v61 = vpack.c.bf16 %v470_v53, %v468_v52  ;;  %v1514_v52 = vld [vmem:[%s7285_s14 + $0x2510] sm:$0xff]  ;;  %v493_v53 = vld [vmem:[%s7285_s14 + $0x528] sm:$0xff] }
  0xb8   : > { %6016 = vmatpush1.bf16.msra.mxu0 %v6015_v62  ;;  %4994 = vmatprep.subr.bf16.mxu1 %v4993_v63  ;;  %v6035_v62 = vpack.c.bf16 %v1494_v56, %v1492_v54  ;;  %v5013_v63 = vpack.c.bf16 %v475_v58, %v473_v57  ;;  %v495_v54 = vld [vmem:[%s7285_s14 + $0x538] sm:$0xff] }
  0xb9   : > { %6018 = vmatprep.subr.bf16.mxu0 %v6017_v3  ;;  %v6037_v3 = vpack.c.bf16 %v1499_v60, %v1497_v59  ;;  %v1519_v56 = vld [vmem:[%s7285_s14 + $0x2538] sm:$0xff]  ;;  %v5033_v59 = vpack.c.bf16 %v495_v54, %v493_v53  ;;  %v492_v60 = vld [vmem:[%s7285_s14 + $0x520] sm:$0xff] }
  0xbb   : > { %4996 = vmatpush1.bf16.msra.mxu1 %v4995_v9  ;;  %v5015_v9 = vpack.c.bf16 %v474_v1, %v472_v0  ;;  %v1518_v0 = vld [vmem:[%s7285_s14 + $0x2530] sm:$0xff]  ;;  %v497_v1 = vld [vmem:[%s7285_s14 + $0x548] sm:$0xff] }
  0xbc   : > { %6020 = vmatpush1.bf16.msra.mxu0 %v6019_v10  ;;  %4998 = vmatprep.subr.bf16.mxu1 %v4997_v11  ;;  %v6039_v10 = vpack.c.bf16 %v1498_v4, %v1496_v2  ;;  %v5017_v11 = vpack.c.bf16 %v479_v6, %v477_v5  ;;  %v499_v2 = vld [vmem:[%s7285_s14 + $0x558] sm:$0xff] }
  0xbd   : > { %6022 = vmatprep.subr.bf16.mxu0 %v6021_v15  ;;  %v6041_v15 = vpack.c.bf16 %v1503_v8, %v1501_v7  ;;  %v1523_v4 = vld [vmem:[%s7285_s14 + $0x2558] sm:$0xff]  ;;  %v5037_v7 = vpack.c.bf16 %v499_v2, %v497_v1  ;;  %v496_v8 = vld [vmem:[%s7285_s14 + $0x540] sm:$0xff] }
  0xbe   : > { %2512 = vmatmul.mubr.f32.vlgmr.msra.gmra.mrb[0].mxu1 %v266_v21  ;;  %v5019_v21 = vpack.c.bf16 %v478_v13, %v476_v12  ;;  %v1522_v12 = vld [vmem:[%s7285_s14 + $0x2550] sm:$0xff]  ;;  %v501_v13 = vld [vmem:[%s7285_s14 + $0x568] sm:$0xff] }
  0xbf   : > { %5000 = vmatpush1.bf16.msra.mxu1 %v4999_v22  ;;  %3648 = vmatmul.mubr.f32.vlgmr.msra.gmra.mrb[0].mxu0 %v298_v23  ;;  %v6043_v22 = vpack.c.bf16 %v1502_v16, %v1500_v14  ;;  %v5021_v23 = vpack.c.bf16 %v483_v18, %v481_v17  ;;  %v503_v14 = vld [vmem:[%s7285_s14 + $0x578] sm:$0xff] }
  0xc0   : > { %6024 = vmatpush1.bf16.msra.mxu0 %v6023_v24  ;;  %5002 = vmatprep.subr.bf16.mxu1 %v5001_v25  ;;  %v480_v24 = vld [vmem:[%s7285_s14 + $0x4c0] sm:$0xff]  ;;  %v482_v25 = vld [vmem:[%s7285_s14 + $0x4d0] sm:$0xff]  ;;  %v1527_v16 = vld [vmem:[%s7285_s14 + $0x2578] sm:$0xff]  ;;  %v5041_v19 = vpack.c.bf16 %v503_v14, %v501_v13 }
  0xc1   : > { %6026 = vmatprep.subr.bf16.mxu0 %v6025_v29  ;;  %2582 = vmatprep.mubr.f32.mxu1 %v269_v35  ;;  %v485_v29 = vld [vmem:[%s7285_s14 + $0x4e8] sm:$0xff]  ;;  %v5023_v33 = vpack.c.bf16 %v482_v25, %v480_v24  ;;  %v1526_v24 = vld [vmem:[%s7285_s14 + $0x2570] sm:$0xff] }
  0xc2   : > { %3718 = vmatprep.mubr.f32.mxu0 %v301_v37  ;;  %v5025_v35 = vpack.c.bf16 %v487_v30, %v485_v29  ;;  %v486_v37 = vld [vmem:[%s7285_s14 + $0x4f0] sm:$0xff]  ;;  %v505_v25 = vld [vmem:[%s7285_s14 + $0x588] sm:$0xff] }
  0xc3   : > { %5004 = vmatpush1.bf16.msra.mxu1 %v5003_v36  ;;  %v484_v36 = vld [vmem:[%s7285_s14 + $0x4e0] sm:$0xff] }
  0xc4   : > { %6028 = vmatpush1.bf16.msra.mxu0 %v6027_v38  ;;  %5006 = vmatprep.subr.bf16.mxu1 %v5005_v39  ;;  %v1508_v38 = vld [vmem:[%s7285_s14 + $0x24e0] sm:$0xff]  ;;  %v6049_v39 = vpack.c.bf16 %v1511_v32, %v1509_v31  ;;  %v5027_v45 = vpack.c.bf16 %v486_v37, %v484_v36  ;;  %v5045_v31 = vpack.c.bf16 %v507_v26, %v505_v25  ;;  %v1530_v36 = vld [vmem:[%s7285_s14 + $0x2590] sm:$0xff]  ;;  %v509_v37 = vld [vmem:[%s7285_s14 + $0x5a8] sm:$0xff] }
  0xc5   : > { %6030 = vmatprep.subr.bf16.mxu0 %v6029_v43  ;;  %v1513_v43 = vld [vmem:[%s7285_s14 + $0x2508] sm:$0xff]  ;;  %v6051_v46 = vpack.c.bf16 %v1510_v40, %v1508_v38  ;;  %v504_v32 = vld [vmem:[%s7285_s14 + $0x580] sm:$0xff]  ;;  %v511_v38 = vld [vmem:[%s7285_s14 + $0x5b8] sm:$0xff] }
  0xc6   : > { %v1535_v40 = vld [vmem:[%s7285_s14 + $0x25b8] sm:$0xff]  ;;  %v268_v25 = vld [vmem:[%s7295_s11 + $0x20] sm:$0xff] }
  0xc7   : > { %5008 = vmatpush1.bf16.msra.mxu1 %v5007_v49  ;;  %v490_v49 = vld [vmem:[%s7285_s14 + $0x510] sm:$0xff] }
  0xc8   : > { %6032 = vmatpush1.bf16.msra.mxu0 %v6031_v50  ;;  %5010 = vmatprep.subr.bf16.mxu1 %v5009_v51  ;;  %v1512_v50 = vld [vmem:[%s7285_s14 + $0x2500] sm:$0xff]  ;;  %v6053_v51 = vpack.c.bf16 %v1515_v44, %v1513_v43  ;;  %v5031_v57 = vpack.c.bf16 %v490_v49, %v488_v48  ;;  %v5049_v43 = vpack.c.bf16 %v511_v38, %v509_v37  ;;  %v1534_v48 = vld [vmem:[%s7285_s14 + $0x25b0] sm:$0xff]  ;;  %v513_v49 = vld [vmem:[%s7285_s14 + $0x5c8] sm:$0xff] }
  0xc9   : > { %6034 = vmatprep.subr.bf16.mxu0 %v6033_v55  ;;  %v1517_v55 = vld [vmem:[%s7285_s14 + $0x2528] sm:$0xff]  ;;  %v6055_v58 = vpack.c.bf16 %v1514_v52, %v1512_v50  ;;  %v508_v44 = vld [vmem:[%s7285_s14 + $0x5a0] sm:$0xff]  ;;  %v515_v50 = vld [vmem:[%s7285_s14 + $0x5d8] sm:$0xff] }
  0xca   : > { %v1539_v52 = vld [vmem:[%s7285_s14 + $0x25d8] sm:$0xff]  ;;  %v1553_v37 = vld [vmem:[%s7285_s14 + $0x2648] sm:$0xff] }
  0xcb   : > { %5012 = vmatpush1.bf16.msra.mxu1 %v5011_v61  ;;  %v494_v61 = vld [vmem:[%s7285_s14 + $0x530] sm:$0xff]  ;;  %v1555_v38 = vld [vmem:[%s7285_s14 + $0x2658] sm:$0xff] }
  0xcc   : > { %6036 = vmatpush1.bf16.msra.mxu0 %v6035_v62  ;;  %5014 = vmatprep.subr.bf16.mxu1 %v5013_v63  ;;  %v1516_v62 = vld [vmem:[%s7285_s14 + $0x2520] sm:$0xff]  ;;  %v6057_v63 = vpack.c.bf16 %v1519_v56, %v1517_v55  ;;  %v5035_v5 = vpack.c.bf16 %v494_v61, %v492_v60  ;;  %v5053_v55 = vpack.c.bf16 %v515_v50, %v513_v49  ;;  %v1538_v60 = vld [vmem:[%s7285_s14 + $0x25d0] sm:$0xff]  ;;  %v517_v61 = vld [vmem:[%s7285_s14 + $0x5e8] sm:$0xff] }
  0xcd   : > { %6038 = vmatprep.subr.bf16.mxu0 %v6037_v3  ;;  %v1521_v3 = vld [vmem:[%s7285_s14 + $0x2548] sm:$0xff]  ;;  %v6059_v6 = vpack.c.bf16 %v1518_v0, %v1516_v62  ;;  %v512_v56 = vld [vmem:[%s7285_s14 + $0x5c0] sm:$0xff]  ;;  %v519_v62 = vld [vmem:[%s7285_s14 + $0x5f8] sm:$0xff] }
  0xce   : > { %v1543_v0 = vld [vmem:[%s7285_s14 + $0x25f8] sm:$0xff]  ;;  %v533_v49 = vld [vmem:[%s7285_s14 + $0x668] sm:$0xff] }
  0xcf   : > { %5016 = vmatpush1.bf16.msra.mxu1 %v5015_v9  ;;  %v498_v9 = vld [vmem:[%s7285_s14 + $0x550] sm:$0xff]  ;;  %v535_v50 = vld [vmem:[%s7285_s14 + $0x678] sm:$0xff] }
  0xd0   : > { %6040 = vmatpush1.bf16.msra.mxu0 %v6039_v10  ;;  %5018 = vmatprep.subr.bf16.mxu1 %v5017_v11  ;;  %v1520_v10 = vld [vmem:[%s7285_s14 + $0x2540] sm:$0xff]  ;;  %v6061_v11 = vpack.c.bf16 %v1523_v4, %v1521_v3  ;;  %v5039_v17 = vpack.c.bf16 %v498_v9, %v496_v8  ;;  %v5057_v3 = vpack.c.bf16 %v519_v62, %v517_v61  ;;  %v1542_v8 = vld [vmem:[%s7285_s14 + $0x25f0] sm:$0xff]  ;;  %v521_v9 = vld [vmem:[%s7285_s14 + $0x608] sm:$0xff] }
  0xd1   : > { %6042 = vmatprep.subr.bf16.mxu0 %v6041_v15  ;;  %v1525_v15 = vld [vmem:[%s7285_s14 + $0x2568] sm:$0xff]  ;;  %v6063_v18 = vpack.c.bf16 %v1522_v12, %v1520_v10  ;;  %v516_v4 = vld [vmem:[%s7285_s14 + $0x5e0] sm:$0xff]  ;;  %v523_v10 = vld [vmem:[%s7285_s14 + $0x618] sm:$0xff] }
  0xd2   : > { %v1547_v12 = vld [vmem:[%s7285_s14 + $0x2618] sm:$0xff]  ;;  %v537_v61 = vld [vmem:[%s7285_s14 + $0x688] sm:$0xff] }
  0xd3   : > { %5020 = vmatpush1.bf16.msra.mxu1 %v5019_v21  ;;  %v502_v21 = vld [vmem:[%s7285_s14 + $0x570] sm:$0xff]  ;;  %v539_v62 = vld [vmem:[%s7285_s14 + $0x698] sm:$0xff] }
  0xd4   : > { %6044 = vmatpush1.bf16.msra.mxu0 %v6043_v22  ;;  %5022 = vmatprep.subr.bf16.mxu1 %v5021_v23  ;;  %v1524_v22 = vld [vmem:[%s7285_s14 + $0x2560] sm:$0xff]  ;;  %v6065_v23 = vpack.c.bf16 %v1527_v16, %v1525_v15  ;;  %v5043_v29 = vpack.c.bf16 %v502_v21, %v500_v20  ;;  %v5061_v15 = vpack.c.bf16 %v523_v10, %v521_v9  ;;  %v1546_v20 = vld [vmem:[%s7285_s14 + $0x2610] sm:$0xff]  ;;  %v525_v21 = vld [vmem:[%s7285_s14 + $0x628] sm:$0xff] }
  0xd5   : > { %6046 = vmatprep.subr.bf16.mxu0 %v6045_v27  ;;  %v1529_v27 = vld [vmem:[%s7285_s14 + $0x2588] sm:$0xff]  ;;  %v6067_v30 = vpack.c.bf16 %v1526_v24, %v1524_v22  ;;  %v520_v16 = vld [vmem:[%s7285_s14 + $0x600] sm:$0xff]  ;;  %v527_v22 = vld [vmem:[%s7285_s14 + $0x638] sm:$0xff] }
  0xd6   : > { %v1551_v24 = vld [vmem:[%s7285_s14 + $0x2638] sm:$0xff]  ;;  %v541_v9 = vld [vmem:[%s7285_s14 + $0x6a8] sm:$0xff] }
  0xd7   : > { %5024 = vmatpush1.bf16.msra.mxu1 %v5023_v33  ;;  %v506_v33 = vld [vmem:[%s7285_s14 + $0x590] sm:$0xff]  ;;  %v543_v10 = vld [vmem:[%s7285_s14 + $0x6b8] sm:$0xff] }
  0xd8   : > { %6048 = vmatpush1.bf16.msra.mxu0 %v6047_v34  ;;  %5026 = vmatprep.subr.bf16.mxu1 %v5025_v35  ;;  %v1528_v34 = vld [vmem:[%s7285_s14 + $0x2580] sm:$0xff]  ;;  %v6069_v35 = vpack.c.bf16 %v1531_v28, %v1529_v27  ;;  %v5047_v41 = vpack.c.bf16 %v506_v33, %v504_v32  ;;  %v300_v27 = vld [vmem:[%s7295_s11 + $0x120] sm:$0xff] }
  0xd9   : > { %6050 = vmatprep.subr.bf16.mxu0 %v6049_v39  ;;  %v1533_v39 = vld [vmem:[%s7285_s14 + $0x25a8] sm:$0xff]  ;;  %v6071_v42 = vpack.c.bf16 %v1530_v36, %v1528_v34  ;;  %v1548_v32 = vld [vmem:[%s7285_s14 + $0x2620] sm:$0xff]  ;;  %v1550_v34 = vld [vmem:[%s7285_s14 + $0x2630] sm:$0xff] }
  0xda   : > { %v531_v36 = vld [vmem:[%s7285_s14 + $0x658] sm:$0xff] }
  0xdb   : > { %5028 = vmatpush1.bf16.msra.mxu1 %v5027_v45  ;;  %v510_v45 = vld [vmem:[%s7285_s14 + $0x5b0] sm:$0xff] }
  0xdc   : > { %6052 = vmatpush1.bf16.msra.mxu0 %v6051_v46  ;;  %5030 = vmatprep.subr.bf16.mxu1 %v5029_v47  ;;  %v1532_v46 = vld [vmem:[%s7285_s14 + $0x25a0] sm:$0xff]  ;;  %v6073_v47 = vpack.c.bf16 %v1535_v40, %v1533_v39  ;;  %v5051_v53 = vpack.c.bf16 %v510_v45, %v508_v44  ;;  %v271_v39 = vld [vmem:[%s7295_s11 + $0x38] sm:$0xff]  ;;  %v530_v45 = vld [vmem:[%s7285_s14 + $0x650] sm:$0xff] }
  0xdd   : > { %6054 = vmatprep.subr.bf16.mxu0 %v6053_v51  ;;  %v1537_v51 = vld [vmem:[%s7285_s14 + $0x25c8] sm:$0xff]  ;;  %v6075_v54 = vpack.c.bf16 %v1534_v48, %v1532_v46  ;;  %v528_v44 = vld [vmem:[%s7285_s14 + $0x640] sm:$0xff]  ;;  %v1554_v48 = vld [vmem:[%s7285_s14 + $0x2650] sm:$0xff] }
  0xde   : > { %v1552_v46 = vld [vmem:[%s7285_s14 + $0x2640] sm:$0xff] }
  0xdf   : > { %5032 = vmatpush1.bf16.msra.mxu1 %v5031_v57  ;;  %v514_v57 = vld [vmem:[%s7285_s14 + $0x5d0] sm:$0xff] }
  0xe0   : > { %6056 = vmatpush1.bf16.msra.mxu0 %v6055_v58  ;;  %5034 = vmatprep.subr.bf16.mxu1 %v5033_v59  ;;  %v1536_v58 = vld [vmem:[%s7285_s14 + $0x25c0] sm:$0xff]  ;;  %v6077_v59 = vpack.c.bf16 %v1539_v52, %v1537_v51  ;;  %v5055_v1 = vpack.c.bf16 %v514_v57, %v512_v56  ;;  %v1557_v51 = vld [vmem:[%s7285_s14 + $0x2668] sm:$0xff]  ;;  %v1559_v52 = vld [vmem:[%s7285_s14 + $0x2678] sm:$0xff] }
  0xe1   : > { %6058 = vmatprep.subr.bf16.mxu0 %v6057_v63  ;;  %v1541_v63 = vld [vmem:[%s7285_s14 + $0x25e8] sm:$0xff]  ;;  %v6079_v2 = vpack.c.bf16 %v1538_v60, %v1536_v58  ;;  %v532_v56 = vld [vmem:[%s7285_s14 + $0x660] sm:$0xff]  ;;  %v534_v57 = vld [vmem:[%s7285_s14 + $0x670] sm:$0xff] }
  0xe2   : > { %v1556_v58 = vld [vmem:[%s7285_s14 + $0x2660] sm:$0xff]  ;;  %v1558_v60 = vld [vmem:[%s7285_s14 + $0x2670] sm:$0xff] }
  0xe3   : > { %5036 = vmatpush1.bf16.msra.mxu1 %v5035_v5  ;;  %v518_v5 = vld [vmem:[%s7285_s14 + $0x5f0] sm:$0xff] }
  0xe4   : > { %6060 = vmatpush1.bf16.msra.mxu0 %v6059_v6  ;;  %5038 = vmatprep.subr.bf16.mxu1 %v5037_v7  ;;  %v1540_v6 = vld [vmem:[%s7285_s14 + $0x25e0] sm:$0xff]  ;;  %v6081_v7 = vpack.c.bf16 %v1543_v0, %v1541_v63  ;;  %v5059_v13 = vpack.c.bf16 %v518_v5, %v516_v4  ;;  %v1561_v63 = vld [vmem:[%s7285_s14 + $0x2688] sm:$0xff]  ;;  %v1563_v0 = vld [vmem:[%s7285_s14 + $0x2698] sm:$0xff] }
  0xe5   : > { %6062 = vmatprep.subr.bf16.mxu0 %v6061_v11  ;;  %v1545_v11 = vld [vmem:[%s7285_s14 + $0x2608] sm:$0xff]  ;;  %v6083_v14 = vpack.c.bf16 %v1542_v8, %v1540_v6  ;;  %v536_v4 = vld [vmem:[%s7285_s14 + $0x680] sm:$0xff]  ;;  %v538_v5 = vld [vmem:[%s7285_s14 + $0x690] sm:$0xff] }
  0xe6   : > { %v1560_v6 = vld [vmem:[%s7285_s14 + $0x2680] sm:$0xff]  ;;  %v1562_v8 = vld [vmem:[%s7285_s14 + $0x2690] sm:$0xff] }
  0xe7   : > { %5040 = vmatpush1.bf16.msra.mxu1 %v5039_v17  ;;  %v522_v17 = vld [vmem:[%s7285_s14 + $0x610] sm:$0xff] }
  0xe8   : > { %6064 = vmatpush1.bf16.msra.mxu0 %v6063_v18  ;;  %5042 = vmatprep.subr.bf16.mxu1 %v5041_v19  ;;  %v1544_v18 = vld [vmem:[%s7285_s14 + $0x2600] sm:$0xff]  ;;  %v6085_v19 = vpack.c.bf16 %v1547_v12, %v1545_v11  ;;  %v5063_v26 = vpack.c.bf16 %v522_v17, %v520_v16  ;;  %v1565_v11 = vld [vmem:[%s7285_s14 + $0x26a8] sm:$0xff]  ;;  %v1567_v12 = vld [vmem:[%s7285_s14 + $0x26b8] sm:$0xff] }
  0xe9   : > { %6066 = vmatprep.subr.bf16.mxu0 %v6065_v23  ;;  %v1549_v23 = vld [vmem:[%s7285_s14 + $0x2628] sm:$0xff]  ;;  %v6087_v28 = vpack.c.bf16 %v1546_v20, %v1544_v18  ;;  %v540_v16 = vld [vmem:[%s7285_s14 + $0x6a0] sm:$0xff]  ;;  %v542_v17 = vld [vmem:[%s7285_s14 + $0x6b0] sm:$0xff] }
  0xea   : > { %v6089_v33 = vpack.c.bf16 %v1551_v24, %v1549_v23  ;;  %v1564_v18 = vld [vmem:[%s7285_s14 + $0x26a0] sm:$0xff]  ;;  %v1566_v20 = vld [vmem:[%s7285_s14 + $0x26b0] sm:$0xff]  ;;  %v1569_v23 = vld [vmem:[%s7285_s14 + $0x26c8] sm:$0xff] }
  0xeb   : > { %5044 = vmatpush1.bf16.msra.mxu1 %v5043_v29  ;;  %v5065_v29 = vpack.c.bf16 %v527_v22, %v525_v21  ;;  %v545_v21 = vld [vmem:[%s7285_s14 + $0x6c8] sm:$0xff]  ;;  %v547_v22 = vld [vmem:[%s7285_s14 + $0x6d8] sm:$0xff] }
  0xec   : > { %6068 = vmatpush1.bf16.msra.mxu0 %v6067_v30  ;;  %5046 = vmatprep.subr.bf16.mxu1 %v5045_v31  ;;  %v524_v30 = vld [vmem:[%s7285_s14 + $0x620] sm:$0xff]  ;;  %v526_v31 = vld [vmem:[%s7285_s14 + $0x630] sm:$0xff]  ;;  %v1571_v24 = vld [vmem:[%s7285_s14 + $0x26d8] sm:$0xff] }
  0xed   : > { %6070 = vmatprep.subr.bf16.mxu0 %v6069_v35  ;;  %v529_v35 = vld [vmem:[%s7285_s14 + $0x648] sm:$0xff]  ;;  %v5067_v40 = vpack.c.bf16 %v526_v31, %v524_v30  ;;  %v1568_v30 = vld [vmem:[%s7285_s14 + $0x26c0] sm:$0xff]  ;;  %v6109_v31 = vpack.c.bf16 %v1571_v24, %v1569_v23 }
  0xee   : > { %v564_v24 = vld [vmem:[%s7285_s14 + $0x760] sm:$0xff] }
  0xef   : > { %5048 = vmatpush1.bf16.msra.mxu1 %v5047_v41  ;;  %v303_v41 = vld [vmem:[%s7295_s11 + $0x138] sm:$0xff] }
  0xf0   : > { %6072 = vmatpush1.bf16.msra.mxu0 %v6071_v42  ;;  %5050 = vmatprep.subr.bf16.mxu1 %v5049_v43  ;;  %v6091_v42 = vpack.c.bf16 %v1550_v34, %v1548_v32  ;;  %v5069_v43 = vpack.c.bf16 %v531_v36, %v529_v35  ;;  %v1570_v32 = vld [vmem:[%s7285_s14 + $0x26d0] sm:$0xff]  ;;  %v551_v34 = vld [vmem:[%s7285_s14 + $0x6f8] sm:$0xff]  ;;  %v1573_v35 = vld [vmem:[%s7285_s14 + $0x26e8] sm:$0xff] }
  0xf1   : > { %6074 = vmatprep.subr.bf16.mxu0 %v6073_v47  ;;  %v6093_v47 = vpack.c.bf16 %v1555_v38, %v1553_v37  ;;  %v1575_v36 = vld [vmem:[%s7285_s14 + $0x26f8] sm:$0xff]  ;;  %v6111_v38 = vpack.c.bf16 %v1570_v32, %v1568_v30 }
  0xf2   : > { %v571_v30 = vld [vmem:[%s7285_s14 + $0x798] sm:$0xff] }
  0xf3   : > { %5052 = vmatpush1.bf16.msra.mxu1 %v5051_v53  ;;  %v5071_v53 = vpack.c.bf16 %v530_v45, %v528_v44  ;;  %v1574_v44 = vld [vmem:[%s7285_s14 + $0x26f0] sm:$0xff]  ;;  %v553_v45 = vld [vmem:[%s7285_s14 + $0x708] sm:$0xff]  ;;  %v1595_v32 = vld [vmem:[%s7285_s14 + $0x2798] sm:$0xff] }
  0xf4   : > { %6076 = vmatpush1.bf16.msra.mxu0 %v6075_v54  ;;  %5054 = vmatprep.subr.bf16.mxu1 %v5053_v55  ;;  %v6095_v54 = vpack.c.bf16 %v1554_v48, %v1552_v46  ;;  %v5073_v55 = vpack.c.bf16 %v535_v50, %v533_v49  ;;  %v555_v46 = vld [vmem:[%s7285_s14 + $0x718] sm:$0xff] }
  0xf5   : > { %6078 = vmatprep.subr.bf16.mxu0 %v6077_v59  ;;  %v6097_v59 = vpack.c.bf16 %v1559_v52, %v1557_v51  ;;  %v1579_v48 = vld [vmem:[%s7285_s14 + $0x2718] sm:$0xff]  ;;  %v5093_v51 = vpack.c.bf16 %v555_v46, %v553_v45  ;;  %v552_v52 = vld [vmem:[%s7285_s14 + $0x700] sm:$0xff] }
  0xf7   : > { %5056 = vmatpush1.bf16.msra.mxu1 %v5055_v1  ;;  %v5075_v1 = vpack.c.bf16 %v534_v57, %v532_v56  ;;  %v1578_v56 = vld [vmem:[%s7285_s14 + $0x2710] sm:$0xff]  ;;  %v557_v57 = vld [vmem:[%s7285_s14 + $0x728] sm:$0xff] }
  0xf8   : > { %6080 = vmatpush1.bf16.msra.mxu0 %v6079_v2  ;;  %5058 = vmatprep.subr.bf16.mxu1 %v5057_v3  ;;  %v6099_v2 = vpack.c.bf16 %v1558_v60, %v1556_v58  ;;  %v5077_v3 = vpack.c.bf16 %v539_v62, %v537_v61  ;;  %v559_v58 = vld [vmem:[%s7285_s14 + $0x738] sm:$0xff] }
  0xf9   : > { %6082 = vmatprep.subr.bf16.mxu0 %v6081_v7  ;;  %v6101_v7 = vpack.c.bf16 %v1563_v0, %v1561_v63  ;;  %v1583_v60 = vld [vmem:[%s7285_s14 + $0x2738] sm:$0xff]  ;;  %v5097_v63 = vpack.c.bf16 %v559_v58, %v557_v57  ;;  %v556_v0 = vld [vmem:[%s7285_s14 + $0x720] sm:$0xff] }
  0xfb   : > { %5060 = vmatpush1.bf16.msra.mxu1 %v5059_v13  ;;  %v5079_v13 = vpack.c.bf16 %v538_v5, %v536_v4  ;;  %v1582_v4 = vld [vmem:[%s7285_s14 + $0x2730] sm:$0xff]  ;;  %v561_v5 = vld [vmem:[%s7285_s14 + $0x748] sm:$0xff] }
  0xfc   : > { %6084 = vmatpush1.bf16.msra.mxu0 %v6083_v14  ;;  %5062 = vmatprep.subr.bf16.mxu1 %v5061_v15  ;;  %v6103_v14 = vpack.c.bf16 %v1562_v8, %v1560_v6  ;;  %v5081_v15 = vpack.c.bf16 %v543_v10, %v541_v9  ;;  %v563_v6 = vld [vmem:[%s7285_s14 + $0x758] sm:$0xff] }
  0xfd   : > { %6086 = vmatprep.subr.bf16.mxu0 %v6085_v19  ;;  %v6105_v19 = vpack.c.bf16 %v1567_v12, %v1565_v11  ;;  %v1587_v8 = vld [vmem:[%s7285_s14 + $0x2758] sm:$0xff]  ;;  %v5101_v11 = vpack.c.bf16 %v563_v6, %v561_v5  ;;  %v560_v12 = vld [vmem:[%s7285_s14 + $0x740] sm:$0xff] }
  0xfe   : > { %2583 = vmatmul.mubr.f32.vlgmr.msra.gmra.mrb[0].mxu1 %v268_v25  ;;  %v5083_v25 = vpack.c.bf16 %v542_v17, %v540_v16  ;;  %v1586_v16 = vld [vmem:[%s7285_s14 + $0x2750] sm:$0xff]  ;;  %v565_v17 = vld [vmem:[%s7285_s14 + $0x768] sm:$0xff] }
  0xff   : > { %5064 = vmatpush1.bf16.msra.mxu1 %v5063_v26  ;;  %3719 = vmatmul.mubr.f32.vlgmr.msra.gmra.mrb[0].mxu0 %v300_v27  ;;  %v6107_v26 = vpack.c.bf16 %v1566_v20, %v1564_v18  ;;  %v5085_v27 = vpack.c.bf16 %v547_v22, %v545_v21  ;;  %v567_v18 = vld [vmem:[%s7285_s14 + $0x778] sm:$0xff] }
 0x100   : > { %6088 = vmatpush1.bf16.msra.mxu0 %v6087_v28  ;;  %5066 = vmatprep.subr.bf16.mxu1 %v5065_v29  ;;  %v544_v28 = vld [vmem:[%s7285_s14 + $0x6c0] sm:$0xff]  ;;  %v546_v29 = vld [vmem:[%s7285_s14 + $0x6d0] sm:$0xff]  ;;  %v1591_v20 = vld [vmem:[%s7285_s14 + $0x2778] sm:$0xff]  ;;  %v5105_v23 = vpack.c.bf16 %v567_v18, %v565_v17 }
 0x101   : > { %6090 = vmatprep.subr.bf16.mxu0 %v6089_v33  ;;  %2653 = vmatprep.mubr.f32.mxu1 %v271_v39  ;;  %v549_v33 = vld [vmem:[%s7285_s14 + $0x6e8] sm:$0xff]  ;;  %v5087_v37 = vpack.c.bf16 %v546_v29, %v544_v28  ;;  %v1590_v28 = vld [vmem:[%s7285_s14 + $0x2770] sm:$0xff] }
 0x102   : > { %3789 = vmatprep.mubr.f32.mxu0 %v303_v41  ;;  %v5089_v39 = vpack.c.bf16 %v551_v34, %v549_v33  ;;  %v550_v41 = vld [vmem:[%s7285_s14 + $0x6f0] sm:$0xff]  ;;  %v569_v29 = vld [vmem:[%s7285_s14 + $0x788] sm:$0xff] }
 0x103   : > { %5068 = vmatpush1.bf16.msra.mxu1 %v5067_v40  ;;  %v548_v40 = vld [vmem:[%s7285_s14 + $0x6e0] sm:$0xff] }
 0x104   : > { %6092 = vmatpush1.bf16.msra.mxu0 %v6091_v42  ;;  %5070 = vmatprep.subr.bf16.mxu1 %v5069_v43  ;;  %v1572_v42 = vld [vmem:[%s7285_s14 + $0x26e0] sm:$0xff]  ;;  %v6113_v43 = vpack.c.bf16 %v1575_v36, %v1573_v35  ;;  %v5091_v49 = vpack.c.bf16 %v550_v41, %v548_v40  ;;  %v5109_v35 = vpack.c.bf16 %v571_v30, %v569_v29  ;;  %v1594_v40 = vld [vmem:[%s7285_s14 + $0x2790] sm:$0xff]  ;;  %v573_v41 = vld [vmem:[%s7285_s14 + $0x7a8] sm:$0xff] }
 0x105   : > { %6094 = vmatprep.subr.bf16.mxu0 %v6093_v47  ;;  %v1577_v47 = vld [vmem:[%s7285_s14 + $0x2708] sm:$0xff]  ;;  %v6115_v50 = vpack.c.bf16 %v1574_v44, %v1572_v42  ;;  %v568_v36 = vld [vmem:[%s7285_s14 + $0x780] sm:$0xff]  ;;  %v575_v42 = vld [vmem:[%s7285_s14 + $0x7b8] sm:$0xff] }
 0x106   : > { %v1599_v44 = vld [vmem:[%s7285_s14 + $0x27b8] sm:$0xff]  ;;  %v270_v29 = vld [vmem:[%s7295_s11 + $0x30] sm:$0xff] }
 0x107   : > { %5072 = vmatpush1.bf16.msra.mxu1 %v5071_v53  ;;  %v554_v53 = vld [vmem:[%s7285_s14 + $0x710] sm:$0xff] }
 0x108   : > { %6096 = vmatpush1.bf16.msra.mxu0 %v6095_v54  ;;  %5074 = vmatprep.subr.bf16.mxu1 %v5073_v55  ;;  %v1576_v54 = vld [vmem:[%s7285_s14 + $0x2700] sm:$0xff]  ;;  %v6117_v55 = vpack.c.bf16 %v1579_v48, %v1577_v47  ;;  %v5095_v61 = vpack.c.bf16 %v554_v53, %v552_v52  ;;  %v5113_v47 = vpack.c.bf16 %v575_v42, %v573_v41  ;;  %v1598_v52 = vld [vmem:[%s7285_s14 + $0x27b0] sm:$0xff]  ;;  %v577_v53 = vld [vmem:[%s7285_s14 + $0x7c8] sm:$0xff] }
 0x109   : > { %6098 = vmatprep.subr.bf16.mxu0 %v6097_v59  ;;  %v1581_v59 = vld [vmem:[%s7285_s14 + $0x2728] sm:$0xff]  ;;  %v6119_v62 = vpack.c.bf16 %v1578_v56, %v1576_v54  ;;  %v572_v48 = vld [vmem:[%s7285_s14 + $0x7a0] sm:$0xff]  ;;  %v579_v54 = vld [vmem:[%s7285_s14 + $0x7d8] sm:$0xff] }
 0x10a   : > { %v1603_v56 = vld [vmem:[%s7285_s14 + $0x27d8] sm:$0xff]  ;;  %v1617_v41 = vld [vmem:[%s7285_s14 + $0x2848] sm:$0xff] }
 0x10b   : > { %5076 = vmatpush1.bf16.msra.mxu1 %v5075_v1  ;;  %v558_v1 = vld [vmem:[%s7285_s14 + $0x730] sm:$0xff]  ;;  %v1619_v42 = vld [vmem:[%s7285_s14 + $0x2858] sm:$0xff] }
 0x10c   : > { %6100 = vmatpush1.bf16.msra.mxu0 %v6099_v2  ;;  %5078 = vmatprep.subr.bf16.mxu1 %v5077_v3  ;;  %v1580_v2 = vld [vmem:[%s7285_s14 + $0x2720] sm:$0xff]  ;;  %v6121_v3 = vpack.c.bf16 %v1583_v60, %v1581_v59  ;;  %v5099_v9 = vpack.c.bf16 %v558_v1, %v556_v0  ;;  %v5117_v59 = vpack.c.bf16 %v579_v54, %v577_v53  ;;  %v1602_v0 = vld [vmem:[%s7285_s14 + $0x27d0] sm:$0xff]  ;;  %v581_v1 = vld [vmem:[%s7285_s14 + $0x7e8] sm:$0xff] }
 0x10d   : > { %6102 = vmatprep.subr.bf16.mxu0 %v6101_v7  ;;  %v1585_v7 = vld [vmem:[%s7285_s14 + $0x2748] sm:$0xff]  ;;  %v6123_v10 = vpack.c.bf16 %v1582_v4, %v1580_v2  ;;  %v576_v60 = vld [vmem:[%s7285_s14 + $0x7c0] sm:$0xff]  ;;  %v583_v2 = vld [vmem:[%s7285_s14 + $0x7f8] sm:$0xff] }
 0x10e   : > { %v1607_v4 = vld [vmem:[%s7285_s14 + $0x27f8] sm:$0xff]  ;;  %v597_v53 = vld [vmem:[%s7285_s14 + $0x868] sm:$0xff] }
 0x10f   : > { %5080 = vmatpush1.bf16.msra.mxu1 %v5079_v13  ;;  %v562_v13 = vld [vmem:[%s7285_s14 + $0x750] sm:$0xff]  ;;  %v599_v54 = vld [vmem:[%s7285_s14 + $0x878] sm:$0xff] }
 0x110   : > { %6104 = vmatpush1.bf16.msra.mxu0 %v6103_v14  ;;  %5082 = vmatprep.subr.bf16.mxu1 %v5081_v15  ;;  %v1584_v14 = vld [vmem:[%s7285_s14 + $0x2740] sm:$0xff]  ;;  %v6125_v15 = vpack.c.bf16 %v1587_v8, %v1585_v7  ;;  %v5103_v21 = vpack.c.bf16 %v562_v13, %v560_v12  ;;  %v5121_v7 = vpack.c.bf16 %v583_v2, %v581_v1  ;;  %v1606_v12 = vld [vmem:[%s7285_s14 + $0x27f0] sm:$0xff]  ;;  %v585_v13 = vld [vmem:[%s7285_s14 + $0x808] sm:$0xff] }
 0x111   : > { %6106 = vmatprep.subr.bf16.mxu0 %v6105_v19  ;;  %v1589_v19 = vld [vmem:[%s7285_s14 + $0x2768] sm:$0xff]  ;;  %v6127_v22 = vpack.c.bf16 %v1586_v16, %v1584_v14  ;;  %v580_v8 = vld [vmem:[%s7285_s14 + $0x7e0] sm:$0xff]  ;;  %v587_v14 = vld [vmem:[%s7285_s14 + $0x818] sm:$0xff] }
 0x112   : > { %v1611_v16 = vld [vmem:[%s7285_s14 + $0x2818] sm:$0xff]  ;;  %v601_v1 = vld [vmem:[%s7285_s14 + $0x888] sm:$0xff] }
 0x113   : > { %5084 = vmatpush1.bf16.msra.mxu1 %v5083_v25  ;;  %v566_v25 = vld [vmem:[%s7285_s14 + $0x770] sm:$0xff]  ;;  %v603_v2 = vld [vmem:[%s7285_s14 + $0x898] sm:$0xff] }
 0x114   : > { %6108 = vmatpush1.bf16.msra.mxu0 %v6107_v26  ;;  %5086 = vmatprep.subr.bf16.mxu1 %v5085_v27  ;;  %v1588_v26 = vld [vmem:[%s7285_s14 + $0x2760] sm:$0xff]  ;;  %v6129_v27 = vpack.c.bf16 %v1591_v20, %v1589_v19  ;;  %v5107_v33 = vpack.c.bf16 %v566_v25, %v564_v24  ;;  %v5125_v19 = vpack.c.bf16 %v587_v14, %v585_v13  ;;  %v1610_v24 = vld [vmem:[%s7285_s14 + $0x2810] sm:$0xff]  ;;  %v589_v25 = vld [vmem:[%s7285_s14 + $0x828] sm:$0xff] }
 0x115   : > { %6110 = vmatprep.subr.bf16.mxu0 %v6109_v31  ;;  %v1593_v31 = vld [vmem:[%s7285_s14 + $0x2788] sm:$0xff]  ;;  %v6131_v34 = vpack.c.bf16 %v1590_v28, %v1588_v26  ;;  %v584_v20 = vld [vmem:[%s7285_s14 + $0x800] sm:$0xff]  ;;  %v591_v26 = vld [vmem:[%s7285_s14 + $0x838] sm:$0xff] }
 0x116   : > { %v1615_v28 = vld [vmem:[%s7285_s14 + $0x2838] sm:$0xff]  ;;  %v605_v13 = vld [vmem:[%s7285_s14 + $0x8a8] sm:$0xff] }
 0x117   : > { %5088 = vmatpush1.bf16.msra.mxu1 %v5087_v37  ;;  %v570_v37 = vld [vmem:[%s7285_s14 + $0x790] sm:$0xff]  ;;  %v607_v14 = vld [vmem:[%s7285_s14 + $0x8b8] sm:$0xff] }
 0x118   : > { %6112 = vmatpush1.bf16.msra.mxu0 %v6111_v38  ;;  %5090 = vmatprep.subr.bf16.mxu1 %v5089_v39  ;;  %v1592_v38 = vld [vmem:[%s7285_s14 + $0x2780] sm:$0xff]  ;;  %v6133_v39 = vpack.c.bf16 %v1595_v32, %v1593_v31  ;;  %v5111_v45 = vpack.c.bf16 %v570_v37, %v568_v36 }
 0x119   : > { %6114 = vmatprep.subr.bf16.mxu0 %v6113_v43  ;;  %v1597_v43 = vld [vmem:[%s7285_s14 + $0x27a8] sm:$0xff]  ;;  %v6135_v46 = vpack.c.bf16 %v1594_v40, %v1592_v38  ;;  %v302_v31 = vld [vmem:[%s7295_s11 + $0x130] sm:$0xff]  ;;  %v1614_v38 = vld [vmem:[%s7285_s14 + $0x2830] sm:$0xff] }
 0x11a   : > { %v1612_v36 = vld [vmem:[%s7285_s14 + $0x2820] sm:$0xff]  ;;  %v595_v40 = vld [vmem:[%s7285_s14 + $0x858] sm:$0xff] }
 0x11b   : > { %5092 = vmatpush1.bf16.msra.mxu1 %v5091_v49  ;;  %v574_v49 = vld [vmem:[%s7285_s14 + $0x7b0] sm:$0xff] }
 0x11c   : > { %6116 = vmatpush1.bf16.msra.mxu0 %v6115_v50  ;;  %5094 = vmatprep.subr.bf16.mxu1 %v5093_v51  ;;  %v1596_v50 = vld [vmem:[%s7285_s14 + $0x27a0] sm:$0xff]  ;;  %v6137_v51 = vpack.c.bf16 %v1599_v44, %v1597_v43  ;;  %v5115_v57 = vpack.c.bf16 %v574_v49, %v572_v48  ;;  %v273_v43 = vld [vmem:[%s7295_s11 + $0x48] sm:$0xff]  ;;  %v594_v49 = vld [vmem:[%s7285_s14 + $0x850] sm:$0xff] }
 0x11d   : > { %6118 = vmatprep.subr.bf16.mxu0 %v6117_v55  ;;  %v1601_v55 = vld [vmem:[%s7285_s14 + $0x27c8] sm:$0xff]  ;;  %v6139_v58 = vpack.c.bf16 %v1598_v52, %v1596_v50  ;;  %v592_v48 = vld [vmem:[%s7285_s14 + $0x840] sm:$0xff]  ;;  %v1618_v52 = vld [vmem:[%s7285_s14 + $0x2850] sm:$0xff] }
 0x11e   : > { %v1616_v50 = vld [vmem:[%s7285_s14 + $0x2840] sm:$0xff] }
 0x11f   : > { %5096 = vmatpush1.bf16.msra.mxu1 %v5095_v61  ;;  %v578_v61 = vld [vmem:[%s7285_s14 + $0x7d0] sm:$0xff] }
 0x120   : > { %6120 = vmatpush1.bf16.msra.mxu0 %v6119_v62  ;;  %5098 = vmatprep.subr.bf16.mxu1 %v5097_v63  ;;  %v1600_v62 = vld [vmem:[%s7285_s14 + $0x27c0] sm:$0xff]  ;;  %v6141_v63 = vpack.c.bf16 %v1603_v56, %v1601_v55  ;;  %v5119_v5 = vpack.c.bf16 %v578_v61, %v576_v60  ;;  %v1621_v55 = vld [vmem:[%s7285_s14 + $0x2868] sm:$0xff]  ;;  %v1623_v56 = vld [vmem:[%s7285_s14 + $0x2878] sm:$0xff] }
 0x121   : > { %6122 = vmatprep.subr.bf16.mxu0 %v6121_v3  ;;  %v1605_v3 = vld [vmem:[%s7285_s14 + $0x27e8] sm:$0xff]  ;;  %v6143_v6 = vpack.c.bf16 %v1602_v0, %v1600_v62  ;;  %v596_v60 = vld [vmem:[%s7285_s14 + $0x860] sm:$0xff]  ;;  %v598_v61 = vld [vmem:[%s7285_s14 + $0x870] sm:$0xff] }
 0x122   : > { %v1620_v62 = vld [vmem:[%s7285_s14 + $0x2860] sm:$0xff]  ;;  %v1622_v0 = vld [vmem:[%s7285_s14 + $0x2870] sm:$0xff] }
 0x123   : > { %5100 = vmatpush1.bf16.msra.mxu1 %v5099_v9  ;;  %v582_v9 = vld [vmem:[%s7285_s14 + $0x7f0] sm:$0xff] }
 0x124   : > { %6124 = vmatpush1.bf16.msra.mxu0 %v6123_v10  ;;  %5102 = vmatprep.subr.bf16.mxu1 %v5101_v11  ;;  %v1604_v10 = vld [vmem:[%s7285_s14 + $0x27e0] sm:$0xff]  ;;  %v6145_v11 = vpack.c.bf16 %v1607_v4, %v1605_v3  ;;  %v5123_v17 = vpack.c.bf16 %v582_v9, %v580_v8  ;;  %v1625_v3 = vld [vmem:[%s7285_s14 + $0x2888] sm:$0xff]  ;;  %v1627_v4 = vld [vmem:[%s7285_s14 + $0x2898] sm:$0xff] }
 0x125   : > { %6126 = vmatprep.subr.bf16.mxu0 %v6125_v15  ;;  %v1609_v15 = vld [vmem:[%s7285_s14 + $0x2808] sm:$0xff]  ;;  %v6147_v18 = vpack.c.bf16 %v1606_v12, %v1604_v10  ;;  %v600_v8 = vld [vmem:[%s7285_s14 + $0x880] sm:$0xff]  ;;  %v602_v9 = vld [vmem:[%s7285_s14 + $0x890] sm:$0xff] }
 0x126   : > { %v1624_v10 = vld [vmem:[%s7285_s14 + $0x2880] sm:$0xff]  ;;  %v1626_v12 = vld [vmem:[%s7285_s14 + $0x2890] sm:$0xff] }
 0x127   : > { %5104 = vmatpush1.bf16.msra.mxu1 %v5103_v21  ;;  %v586_v21 = vld [vmem:[%s7285_s14 + $0x810] sm:$0xff] }
 0x128   : > { %6128 = vmatpush1.bf16.msra.mxu0 %v6127_v22  ;;  %5106 = vmatprep.subr.bf16.mxu1 %v5105_v23  ;;  %v1608_v22 = vld [vmem:[%s7285_s14 + $0x2800] sm:$0xff]  ;;  %v6149_v23 = vpack.c.bf16 %v1611_v16, %v1609_v15  ;;  %v5127_v30 = vpack.c.bf16 %v586_v21, %v584_v20  ;;  %v1629_v15 = vld [vmem:[%s7285_s14 + $0x28a8] sm:$0xff]  ;;  %v1631_v16 = vld [vmem:[%s7285_s14 + $0x28b8] sm:$0xff] }
 0x129   : > { %6130 = vmatprep.subr.bf16.mxu0 %v6129_v27  ;;  %v1613_v27 = vld [vmem:[%s7285_s14 + $0x2828] sm:$0xff]  ;;  %v6151_v32 = vpack.c.bf16 %v1610_v24, %v1608_v22  ;;  %v604_v20 = vld [vmem:[%s7285_s14 + $0x8a0] sm:$0xff]  ;;  %v606_v21 = vld [vmem:[%s7285_s14 + $0x8b0] sm:$0xff] }
 0x12a   : > { %v6153_v37 = vpack.c.bf16 %v1615_v28, %v1613_v27  ;;  %v1628_v22 = vld [vmem:[%s7285_s14 + $0x28a0] sm:$0xff]  ;;  %v1630_v24 = vld [vmem:[%s7285_s14 + $0x28b0] sm:$0xff]  ;;  %v1633_v27 = vld [vmem:[%s7285_s14 + $0x28c8] sm:$0xff] }
 0x12b   : > { %5108 = vmatpush1.bf16.msra.mxu1 %v5107_v33  ;;  %v5129_v33 = vpack.c.bf16 %v591_v26, %v589_v25  ;;  %v609_v25 = vld [vmem:[%s7285_s14 + $0x8c8] sm:$0xff]  ;;  %v611_v26 = vld [vmem:[%s7285_s14 + $0x8d8] sm:$0xff] }
 0x12c   : > { %6132 = vmatpush1.bf16.msra.mxu0 %v6131_v34  ;;  %5110 = vmatprep.subr.bf16.mxu1 %v5109_v35  ;;  %v588_v34 = vld [vmem:[%s7285_s14 + $0x820] sm:$0xff]  ;;  %v590_v35 = vld [vmem:[%s7285_s14 + $0x830] sm:$0xff]  ;;  %v1635_v28 = vld [vmem:[%s7285_s14 + $0x28d8] sm:$0xff] }
 0x12d   : > { %6134 = vmatprep.subr.bf16.mxu0 %v6133_v39  ;;  %v593_v39 = vld [vmem:[%s7285_s14 + $0x848] sm:$0xff]  ;;  %v5131_v44 = vpack.c.bf16 %v590_v35, %v588_v34  ;;  %v1632_v34 = vld [vmem:[%s7285_s14 + $0x28c0] sm:$0xff]  ;;  %v6173_v35 = vpack.c.bf16 %v1635_v28, %v1633_v27 }
 0x12e   : > { %v628_v28 = vld [vmem:[%s7285_s14 + $0x960] sm:$0xff] }
 0x12f   : > { %5112 = vmatpush1.bf16.msra.mxu1 %v5111_v45  ;;  %v305_v45 = vld [vmem:[%s7295_s11 + $0x148] sm:$0xff] }
 0x130   : > { %6136 = vmatpush1.bf16.msra.mxu0 %v6135_v46  ;;  %5114 = vmatprep.subr.bf16.mxu1 %v5113_v47  ;;  %v6155_v46 = vpack.c.bf16 %v1614_v38, %v1612_v36  ;;  %v5133_v47 = vpack.c.bf16 %v595_v40, %v593_v39  ;;  %v1634_v36 = vld [vmem:[%s7285_s14 + $0x28d0] sm:$0xff]  ;;  %v615_v38 = vld [vmem:[%s7285_s14 + $0x8f8] sm:$0xff]  ;;  %v1637_v39 = vld [vmem:[%s7285_s14 + $0x28e8] sm:$0xff] }
 0x131   : > { %6138 = vmatprep.subr.bf16.mxu0 %v6137_v51  ;;  %v6157_v51 = vpack.c.bf16 %v1619_v42, %v1617_v41  ;;  %v1639_v40 = vld [vmem:[%s7285_s14 + $0x28f8] sm:$0xff]  ;;  %v6175_v42 = vpack.c.bf16 %v1634_v36, %v1632_v34 }
 0x132   : > { %v635_v34 = vld [vmem:[%s7285_s14 + $0x998] sm:$0xff] }
 0x133   : > { %5116 = vmatpush1.bf16.msra.mxu1 %v5115_v57  ;;  %v5135_v57 = vpack.c.bf16 %v594_v49, %v592_v48  ;;  %v1638_v48 = vld [vmem:[%s7285_s14 + $0x28f0] sm:$0xff]  ;;  %v617_v49 = vld [vmem:[%s7285_s14 + $0x908] sm:$0xff]  ;;  %v1659_v36 = vld [vmem:[%s7285_s14 + $0x2998] sm:$0xff] }
 0x134   : > { %6140 = vmatpush1.bf16.msra.mxu0 %v6139_v58  ;;  %5118 = vmatprep.subr.bf16.mxu1 %v5117_v59  ;;  %v6159_v58 = vpack.c.bf16 %v1618_v52, %v1616_v50  ;;  %v5137_v59 = vpack.c.bf16 %v599_v54, %v597_v53  ;;  %v619_v50 = vld [vmem:[%s7285_s14 + $0x918] sm:$0xff] }
 0x135   : > { %6142 = vmatprep.subr.bf16.mxu0 %v6141_v63  ;;  %v6161_v63 = vpack.c.bf16 %v1623_v56, %v1621_v55  ;;  %v1643_v52 = vld [vmem:[%s7285_s14 + $0x2918] sm:$0xff]  ;;  %v5157_v55 = vpack.c.bf16 %v619_v50, %v617_v49  ;;  %v616_v56 = vld [vmem:[%s7285_s14 + $0x900] sm:$0xff] }
 0x137   : > { %5120 = vmatpush1.bf16.msra.mxu1 %v5119_v5  ;;  %v5139_v5 = vpack.c.bf16 %v598_v61, %v596_v60  ;;  %v1642_v60 = vld [vmem:[%s7285_s14 + $0x2910] sm:$0xff]  ;;  %v621_v61 = vld [vmem:[%s7285_s14 + $0x928] sm:$0xff] }
 0x138   : > { %6144 = vmatpush1.bf16.msra.mxu0 %v6143_v6  ;;  %5122 = vmatprep.subr.bf16.mxu1 %v5121_v7  ;;  %v6163_v6 = vpack.c.bf16 %v1622_v0, %v1620_v62  ;;  %v5141_v7 = vpack.c.bf16 %v603_v2, %v601_v1  ;;  %v623_v62 = vld [vmem:[%s7285_s14 + $0x938] sm:$0xff] }
 0x139   : > { %6146 = vmatprep.subr.bf16.mxu0 %v6145_v11  ;;  %v6165_v11 = vpack.c.bf16 %v1627_v4, %v1625_v3  ;;  %v1647_v0 = vld [vmem:[%s7285_s14 + $0x2938] sm:$0xff]  ;;  %v5161_v3 = vpack.c.bf16 %v623_v62, %v621_v61  ;;  %v620_v4 = vld [vmem:[%s7285_s14 + $0x920] sm:$0xff] }
 0x13b   : > { %5124 = vmatpush1.bf16.msra.mxu1 %v5123_v17  ;;  %v5143_v17 = vpack.c.bf16 %v602_v9, %v600_v8  ;;  %v1646_v8 = vld [vmem:[%s7285_s14 + $0x2930] sm:$0xff]  ;;  %v625_v9 = vld [vmem:[%s7285_s14 + $0x948] sm:$0xff] }
 0x13c   : > { %6148 = vmatpush1.bf16.msra.mxu0 %v6147_v18  ;;  %5126 = vmatprep.subr.bf16.mxu1 %v5125_v19  ;;  %v6167_v18 = vpack.c.bf16 %v1626_v12, %v1624_v10  ;;  %v5145_v19 = vpack.c.bf16 %v607_v14, %v605_v13  ;;  %v627_v10 = vld [vmem:[%s7285_s14 + $0x958] sm:$0xff] }
 0x13d   : > { %6150 = vmatprep.subr.bf16.mxu0 %v6149_v23  ;;  %v6169_v23 = vpack.c.bf16 %v1631_v16, %v1629_v15  ;;  %v1651_v12 = vld [vmem:[%s7285_s14 + $0x2958] sm:$0xff]  ;;  %v5165_v15 = vpack.c.bf16 %v627_v10, %v625_v9  ;;  %v624_v16 = vld [vmem:[%s7285_s14 + $0x940] sm:$0xff] }
 0x13e   : > { %2654 = vmatmul.mubr.f32.vlgmr.msra.gmra.mrb[0].mxu1 %v270_v29  ;;  %v5147_v29 = vpack.c.bf16 %v606_v21, %v604_v20  ;;  %v1650_v20 = vld [vmem:[%s7285_s14 + $0x2950] sm:$0xff]  ;;  %v629_v21 = vld [vmem:[%s7285_s14 + $0x968] sm:$0xff] }
 0x13f   : > { %5128 = vmatpush1.bf16.msra.mxu1 %v5127_v30  ;;  %3790 = vmatmul.mubr.f32.vlgmr.msra.gmra.mrb[0].mxu0 %v302_v31  ;;  %v6171_v30 = vpack.c.bf16 %v1630_v24, %v1628_v22  ;;  %v5149_v31 = vpack.c.bf16 %v611_v26, %v609_v25  ;;  %v631_v22 = vld [vmem:[%s7285_s14 + $0x978] sm:$0xff] }
 0x140   : > { %6152 = vmatpush1.bf16.msra.mxu0 %v6151_v32  ;;  %5130 = vmatprep.subr.bf16.mxu1 %v5129_v33  ;;  %v608_v32 = vld [vmem:[%s7285_s14 + $0x8c0] sm:$0xff]  ;;  %v610_v33 = vld [vmem:[%s7285_s14 + $0x8d0] sm:$0xff]  ;;  %v1655_v24 = vld [vmem:[%s7285_s14 + $0x2978] sm:$0xff]  ;;  %v5169_v27 = vpack.c.bf16 %v631_v22, %v629_v21 }
 0x141   : > { %6154 = vmatprep.subr.bf16.mxu0 %v6153_v37  ;;  %2724 = vmatprep.mubr.f32.mxu1 %v273_v43  ;;  %v613_v37 = vld [vmem:[%s7285_s14 + $0x8e8] sm:$0xff]  ;;  %v5151_v41 = vpack.c.bf16 %v610_v33, %v608_v32  ;;  %v1654_v32 = vld [vmem:[%s7285_s14 + $0x2970] sm:$0xff] }
 0x142   : > { %3860 = vmatprep.mubr.f32.mxu0 %v305_v45  ;;  %v5153_v43 = vpack.c.bf16 %v615_v38, %v613_v37  ;;  %v614_v45 = vld [vmem:[%s7285_s14 + $0x8f0] sm:$0xff]  ;;  %v633_v33 = vld [vmem:[%s7285_s14 + $0x988] sm:$0xff] }
 0x143   : > { %5132 = vmatpush1.bf16.msra.mxu1 %v5131_v44  ;;  %v612_v44 = vld [vmem:[%s7285_s14 + $0x8e0] sm:$0xff] }
 0x144   : > { %6156 = vmatpush1.bf16.msra.mxu0 %v6155_v46  ;;  %5134 = vmatprep.subr.bf16.mxu1 %v5133_v47  ;;  %v1636_v46 = vld [vmem:[%s7285_s14 + $0x28e0] sm:$0xff]  ;;  %v6177_v47 = vpack.c.bf16 %v1639_v40, %v1637_v39  ;;  %v5155_v53 = vpack.c.bf16 %v614_v45, %v612_v44  ;;  %v5173_v39 = vpack.c.bf16 %v635_v34, %v633_v33  ;;  %v1658_v44 = vld [vmem:[%s7285_s14 + $0x2990] sm:$0xff]  ;;  %v637_v45 = vld [vmem:[%s7285_s14 + $0x9a8] sm:$0xff] }
 0x145   : > { %6158 = vmatprep.subr.bf16.mxu0 %v6157_v51  ;;  %v1641_v51 = vld [vmem:[%s7285_s14 + $0x2908] sm:$0xff]  ;;  %v6179_v54 = vpack.c.bf16 %v1638_v48, %v1636_v46  ;;  %v632_v40 = vld [vmem:[%s7285_s14 + $0x980] sm:$0xff]  ;;  %v639_v46 = vld [vmem:[%s7285_s14 + $0x9b8] sm:$0xff] }
 0x146   : > { %v1663_v48 = vld [vmem:[%s7285_s14 + $0x29b8] sm:$0xff]  ;;  %v272_v33 = vld [vmem:[%s7295_s11 + $0x40] sm:$0xff] }
 0x147   : > { %5136 = vmatpush1.bf16.msra.mxu1 %v5135_v57  ;;  %v618_v57 = vld [vmem:[%s7285_s14 + $0x910] sm:$0xff] }
 0x148   : > { %6160 = vmatpush1.bf16.msra.mxu0 %v6159_v58  ;;  %5138 = vmatprep.subr.bf16.mxu1 %v5137_v59  ;;  %v1640_v58 = vld [vmem:[%s7285_s14 + $0x2900] sm:$0xff]  ;;  %v6181_v59 = vpack.c.bf16 %v1643_v52, %v1641_v51  ;;  %v5159_v1 = vpack.c.bf16 %v618_v57, %v616_v56  ;;  %v5177_v51 = vpack.c.bf16 %v639_v46, %v637_v45  ;;  %v1662_v56 = vld [vmem:[%s7285_s14 + $0x29b0] sm:$0xff]  ;;  %v641_v57 = vld [vmem:[%s7285_s14 + $0x9c8] sm:$0xff] }
 0x149   : > { %6162 = vmatprep.subr.bf16.mxu0 %v6161_v63  ;;  %v1645_v63 = vld [vmem:[%s7285_s14 + $0x2928] sm:$0xff]  ;;  %v6183_v2 = vpack.c.bf16 %v1642_v60, %v1640_v58  ;;  %v636_v52 = vld [vmem:[%s7285_s14 + $0x9a0] sm:$0xff]  ;;  %v643_v58 = vld [vmem:[%s7285_s14 + $0x9d8] sm:$0xff] }
 0x14a   : > { %v1667_v60 = vld [vmem:[%s7285_s14 + $0x29d8] sm:$0xff]  ;;  %v1681_v45 = vld [vmem:[%s7285_s14 + $0x2a48] sm:$0xff] }
 0x14b   : > { %5140 = vmatpush1.bf16.msra.mxu1 %v5139_v5  ;;  %v622_v5 = vld [vmem:[%s7285_s14 + $0x930] sm:$0xff]  ;;  %v1683_v46 = vld [vmem:[%s7285_s14 + $0x2a58] sm:$0xff] }
 0x14c   : > { %6164 = vmatpush1.bf16.msra.mxu0 %v6163_v6  ;;  %5142 = vmatprep.subr.bf16.mxu1 %v5141_v7  ;;  %v1644_v6 = vld [vmem:[%s7285_s14 + $0x2920] sm:$0xff]  ;;  %v6185_v7 = vpack.c.bf16 %v1647_v0, %v1645_v63  ;;  %v5163_v13 = vpack.c.bf16 %v622_v5, %v620_v4  ;;  %v5181_v63 = vpack.c.bf16 %v643_v58, %v641_v57  ;;  %v1666_v4 = vld [vmem:[%s7285_s14 + $0x29d0] sm:$0xff]  ;;  %v645_v5 = vld [vmem:[%s7285_s14 + $0x9e8] sm:$0xff] }
 0x14d   : > { %6166 = vmatprep.subr.bf16.mxu0 %v6165_v11  ;;  %v1649_v11 = vld [vmem:[%s7285_s14 + $0x2948] sm:$0xff]  ;;  %v6187_v14 = vpack.c.bf16 %v1646_v8, %v1644_v6  ;;  %v640_v0 = vld [vmem:[%s7285_s14 + $0x9c0] sm:$0xff]  ;;  %v647_v6 = vld [vmem:[%s7285_s14 + $0x9f8] sm:$0xff] }
 0x14e   : > { %v1671_v8 = vld [vmem:[%s7285_s14 + $0x29f8] sm:$0xff]  ;;  %v661_v57 = vld [vmem:[%s7285_s14 + $0xa68] sm:$0xff] }
 0x14f   : > { %5144 = vmatpush1.bf16.msra.mxu1 %v5143_v17  ;;  %v626_v17 = vld [vmem:[%s7285_s14 + $0x950] sm:$0xff]  ;;  %v663_v58 = vld [vmem:[%s7285_s14 + $0xa78] sm:$0xff] }
 0x150   : > { %6168 = vmatpush1.bf16.msra.mxu0 %v6167_v18  ;;  %5146 = vmatprep.subr.bf16.mxu1 %v5145_v19  ;;  %v1648_v18 = vld [vmem:[%s7285_s14 + $0x2940] sm:$0xff]  ;;  %v6189_v19 = vpack.c.bf16 %v1651_v12, %v1649_v11  ;;  %v5167_v25 = vpack.c.bf16 %v626_v17, %v624_v16  ;;  %v5185_v11 = vpack.c.bf16 %v647_v6, %v645_v5  ;;  %v1670_v16 = vld [vmem:[%s7285_s14 + $0x29f0] sm:$0xff]  ;;  %v649_v17 = vld [vmem:[%s7285_s14 + $0xa08] sm:$0xff] }
 0x151   : > { %6170 = vmatprep.subr.bf16.mxu0 %v6169_v23  ;;  %v1653_v23 = vld [vmem:[%s7285_s14 + $0x2968] sm:$0xff]  ;;  %v6191_v26 = vpack.c.bf16 %v1650_v20, %v1648_v18  ;;  %v644_v12 = vld [vmem:[%s7285_s14 + $0x9e0] sm:$0xff]  ;;  %v651_v18 = vld [vmem:[%s7285_s14 + $0xa18] sm:$0xff] }
 0x152   : > { %v1675_v20 = vld [vmem:[%s7285_s14 + $0x2a18] sm:$0xff]  ;;  %v665_v5 = vld [vmem:[%s7285_s14 + $0xa88] sm:$0xff] }
 0x153   : > { %5148 = vmatpush1.bf16.msra.mxu1 %v5147_v29  ;;  %v630_v29 = vld [vmem:[%s7285_s14 + $0x970] sm:$0xff]  ;;  %v667_v6 = vld [vmem:[%s7285_s14 + $0xa98] sm:$0xff] }
 0x154   : > { %6172 = vmatpush1.bf16.msra.mxu0 %v6171_v30  ;;  %5150 = vmatprep.subr.bf16.mxu1 %v5149_v31  ;;  %v1652_v30 = vld [vmem:[%s7285_s14 + $0x2960] sm:$0xff]  ;;  %v6193_v31 = vpack.c.bf16 %v1655_v24, %v1653_v23  ;;  %v5171_v37 = vpack.c.bf16 %v630_v29, %v628_v28  ;;  %v5189_v23 = vpack.c.bf16 %v651_v18, %v649_v17  ;;  %v1674_v28 = vld [vmem:[%s7285_s14 + $0x2a10] sm:$0xff]  ;;  %v653_v29 = vld [vmem:[%s7285_s14 + $0xa28] sm:$0xff] }
 0x155   : > { %6174 = vmatprep.subr.bf16.mxu0 %v6173_v35  ;;  %v1657_v35 = vld [vmem:[%s7285_s14 + $0x2988] sm:$0xff]  ;;  %v6195_v38 = vpack.c.bf16 %v1654_v32, %v1652_v30  ;;  %v648_v24 = vld [vmem:[%s7285_s14 + $0xa00] sm:$0xff]  ;;  %v655_v30 = vld [vmem:[%s7285_s14 + $0xa38] sm:$0xff] }
 0x156   : > { %v1679_v32 = vld [vmem:[%s7285_s14 + $0x2a38] sm:$0xff]  ;;  %v669_v17 = vld [vmem:[%s7285_s14 + $0xaa8] sm:$0xff] }
 0x157   : > { %5152 = vmatpush1.bf16.msra.mxu1 %v5151_v41  ;;  %v634_v41 = vld [vmem:[%s7285_s14 + $0x990] sm:$0xff]  ;;  %v671_v18 = vld [vmem:[%s7285_s14 + $0xab8] sm:$0xff] }
 0x158   : > { %6176 = vmatpush1.bf16.msra.mxu0 %v6175_v42  ;;  %5154 = vmatprep.subr.bf16.mxu1 %v5153_v43  ;;  %v1656_v42 = vld [vmem:[%s7285_s14 + $0x2980] sm:$0xff]  ;;  %v6197_v43 = vpack.c.bf16 %v1659_v36, %v1657_v35  ;;  %v5175_v49 = vpack.c.bf16 %v634_v41, %v632_v40  ;;  %v304_v35 = vld [vmem:[%s7295_s11 + $0x140] sm:$0xff] }
 0x159   : > { %6178 = vmatprep.subr.bf16.mxu0 %v6177_v47  ;;  %v1661_v47 = vld [vmem:[%s7285_s14 + $0x29a8] sm:$0xff]  ;;  %v6199_v50 = vpack.c.bf16 %v1658_v44, %v1656_v42  ;;  %v1676_v40 = vld [vmem:[%s7285_s14 + $0x2a20] sm:$0xff]  ;;  %v1678_v42 = vld [vmem:[%s7285_s14 + $0x2a30] sm:$0xff] }
 0x15a   : > { %v659_v44 = vld [vmem:[%s7285_s14 + $0xa58] sm:$0xff] }
 0x15b   : > { %5156 = vmatpush1.bf16.msra.mxu1 %v5155_v53  ;;  %v638_v53 = vld [vmem:[%s7285_s14 + $0x9b0] sm:$0xff] }
 0x15c   : > { %6180 = vmatpush1.bf16.msra.mxu0 %v6179_v54  ;;  %5158 = vmatprep.subr.bf16.mxu1 %v5157_v55  ;;  %v1660_v54 = vld [vmem:[%s7285_s14 + $0x29a0] sm:$0xff]  ;;  %v6201_v55 = vpack.c.bf16 %v1663_v48, %v1661_v47  ;;  %v5179_v61 = vpack.c.bf16 %v638_v53, %v636_v52  ;;  %v275_v47 = vld [vmem:[%s7295_s11 + $0x58] sm:$0xff]  ;;  %v658_v53 = vld [vmem:[%s7285_s14 + $0xa50] sm:$0xff] }
 0x15d   : > { %6182 = vmatprep.subr.bf16.mxu0 %v6181_v59  ;;  %v1665_v59 = vld [vmem:[%s7285_s14 + $0x29c8] sm:$0xff]  ;;  %v6203_v62 = vpack.c.bf16 %v1662_v56, %v1660_v54  ;;  %v656_v52 = vld [vmem:[%s7285_s14 + $0xa40] sm:$0xff]  ;;  %v1682_v56 = vld [vmem:[%s7285_s14 + $0x2a50] sm:$0xff] }
 0x15e   : > { %v1680_v54 = vld [vmem:[%s7285_s14 + $0x2a40] sm:$0xff] }
 0x15f   : > { %5160 = vmatpush1.bf16.msra.mxu1 %v5159_v1  ;;  %v642_v1 = vld [vmem:[%s7285_s14 + $0x9d0] sm:$0xff] }
 0x160   : > { %6184 = vmatpush1.bf16.msra.mxu0 %v6183_v2  ;;  %5162 = vmatprep.subr.bf16.mxu1 %v5161_v3  ;;  %v1664_v2 = vld [vmem:[%s7285_s14 + $0x29c0] sm:$0xff]  ;;  %v6205_v3 = vpack.c.bf16 %v1667_v60, %v1665_v59  ;;  %v5183_v9 = vpack.c.bf16 %v642_v1, %v640_v0  ;;  %v1685_v59 = vld [vmem:[%s7285_s14 + $0x2a68] sm:$0xff]  ;;  %v1687_v60 = vld [vmem:[%s7285_s14 + $0x2a78] sm:$0xff] }
 0x161   : > { %6186 = vmatprep.subr.bf16.mxu0 %v6185_v7  ;;  %v1669_v7 = vld [vmem:[%s7285_s14 + $0x29e8] sm:$0xff]  ;;  %v6207_v10 = vpack.c.bf16 %v1666_v4, %v1664_v2  ;;  %v660_v0 = vld [vmem:[%s7285_s14 + $0xa60] sm:$0xff]  ;;  %v662_v1 = vld [vmem:[%s7285_s14 + $0xa70] sm:$0xff] }
 0x162   : > { %v1684_v2 = vld [vmem:[%s7285_s14 + $0x2a60] sm:$0xff]  ;;  %v1686_v4 = vld [vmem:[%s7285_s14 + $0x2a70] sm:$0xff] }
 0x163   : > { %5164 = vmatpush1.bf16.msra.mxu1 %v5163_v13  ;;  %v646_v13 = vld [vmem:[%s7285_s14 + $0x9f0] sm:$0xff] }
 0x164   : > { %6188 = vmatpush1.bf16.msra.mxu0 %v6187_v14  ;;  %5166 = vmatprep.subr.bf16.mxu1 %v5165_v15  ;;  %v1668_v14 = vld [vmem:[%s7285_s14 + $0x29e0] sm:$0xff]  ;;  %v6209_v15 = vpack.c.bf16 %v1671_v8, %v1669_v7  ;;  %v5187_v21 = vpack.c.bf16 %v646_v13, %v644_v12  ;;  %v1689_v7 = vld [vmem:[%s7285_s14 + $0x2a88] sm:$0xff]  ;;  %v1691_v8 = vld [vmem:[%s7285_s14 + $0x2a98] sm:$0xff] }
 0x165   : > { %6190 = vmatprep.subr.bf16.mxu0 %v6189_v19  ;;  %v1673_v19 = vld [vmem:[%s7285_s14 + $0x2a08] sm:$0xff]  ;;  %v6211_v22 = vpack.c.bf16 %v1670_v16, %v1668_v14  ;;  %v664_v12 = vld [vmem:[%s7285_s14 + $0xa80] sm:$0xff]  ;;  %v666_v13 = vld [vmem:[%s7285_s14 + $0xa90] sm:$0xff] }
 0x166   : > { %v1688_v14 = vld [vmem:[%s7285_s14 + $0x2a80] sm:$0xff]  ;;  %v1690_v16 = vld [vmem:[%s7285_s14 + $0x2a90] sm:$0xff] }
 0x167   : > { %5168 = vmatpush1.bf16.msra.mxu1 %v5167_v25  ;;  %v650_v25 = vld [vmem:[%s7285_s14 + $0xa10] sm:$0xff] }
 0x168   : > { %6192 = vmatpush1.bf16.msra.mxu0 %v6191_v26  ;;  %5170 = vmatprep.subr.bf16.mxu1 %v5169_v27  ;;  %v1672_v26 = vld [vmem:[%s7285_s14 + $0x2a00] sm:$0xff]  ;;  %v6213_v27 = vpack.c.bf16 %v1675_v20, %v1673_v19  ;;  %v5191_v34 = vpack.c.bf16 %v650_v25, %v648_v24  ;;  %v1693_v19 = vld [vmem:[%s7285_s14 + $0x2aa8] sm:$0xff]  ;;  %v1695_v20 = vld [vmem:[%s7285_s14 + $0x2ab8] sm:$0xff] }
 0x169   : > { %6194 = vmatprep.subr.bf16.mxu0 %v6193_v31  ;;  %v1677_v31 = vld [vmem:[%s7285_s14 + $0x2a28] sm:$0xff]  ;;  %v6215_v36 = vpack.c.bf16 %v1674_v28, %v1672_v26  ;;  %v668_v24 = vld [vmem:[%s7285_s14 + $0xaa0] sm:$0xff]  ;;  %v670_v25 = vld [vmem:[%s7285_s14 + $0xab0] sm:$0xff] }
 0x16a   : > { %v6217_v41 = vpack.c.bf16 %v1679_v32, %v1677_v31  ;;  %v1692_v26 = vld [vmem:[%s7285_s14 + $0x2aa0] sm:$0xff]  ;;  %v1694_v28 = vld [vmem:[%s7285_s14 + $0x2ab0] sm:$0xff]  ;;  %v1697_v31 = vld [vmem:[%s7285_s14 + $0x2ac8] sm:$0xff] }
 0x16b   : > { %5172 = vmatpush1.bf16.msra.mxu1 %v5171_v37  ;;  %v5193_v37 = vpack.c.bf16 %v655_v30, %v653_v29  ;;  %v673_v29 = vld [vmem:[%s7285_s14 + $0xac8] sm:$0xff]  ;;  %v675_v30 = vld [vmem:[%s7285_s14 + $0xad8] sm:$0xff] }
 0x16c   : > { %6196 = vmatpush1.bf16.msra.mxu0 %v6195_v38  ;;  %5174 = vmatprep.subr.bf16.mxu1 %v5173_v39  ;;  %v652_v38 = vld [vmem:[%s7285_s14 + $0xa20] sm:$0xff]  ;;  %v654_v39 = vld [vmem:[%s7285_s14 + $0xa30] sm:$0xff]  ;;  %v1699_v32 = vld [vmem:[%s7285_s14 + $0x2ad8] sm:$0xff] }
 0x16d   : > { %6198 = vmatprep.subr.bf16.mxu0 %v6197_v43  ;;  %v657_v43 = vld [vmem:[%s7285_s14 + $0xa48] sm:$0xff]  ;;  %v5195_v48 = vpack.c.bf16 %v654_v39, %v652_v38  ;;  %v1696_v38 = vld [vmem:[%s7285_s14 + $0x2ac0] sm:$0xff]  ;;  %v6237_v39 = vpack.c.bf16 %v1699_v32, %v1697_v31 }
 0x16e   : > { %v692_v32 = vld [vmem:[%s7285_s14 + $0xb60] sm:$0xff] }
 0x16f   : > { %5176 = vmatpush1.bf16.msra.mxu1 %v5175_v49  ;;  %v307_v49 = vld [vmem:[%s7295_s11 + $0x158] sm:$0xff] }
 0x170   : > { %6200 = vmatpush1.bf16.msra.mxu0 %v6199_v50  ;;  %5178 = vmatprep.subr.bf16.mxu1 %v5177_v51  ;;  %v6219_v50 = vpack.c.bf16 %v1678_v42, %v1676_v40  ;;  %v5197_v51 = vpack.c.bf16 %v659_v44, %v657_v43  ;;  %v1698_v40 = vld [vmem:[%s7285_s14 + $0x2ad0] sm:$0xff]  ;;  %v679_v42 = vld [vmem:[%s7285_s14 + $0xaf8] sm:$0xff]  ;;  %v1701_v43 = vld [vmem:[%s7285_s14 + $0x2ae8] sm:$0xff] }
 0x171   : > { %6202 = vmatprep.subr.bf16.mxu0 %v6201_v55  ;;  %v6221_v55 = vpack.c.bf16 %v1683_v46, %v1681_v45  ;;  %v1703_v44 = vld [vmem:[%s7285_s14 + $0x2af8] sm:$0xff]  ;;  %v6239_v46 = vpack.c.bf16 %v1698_v40, %v1696_v38 }
 0x172   : > { %v699_v38 = vld [vmem:[%s7285_s14 + $0xb98] sm:$0xff] }
 0x173   : > { %5180 = vmatpush1.bf16.msra.mxu1 %v5179_v61  ;;  %v5199_v61 = vpack.c.bf16 %v658_v53, %v656_v52  ;;  %v1702_v52 = vld [vmem:[%s7285_s14 + $0x2af0] sm:$0xff]  ;;  %v681_v53 = vld [vmem:[%s7285_s14 + $0xb08] sm:$0xff]  ;;  %v1723_v40 = vld [vmem:[%s7285_s14 + $0x2b98] sm:$0xff] }
 0x174   : > { %6204 = vmatpush1.bf16.msra.mxu0 %v6203_v62  ;;  %5182 = vmatprep.subr.bf16.mxu1 %v5181_v63  ;;  %v6223_v62 = vpack.c.bf16 %v1682_v56, %v1680_v54  ;;  %v5201_v63 = vpack.c.bf16 %v663_v58, %v661_v57  ;;  %v683_v54 = vld [vmem:[%s7285_s14 + $0xb18] sm:$0xff] }
 0x175   : > { %6206 = vmatprep.subr.bf16.mxu0 %v6205_v3  ;;  %v6225_v3 = vpack.c.bf16 %v1687_v60, %v1685_v59  ;;  %v1707_v56 = vld [vmem:[%s7285_s14 + $0x2b18] sm:$0xff]  ;;  %v5221_v59 = vpack.c.bf16 %v683_v54, %v681_v53  ;;  %v680_v60 = vld [vmem:[%s7285_s14 + $0xb00] sm:$0xff] }
 0x177   : > { %5184 = vmatpush1.bf16.msra.mxu1 %v5183_v9  ;;  %v5203_v9 = vpack.c.bf16 %v662_v1, %v660_v0  ;;  %v1706_v0 = vld [vmem:[%s7285_s14 + $0x2b10] sm:$0xff]  ;;  %v685_v1 = vld [vmem:[%s7285_s14 + $0xb28] sm:$0xff] }
 0x178   : > { %6208 = vmatpush1.bf16.msra.mxu0 %v6207_v10  ;;  %5186 = vmatprep.subr.bf16.mxu1 %v5185_v11  ;;  %v6227_v10 = vpack.c.bf16 %v1686_v4, %v1684_v2  ;;  %v5205_v11 = vpack.c.bf16 %v667_v6, %v665_v5  ;;  %v687_v2 = vld [vmem:[%s7285_s14 + $0xb38] sm:$0xff] }
 0x179   : > { %6210 = vmatprep.subr.bf16.mxu0 %v6209_v15  ;;  %v6229_v15 = vpack.c.bf16 %v1691_v8, %v1689_v7  ;;  %v1711_v4 = vld [vmem:[%s7285_s14 + $0x2b38] sm:$0xff]  ;;  %v5225_v7 = vpack.c.bf16 %v687_v2, %v685_v1  ;;  %v684_v8 = vld [vmem:[%s7285_s14 + $0xb20] sm:$0xff] }
 0x17b   : > { %5188 = vmatpush1.bf16.msra.mxu1 %v5187_v21  ;;  %v5207_v21 = vpack.c.bf16 %v666_v13, %v664_v12  ;;  %v1710_v12 = vld [vmem:[%s7285_s14 + $0x2b30] sm:$0xff]  ;;  %v689_v13 = vld [vmem:[%s7285_s14 + $0xb48] sm:$0xff] }
 0x17c   : > { %6212 = vmatpush1.bf16.msra.mxu0 %v6211_v22  ;;  %5190 = vmatprep.subr.bf16.mxu1 %v5189_v23  ;;  %v6231_v22 = vpack.c.bf16 %v1690_v16, %v1688_v14  ;;  %v5209_v23 = vpack.c.bf16 %v671_v18, %v669_v17  ;;  %v691_v14 = vld [vmem:[%s7285_s14 + $0xb58] sm:$0xff] }
 0x17d   : > { %6214 = vmatprep.subr.bf16.mxu0 %v6213_v27  ;;  %v6233_v27 = vpack.c.bf16 %v1695_v20, %v1693_v19  ;;  %v1715_v16 = vld [vmem:[%s7285_s14 + $0x2b58] sm:$0xff]  ;;  %v5229_v19 = vpack.c.bf16 %v691_v14, %v689_v13  ;;  %v688_v20 = vld [vmem:[%s7285_s14 + $0xb40] sm:$0xff] }
 0x17e   : > { %2725 = vmatmul.mubr.f32.vlgmr.msra.gmra.mrb[0].mxu1 %v272_v33  ;;  %v5211_v33 = vpack.c.bf16 %v670_v25, %v668_v24  ;;  %v1714_v24 = vld [vmem:[%s7285_s14 + $0x2b50] sm:$0xff]  ;;  %v693_v25 = vld [vmem:[%s7285_s14 + $0xb68] sm:$0xff] }
 0x17f   : > { %5192 = vmatpush1.bf16.msra.mxu1 %v5191_v34  ;;  %3861 = vmatmul.mubr.f32.vlgmr.msra.gmra.mrb[0].mxu0 %v304_v35  ;;  %v6235_v34 = vpack.c.bf16 %v1694_v28, %v1692_v26  ;;  %v5213_v35 = vpack.c.bf16 %v675_v30, %v673_v29  ;;  %v695_v26 = vld [vmem:[%s7285_s14 + $0xb78] sm:$0xff] }
 0x180   : > { %6216 = vmatpush1.bf16.msra.mxu0 %v6215_v36  ;;  %5194 = vmatprep.subr.bf16.mxu1 %v5193_v37  ;;  %v672_v36 = vld [vmem:[%s7285_s14 + $0xac0] sm:$0xff]  ;;  %v674_v37 = vld [vmem:[%s7285_s14 + $0xad0] sm:$0xff]  ;;  %v1719_v28 = vld [vmem:[%s7285_s14 + $0x2b78] sm:$0xff]  ;;  %v5233_v31 = vpack.c.bf16 %v695_v26, %v693_v25 }
 0x181   : > { %6218 = vmatprep.subr.bf16.mxu0 %v6217_v41  ;;  %2795 = vmatprep.mubr.f32.mxu1 %v275_v47  ;;  %v677_v41 = vld [vmem:[%s7285_s14 + $0xae8] sm:$0xff]  ;;  %v5215_v45 = vpack.c.bf16 %v674_v37, %v672_v36  ;;  %v1718_v36 = vld [vmem:[%s7285_s14 + $0x2b70] sm:$0xff] }
 0x182   : > { %3931 = vmatprep.mubr.f32.mxu0 %v307_v49  ;;  %v5217_v47 = vpack.c.bf16 %v679_v42, %v677_v41  ;;  %v678_v49 = vld [vmem:[%s7285_s14 + $0xaf0] sm:$0xff]  ;;  %v697_v37 = vld [vmem:[%s7285_s14 + $0xb88] sm:$0xff] }
 0x183   : > { %5196 = vmatpush1.bf16.msra.mxu1 %v5195_v48  ;;  %v676_v48 = vld [vmem:[%s7285_s14 + $0xae0] sm:$0xff] }
 0x184   : > { %6220 = vmatpush1.bf16.msra.mxu0 %v6219_v50  ;;  %5198 = vmatprep.subr.bf16.mxu1 %v5197_v51  ;;  %v1700_v50 = vld [vmem:[%s7285_s14 + $0x2ae0] sm:$0xff]  ;;  %v6241_v51 = vpack.c.bf16 %v1703_v44, %v1701_v43  ;;  %v5219_v57 = vpack.c.bf16 %v678_v49, %v676_v48  ;;  %v5237_v43 = vpack.c.bf16 %v699_v38, %v697_v37  ;;  %v1722_v48 = vld [vmem:[%s7285_s14 + $0x2b90] sm:$0xff]  ;;  %v701_v49 = vld [vmem:[%s7285_s14 + $0xba8] sm:$0xff] }
 0x185   : > { %6222 = vmatprep.subr.bf16.mxu0 %v6221_v55  ;;  %v1705_v55 = vld [vmem:[%s7285_s14 + $0x2b08] sm:$0xff]  ;;  %v6243_v58 = vpack.c.bf16 %v1702_v52, %v1700_v50  ;;  %v696_v44 = vld [vmem:[%s7285_s14 + $0xb80] sm:$0xff]  ;;  %v703_v50 = vld [vmem:[%s7285_s14 + $0xbb8] sm:$0xff] }
 0x186   : > { %v1727_v52 = vld [vmem:[%s7285_s14 + $0x2bb8] sm:$0xff]  ;;  %v274_v37 = vld [vmem:[%s7295_s11 + $0x50] sm:$0xff] }
 0x187   : > { %5200 = vmatpush1.bf16.msra.mxu1 %v5199_v61  ;;  %v682_v61 = vld [vmem:[%s7285_s14 + $0xb10] sm:$0xff] }
 0x188   : > { %6224 = vmatpush1.bf16.msra.mxu0 %v6223_v62  ;;  %5202 = vmatprep.subr.bf16.mxu1 %v5201_v63  ;;  %v1704_v62 = vld [vmem:[%s7285_s14 + $0x2b00] sm:$0xff]  ;;  %v6245_v63 = vpack.c.bf16 %v1707_v56, %v1705_v55  ;;  %v5223_v5 = vpack.c.bf16 %v682_v61, %v680_v60  ;;  %v5241_v55 = vpack.c.bf16 %v703_v50, %v701_v49  ;;  %v1726_v60 = vld [vmem:[%s7285_s14 + $0x2bb0] sm:$0xff]  ;;  %v705_v61 = vld [vmem:[%s7285_s14 + $0xbc8] sm:$0xff] }
 0x189   : > { %6226 = vmatprep.subr.bf16.mxu0 %v6225_v3  ;;  %v1709_v3 = vld [vmem:[%s7285_s14 + $0x2b28] sm:$0xff]  ;;  %v6247_v6 = vpack.c.bf16 %v1706_v0, %v1704_v62  ;;  %v700_v56 = vld [vmem:[%s7285_s14 + $0xba0] sm:$0xff]  ;;  %v707_v62 = vld [vmem:[%s7285_s14 + $0xbd8] sm:$0xff] }
 0x18a   : > { %v1731_v0 = vld [vmem:[%s7285_s14 + $0x2bd8] sm:$0xff]  ;;  %v1745_v49 = vld [vmem:[%s7285_s14 + $0x2c48] sm:$0xff] }
 0x18b   : > { %5204 = vmatpush1.bf16.msra.mxu1 %v5203_v9  ;;  %v686_v9 = vld [vmem:[%s7285_s14 + $0xb30] sm:$0xff]  ;;  %v1747_v50 = vld [vmem:[%s7285_s14 + $0x2c58] sm:$0xff] }
 0x18c   : > { %6228 = vmatpush1.bf16.msra.mxu0 %v6227_v10  ;;  %5206 = vmatprep.subr.bf16.mxu1 %v5205_v11  ;;  %v1708_v10 = vld [vmem:[%s7285_s14 + $0x2b20] sm:$0xff]  ;;  %v6249_v11 = vpack.c.bf16 %v1711_v4, %v1709_v3  ;;  %v5227_v17 = vpack.c.bf16 %v686_v9, %v684_v8  ;;  %v5245_v3 = vpack.c.bf16 %v707_v62, %v705_v61  ;;  %v1730_v8 = vld [vmem:[%s7285_s14 + $0x2bd0] sm:$0xff]  ;;  %v709_v9 = vld [vmem:[%s7285_s14 + $0xbe8] sm:$0xff] }
 0x18d   : > { %6230 = vmatprep.subr.bf16.mxu0 %v6229_v15  ;;  %v1713_v15 = vld [vmem:[%s7285_s14 + $0x2b48] sm:$0xff]  ;;  %v6251_v18 = vpack.c.bf16 %v1710_v12, %v1708_v10  ;;  %v704_v4 = vld [vmem:[%s7285_s14 + $0xbc0] sm:$0xff]  ;;  %v711_v10 = vld [vmem:[%s7285_s14 + $0xbf8] sm:$0xff] }
 0x18e   : > { %v1735_v12 = vld [vmem:[%s7285_s14 + $0x2bf8] sm:$0xff]  ;;  %v725_v61 = vld [vmem:[%s7285_s14 + $0xc68] sm:$0xff] }
 0x18f   : > { %5208 = vmatpush1.bf16.msra.mxu1 %v5207_v21  ;;  %v690_v21 = vld [vmem:[%s7285_s14 + $0xb50] sm:$0xff]  ;;  %v727_v62 = vld [vmem:[%s7285_s14 + $0xc78] sm:$0xff] }
 0x190   : > { %6232 = vmatpush1.bf16.msra.mxu0 %v6231_v22  ;;  %5210 = vmatprep.subr.bf16.mxu1 %v5209_v23  ;;  %v1712_v22 = vld [vmem:[%s7285_s14 + $0x2b40] sm:$0xff]  ;;  %v6253_v23 = vpack.c.bf16 %v1715_v16, %v1713_v15  ;;  %v5231_v29 = vpack.c.bf16 %v690_v21, %v688_v20  ;;  %v5249_v15 = vpack.c.bf16 %v711_v10, %v709_v9  ;;  %v1734_v20 = vld [vmem:[%s7285_s14 + $0x2bf0] sm:$0xff]  ;;  %v713_v21 = vld [vmem:[%s7285_s14 + $0xc08] sm:$0xff] }
 0x191   : > { %6234 = vmatprep.subr.bf16.mxu0 %v6233_v27  ;;  %v1717_v27 = vld [vmem:[%s7285_s14 + $0x2b68] sm:$0xff]  ;;  %v6255_v30 = vpack.c.bf16 %v1714_v24, %v1712_v22  ;;  %v708_v16 = vld [vmem:[%s7285_s14 + $0xbe0] sm:$0xff]  ;;  %v715_v22 = vld [vmem:[%s7285_s14 + $0xc18] sm:$0xff] }
 0x192   : > { %v1739_v24 = vld [vmem:[%s7285_s14 + $0x2c18] sm:$0xff]  ;;  %v729_v9 = vld [vmem:[%s7285_s14 + $0xc88] sm:$0xff] }
 0x193   : > { %5212 = vmatpush1.bf16.msra.mxu1 %v5211_v33  ;;  %v694_v33 = vld [vmem:[%s7285_s14 + $0xb70] sm:$0xff]  ;;  %v731_v10 = vld [vmem:[%s7285_s14 + $0xc98] sm:$0xff] }
 0x194   : > { %6236 = vmatpush1.bf16.msra.mxu0 %v6235_v34  ;;  %5214 = vmatprep.subr.bf16.mxu1 %v5213_v35  ;;  %v1716_v34 = vld [vmem:[%s7285_s14 + $0x2b60] sm:$0xff]  ;;  %v6257_v35 = vpack.c.bf16 %v1719_v28, %v1717_v27  ;;  %v5235_v41 = vpack.c.bf16 %v694_v33, %v692_v32  ;;  %v5253_v27 = vpack.c.bf16 %v715_v22, %v713_v21  ;;  %v1738_v32 = vld [vmem:[%s7285_s14 + $0x2c10] sm:$0xff]  ;;  %v717_v33 = vld [vmem:[%s7285_s14 + $0xc28] sm:$0xff] }
 0x195   : > { %6238 = vmatprep.subr.bf16.mxu0 %v6237_v39  ;;  %v1721_v39 = vld [vmem:[%s7285_s14 + $0x2b88] sm:$0xff]  ;;  %v6259_v42 = vpack.c.bf16 %v1718_v36, %v1716_v34  ;;  %v712_v28 = vld [vmem:[%s7285_s14 + $0xc00] sm:$0xff]  ;;  %v719_v34 = vld [vmem:[%s7285_s14 + $0xc38] sm:$0xff] }
 0x196   : > { %v1743_v36 = vld [vmem:[%s7285_s14 + $0x2c38] sm:$0xff]  ;;  %v733_v21 = vld [vmem:[%s7285_s14 + $0xca8] sm:$0xff] }
 0x197   : > { %5216 = vmatpush1.bf16.msra.mxu1 %v5215_v45  ;;  %v698_v45 = vld [vmem:[%s7285_s14 + $0xb90] sm:$0xff]  ;;  %v735_v22 = vld [vmem:[%s7285_s14 + $0xcb8] sm:$0xff] }
 0x198   : > { %6240 = vmatpush1.bf16.msra.mxu0 %v6239_v46  ;;  %5218 = vmatprep.subr.bf16.mxu1 %v5217_v47  ;;  %v1720_v46 = vld [vmem:[%s7285_s14 + $0x2b80] sm:$0xff]  ;;  %v6261_v47 = vpack.c.bf16 %v1723_v40, %v1721_v39  ;;  %v5239_v53 = vpack.c.bf16 %v698_v45, %v696_v44 }
 0x199   : > { %6242 = vmatprep.subr.bf16.mxu0 %v6241_v51  ;;  %v1725_v51 = vld [vmem:[%s7285_s14 + $0x2ba8] sm:$0xff]  ;;  %v6263_v54 = vpack.c.bf16 %v1722_v48, %v1720_v46  ;;  %v306_v39 = vld [vmem:[%s7295_s11 + $0x150] sm:$0xff]  ;;  %v1742_v46 = vld [vmem:[%s7285_s14 + $0x2c30] sm:$0xff] }
 0x19a   : > { %v1740_v44 = vld [vmem:[%s7285_s14 + $0x2c20] sm:$0xff]  ;;  %v723_v48 = vld [vmem:[%s7285_s14 + $0xc58] sm:$0xff] }
 0x19b   : > { %5220 = vmatpush1.bf16.msra.mxu1 %v5219_v57  ;;  %v702_v57 = vld [vmem:[%s7285_s14 + $0xbb0] sm:$0xff] }
 0x19c   : > { %6244 = vmatpush1.bf16.msra.mxu0 %v6243_v58  ;;  %5222 = vmatprep.subr.bf16.mxu1 %v5221_v59  ;;  %v1724_v58 = vld [vmem:[%s7285_s14 + $0x2ba0] sm:$0xff]  ;;  %v6265_v59 = vpack.c.bf16 %v1727_v52, %v1725_v51  ;;  %v5243_v1 = vpack.c.bf16 %v702_v57, %v700_v56  ;;  %v277_v51 = vld [vmem:[%s7295_s11 + $0x68] sm:$0xff]  ;;  %v722_v57 = vld [vmem:[%s7285_s14 + $0xc50] sm:$0xff] }
 0x19d   : > { %6246 = vmatprep.subr.bf16.mxu0 %v6245_v63  ;;  %v1729_v63 = vld [vmem:[%s7285_s14 + $0x2bc8] sm:$0xff]  ;;  %v6267_v2 = vpack.c.bf16 %v1726_v60, %v1724_v58  ;;  %v720_v56 = vld [vmem:[%s7285_s14 + $0xc40] sm:$0xff]  ;;  %v1746_v60 = vld [vmem:[%s7285_s14 + $0x2c50] sm:$0xff] }
 0x19e   : > { %v1744_v58 = vld [vmem:[%s7285_s14 + $0x2c40] sm:$0xff] }
 0x19f   : > { %5224 = vmatpush1.bf16.msra.mxu1 %v5223_v5  ;;  %v706_v5 = vld [vmem:[%s7285_s14 + $0xbd0] sm:$0xff] }
 0x1a0   : > { %6248 = vmatpush1.bf16.msra.mxu0 %v6247_v6  ;;  %5226 = vmatprep.subr.bf16.mxu1 %v5225_v7  ;;  %v1728_v6 = vld [vmem:[%s7285_s14 + $0x2bc0] sm:$0xff]  ;;  %v6269_v7 = vpack.c.bf16 %v1731_v0, %v1729_v63  ;;  %v5247_v13 = vpack.c.bf16 %v706_v5, %v704_v4  ;;  %v1749_v63 = vld [vmem:[%s7285_s14 + $0x2c68] sm:$0xff]  ;;  %v1751_v0 = vld [vmem:[%s7285_s14 + $0x2c78] sm:$0xff] }
 0x1a1   : > { %6250 = vmatprep.subr.bf16.mxu0 %v6249_v11  ;;  %v1733_v11 = vld [vmem:[%s7285_s14 + $0x2be8] sm:$0xff]  ;;  %v6271_v14 = vpack.c.bf16 %v1730_v8, %v1728_v6  ;;  %v724_v4 = vld [vmem:[%s7285_s14 + $0xc60] sm:$0xff]  ;;  %v726_v5 = vld [vmem:[%s7285_s14 + $0xc70] sm:$0xff] }
 0x1a2   : > { %v1748_v6 = vld [vmem:[%s7285_s14 + $0x2c60] sm:$0xff]  ;;  %v1750_v8 = vld [vmem:[%s7285_s14 + $0x2c70] sm:$0xff] }
 0x1a3   : > { %5228 = vmatpush1.bf16.msra.mxu1 %v5227_v17  ;;  %v710_v17 = vld [vmem:[%s7285_s14 + $0xbf0] sm:$0xff] }
 0x1a4   : > { %6252 = vmatpush1.bf16.msra.mxu0 %v6251_v18  ;;  %5230 = vmatprep.subr.bf16.mxu1 %v5229_v19  ;;  %v1732_v18 = vld [vmem:[%s7285_s14 + $0x2be0] sm:$0xff]  ;;  %v6273_v19 = vpack.c.bf16 %v1735_v12, %v1733_v11  ;;  %v5251_v25 = vpack.c.bf16 %v710_v17, %v708_v16  ;;  %v1753_v11 = vld [vmem:[%s7285_s14 + $0x2c88] sm:$0xff]  ;;  %v1755_v12 = vld [vmem:[%s7285_s14 + $0x2c98] sm:$0xff] }
 0x1a5   : > { %6254 = vmatprep.subr.bf16.mxu0 %v6253_v23  ;;  %v1737_v23 = vld [vmem:[%s7285_s14 + $0x2c08] sm:$0xff]  ;;  %v6275_v26 = vpack.c.bf16 %v1734_v20, %v1732_v18  ;;  %v728_v16 = vld [vmem:[%s7285_s14 + $0xc80] sm:$0xff]  ;;  %v730_v17 = vld [vmem:[%s7285_s14 + $0xc90] sm:$0xff] }
 0x1a6   : > { %v1752_v18 = vld [vmem:[%s7285_s14 + $0x2c80] sm:$0xff]  ;;  %v1754_v20 = vld [vmem:[%s7285_s14 + $0x2c90] sm:$0xff] }
 0x1a7   : > { %5232 = vmatpush1.bf16.msra.mxu1 %v5231_v29  ;;  %v714_v29 = vld [vmem:[%s7285_s14 + $0xc10] sm:$0xff] }
 0x1a8   : > { %6256 = vmatpush1.bf16.msra.mxu0 %v6255_v30  ;;  %5234 = vmatprep.subr.bf16.mxu1 %v5233_v31  ;;  %v1736_v30 = vld [vmem:[%s7285_s14 + $0x2c00] sm:$0xff]  ;;  %v6277_v31 = vpack.c.bf16 %v1739_v24, %v1737_v23  ;;  %v5255_v38 = vpack.c.bf16 %v714_v29, %v712_v28  ;;  %v1757_v23 = vld [vmem:[%s7285_s14 + $0x2ca8] sm:$0xff]  ;;  %v1759_v24 = vld [vmem:[%s7285_s14 + $0x2cb8] sm:$0xff] }
 0x1a9   : > { %6258 = vmatprep.subr.bf16.mxu0 %v6257_v35  ;;  %v1741_v35 = vld [vmem:[%s7285_s14 + $0x2c28] sm:$0xff]  ;;  %v6279_v40 = vpack.c.bf16 %v1738_v32, %v1736_v30  ;;  %v732_v28 = vld [vmem:[%s7285_s14 + $0xca0] sm:$0xff]  ;;  %v734_v29 = vld [vmem:[%s7285_s14 + $0xcb0] sm:$0xff] }
 0x1aa   : > { %v6281_v45 = vpack.c.bf16 %v1743_v36, %v1741_v35  ;;  %v1756_v30 = vld [vmem:[%s7285_s14 + $0x2ca0] sm:$0xff]  ;;  %v1758_v32 = vld [vmem:[%s7285_s14 + $0x2cb0] sm:$0xff]  ;;  %v1761_v35 = vld [vmem:[%s7285_s14 + $0x2cc8] sm:$0xff] }
 0x1ab   : > { %5236 = vmatpush1.bf16.msra.mxu1 %v5235_v41  ;;  %v5257_v41 = vpack.c.bf16 %v719_v34, %v717_v33  ;;  %v737_v33 = vld [vmem:[%s7285_s14 + $0xcc8] sm:$0xff]  ;;  %v739_v34 = vld [vmem:[%s7285_s14 + $0xcd8] sm:$0xff] }
 0x1ac   : > { %6260 = vmatpush1.bf16.msra.mxu0 %v6259_v42  ;;  %5238 = vmatprep.subr.bf16.mxu1 %v5237_v43  ;;  %v716_v42 = vld [vmem:[%s7285_s14 + $0xc20] sm:$0xff]  ;;  %v718_v43 = vld [vmem:[%s7285_s14 + $0xc30] sm:$0xff]  ;;  %v1763_v36 = vld [vmem:[%s7285_s14 + $0x2cd8] sm:$0xff] }
 0x1ad   : > { %6262 = vmatprep.subr.bf16.mxu0 %v6261_v47  ;;  %v721_v47 = vld [vmem:[%s7285_s14 + $0xc48] sm:$0xff]  ;;  %v5259_v52 = vpack.c.bf16 %v718_v43, %v716_v42  ;;  %v1760_v42 = vld [vmem:[%s7285_s14 + $0x2cc0] sm:$0xff]  ;;  %v6301_v43 = vpack.c.bf16 %v1763_v36, %v1761_v35 }
 0x1ae   : > { %v756_v36 = vld [vmem:[%s7285_s14 + $0xd60] sm:$0xff] }
 0x1af   : > { %5240 = vmatpush1.bf16.msra.mxu1 %v5239_v53  ;;  %v309_v53 = vld [vmem:[%s7295_s11 + $0x168] sm:$0xff] }
 0x1b0   : > { %6264 = vmatpush1.bf16.msra.mxu0 %v6263_v54  ;;  %5242 = vmatprep.subr.bf16.mxu1 %v5241_v55  ;;  %v6283_v54 = vpack.c.bf16 %v1742_v46, %v1740_v44  ;;  %v5261_v55 = vpack.c.bf16 %v723_v48, %v721_v47  ;;  %v1762_v44 = vld [vmem:[%s7285_s14 + $0x2cd0] sm:$0xff]  ;;  %v743_v46 = vld [vmem:[%s7285_s14 + $0xcf8] sm:$0xff]  ;;  %v1765_v47 = vld [vmem:[%s7285_s14 + $0x2ce8] sm:$0xff] }
 0x1b1   : > { %6266 = vmatprep.subr.bf16.mxu0 %v6265_v59  ;;  %v6285_v59 = vpack.c.bf16 %v1747_v50, %v1745_v49  ;;  %v1767_v48 = vld [vmem:[%s7285_s14 + $0x2cf8] sm:$0xff]  ;;  %v6303_v50 = vpack.c.bf16 %v1762_v44, %v1760_v42 }
 0x1b2   : > { %v763_v42 = vld [vmem:[%s7285_s14 + $0xd98] sm:$0xff] }
 0x1b3   : > { %5244 = vmatpush1.bf16.msra.mxu1 %v5243_v1  ;;  %v5263_v1 = vpack.c.bf16 %v722_v57, %v720_v56  ;;  %v1766_v56 = vld [vmem:[%s7285_s14 + $0x2cf0] sm:$0xff]  ;;  %v745_v57 = vld [vmem:[%s7285_s14 + $0xd08] sm:$0xff]  ;;  %v1787_v44 = vld [vmem:[%s7285_s14 + $0x2d98] sm:$0xff] }
 0x1b4   : > { %6268 = vmatpush1.bf16.msra.mxu0 %v6267_v2  ;;  %5246 = vmatprep.subr.bf16.mxu1 %v5245_v3  ;;  %v6287_v2 = vpack.c.bf16 %v1746_v60, %v1744_v58  ;;  %v5265_v3 = vpack.c.bf16 %v727_v62, %v725_v61  ;;  %v747_v58 = vld [vmem:[%s7285_s14 + $0xd18] sm:$0xff] }
 0x1b5   : > { %6270 = vmatprep.subr.bf16.mxu0 %v6269_v7  ;;  %v6289_v7 = vpack.c.bf16 %v1751_v0, %v1749_v63  ;;  %v1771_v60 = vld [vmem:[%s7285_s14 + $0x2d18] sm:$0xff]  ;;  %v5285_v63 = vpack.c.bf16 %v747_v58, %v745_v57  ;;  %v744_v0 = vld [vmem:[%s7285_s14 + $0xd00] sm:$0xff] }
 0x1b7   : > { %5248 = vmatpush1.bf16.msra.mxu1 %v5247_v13  ;;  %v5267_v13 = vpack.c.bf16 %v726_v5, %v724_v4  ;;  %v1770_v4 = vld [vmem:[%s7285_s14 + $0x2d10] sm:$0xff]  ;;  %v749_v5 = vld [vmem:[%s7285_s14 + $0xd28] sm:$0xff] }
 0x1b8   : > { %6272 = vmatpush1.bf16.msra.mxu0 %v6271_v14  ;;  %5250 = vmatprep.subr.bf16.mxu1 %v5249_v15  ;;  %v6291_v14 = vpack.c.bf16 %v1750_v8, %v1748_v6  ;;  %v5269_v15 = vpack.c.bf16 %v731_v10, %v729_v9  ;;  %v751_v6 = vld [vmem:[%s7285_s14 + $0xd38] sm:$0xff] }
 0x1b9   : > { %6274 = vmatprep.subr.bf16.mxu0 %v6273_v19  ;;  %v6293_v19 = vpack.c.bf16 %v1755_v12, %v1753_v11  ;;  %v1775_v8 = vld [vmem:[%s7285_s14 + $0x2d38] sm:$0xff]  ;;  %v5289_v11 = vpack.c.bf16 %v751_v6, %v749_v5  ;;  %v748_v12 = vld [vmem:[%s7285_s14 + $0xd20] sm:$0xff] }
 0x1bb   : > { %5252 = vmatpush1.bf16.msra.mxu1 %v5251_v25  ;;  %v5271_v25 = vpack.c.bf16 %v730_v17, %v728_v16  ;;  %v1774_v16 = vld [vmem:[%s7285_s14 + $0x2d30] sm:$0xff]  ;;  %v753_v17 = vld [vmem:[%s7285_s14 + $0xd48] sm:$0xff] }
 0x1bc   : > { %6276 = vmatpush1.bf16.msra.mxu0 %v6275_v26  ;;  %5254 = vmatprep.subr.bf16.mxu1 %v5253_v27  ;;  %v6295_v26 = vpack.c.bf16 %v1754_v20, %v1752_v18  ;;  %v5273_v27 = vpack.c.bf16 %v735_v22, %v733_v21  ;;  %v755_v18 = vld [vmem:[%s7285_s14 + $0xd58] sm:$0xff] }
 0x1bd   : > { %6278 = vmatprep.subr.bf16.mxu0 %v6277_v31  ;;  %v6297_v31 = vpack.c.bf16 %v1759_v24, %v1757_v23  ;;  %v1779_v20 = vld [vmem:[%s7285_s14 + $0x2d58] sm:$0xff]  ;;  %v5293_v23 = vpack.c.bf16 %v755_v18, %v753_v17  ;;  %v752_v24 = vld [vmem:[%s7285_s14 + $0xd40] sm:$0xff] }
 0x1be   : > { %2796 = vmatmul.mubr.f32.vlgmr.msra.gmra.mrb[0].mxu1 %v274_v37  ;;  %v5275_v37 = vpack.c.bf16 %v734_v29, %v732_v28  ;;  %v1778_v28 = vld [vmem:[%s7285_s14 + $0x2d50] sm:$0xff]  ;;  %v757_v29 = vld [vmem:[%s7285_s14 + $0xd68] sm:$0xff] }
 0x1bf   : > { %5256 = vmatpush1.bf16.msra.mxu1 %v5255_v38  ;;  %3932 = vmatmul.mubr.f32.vlgmr.msra.gmra.mrb[0].mxu0 %v306_v39  ;;  %v6299_v38 = vpack.c.bf16 %v1758_v32, %v1756_v30  ;;  %v5277_v39 = vpack.c.bf16 %v739_v34, %v737_v33  ;;  %v759_v30 = vld [vmem:[%s7285_s14 + $0xd78] sm:$0xff] }
 0x1c0   : > { %6280 = vmatpush1.bf16.msra.mxu0 %v6279_v40  ;;  %5258 = vmatprep.subr.bf16.mxu1 %v5257_v41  ;;  %v736_v40 = vld [vmem:[%s7285_s14 + $0xcc0] sm:$0xff]  ;;  %v738_v41 = vld [vmem:[%s7285_s14 + $0xcd0] sm:$0xff]  ;;  %v1783_v32 = vld [vmem:[%s7285_s14 + $0x2d78] sm:$0xff]  ;;  %v5297_v35 = vpack.c.bf16 %v759_v30, %v757_v29 }
 0x1c1   : > { %6282 = vmatprep.subr.bf16.mxu0 %v6281_v45  ;;  %2866 = vmatprep.mubr.f32.mxu1 %v277_v51  ;;  %v741_v45 = vld [vmem:[%s7285_s14 + $0xce8] sm:$0xff]  ;;  %v5279_v49 = vpack.c.bf16 %v738_v41, %v736_v40  ;;  %v1782_v40 = vld [vmem:[%s7285_s14 + $0x2d70] sm:$0xff] }
 0x1c2   : > { %4002 = vmatprep.mubr.f32.mxu0 %v309_v53  ;;  %v5281_v51 = vpack.c.bf16 %v743_v46, %v741_v45  ;;  %v742_v53 = vld [vmem:[%s7285_s14 + $0xcf0] sm:$0xff]  ;;  %v761_v41 = vld [vmem:[%s7285_s14 + $0xd88] sm:$0xff] }
 0x1c3   : > { %5260 = vmatpush1.bf16.msra.mxu1 %v5259_v52  ;;  %v740_v52 = vld [vmem:[%s7285_s14 + $0xce0] sm:$0xff] }
 0x1c4   : > { %6284 = vmatpush1.bf16.msra.mxu0 %v6283_v54  ;;  %5262 = vmatprep.subr.bf16.mxu1 %v5261_v55  ;;  %v1764_v54 = vld [vmem:[%s7285_s14 + $0x2ce0] sm:$0xff]  ;;  %v6305_v55 = vpack.c.bf16 %v1767_v48, %v1765_v47  ;;  %v5283_v61 = vpack.c.bf16 %v742_v53, %v740_v52  ;;  %v5301_v47 = vpack.c.bf16 %v763_v42, %v761_v41  ;;  %v1786_v52 = vld [vmem:[%s7285_s14 + $0x2d90] sm:$0xff]  ;;  %v765_v53 = vld [vmem:[%s7285_s14 + $0xda8] sm:$0xff] }
 0x1c5   : > { %6286 = vmatprep.subr.bf16.mxu0 %v6285_v59  ;;  %v1769_v59 = vld [vmem:[%s7285_s14 + $0x2d08] sm:$0xff]  ;;  %v6307_v62 = vpack.c.bf16 %v1766_v56, %v1764_v54  ;;  %v760_v48 = vld [vmem:[%s7285_s14 + $0xd80] sm:$0xff]  ;;  %v767_v54 = vld [vmem:[%s7285_s14 + $0xdb8] sm:$0xff] }
 0x1c6   : > { %v1791_v56 = vld [vmem:[%s7285_s14 + $0x2db8] sm:$0xff]  ;;  %v276_v41 = vld [vmem:[%s7295_s11 + $0x60] sm:$0xff] }
 0x1c7   : > { %5264 = vmatpush1.bf16.msra.mxu1 %v5263_v1  ;;  %v746_v1 = vld [vmem:[%s7285_s14 + $0xd10] sm:$0xff] }
 0x1c8   : > { %6288 = vmatpush1.bf16.msra.mxu0 %v6287_v2  ;;  %5266 = vmatprep.subr.bf16.mxu1 %v5265_v3  ;;  %v1768_v2 = vld [vmem:[%s7285_s14 + $0x2d00] sm:$0xff]  ;;  %v6309_v3 = vpack.c.bf16 %v1771_v60, %v1769_v59  ;;  %v5287_v9 = vpack.c.bf16 %v746_v1, %v744_v0  ;;  %v5305_v59 = vpack.c.bf16 %v767_v54, %v765_v53  ;;  %v1790_v0 = vld [vmem:[%s7285_s14 + $0x2db0] sm:$0xff]  ;;  %v769_v1 = vld [vmem:[%s7285_s14 + $0xdc8] sm:$0xff] }
 0x1c9   : > { %6290 = vmatprep.subr.bf16.mxu0 %v6289_v7  ;;  %v1773_v7 = vld [vmem:[%s7285_s14 + $0x2d28] sm:$0xff]  ;;  %v6311_v10 = vpack.c.bf16 %v1770_v4, %v1768_v2  ;;  %v764_v60 = vld [vmem:[%s7285_s14 + $0xda0] sm:$0xff]  ;;  %v771_v2 = vld [vmem:[%s7285_s14 + $0xdd8] sm:$0xff] }
 0x1ca   : > { %v1795_v4 = vld [vmem:[%s7285_s14 + $0x2dd8] sm:$0xff]  ;;  %v1809_v53 = vld [vmem:[%s7285_s14 + $0x2e48] sm:$0xff] }
 0x1cb   : > { %5268 = vmatpush1.bf16.msra.mxu1 %v5267_v13  ;;  %v750_v13 = vld [vmem:[%s7285_s14 + $0xd30] sm:$0xff]  ;;  %v1811_v54 = vld [vmem:[%s7285_s14 + $0x2e58] sm:$0xff] }
 0x1cc   : > { %6292 = vmatpush1.bf16.msra.mxu0 %v6291_v14  ;;  %5270 = vmatprep.subr.bf16.mxu1 %v5269_v15  ;;  %v1772_v14 = vld [vmem:[%s7285_s14 + $0x2d20] sm:$0xff]  ;;  %v6313_v15 = vpack.c.bf16 %v1775_v8, %v1773_v7  ;;  %v5291_v21 = vpack.c.bf16 %v750_v13, %v748_v12  ;;  %v5309_v7 = vpack.c.bf16 %v771_v2, %v769_v1  ;;  %v1794_v12 = vld [vmem:[%s7285_s14 + $0x2dd0] sm:$0xff]  ;;  %v773_v13 = vld [vmem:[%s7285_s14 + $0xde8] sm:$0xff] }
 0x1cd   : > { %6294 = vmatprep.subr.bf16.mxu0 %v6293_v19  ;;  %v1777_v19 = vld [vmem:[%s7285_s14 + $0x2d48] sm:$0xff]  ;;  %v6315_v22 = vpack.c.bf16 %v1774_v16, %v1772_v14  ;;  %v768_v8 = vld [vmem:[%s7285_s14 + $0xdc0] sm:$0xff]  ;;  %v775_v14 = vld [vmem:[%s7285_s14 + $0xdf8] sm:$0xff] }
 0x1ce   : > { %v1799_v16 = vld [vmem:[%s7285_s14 + $0x2df8] sm:$0xff]  ;;  %v789_v1 = vld [vmem:[%s7285_s14 + $0xe68] sm:$0xff] }
 0x1cf   : > { %5272 = vmatpush1.bf16.msra.mxu1 %v5271_v25  ;;  %v754_v25 = vld [vmem:[%s7285_s14 + $0xd50] sm:$0xff]  ;;  %v791_v2 = vld [vmem:[%s7285_s14 + $0xe78] sm:$0xff] }
 0x1d0   : > { %6296 = vmatpush1.bf16.msra.mxu0 %v6295_v26  ;;  %5274 = vmatprep.subr.bf16.mxu1 %v5273_v27  ;;  %v1776_v26 = vld [vmem:[%s7285_s14 + $0x2d40] sm:$0xff]  ;;  %v6317_v27 = vpack.c.bf16 %v1779_v20, %v1777_v19  ;;  %v5295_v33 = vpack.c.bf16 %v754_v25, %v752_v24  ;;  %v5313_v19 = vpack.c.bf16 %v775_v14, %v773_v13  ;;  %v1798_v24 = vld [vmem:[%s7285_s14 + $0x2df0] sm:$0xff]  ;;  %v777_v25 = vld [vmem:[%s7285_s14 + $0xe08] sm:$0xff] }
 0x1d1   : > { %6298 = vmatprep.subr.bf16.mxu0 %v6297_v31  ;;  %v1781_v31 = vld [vmem:[%s7285_s14 + $0x2d68] sm:$0xff]  ;;  %v6319_v34 = vpack.c.bf16 %v1778_v28, %v1776_v26  ;;  %v772_v20 = vld [vmem:[%s7285_s14 + $0xde0] sm:$0xff]  ;;  %v779_v26 = vld [vmem:[%s7285_s14 + $0xe18] sm:$0xff] }
 0x1d2   : > { %v1803_v28 = vld [vmem:[%s7285_s14 + $0x2e18] sm:$0xff]  ;;  %v793_v13 = vld [vmem:[%s7285_s14 + $0xe88] sm:$0xff] }
 0x1d3   : > { %5276 = vmatpush1.bf16.msra.mxu1 %v5275_v37  ;;  %v758_v37 = vld [vmem:[%s7285_s14 + $0xd70] sm:$0xff]  ;;  %v795_v14 = vld [vmem:[%s7285_s14 + $0xe98] sm:$0xff] }
 0x1d4   : > { %6300 = vmatpush1.bf16.msra.mxu0 %v6299_v38  ;;  %5278 = vmatprep.subr.bf16.mxu1 %v5277_v39  ;;  %v1780_v38 = vld [vmem:[%s7285_s14 + $0x2d60] sm:$0xff]  ;;  %v6321_v39 = vpack.c.bf16 %v1783_v32, %v1781_v31  ;;  %v5299_v45 = vpack.c.bf16 %v758_v37, %v756_v36  ;;  %v5317_v31 = vpack.c.bf16 %v779_v26, %v777_v25  ;;  %v1802_v36 = vld [vmem:[%s7285_s14 + $0x2e10] sm:$0xff]  ;;  %v781_v37 = vld [vmem:[%s7285_s14 + $0xe28] sm:$0xff] }
 0x1d5   : > { %6302 = vmatprep.subr.bf16.mxu0 %v6301_v43  ;;  %v1785_v43 = vld [vmem:[%s7285_s14 + $0x2d88] sm:$0xff]  ;;  %v6323_v46 = vpack.c.bf16 %v1782_v40, %v1780_v38  ;;  %v776_v32 = vld [vmem:[%s7285_s14 + $0xe00] sm:$0xff]  ;;  %v783_v38 = vld [vmem:[%s7285_s14 + $0xe38] sm:$0xff] }
 0x1d6   : > { %v1807_v40 = vld [vmem:[%s7285_s14 + $0x2e38] sm:$0xff]  ;;  %v797_v25 = vld [vmem:[%s7285_s14 + $0xea8] sm:$0xff] }
 0x1d7   : > { %5280 = vmatpush1.bf16.msra.mxu1 %v5279_v49  ;;  %v762_v49 = vld [vmem:[%s7285_s14 + $0xd90] sm:$0xff]  ;;  %v799_v26 = vld [vmem:[%s7285_s14 + $0xeb8] sm:$0xff] }
 0x1d8   : > { %6304 = vmatpush1.bf16.msra.mxu0 %v6303_v50  ;;  %5282 = vmatprep.subr.bf16.mxu1 %v5281_v51  ;;  %v1784_v50 = vld [vmem:[%s7285_s14 + $0x2d80] sm:$0xff]  ;;  %v6325_v51 = vpack.c.bf16 %v1787_v44, %v1785_v43  ;;  %v5303_v57 = vpack.c.bf16 %v762_v49, %v760_v48  ;;  %v308_v43 = vld [vmem:[%s7295_s11 + $0x160] sm:$0xff] }
 0x1d9   : > { %6306 = vmatprep.subr.bf16.mxu0 %v6305_v55  ;;  %v1789_v55 = vld [vmem:[%s7285_s14 + $0x2da8] sm:$0xff]  ;;  %v6327_v58 = vpack.c.bf16 %v1786_v52, %v1784_v50  ;;  %v1804_v48 = vld [vmem:[%s7285_s14 + $0x2e20] sm:$0xff]  ;;  %v1806_v50 = vld [vmem:[%s7285_s14 + $0x2e30] sm:$0xff] }
 0x1da   : > { %v787_v52 = vld [vmem:[%s7285_s14 + $0xe58] sm:$0xff] }
 0x1db   : > { %5284 = vmatpush1.bf16.msra.mxu1 %v5283_v61  ;;  %v766_v61 = vld [vmem:[%s7285_s14 + $0xdb0] sm:$0xff] }
 0x1dc   : > { %6308 = vmatpush1.bf16.msra.mxu0 %v6307_v62  ;;  %5286 = vmatprep.subr.bf16.mxu1 %v5285_v63  ;;  %v1788_v62 = vld [vmem:[%s7285_s14 + $0x2da0] sm:$0xff]  ;;  %v6329_v63 = vpack.c.bf16 %v1791_v56, %v1789_v55  ;;  %v5307_v5 = vpack.c.bf16 %v766_v61, %v764_v60  ;;  %v279_v55 = vld [vmem:[%s7295_s11 + $0x78] sm:$0xff]  ;;  %v786_v61 = vld [vmem:[%s7285_s14 + $0xe50] sm:$0xff] }
 0x1dd   : > { %6310 = vmatprep.subr.bf16.mxu0 %v6309_v3  ;;  %v1793_v3 = vld [vmem:[%s7285_s14 + $0x2dc8] sm:$0xff]  ;;  %v6331_v6 = vpack.c.bf16 %v1790_v0, %v1788_v62  ;;  %v784_v60 = vld [vmem:[%s7285_s14 + $0xe40] sm:$0xff]  ;;  %v1810_v0 = vld [vmem:[%s7285_s14 + $0x2e50] sm:$0xff] }
 0x1de   : > { %v1808_v62 = vld [vmem:[%s7285_s14 + $0x2e40] sm:$0xff] }
 0x1df   : > { %5288 = vmatpush1.bf16.msra.mxu1 %v5287_v9  ;;  %v770_v9 = vld [vmem:[%s7285_s14 + $0xdd0] sm:$0xff] }
 0x1e0   : > { %6312 = vmatpush1.bf16.msra.mxu0 %v6311_v10  ;;  %5290 = vmatprep.subr.bf16.mxu1 %v5289_v11  ;;  %v1792_v10 = vld [vmem:[%s7285_s14 + $0x2dc0] sm:$0xff]  ;;  %v6333_v11 = vpack.c.bf16 %v1795_v4, %v1793_v3  ;;  %v5311_v17 = vpack.c.bf16 %v770_v9, %v768_v8  ;;  %v1813_v3 = vld [vmem:[%s7285_s14 + $0x2e68] sm:$0xff]  ;;  %v1815_v4 = vld [vmem:[%s7285_s14 + $0x2e78] sm:$0xff] }
 0x1e1   : > { %6314 = vmatprep.subr.bf16.mxu0 %v6313_v15  ;;  %v1797_v15 = vld [vmem:[%s7285_s14 + $0x2de8] sm:$0xff]  ;;  %v6335_v18 = vpack.c.bf16 %v1794_v12, %v1792_v10  ;;  %v788_v8 = vld [vmem:[%s7285_s14 + $0xe60] sm:$0xff]  ;;  %v790_v9 = vld [vmem:[%s7285_s14 + $0xe70] sm:$0xff] }
 0x1e2   : > { %v1812_v10 = vld [vmem:[%s7285_s14 + $0x2e60] sm:$0xff]  ;;  %v1814_v12 = vld [vmem:[%s7285_s14 + $0x2e70] sm:$0xff] }
 0x1e3   : > { %5292 = vmatpush1.bf16.msra.mxu1 %v5291_v21  ;;  %v774_v21 = vld [vmem:[%s7285_s14 + $0xdf0] sm:$0xff] }
 0x1e4   : > { %6316 = vmatpush1.bf16.msra.mxu0 %v6315_v22  ;;  %5294 = vmatprep.subr.bf16.mxu1 %v5293_v23  ;;  %v1796_v22 = vld [vmem:[%s7285_s14 + $0x2de0] sm:$0xff]  ;;  %v6337_v23 = vpack.c.bf16 %v1799_v16, %v1797_v15  ;;  %v5315_v29 = vpack.c.bf16 %v774_v21, %v772_v20  ;;  %v1817_v15 = vld [vmem:[%s7285_s14 + $0x2e88] sm:$0xff]  ;;  %v1819_v16 = vld [vmem:[%s7285_s14 + $0x2e98] sm:$0xff] }
 0x1e5   : > { %6318 = vmatprep.subr.bf16.mxu0 %v6317_v27  ;;  %v1801_v27 = vld [vmem:[%s7285_s14 + $0x2e08] sm:$0xff]  ;;  %v6339_v30 = vpack.c.bf16 %v1798_v24, %v1796_v22  ;;  %v792_v20 = vld [vmem:[%s7285_s14 + $0xe80] sm:$0xff]  ;;  %v794_v21 = vld [vmem:[%s7285_s14 + $0xe90] sm:$0xff] }
 0x1e6   : > { %v1816_v22 = vld [vmem:[%s7285_s14 + $0x2e80] sm:$0xff]  ;;  %v1818_v24 = vld [vmem:[%s7285_s14 + $0x2e90] sm:$0xff] }
 0x1e7   : > { %5296 = vmatpush1.bf16.msra.mxu1 %v5295_v33  ;;  %v778_v33 = vld [vmem:[%s7285_s14 + $0xe10] sm:$0xff] }
 0x1e8   : > { %6320 = vmatpush1.bf16.msra.mxu0 %v6319_v34  ;;  %5298 = vmatprep.subr.bf16.mxu1 %v5297_v35  ;;  %v1800_v34 = vld [vmem:[%s7285_s14 + $0x2e00] sm:$0xff]  ;;  %v6341_v35 = vpack.c.bf16 %v1803_v28, %v1801_v27  ;;  %v5319_v42 = vpack.c.bf16 %v778_v33, %v776_v32  ;;  %v1821_v27 = vld [vmem:[%s7285_s14 + $0x2ea8] sm:$0xff]  ;;  %v1823_v28 = vld [vmem:[%s7285_s14 + $0x2eb8] sm:$0xff] }
 0x1e9   : > { %6322 = vmatprep.subr.bf16.mxu0 %v6321_v39  ;;  %v1805_v39 = vld [vmem:[%s7285_s14 + $0x2e28] sm:$0xff]  ;;  %v6343_v44 = vpack.c.bf16 %v1802_v36, %v1800_v34  ;;  %v796_v32 = vld [vmem:[%s7285_s14 + $0xea0] sm:$0xff]  ;;  %v798_v33 = vld [vmem:[%s7285_s14 + $0xeb0] sm:$0xff] }
 0x1ea   : > { %v6345_v49 = vpack.c.bf16 %v1807_v40, %v1805_v39  ;;  %v1820_v34 = vld [vmem:[%s7285_s14 + $0x2ea0] sm:$0xff]  ;;  %v1822_v36 = vld [vmem:[%s7285_s14 + $0x2eb0] sm:$0xff]  ;;  %v1825_v39 = vld [vmem:[%s7285_s14 + $0x2ec8] sm:$0xff] }
 0x1eb   : > { %5300 = vmatpush1.bf16.msra.mxu1 %v5299_v45  ;;  %v5321_v45 = vpack.c.bf16 %v783_v38, %v781_v37  ;;  %v801_v37 = vld [vmem:[%s7285_s14 + $0xec8] sm:$0xff]  ;;  %v803_v38 = vld [vmem:[%s7285_s14 + $0xed8] sm:$0xff] }
 0x1ec   : > { %6324 = vmatpush1.bf16.msra.mxu0 %v6323_v46  ;;  %5302 = vmatprep.subr.bf16.mxu1 %v5301_v47  ;;  %v780_v46 = vld [vmem:[%s7285_s14 + $0xe20] sm:$0xff]  ;;  %v782_v47 = vld [vmem:[%s7285_s14 + $0xe30] sm:$0xff]  ;;  %v1827_v40 = vld [vmem:[%s7285_s14 + $0x2ed8] sm:$0xff] }
 0x1ed   : > { %6326 = vmatprep.subr.bf16.mxu0 %v6325_v51  ;;  %v785_v51 = vld [vmem:[%s7285_s14 + $0xe48] sm:$0xff]  ;;  %v5323_v56 = vpack.c.bf16 %v782_v47, %v780_v46  ;;  %v1824_v46 = vld [vmem:[%s7285_s14 + $0x2ec0] sm:$0xff]  ;;  %v6365_v47 = vpack.c.bf16 %v1827_v40, %v1825_v39 }
 0x1ee   : > { %v820_v40 = vld [vmem:[%s7285_s14 + $0xf60] sm:$0xff] }
 0x1ef   : > { %5304 = vmatpush1.bf16.msra.mxu1 %v5303_v57  ;;  %v311_v57 = vld [vmem:[%s7295_s11 + $0x178] sm:$0xff] }
 0x1f0   : > { %6328 = vmatpush1.bf16.msra.mxu0 %v6327_v58  ;;  %5306 = vmatprep.subr.bf16.mxu1 %v5305_v59  ;;  %v6347_v58 = vpack.c.bf16 %v1806_v50, %v1804_v48  ;;  %v5325_v59 = vpack.c.bf16 %v787_v52, %v785_v51  ;;  %v1826_v48 = vld [vmem:[%s7285_s14 + $0x2ed0] sm:$0xff]  ;;  %v807_v50 = vld [vmem:[%s7285_s14 + $0xef8] sm:$0xff]  ;;  %v1829_v51 = vld [vmem:[%s7285_s14 + $0x2ee8] sm:$0xff] }
 0x1f1   : > { %6330 = vmatprep.subr.bf16.mxu0 %v6329_v63  ;;  %v6349_v63 = vpack.c.bf16 %v1811_v54, %v1809_v53  ;;  %v1831_v52 = vld [vmem:[%s7285_s14 + $0x2ef8] sm:$0xff]  ;;  %v6367_v54 = vpack.c.bf16 %v1826_v48, %v1824_v46 }
 0x1f2   : > { %v827_v46 = vld [vmem:[%s7285_s14 + $0xf98] sm:$0xff] }
 0x1f3   : > { %5308 = vmatpush1.bf16.msra.mxu1 %v5307_v5  ;;  %v5327_v5 = vpack.c.bf16 %v786_v61, %v784_v60  ;;  %v1830_v60 = vld [vmem:[%s7285_s14 + $0x2ef0] sm:$0xff]  ;;  %v809_v61 = vld [vmem:[%s7285_s14 + $0xf08] sm:$0xff]  ;;  %v1851_v48 = vld [vmem:[%s7285_s14 + $0x2f98] sm:$0xff] }
 0x1f4   : > { %6332 = vmatpush1.bf16.msra.mxu0 %v6331_v6  ;;  %5310 = vmatprep.subr.bf16.mxu1 %v5309_v7  ;;  %v6351_v6 = vpack.c.bf16 %v1810_v0, %v1808_v62  ;;  %v5329_v7 = vpack.c.bf16 %v791_v2, %v789_v1  ;;  %v811_v62 = vld [vmem:[%s7285_s14 + $0xf18] sm:$0xff] }
 0x1f5   : > { %6334 = vmatprep.subr.bf16.mxu0 %v6333_v11  ;;  %v6353_v11 = vpack.c.bf16 %v1815_v4, %v1813_v3  ;;  %v1835_v0 = vld [vmem:[%s7285_s14 + $0x2f18] sm:$0xff]  ;;  %v5349_v3 = vpack.c.bf16 %v811_v62, %v809_v61  ;;  %v808_v4 = vld [vmem:[%s7285_s14 + $0xf00] sm:$0xff] }
 0x1f7   : > { %5312 = vmatpush1.bf16.msra.mxu1 %v5311_v17  ;;  %v5331_v17 = vpack.c.bf16 %v790_v9, %v788_v8  ;;  %v1834_v8 = vld [vmem:[%s7285_s14 + $0x2f10] sm:$0xff]  ;;  %v813_v9 = vld [vmem:[%s7285_s14 + $0xf28] sm:$0xff] }
 0x1f8   : > { %6336 = vmatpush1.bf16.msra.mxu0 %v6335_v18  ;;  %5314 = vmatprep.subr.bf16.mxu1 %v5313_v19  ;;  %v6355_v18 = vpack.c.bf16 %v1814_v12, %v1812_v10  ;;  %v5333_v19 = vpack.c.bf16 %v795_v14, %v793_v13  ;;  %v815_v10 = vld [vmem:[%s7285_s14 + $0xf38] sm:$0xff] }
 0x1f9   : > { %6338 = vmatprep.subr.bf16.mxu0 %v6337_v23  ;;  %v6357_v23 = vpack.c.bf16 %v1819_v16, %v1817_v15  ;;  %v1839_v12 = vld [vmem:[%s7285_s14 + $0x2f38] sm:$0xff]  ;;  %v5353_v15 = vpack.c.bf16 %v815_v10, %v813_v9  ;;  %v812_v16 = vld [vmem:[%s7285_s14 + $0xf20] sm:$0xff] }
 0x1fb   : > { %5316 = vmatpush1.bf16.msra.mxu1 %v5315_v29  ;;  %v5335_v29 = vpack.c.bf16 %v794_v21, %v792_v20  ;;  %v1838_v20 = vld [vmem:[%s7285_s14 + $0x2f30] sm:$0xff]  ;;  %v817_v21 = vld [vmem:[%s7285_s14 + $0xf48] sm:$0xff] }
 0x1fc   : > { %6340 = vmatpush1.bf16.msra.mxu0 %v6339_v30  ;;  %5318 = vmatprep.subr.bf16.mxu1 %v5317_v31  ;;  %v6359_v30 = vpack.c.bf16 %v1818_v24, %v1816_v22  ;;  %v5337_v31 = vpack.c.bf16 %v799_v26, %v797_v25  ;;  %v819_v22 = vld [vmem:[%s7285_s14 + $0xf58] sm:$0xff] }
 0x1fd   : > { %6342 = vmatprep.subr.bf16.mxu0 %v6341_v35  ;;  %v6361_v35 = vpack.c.bf16 %v1823_v28, %v1821_v27  ;;  %v1843_v24 = vld [vmem:[%s7285_s14 + $0x2f58] sm:$0xff]  ;;  %v5357_v27 = vpack.c.bf16 %v819_v22, %v817_v21  ;;  %v816_v28 = vld [vmem:[%s7285_s14 + $0xf40] sm:$0xff] }
 0x1fe   : > { %2867 = vmatmul.mubr.f32.vlgmr.msra.gmra.mrb[0].mxu1 %v276_v41  ;;  %v5339_v41 = vpack.c.bf16 %v798_v33, %v796_v32  ;;  %v1842_v32 = vld [vmem:[%s7285_s14 + $0x2f50] sm:$0xff]  ;;  %v821_v33 = vld [vmem:[%s7285_s14 + $0xf68] sm:$0xff] }
 0x1ff   : > { %5320 = vmatpush1.bf16.msra.mxu1 %v5319_v42  ;;  %4003 = vmatmul.mubr.f32.vlgmr.msra.gmra.mrb[0].mxu0 %v308_v43  ;;  %v6363_v42 = vpack.c.bf16 %v1822_v36, %v1820_v34  ;;  %v5341_v43 = vpack.c.bf16 %v803_v38, %v801_v37  ;;  %v823_v34 = vld [vmem:[%s7285_s14 + $0xf78] sm:$0xff] }
 0x200   : > { %6344 = vmatpush1.bf16.msra.mxu0 %v6343_v44  ;;  %5322 = vmatprep.subr.bf16.mxu1 %v5321_v45  ;;  %v800_v44 = vld [vmem:[%s7285_s14 + $0xec0] sm:$0xff]  ;;  %v802_v45 = vld [vmem:[%s7285_s14 + $0xed0] sm:$0xff]  ;;  %v1847_v36 = vld [vmem:[%s7285_s14 + $0x2f78] sm:$0xff]  ;;  %v5361_v39 = vpack.c.bf16 %v823_v34, %v821_v33 }
 0x201   : > { %6346 = vmatprep.subr.bf16.mxu0 %v6345_v49  ;;  %2937 = vmatprep.mubr.f32.mxu1 %v279_v55  ;;  %v805_v49 = vld [vmem:[%s7285_s14 + $0xee8] sm:$0xff]  ;;  %v5343_v53 = vpack.c.bf16 %v802_v45, %v800_v44  ;;  %v1846_v44 = vld [vmem:[%s7285_s14 + $0x2f70] sm:$0xff] }
 0x202   : > { %4073 = vmatprep.mubr.f32.mxu0 %v311_v57  ;;  %v5345_v55 = vpack.c.bf16 %v807_v50, %v805_v49  ;;  %v806_v57 = vld [vmem:[%s7285_s14 + $0xef0] sm:$0xff]  ;;  %v825_v45 = vld [vmem:[%s7285_s14 + $0xf88] sm:$0xff] }
 0x203   : > { %5324 = vmatpush1.bf16.msra.mxu1 %v5323_v56  ;;  %v804_v56 = vld [vmem:[%s7285_s14 + $0xee0] sm:$0xff] }
 0x204   : > { %6348 = vmatpush1.bf16.msra.mxu0 %v6347_v58  ;;  %5326 = vmatprep.subr.bf16.mxu1 %v5325_v59  ;;  %v1828_v58 = vld [vmem:[%s7285_s14 + $0x2ee0] sm:$0xff]  ;;  %v6369_v59 = vpack.c.bf16 %v1831_v52, %v1829_v51  ;;  %v5347_v1 = vpack.c.bf16 %v806_v57, %v804_v56  ;;  %v5365_v51 = vpack.c.bf16 %v827_v46, %v825_v45  ;;  %v1850_v56 = vld [vmem:[%s7285_s14 + $0x2f90] sm:$0xff]  ;;  %v829_v57 = vld [vmem:[%s7285_s14 + $0xfa8] sm:$0xff] }
 0x205   : > { %6350 = vmatprep.subr.bf16.mxu0 %v6349_v63  ;;  %v1833_v63 = vld [vmem:[%s7285_s14 + $0x2f08] sm:$0xff]  ;;  %v6371_v2 = vpack.c.bf16 %v1830_v60, %v1828_v58  ;;  %v824_v52 = vld [vmem:[%s7285_s14 + $0xf80] sm:$0xff]  ;;  %v831_v58 = vld [vmem:[%s7285_s14 + $0xfb8] sm:$0xff] }
 0x206   : > { %v1855_v60 = vld [vmem:[%s7285_s14 + $0x2fb8] sm:$0xff]  ;;  %v278_v45 = vld [vmem:[%s7295_s11 + $0x70] sm:$0xff] }
 0x207   : > { %5328 = vmatpush1.bf16.msra.mxu1 %v5327_v5  ;;  %v810_v5 = vld [vmem:[%s7285_s14 + $0xf10] sm:$0xff] }
 0x208   : > { %6352 = vmatpush1.bf16.msra.mxu0 %v6351_v6  ;;  %5330 = vmatprep.subr.bf16.mxu1 %v5329_v7  ;;  %v1832_v6 = vld [vmem:[%s7285_s14 + $0x2f00] sm:$0xff]  ;;  %v6373_v7 = vpack.c.bf16 %v1835_v0, %v1833_v63  ;;  %v5351_v13 = vpack.c.bf16 %v810_v5, %v808_v4  ;;  %v5369_v63 = vpack.c.bf16 %v831_v58, %v829_v57  ;;  %v1854_v4 = vld [vmem:[%s7285_s14 + $0x2fb0] sm:$0xff]  ;;  %v833_v5 = vld [vmem:[%s7285_s14 + $0xfc8] sm:$0xff] }
 0x209   : > { %6354 = vmatprep.subr.bf16.mxu0 %v6353_v11  ;;  %v1837_v11 = vld [vmem:[%s7285_s14 + $0x2f28] sm:$0xff]  ;;  %v6375_v14 = vpack.c.bf16 %v1834_v8, %v1832_v6  ;;  %v828_v0 = vld [vmem:[%s7285_s14 + $0xfa0] sm:$0xff]  ;;  %v835_v6 = vld [vmem:[%s7285_s14 + $0xfd8] sm:$0xff] }
 0x20a   : > { %v1859_v8 = vld [vmem:[%s7285_s14 + $0x2fd8] sm:$0xff]  ;;  %v1873_v57 = vld [vmem:[%s7285_s14 + $0x3048] sm:$0xff] }
 0x20b   : > { %5332 = vmatpush1.bf16.msra.mxu1 %v5331_v17  ;;  %v814_v17 = vld [vmem:[%s7285_s14 + $0xf30] sm:$0xff]  ;;  %v1875_v58 = vld [vmem:[%s7285_s14 + $0x3058] sm:$0xff] }
 0x20c   : > { %6356 = vmatpush1.bf16.msra.mxu0 %v6355_v18  ;;  %5334 = vmatprep.subr.bf16.mxu1 %v5333_v19  ;;  %v1836_v18 = vld [vmem:[%s7285_s14 + $0x2f20] sm:$0xff]  ;;  %v6377_v19 = vpack.c.bf16 %v1839_v12, %v1837_v11  ;;  %v5355_v25 = vpack.c.bf16 %v814_v17, %v812_v16  ;;  %v5373_v11 = vpack.c.bf16 %v835_v6, %v833_v5  ;;  %v1858_v16 = vld [vmem:[%s7285_s14 + $0x2fd0] sm:$0xff]  ;;  %v837_v17 = vld [vmem:[%s7285_s14 + $0xfe8] sm:$0xff] }
 0x20d   : > { %6358 = vmatprep.subr.bf16.mxu0 %v6357_v23  ;;  %v1841_v23 = vld [vmem:[%s7285_s14 + $0x2f48] sm:$0xff]  ;;  %v6379_v26 = vpack.c.bf16 %v1838_v20, %v1836_v18  ;;  %v832_v12 = vld [vmem:[%s7285_s14 + $0xfc0] sm:$0xff]  ;;  %v839_v18 = vld [vmem:[%s7285_s14 + $0xff8] sm:$0xff] }
 0x20e   : > { %v1863_v20 = vld [vmem:[%s7285_s14 + $0x2ff8] sm:$0xff]  ;;  %v853_v5 = vld [vmem:[%s7285_s14 + $0x1068] sm:$0xff] }
 0x20f   : > { %5336 = vmatpush1.bf16.msra.mxu1 %v5335_v29  ;;  %v818_v29 = vld [vmem:[%s7285_s14 + $0xf50] sm:$0xff]  ;;  %v855_v6 = vld [vmem:[%s7285_s14 + $0x1078] sm:$0xff] }
 0x210   : > { %6360 = vmatpush1.bf16.msra.mxu0 %v6359_v30  ;;  %5338 = vmatprep.subr.bf16.mxu1 %v5337_v31  ;;  %v1840_v30 = vld [vmem:[%s7285_s14 + $0x2f40] sm:$0xff]  ;;  %v6381_v31 = vpack.c.bf16 %v1843_v24, %v1841_v23  ;;  %v5359_v37 = vpack.c.bf16 %v818_v29, %v816_v28  ;;  %v5377_v23 = vpack.c.bf16 %v839_v18, %v837_v17  ;;  %v1862_v28 = vld [vmem:[%s7285_s14 + $0x2ff0] sm:$0xff]  ;;  %v841_v29 = vld [vmem:[%s7285_s14 + $0x1008] sm:$0xff] }
 0x211   : > { %6362 = vmatprep.subr.bf16.mxu0 %v6361_v35  ;;  %v1845_v35 = vld [vmem:[%s7285_s14 + $0x2f68] sm:$0xff]  ;;  %v6383_v38 = vpack.c.bf16 %v1842_v32, %v1840_v30  ;;  %v836_v24 = vld [vmem:[%s7285_s14 + $0xfe0] sm:$0xff]  ;;  %v843_v30 = vld [vmem:[%s7285_s14 + $0x1018] sm:$0xff] }
 0x212   : > { %v1867_v32 = vld [vmem:[%s7285_s14 + $0x3018] sm:$0xff]  ;;  %v857_v17 = vld [vmem:[%s7285_s14 + $0x1088] sm:$0xff] }
 0x213   : > { %5340 = vmatpush1.bf16.msra.mxu1 %v5339_v41  ;;  %v822_v41 = vld [vmem:[%s7285_s14 + $0xf70] sm:$0xff]  ;;  %v859_v18 = vld [vmem:[%s7285_s14 + $0x1098] sm:$0xff] }
 0x214   : > { %6364 = vmatpush1.bf16.msra.mxu0 %v6363_v42  ;;  %5342 = vmatprep.subr.bf16.mxu1 %v5341_v43  ;;  %v1844_v42 = vld [vmem:[%s7285_s14 + $0x2f60] sm:$0xff]  ;;  %v6385_v43 = vpack.c.bf16 %v1847_v36, %v1845_v35  ;;  %v5363_v49 = vpack.c.bf16 %v822_v41, %v820_v40  ;;  %v5381_v35 = vpack.c.bf16 %v843_v30, %v841_v29  ;;  %v1866_v40 = vld [vmem:[%s7285_s14 + $0x3010] sm:$0xff]  ;;  %v845_v41 = vld [vmem:[%s7285_s14 + $0x1028] sm:$0xff] }
 0x215   : > { %6366 = vmatprep.subr.bf16.mxu0 %v6365_v47  ;;  %v1849_v47 = vld [vmem:[%s7285_s14 + $0x2f88] sm:$0xff]  ;;  %v6387_v50 = vpack.c.bf16 %v1846_v44, %v1844_v42  ;;  %v840_v36 = vld [vmem:[%s7285_s14 + $0x1000] sm:$0xff]  ;;  %v847_v42 = vld [vmem:[%s7285_s14 + $0x1038] sm:$0xff] }
 0x216   : > { %v1871_v44 = vld [vmem:[%s7285_s14 + $0x3038] sm:$0xff]  ;;  %v861_v29 = vld [vmem:[%s7285_s14 + $0x10a8] sm:$0xff] }
 0x217   : > { %5344 = vmatpush1.bf16.msra.mxu1 %v5343_v53  ;;  %v826_v53 = vld [vmem:[%s7285_s14 + $0xf90] sm:$0xff]  ;;  %v863_v30 = vld [vmem:[%s7285_s14 + $0x10b8] sm:$0xff] }
 0x218   : > { %6368 = vmatpush1.bf16.msra.mxu0 %v6367_v54  ;;  %5346 = vmatprep.subr.bf16.mxu1 %v5345_v55  ;;  %v1848_v54 = vld [vmem:[%s7285_s14 + $0x2f80] sm:$0xff]  ;;  %v6389_v55 = vpack.c.bf16 %v1851_v48, %v1849_v47  ;;  %v5367_v61 = vpack.c.bf16 %v826_v53, %v824_v52 }
 0x219   : > { %6370 = vmatprep.subr.bf16.mxu0 %v6369_v59  ;;  %v1853_v59 = vld [vmem:[%s7285_s14 + $0x2fa8] sm:$0xff]  ;;  %v6391_v62 = vpack.c.bf16 %v1850_v56, %v1848_v54  ;;  %v310_v47 = vld [vmem:[%s7295_s11 + $0x170] sm:$0xff]  ;;  %v1870_v54 = vld [vmem:[%s7285_s14 + $0x3030] sm:$0xff] }
 0x21a   : > { %v1868_v52 = vld [vmem:[%s7285_s14 + $0x3020] sm:$0xff]  ;;  %v851_v56 = vld [vmem:[%s7285_s14 + $0x1058] sm:$0xff] }
 0x21b   : > { %5348 = vmatpush1.bf16.msra.mxu1 %v5347_v1  ;;  %v830_v1 = vld [vmem:[%s7285_s14 + $0xfb0] sm:$0xff] }
 0x21c   : > { %6372 = vmatpush1.bf16.msra.mxu0 %v6371_v2  ;;  %5350 = vmatprep.subr.bf16.mxu1 %v5349_v3  ;;  %v1852_v2 = vld [vmem:[%s7285_s14 + $0x2fa0] sm:$0xff]  ;;  %v6393_v3 = vpack.c.bf16 %v1855_v60, %v1853_v59  ;;  %v5371_v9 = vpack.c.bf16 %v830_v1, %v828_v0  ;;  %v281_v59 = vld [vmem:[%s7295_s11 + $0x88] sm:$0xff]  ;;  %v850_v1 = vld [vmem:[%s7285_s14 + $0x1050] sm:$0xff] }
 0x21d   : > { %6374 = vmatprep.subr.bf16.mxu0 %v6373_v7  ;;  %v1857_v7 = vld [vmem:[%s7285_s14 + $0x2fc8] sm:$0xff]  ;;  %v6395_v10 = vpack.c.bf16 %v1854_v4, %v1852_v2  ;;  %v848_v0 = vld [vmem:[%s7285_s14 + $0x1040] sm:$0xff]  ;;  %v1874_v4 = vld [vmem:[%s7285_s14 + $0x3050] sm:$0xff] }
 0x21e   : > { %v1872_v2 = vld [vmem:[%s7285_s14 + $0x3040] sm:$0xff] }
 0x21f   : > { %5352 = vmatpush1.bf16.msra.mxu1 %v5351_v13  ;;  %v834_v13 = vld [vmem:[%s7285_s14 + $0xfd0] sm:$0xff] }
 0x220   : > { %6376 = vmatpush1.bf16.msra.mxu0 %v6375_v14  ;;  %5354 = vmatprep.subr.bf16.mxu1 %v5353_v15  ;;  %v1856_v14 = vld [vmem:[%s7285_s14 + $0x2fc0] sm:$0xff]  ;;  %v6397_v15 = vpack.c.bf16 %v1859_v8, %v1857_v7  ;;  %v5375_v21 = vpack.c.bf16 %v834_v13, %v832_v12  ;;  %v1877_v7 = vld [vmem:[%s7285_s14 + $0x3068] sm:$0xff]  ;;  %v1879_v8 = vld [vmem:[%s7285_s14 + $0x3078] sm:$0xff] }
 0x221   : > { %6378 = vmatprep.subr.bf16.mxu0 %v6377_v19  ;;  %v1861_v19 = vld [vmem:[%s7285_s14 + $0x2fe8] sm:$0xff]  ;;  %v6399_v22 = vpack.c.bf16 %v1858_v16, %v1856_v14  ;;  %v852_v12 = vld [vmem:[%s7285_s14 + $0x1060] sm:$0xff]  ;;  %v854_v13 = vld [vmem:[%s7285_s14 + $0x1070] sm:$0xff] }
 0x222   : > { %v1876_v14 = vld [vmem:[%s7285_s14 + $0x3060] sm:$0xff]  ;;  %v1878_v16 = vld [vmem:[%s7285_s14 + $0x3070] sm:$0xff] }
 0x223   : > { %5356 = vmatpush1.bf16.msra.mxu1 %v5355_v25  ;;  %v838_v25 = vld [vmem:[%s7285_s14 + $0xff0] sm:$0xff] }
 0x224   : > { %6380 = vmatpush1.bf16.msra.mxu0 %v6379_v26  ;;  %5358 = vmatprep.subr.bf16.mxu1 %v5357_v27  ;;  %v1860_v26 = vld [vmem:[%s7285_s14 + $0x2fe0] sm:$0xff]  ;;  %v6401_v27 = vpack.c.bf16 %v1863_v20, %v1861_v19  ;;  %v5379_v33 = vpack.c.bf16 %v838_v25, %v836_v24  ;;  %v1881_v19 = vld [vmem:[%s7285_s14 + $0x3088] sm:$0xff]  ;;  %v1883_v20 = vld [vmem:[%s7285_s14 + $0x3098] sm:$0xff] }
 0x225   : > { %6382 = vmatprep.subr.bf16.mxu0 %v6381_v31  ;;  %v1865_v31 = vld [vmem:[%s7285_s14 + $0x3008] sm:$0xff]  ;;  %v6403_v34 = vpack.c.bf16 %v1862_v28, %v1860_v26  ;;  %v856_v24 = vld [vmem:[%s7285_s14 + $0x1080] sm:$0xff]  ;;  %v858_v25 = vld [vmem:[%s7285_s14 + $0x1090] sm:$0xff] }
 0x226   : > { %v1880_v26 = vld [vmem:[%s7285_s14 + $0x3080] sm:$0xff]  ;;  %v1882_v28 = vld [vmem:[%s7285_s14 + $0x3090] sm:$0xff] }
 0x227   : > { %5360 = vmatpush1.bf16.msra.mxu1 %v5359_v37  ;;  %v842_v37 = vld [vmem:[%s7285_s14 + $0x1010] sm:$0xff] }
 0x228   : > { %6384 = vmatpush1.bf16.msra.mxu0 %v6383_v38  ;;  %5362 = vmatprep.subr.bf16.mxu1 %v5361_v39  ;;  %v1864_v38 = vld [vmem:[%s7285_s14 + $0x3000] sm:$0xff]  ;;  %v6405_v39 = vpack.c.bf16 %v1867_v32, %v1865_v31  ;;  %v5383_v46 = vpack.c.bf16 %v842_v37, %v840_v36  ;;  %v1885_v31 = vld [vmem:[%s7285_s14 + $0x30a8] sm:$0xff]  ;;  %v1887_v32 = vld [vmem:[%s7285_s14 + $0x30b8] sm:$0xff] }
 0x229   : > { %6386 = vmatprep.subr.bf16.mxu0 %v6385_v43  ;;  %v1869_v43 = vld [vmem:[%s7285_s14 + $0x3028] sm:$0xff]  ;;  %v6407_v48 = vpack.c.bf16 %v1866_v40, %v1864_v38  ;;  %v860_v36 = vld [vmem:[%s7285_s14 + $0x10a0] sm:$0xff]  ;;  %v862_v37 = vld [vmem:[%s7285_s14 + $0x10b0] sm:$0xff] }
 0x22a   : > { %v6409_v53 = vpack.c.bf16 %v1871_v44, %v1869_v43  ;;  %v1884_v38 = vld [vmem:[%s7285_s14 + $0x30a0] sm:$0xff]  ;;  %v1886_v40 = vld [vmem:[%s7285_s14 + $0x30b0] sm:$0xff]  ;;  %v1889_v43 = vld [vmem:[%s7285_s14 + $0x30c8] sm:$0xff] }
 0x22b   : > { %5364 = vmatpush1.bf16.msra.mxu1 %v5363_v49  ;;  %v5385_v49 = vpack.c.bf16 %v847_v42, %v845_v41  ;;  %v865_v41 = vld [vmem:[%s7285_s14 + $0x10c8] sm:$0xff]  ;;  %v867_v42 = vld [vmem:[%s7285_s14 + $0x10d8] sm:$0xff] }
 0x22c   : > { %6388 = vmatpush1.bf16.msra.mxu0 %v6387_v50  ;;  %5366 = vmatprep.subr.bf16.mxu1 %v5365_v51  ;;  %v844_v50 = vld [vmem:[%s7285_s14 + $0x1020] sm:$0xff]  ;;  %v846_v51 = vld [vmem:[%s7285_s14 + $0x1030] sm:$0xff]  ;;  %v1891_v44 = vld [vmem:[%s7285_s14 + $0x30d8] sm:$0xff] }
 0x22d   : > { %6390 = vmatprep.subr.bf16.mxu0 %v6389_v55  ;;  %v849_v55 = vld [vmem:[%s7285_s14 + $0x1048] sm:$0xff]  ;;  %v5387_v60 = vpack.c.bf16 %v846_v51, %v844_v50  ;;  %v1888_v50 = vld [vmem:[%s7285_s14 + $0x30c0] sm:$0xff]  ;;  %v6429_v51 = vpack.c.bf16 %v1891_v44, %v1889_v43 }
 0x22e   : > { %v884_v44 = vld [vmem:[%s7285_s14 + $0x1160] sm:$0xff] }
 0x22f   : > { %5368 = vmatpush1.bf16.msra.mxu1 %v5367_v61  ;;  %v313_v61 = vld [vmem:[%s7295_s11 + $0x188] sm:$0xff] }
 0x230   : > { %6392 = vmatpush1.bf16.msra.mxu0 %v6391_v62  ;;  %5370 = vmatprep.subr.bf16.mxu1 %v5369_v63  ;;  %v6411_v62 = vpack.c.bf16 %v1870_v54, %v1868_v52  ;;  %v5389_v63 = vpack.c.bf16 %v851_v56, %v849_v55  ;;  %v1890_v52 = vld [vmem:[%s7285_s14 + $0x30d0] sm:$0xff]  ;;  %v871_v54 = vld [vmem:[%s7285_s14 + $0x10f8] sm:$0xff]  ;;  %v1893_v55 = vld [vmem:[%s7285_s14 + $0x30e8] sm:$0xff] }
 0x231   : > { %6394 = vmatprep.subr.bf16.mxu0 %v6393_v3  ;;  %v6413_v3 = vpack.c.bf16 %v1875_v58, %v1873_v57  ;;  %v1895_v56 = vld [vmem:[%s7285_s14 + $0x30f8] sm:$0xff]  ;;  %v6431_v58 = vpack.c.bf16 %v1890_v52, %v1888_v50 }
 0x232   : > { %v891_v50 = vld [vmem:[%s7285_s14 + $0x1198] sm:$0xff] }
 0x233   : > { %5372 = vmatpush1.bf16.msra.mxu1 %v5371_v9  ;;  %v5391_v9 = vpack.c.bf16 %v850_v1, %v848_v0  ;;  %v1894_v0 = vld [vmem:[%s7285_s14 + $0x30f0] sm:$0xff]  ;;  %v873_v1 = vld [vmem:[%s7285_s14 + $0x1108] sm:$0xff]  ;;  %v1915_v52 = vld [vmem:[%s7285_s14 + $0x3198] sm:$0xff] }
 0x234   : > { %6396 = vmatpush1.bf16.msra.mxu0 %v6395_v10  ;;  %5374 = vmatprep.subr.bf16.mxu1 %v5373_v11  ;;  %v6415_v10 = vpack.c.bf16 %v1874_v4, %v1872_v2  ;;  %v5393_v11 = vpack.c.bf16 %v855_v6, %v853_v5  ;;  %v875_v2 = vld [vmem:[%s7285_s14 + $0x1118] sm:$0xff] }
 0x235   : > { %6398 = vmatprep.subr.bf16.mxu0 %v6397_v15  ;;  %v6417_v15 = vpack.c.bf16 %v1879_v8, %v1877_v7  ;;  %v1899_v4 = vld [vmem:[%s7285_s14 + $0x3118] sm:$0xff]  ;;  %v5413_v7 = vpack.c.bf16 %v875_v2, %v873_v1  ;;  %v872_v8 = vld [vmem:[%s7285_s14 + $0x1100] sm:$0xff] }
 0x237   : > { %5376 = vmatpush1.bf16.msra.mxu1 %v5375_v21  ;;  %v5395_v21 = vpack.c.bf16 %v854_v13, %v852_v12  ;;  %v1898_v12 = vld [vmem:[%s7285_s14 + $0x3110] sm:$0xff]  ;;  %v877_v13 = vld [vmem:[%s7285_s14 + $0x1128] sm:$0xff] }
 0x238   : > { %6400 = vmatpush1.bf16.msra.mxu0 %v6399_v22  ;;  %5378 = vmatprep.subr.bf16.mxu1 %v5377_v23  ;;  %v6419_v22 = vpack.c.bf16 %v1878_v16, %v1876_v14  ;;  %v5397_v23 = vpack.c.bf16 %v859_v18, %v857_v17  ;;  %v879_v14 = vld [vmem:[%s7285_s14 + $0x1138] sm:$0xff] }
 0x239   : > { %6402 = vmatprep.subr.bf16.mxu0 %v6401_v27  ;;  %v6421_v27 = vpack.c.bf16 %v1883_v20, %v1881_v19  ;;  %v1903_v16 = vld [vmem:[%s7285_s14 + $0x3138] sm:$0xff]  ;;  %v5417_v19 = vpack.c.bf16 %v879_v14, %v877_v13  ;;  %v876_v20 = vld [vmem:[%s7285_s14 + $0x1120] sm:$0xff] }
 0x23b   : > { %5380 = vmatpush1.bf16.msra.mxu1 %v5379_v33  ;;  %v5399_v33 = vpack.c.bf16 %v858_v25, %v856_v24  ;;  %v1902_v24 = vld [vmem:[%s7285_s14 + $0x3130] sm:$0xff]  ;;  %v881_v25 = vld [vmem:[%s7285_s14 + $0x1148] sm:$0xff] }
 0x23c   : > { %6404 = vmatpush1.bf16.msra.mxu0 %v6403_v34  ;;  %5382 = vmatprep.subr.bf16.mxu1 %v5381_v35  ;;  %v6423_v34 = vpack.c.bf16 %v1882_v28, %v1880_v26  ;;  %v5401_v35 = vpack.c.bf16 %v863_v30, %v861_v29  ;;  %v883_v26 = vld [vmem:[%s7285_s14 + $0x1158] sm:$0xff] }
 0x23d   : > { %6406 = vmatprep.subr.bf16.mxu0 %v6405_v39  ;;  %v6425_v39 = vpack.c.bf16 %v1887_v32, %v1885_v31  ;;  %v1907_v28 = vld [vmem:[%s7285_s14 + $0x3158] sm:$0xff]  ;;  %v5421_v31 = vpack.c.bf16 %v883_v26, %v881_v25  ;;  %v880_v32 = vld [vmem:[%s7285_s14 + $0x1140] sm:$0xff] }
 0x23e   : > { %2938 = vmatmul.mubr.f32.vlgmr.msra.gmra.mrb[0].mxu1 %v278_v45  ;;  %v5403_v45 = vpack.c.bf16 %v862_v37, %v860_v36  ;;  %v1906_v36 = vld [vmem:[%s7285_s14 + $0x3150] sm:$0xff]  ;;  %v885_v37 = vld [vmem:[%s7285_s14 + $0x1168] sm:$0xff] }
 0x23f   : > { %5384 = vmatpush1.bf16.msra.mxu1 %v5383_v46  ;;  %4074 = vmatmul.mubr.f32.vlgmr.msra.gmra.mrb[0].mxu0 %v310_v47  ;;  %v6427_v46 = vpack.c.bf16 %v1886_v40, %v1884_v38  ;;  %v5405_v47 = vpack.c.bf16 %v867_v42, %v865_v41  ;;  %v887_v38 = vld [vmem:[%s7285_s14 + $0x1178] sm:$0xff] }
 0x240   : > { %6408 = vmatpush1.bf16.msra.mxu0 %v6407_v48  ;;  %5386 = vmatprep.subr.bf16.mxu1 %v5385_v49  ;;  %v864_v48 = vld [vmem:[%s7285_s14 + $0x10c0] sm:$0xff]  ;;  %v866_v49 = vld [vmem:[%s7285_s14 + $0x10d0] sm:$0xff]  ;;  %v1911_v40 = vld [vmem:[%s7285_s14 + $0x3178] sm:$0xff]  ;;  %v5425_v43 = vpack.c.bf16 %v887_v38, %v885_v37 }
 0x241   : > { %6410 = vmatprep.subr.bf16.mxu0 %v6409_v53  ;;  %3008 = vmatprep.mubr.f32.mxu1 %v281_v59  ;;  %v869_v53 = vld [vmem:[%s7285_s14 + $0x10e8] sm:$0xff]  ;;  %v5407_v57 = vpack.c.bf16 %v866_v49, %v864_v48  ;;  %v1910_v48 = vld [vmem:[%s7285_s14 + $0x3170] sm:$0xff] }
 0x242   : > { %4144 = vmatprep.mubr.f32.mxu0 %v313_v61  ;;  %v5409_v59 = vpack.c.bf16 %v871_v54, %v869_v53  ;;  %v870_v61 = vld [vmem:[%s7285_s14 + $0x10f0] sm:$0xff]  ;;  %v889_v49 = vld [vmem:[%s7285_s14 + $0x1188] sm:$0xff] }
 0x243   : > { %5388 = vmatpush1.bf16.msra.mxu1 %v5387_v60  ;;  %v868_v60 = vld [vmem:[%s7285_s14 + $0x10e0] sm:$0xff] }
 0x244   : > { %6412 = vmatpush1.bf16.msra.mxu0 %v6411_v62  ;;  %5390 = vmatprep.subr.bf16.mxu1 %v5389_v63  ;;  %v1892_v62 = vld [vmem:[%s7285_s14 + $0x30e0] sm:$0xff]  ;;  %v6433_v63 = vpack.c.bf16 %v1895_v56, %v1893_v55  ;;  %v5411_v5 = vpack.c.bf16 %v870_v61, %v868_v60  ;;  %v5429_v55 = vpack.c.bf16 %v891_v50, %v889_v49  ;;  %v1914_v60 = vld [vmem:[%s7285_s14 + $0x3190] sm:$0xff]  ;;  %v893_v61 = vld [vmem:[%s7285_s14 + $0x11a8] sm:$0xff] }
 0x245   : > { %6414 = vmatprep.subr.bf16.mxu0 %v6413_v3  ;;  %v1897_v3 = vld [vmem:[%s7285_s14 + $0x3108] sm:$0xff]  ;;  %v6435_v6 = vpack.c.bf16 %v1894_v0, %v1892_v62  ;;  %v888_v56 = vld [vmem:[%s7285_s14 + $0x1180] sm:$0xff]  ;;  %v895_v62 = vld [vmem:[%s7285_s14 + $0x11b8] sm:$0xff] }
 0x246   : > { %v1919_v0 = vld [vmem:[%s7285_s14 + $0x31b8] sm:$0xff]  ;;  %v280_v49 = vld [vmem:[%s7295_s11 + $0x80] sm:$0xff] }
 0x247   : > { %5392 = vmatpush1.bf16.msra.mxu1 %v5391_v9  ;;  %v874_v9 = vld [vmem:[%s7285_s14 + $0x1110] sm:$0xff] }
 0x248   : > { %6416 = vmatpush1.bf16.msra.mxu0 %v6415_v10  ;;  %5394 = vmatprep.subr.bf16.mxu1 %v5393_v11  ;;  %v1896_v10 = vld [vmem:[%s7285_s14 + $0x3100] sm:$0xff]  ;;  %v6437_v11 = vpack.c.bf16 %v1899_v4, %v1897_v3  ;;  %v5415_v17 = vpack.c.bf16 %v874_v9, %v872_v8  ;;  %v5433_v3 = vpack.c.bf16 %v895_v62, %v893_v61  ;;  %v1918_v8 = vld [vmem:[%s7285_s14 + $0x31b0] sm:$0xff]  ;;  %v897_v9 = vld [vmem:[%s7285_s14 + $0x11c8] sm:$0xff] }
 0x249   : > { %6418 = vmatprep.subr.bf16.mxu0 %v6417_v15  ;;  %v1901_v15 = vld [vmem:[%s7285_s14 + $0x3128] sm:$0xff]  ;;  %v6439_v18 = vpack.c.bf16 %v1898_v12, %v1896_v10  ;;  %v892_v4 = vld [vmem:[%s7285_s14 + $0x11a0] sm:$0xff]  ;;  %v899_v10 = vld [vmem:[%s7285_s14 + $0x11d8] sm:$0xff] }
 0x24a   : > { %v1923_v12 = vld [vmem:[%s7285_s14 + $0x31d8] sm:$0xff]  ;;  %v1937_v61 = vld [vmem:[%s7285_s14 + $0x3248] sm:$0xff] }
 0x24b   : > { %5396 = vmatpush1.bf16.msra.mxu1 %v5395_v21  ;;  %v878_v21 = vld [vmem:[%s7285_s14 + $0x1130] sm:$0xff]  ;;  %v1939_v62 = vld [vmem:[%s7285_s14 + $0x3258] sm:$0xff] }
 0x24c   : > { %6420 = vmatpush1.bf16.msra.mxu0 %v6419_v22  ;;  %5398 = vmatprep.subr.bf16.mxu1 %v5397_v23  ;;  %v1900_v22 = vld [vmem:[%s7285_s14 + $0x3120] sm:$0xff]  ;;  %v6441_v23 = vpack.c.bf16 %v1903_v16, %v1901_v15  ;;  %v5419_v29 = vpack.c.bf16 %v878_v21, %v876_v20  ;;  %v5437_v15 = vpack.c.bf16 %v899_v10, %v897_v9  ;;  %v1922_v20 = vld [vmem:[%s7285_s14 + $0x31d0] sm:$0xff]  ;;  %v901_v21 = vld [vmem:[%s7285_s14 + $0x11e8] sm:$0xff] }
 0x24d   : > { %6422 = vmatprep.subr.bf16.mxu0 %v6421_v27  ;;  %v1905_v27 = vld [vmem:[%s7285_s14 + $0x3148] sm:$0xff]  ;;  %v6443_v30 = vpack.c.bf16 %v1902_v24, %v1900_v22  ;;  %v896_v16 = vld [vmem:[%s7285_s14 + $0x11c0] sm:$0xff]  ;;  %v903_v22 = vld [vmem:[%s7285_s14 + $0x11f8] sm:$0xff] }
 0x24e   : > { %v1927_v24 = vld [vmem:[%s7285_s14 + $0x31f8] sm:$0xff]  ;;  %v917_v9 = vld [vmem:[%s7285_s14 + $0x1268] sm:$0xff] }
 0x24f   : > { %5400 = vmatpush1.bf16.msra.mxu1 %v5399_v33  ;;  %v882_v33 = vld [vmem:[%s7285_s14 + $0x1150] sm:$0xff]  ;;  %v919_v10 = vld [vmem:[%s7285_s14 + $0x1278] sm:$0xff] }
 0x250   : > { %6424 = vmatpush1.bf16.msra.mxu0 %v6423_v34  ;;  %5402 = vmatprep.subr.bf16.mxu1 %v5401_v35  ;;  %v1904_v34 = vld [vmem:[%s7285_s14 + $0x3140] sm:$0xff]  ;;  %v6445_v35 = vpack.c.bf16 %v1907_v28, %v1905_v27  ;;  %v5423_v41 = vpack.c.bf16 %v882_v33, %v880_v32  ;;  %v5441_v27 = vpack.c.bf16 %v903_v22, %v901_v21  ;;  %v1926_v32 = vld [vmem:[%s7285_s14 + $0x31f0] sm:$0xff]  ;;  %v905_v33 = vld [vmem:[%s7285_s14 + $0x1208] sm:$0xff] }
 0x251   : > { %6426 = vmatprep.subr.bf16.mxu0 %v6425_v39  ;;  %v1909_v39 = vld [vmem:[%s7285_s14 + $0x3168] sm:$0xff]  ;;  %v6447_v42 = vpack.c.bf16 %v1906_v36, %v1904_v34  ;;  %v900_v28 = vld [vmem:[%s7285_s14 + $0x11e0] sm:$0xff]  ;;  %v907_v34 = vld [vmem:[%s7285_s14 + $0x1218] sm:$0xff] }
 0x252   : > { %v1931_v36 = vld [vmem:[%s7285_s14 + $0x3218] sm:$0xff]  ;;  %v921_v21 = vld [vmem:[%s7285_s14 + $0x1288] sm:$0xff] }
 0x253   : > { %5404 = vmatpush1.bf16.msra.mxu1 %v5403_v45  ;;  %v886_v45 = vld [vmem:[%s7285_s14 + $0x1170] sm:$0xff]  ;;  %v923_v22 = vld [vmem:[%s7285_s14 + $0x1298] sm:$0xff] }
 0x254   : > { %6428 = vmatpush1.bf16.msra.mxu0 %v6427_v46  ;;  %5406 = vmatprep.subr.bf16.mxu1 %v5405_v47  ;;  %v1908_v46 = vld [vmem:[%s7285_s14 + $0x3160] sm:$0xff]  ;;  %v6449_v47 = vpack.c.bf16 %v1911_v40, %v1909_v39  ;;  %v5427_v53 = vpack.c.bf16 %v886_v45, %v884_v44  ;;  %v5445_v39 = vpack.c.bf16 %v907_v34, %v905_v33  ;;  %v1930_v44 = vld [vmem:[%s7285_s14 + $0x3210] sm:$0xff]  ;;  %v909_v45 = vld [vmem:[%s7285_s14 + $0x1228] sm:$0xff] }
 0x255   : > { %6430 = vmatprep.subr.bf16.mxu0 %v6429_v51  ;;  %v1913_v51 = vld [vmem:[%s7285_s14 + $0x3188] sm:$0xff]  ;;  %v6451_v54 = vpack.c.bf16 %v1910_v48, %v1908_v46  ;;  %v904_v40 = vld [vmem:[%s7285_s14 + $0x1200] sm:$0xff]  ;;  %v911_v46 = vld [vmem:[%s7285_s14 + $0x1238] sm:$0xff] }
 0x256   : > { %v1935_v48 = vld [vmem:[%s7285_s14 + $0x3238] sm:$0xff]  ;;  %v925_v33 = vld [vmem:[%s7285_s14 + $0x12a8] sm:$0xff] }
 0x257   : > { %5408 = vmatpush1.bf16.msra.mxu1 %v5407_v57  ;;  %v890_v57 = vld [vmem:[%s7285_s14 + $0x1190] sm:$0xff]  ;;  %v927_v34 = vld [vmem:[%s7285_s14 + $0x12b8] sm:$0xff] }
 0x258   : > { %6432 = vmatpush1.bf16.msra.mxu0 %v6431_v58  ;;  %5410 = vmatprep.subr.bf16.mxu1 %v5409_v59  ;;  %v1912_v58 = vld [vmem:[%s7285_s14 + $0x3180] sm:$0xff]  ;;  %v6453_v59 = vpack.c.bf16 %v1915_v52, %v1913_v51  ;;  %v5431_v1 = vpack.c.bf16 %v890_v57, %v888_v56  ;;  %v312_v51 = vld [vmem:[%s7295_s11 + $0x180] sm:$0xff] }
 0x259   : > { %6434 = vmatprep.subr.bf16.mxu0 %v6433_v63  ;;  %v1917_v63 = vld [vmem:[%s7285_s14 + $0x31a8] sm:$0xff]  ;;  %v6455_v2 = vpack.c.bf16 %v1914_v60, %v1912_v58  ;;  %v1932_v56 = vld [vmem:[%s7285_s14 + $0x3220] sm:$0xff]  ;;  %v1934_v58 = vld [vmem:[%s7285_s14 + $0x3230] sm:$0xff] }
 0x25a   : > { %v915_v60 = vld [vmem:[%s7285_s14 + $0x1258] sm:$0xff] }
 0x25b   : > { %5412 = vmatpush1.bf16.msra.mxu1 %v5411_v5  ;;  %v894_v5 = vld [vmem:[%s7285_s14 + $0x11b0] sm:$0xff] }
 0x25c   : > { %6436 = vmatpush1.bf16.msra.mxu0 %v6435_v6  ;;  %5414 = vmatprep.subr.bf16.mxu1 %v5413_v7  ;;  %v1916_v6 = vld [vmem:[%s7285_s14 + $0x31a0] sm:$0xff]  ;;  %v6457_v7 = vpack.c.bf16 %v1919_v0, %v1917_v63  ;;  %v5435_v13 = vpack.c.bf16 %v894_v5, %v892_v4  ;;  %v283_v63 = vld [vmem:[%s7295_s11 + $0x98] sm:$0xff]  ;;  %v914_v5 = vld [vmem:[%s7285_s14 + $0x1250] sm:$0xff] }
 0x25d   : > { %6438 = vmatprep.subr.bf16.mxu0 %v6437_v11  ;;  %v1921_v11 = vld [vmem:[%s7285_s14 + $0x31c8] sm:$0xff]  ;;  %v6459_v14 = vpack.c.bf16 %v1918_v8, %v1916_v6  ;;  %v912_v4 = vld [vmem:[%s7285_s14 + $0x1240] sm:$0xff]  ;;  %v1938_v8 = vld [vmem:[%s7285_s14 + $0x3250] sm:$0xff] }
 0x25e   : > { %v1936_v6 = vld [vmem:[%s7285_s14 + $0x3240] sm:$0xff] }
 0x25f   : > { %5416 = vmatpush1.bf16.msra.mxu1 %v5415_v17  ;;  %v898_v17 = vld [vmem:[%s7285_s14 + $0x11d0] sm:$0xff] }
 0x260   : > { %6440 = vmatpush1.bf16.msra.mxu0 %v6439_v18  ;;  %5418 = vmatprep.subr.bf16.mxu1 %v5417_v19  ;;  %v1920_v18 = vld [vmem:[%s7285_s14 + $0x31c0] sm:$0xff]  ;;  %v6461_v19 = vpack.c.bf16 %v1923_v12, %v1921_v11  ;;  %v5439_v25 = vpack.c.bf16 %v898_v17, %v896_v16  ;;  %v1941_v11 = vld [vmem:[%s7285_s14 + $0x3268] sm:$0xff]  ;;  %v1943_v12 = vld [vmem:[%s7285_s14 + $0x3278] sm:$0xff] }
 0x261   : > { %6442 = vmatprep.subr.bf16.mxu0 %v6441_v23  ;;  %v1925_v23 = vld [vmem:[%s7285_s14 + $0x31e8] sm:$0xff]  ;;  %v6463_v26 = vpack.c.bf16 %v1922_v20, %v1920_v18  ;;  %v916_v16 = vld [vmem:[%s7285_s14 + $0x1260] sm:$0xff]  ;;  %v918_v17 = vld [vmem:[%s7285_s14 + $0x1270] sm:$0xff] }
 0x262   : > { %v1940_v18 = vld [vmem:[%s7285_s14 + $0x3260] sm:$0xff]  ;;  %v1942_v20 = vld [vmem:[%s7285_s14 + $0x3270] sm:$0xff] }
 0x263   : > { %5420 = vmatpush1.bf16.msra.mxu1 %v5419_v29  ;;  %v902_v29 = vld [vmem:[%s7285_s14 + $0x11f0] sm:$0xff] }
 0x264   : > { %6444 = vmatpush1.bf16.msra.mxu0 %v6443_v30  ;;  %5422 = vmatprep.subr.bf16.mxu1 %v5421_v31  ;;  %v1924_v30 = vld [vmem:[%s7285_s14 + $0x31e0] sm:$0xff]  ;;  %v6465_v31 = vpack.c.bf16 %v1927_v24, %v1925_v23  ;;  %v5443_v37 = vpack.c.bf16 %v902_v29, %v900_v28  ;;  %v1945_v23 = vld [vmem:[%s7285_s14 + $0x3288] sm:$0xff]  ;;  %v1947_v24 = vld [vmem:[%s7285_s14 + $0x3298] sm:$0xff] }
 0x265   : > { %6446 = vmatprep.subr.bf16.mxu0 %v6445_v35  ;;  %v1929_v35 = vld [vmem:[%s7285_s14 + $0x3208] sm:$0xff]  ;;  %v6467_v38 = vpack.c.bf16 %v1926_v32, %v1924_v30  ;;  %v920_v28 = vld [vmem:[%s7285_s14 + $0x1280] sm:$0xff]  ;;  %v922_v29 = vld [vmem:[%s7285_s14 + $0x1290] sm:$0xff] }
 0x266   : > { %v1944_v30 = vld [vmem:[%s7285_s14 + $0x3280] sm:$0xff]  ;;  %v1946_v32 = vld [vmem:[%s7285_s14 + $0x3290] sm:$0xff] }
 0x267   : > { %5424 = vmatpush1.bf16.msra.mxu1 %v5423_v41  ;;  %v906_v41 = vld [vmem:[%s7285_s14 + $0x1210] sm:$0xff] }
 0x268   : > { %6448 = vmatpush1.bf16.msra.mxu0 %v6447_v42  ;;  %5426 = vmatprep.subr.bf16.mxu1 %v5425_v43  ;;  %v1928_v42 = vld [vmem:[%s7285_s14 + $0x3200] sm:$0xff]  ;;  %v6469_v43 = vpack.c.bf16 %v1931_v36, %v1929_v35  ;;  %v5447_v50 = vpack.c.bf16 %v906_v41, %v904_v40  ;;  %v1949_v35 = vld [vmem:[%s7285_s14 + $0x32a8] sm:$0xff]  ;;  %v1951_v36 = vld [vmem:[%s7285_s14 + $0x32b8] sm:$0xff] }
 0x269   : > { %6450 = vmatprep.subr.bf16.mxu0 %v6449_v47  ;;  %v1933_v47 = vld [vmem:[%s7285_s14 + $0x3228] sm:$0xff]  ;;  %v6471_v52 = vpack.c.bf16 %v1930_v44, %v1928_v42  ;;  %v924_v40 = vld [vmem:[%s7285_s14 + $0x12a0] sm:$0xff]  ;;  %v926_v41 = vld [vmem:[%s7285_s14 + $0x12b0] sm:$0xff] }
 0x26a   : > { %v6473_v57 = vpack.c.bf16 %v1935_v48, %v1933_v47  ;;  %v1948_v42 = vld [vmem:[%s7285_s14 + $0x32a0] sm:$0xff]  ;;  %v1950_v44 = vld [vmem:[%s7285_s14 + $0x32b0] sm:$0xff]  ;;  %v1953_v47 = vld [vmem:[%s7285_s14 + $0x32c8] sm:$0xff] }
 0x26b   : > { %5428 = vmatpush1.bf16.msra.mxu1 %v5427_v53  ;;  %v5449_v53 = vpack.c.bf16 %v911_v46, %v909_v45  ;;  %v929_v45 = vld [vmem:[%s7285_s14 + $0x12c8] sm:$0xff]  ;;  %v931_v46 = vld [vmem:[%s7285_s14 + $0x12d8] sm:$0xff] }
 0x26c   : > { %6452 = vmatpush1.bf16.msra.mxu0 %v6451_v54  ;;  %5430 = vmatprep.subr.bf16.mxu1 %v5429_v55  ;;  %v908_v54 = vld [vmem:[%s7285_s14 + $0x1220] sm:$0xff]  ;;  %v910_v55 = vld [vmem:[%s7285_s14 + $0x1230] sm:$0xff]  ;;  %v1955_v48 = vld [vmem:[%s7285_s14 + $0x32d8] sm:$0xff] }
 0x26d   : > { %6454 = vmatprep.subr.bf16.mxu0 %v6453_v59  ;;  %v913_v59 = vld [vmem:[%s7285_s14 + $0x1248] sm:$0xff]  ;;  %v5451_v0 = vpack.c.bf16 %v910_v55, %v908_v54  ;;  %v1952_v54 = vld [vmem:[%s7285_s14 + $0x32c0] sm:$0xff]  ;;  %v6493_v55 = vpack.c.bf16 %v1955_v48, %v1953_v47 }
 0x26e   : > { %v948_v48 = vld [vmem:[%s7285_s14 + $0x1360] sm:$0xff] }
 0x26f   : > { %5432 = vmatpush1.bf16.msra.mxu1 %v5431_v1  ;;  %v315_v1 = vld [vmem:[%s7295_s11 + $0x198] sm:$0xff] }
 0x270   : > { %6456 = vmatpush1.bf16.msra.mxu0 %v6455_v2  ;;  %5434 = vmatprep.subr.bf16.mxu1 %v5433_v3  ;;  %v6475_v2 = vpack.c.bf16 %v1934_v58, %v1932_v56  ;;  %v5453_v3 = vpack.c.bf16 %v915_v60, %v913_v59  ;;  %v1954_v56 = vld [vmem:[%s7285_s14 + $0x32d0] sm:$0xff]  ;;  %v935_v58 = vld [vmem:[%s7285_s14 + $0x12f8] sm:$0xff]  ;;  %v1957_v59 = vld [vmem:[%s7285_s14 + $0x32e8] sm:$0xff] }
 0x271   : > { %6458 = vmatprep.subr.bf16.mxu0 %v6457_v7  ;;  %v6477_v7 = vpack.c.bf16 %v1939_v62, %v1937_v61  ;;  %v1959_v60 = vld [vmem:[%s7285_s14 + $0x32f8] sm:$0xff]  ;;  %v6495_v62 = vpack.c.bf16 %v1954_v56, %v1952_v54 }
 0x272   : > { %v955_v54 = vld [vmem:[%s7285_s14 + $0x1398] sm:$0xff] }
 0x273   : > { %5436 = vmatpush1.bf16.msra.mxu1 %v5435_v13  ;;  %v5455_v13 = vpack.c.bf16 %v914_v5, %v912_v4  ;;  %v1958_v4 = vld [vmem:[%s7285_s14 + $0x32f0] sm:$0xff]  ;;  %v937_v5 = vld [vmem:[%s7285_s14 + $0x1308] sm:$0xff]  ;;  %v1979_v56 = vld [vmem:[%s7285_s14 + $0x3398] sm:$0xff] }
 0x274   : > { %6460 = vmatpush1.bf16.msra.mxu0 %v6459_v14  ;;  %5438 = vmatprep.subr.bf16.mxu1 %v5437_v15  ;;  %v6479_v14 = vpack.c.bf16 %v1938_v8, %v1936_v6  ;;  %v5457_v15 = vpack.c.bf16 %v919_v10, %v917_v9  ;;  %v939_v6 = vld [vmem:[%s7285_s14 + $0x1318] sm:$0xff] }
 0x275   : > { %6462 = vmatprep.subr.bf16.mxu0 %v6461_v19  ;;  %v6481_v19 = vpack.c.bf16 %v1943_v12, %v1941_v11  ;;  %v1963_v8 = vld [vmem:[%s7285_s14 + $0x3318] sm:$0xff]  ;;  %v5477_v11 = vpack.c.bf16 %v939_v6, %v937_v5  ;;  %v936_v12 = vld [vmem:[%s7285_s14 + $0x1300] sm:$0xff] }
 0x277   : > { %5440 = vmatpush1.bf16.msra.mxu1 %v5439_v25  ;;  %v5459_v25 = vpack.c.bf16 %v918_v17, %v916_v16  ;;  %v1962_v16 = vld [vmem:[%s7285_s14 + $0x3310] sm:$0xff]  ;;  %v941_v17 = vld [vmem:[%s7285_s14 + $0x1328] sm:$0xff] }
 0x278   : > { %6464 = vmatpush1.bf16.msra.mxu0 %v6463_v26  ;;  %5442 = vmatprep.subr.bf16.mxu1 %v5441_v27  ;;  %v6483_v26 = vpack.c.bf16 %v1942_v20, %v1940_v18  ;;  %v5461_v27 = vpack.c.bf16 %v923_v22, %v921_v21  ;;  %v943_v18 = vld [vmem:[%s7285_s14 + $0x1338] sm:$0xff] }
 0x279   : > { %6466 = vmatprep.subr.bf16.mxu0 %v6465_v31  ;;  %v6485_v31 = vpack.c.bf16 %v1947_v24, %v1945_v23  ;;  %v1967_v20 = vld [vmem:[%s7285_s14 + $0x3338] sm:$0xff]  ;;  %v5481_v23 = vpack.c.bf16 %v943_v18, %v941_v17  ;;  %v940_v24 = vld [vmem:[%s7285_s14 + $0x1320] sm:$0xff] }
 0x27b   : > { %5444 = vmatpush1.bf16.msra.mxu1 %v5443_v37  ;;  %v5463_v37 = vpack.c.bf16 %v922_v29, %v920_v28  ;;  %v1966_v28 = vld [vmem:[%s7285_s14 + $0x3330] sm:$0xff]  ;;  %v945_v29 = vld [vmem:[%s7285_s14 + $0x1348] sm:$0xff] }
 0x27c   : > { %6468 = vmatpush1.bf16.msra.mxu0 %v6467_v38  ;;  %5446 = vmatprep.subr.bf16.mxu1 %v5445_v39  ;;  %v6487_v38 = vpack.c.bf16 %v1946_v32, %v1944_v30  ;;  %v5465_v39 = vpack.c.bf16 %v927_v34, %v925_v33  ;;  %v947_v30 = vld [vmem:[%s7285_s14 + $0x1358] sm:$0xff] }
 0x27d   : > { %6470 = vmatprep.subr.bf16.mxu0 %v6469_v43  ;;  %v6489_v43 = vpack.c.bf16 %v1951_v36, %v1949_v35  ;;  %v1971_v32 = vld [vmem:[%s7285_s14 + $0x3358] sm:$0xff]  ;;  %v5485_v35 = vpack.c.bf16 %v947_v30, %v945_v29  ;;  %v944_v36 = vld [vmem:[%s7285_s14 + $0x1340] sm:$0xff] }
 0x27e   : > { %3009 = vmatmul.mubr.f32.vlgmr.msra.gmra.mrb[0].mxu1 %v280_v49  ;;  %v5467_v49 = vpack.c.bf16 %v926_v41, %v924_v40  ;;  %v1970_v40 = vld [vmem:[%s7285_s14 + $0x3350] sm:$0xff]  ;;  %v949_v41 = vld [vmem:[%s7285_s14 + $0x1368] sm:$0xff] }
 0x27f   : > { %5448 = vmatpush1.bf16.msra.mxu1 %v5447_v50  ;;  %4145 = vmatmul.mubr.f32.vlgmr.msra.gmra.mrb[0].mxu0 %v312_v51  ;;  %v6491_v50 = vpack.c.bf16 %v1950_v44, %v1948_v42  ;;  %v5469_v51 = vpack.c.bf16 %v931_v46, %v929_v45  ;;  %v951_v42 = vld [vmem:[%s7285_s14 + $0x1378] sm:$0xff] }
 0x280   : > { %6472 = vmatpush1.bf16.msra.mxu0 %v6471_v52  ;;  %5450 = vmatprep.subr.bf16.mxu1 %v5449_v53  ;;  %v928_v52 = vld [vmem:[%s7285_s14 + $0x12c0] sm:$0xff]  ;;  %v930_v53 = vld [vmem:[%s7285_s14 + $0x12d0] sm:$0xff]  ;;  %v1975_v44 = vld [vmem:[%s7285_s14 + $0x3378] sm:$0xff]  ;;  %v5489_v47 = vpack.c.bf16 %v951_v42, %v949_v41 }
 0x281   : > { %6474 = vmatprep.subr.bf16.mxu0 %v6473_v57  ;;  %3079 = vmatprep.mubr.f32.mxu1 %v283_v63  ;;  %v933_v57 = vld [vmem:[%s7285_s14 + $0x12e8] sm:$0xff]  ;;  %v5471_v61 = vpack.c.bf16 %v930_v53, %v928_v52  ;;  %v1974_v52 = vld [vmem:[%s7285_s14 + $0x3370] sm:$0xff] }
 0x282   : > { %4215 = vmatprep.mubr.f32.mxu0 %v315_v1  ;;  %v5473_v63 = vpack.c.bf16 %v935_v58, %v933_v57  ;;  %v934_v1 = vld [vmem:[%s7285_s14 + $0x12f0] sm:$0xff]  ;;  %v953_v53 = vld [vmem:[%s7285_s14 + $0x1388] sm:$0xff] }
 0x283   : > { %5452 = vmatpush1.bf16.msra.mxu1 %v5451_v0  ;;  %v932_v0 = vld [vmem:[%s7285_s14 + $0x12e0] sm:$0xff] }
 0x284   : > { %6476 = vmatpush1.bf16.msra.mxu0 %v6475_v2  ;;  %5454 = vmatprep.subr.bf16.mxu1 %v5453_v3  ;;  %v1956_v2 = vld [vmem:[%s7285_s14 + $0x32e0] sm:$0xff]  ;;  %v6497_v3 = vpack.c.bf16 %v1959_v60, %v1957_v59  ;;  %v5475_v9 = vpack.c.bf16 %v934_v1, %v932_v0  ;;  %v5493_v59 = vpack.c.bf16 %v955_v54, %v953_v53  ;;  %v1978_v0 = vld [vmem:[%s7285_s14 + $0x3390] sm:$0xff]  ;;  %v957_v1 = vld [vmem:[%s7285_s14 + $0x13a8] sm:$0xff] }
 0x285   : > { %6478 = vmatprep.subr.bf16.mxu0 %v6477_v7  ;;  %v1961_v7 = vld [vmem:[%s7285_s14 + $0x3308] sm:$0xff]  ;;  %v6499_v10 = vpack.c.bf16 %v1958_v4, %v1956_v2  ;;  %v952_v60 = vld [vmem:[%s7285_s14 + $0x1380] sm:$0xff]  ;;  %v959_v2 = vld [vmem:[%s7285_s14 + $0x13b8] sm:$0xff] }
 0x286   : > { %v1983_v4 = vld [vmem:[%s7285_s14 + $0x33b8] sm:$0xff]  ;;  %v282_v53 = vld [vmem:[%s7295_s11 + $0x90] sm:$0xff] }
 0x287   : > { %5456 = vmatpush1.bf16.msra.mxu1 %v5455_v13  ;;  %v938_v13 = vld [vmem:[%s7285_s14 + $0x1310] sm:$0xff] }
 0x288   : > { %6480 = vmatpush1.bf16.msra.mxu0 %v6479_v14  ;;  %5458 = vmatprep.subr.bf16.mxu1 %v5457_v15  ;;  %v1960_v14 = vld [vmem:[%s7285_s14 + $0x3300] sm:$0xff]  ;;  %v6501_v15 = vpack.c.bf16 %v1963_v8, %v1961_v7  ;;  %v5479_v21 = vpack.c.bf16 %v938_v13, %v936_v12  ;;  %v5497_v7 = vpack.c.bf16 %v959_v2, %v957_v1  ;;  %v1982_v12 = vld [vmem:[%s7285_s14 + $0x33b0] sm:$0xff]  ;;  %v961_v13 = vld [vmem:[%s7285_s14 + $0x13c8] sm:$0xff] }
 0x289   : > { %6482 = vmatprep.subr.bf16.mxu0 %v6481_v19  ;;  %v1965_v19 = vld [vmem:[%s7285_s14 + $0x3328] sm:$0xff]  ;;  %v6503_v22 = vpack.c.bf16 %v1962_v16, %v1960_v14  ;;  %v956_v8 = vld [vmem:[%s7285_s14 + $0x13a0] sm:$0xff]  ;;  %v963_v14 = vld [vmem:[%s7285_s14 + $0x13d8] sm:$0xff] }
 0x28a   : > { %v1987_v16 = vld [vmem:[%s7285_s14 + $0x33d8] sm:$0xff]  ;;  %v2001_v1 = vld [vmem:[%s7285_s14 + $0x3448] sm:$0xff] }
 0x28b   : > { %5460 = vmatpush1.bf16.msra.mxu1 %v5459_v25  ;;  %v942_v25 = vld [vmem:[%s7285_s14 + $0x1330] sm:$0xff]  ;;  %v2003_v2 = vld [vmem:[%s7285_s14 + $0x3458] sm:$0xff] }
 0x28c   : > { %6484 = vmatpush1.bf16.msra.mxu0 %v6483_v26  ;;  %5462 = vmatprep.subr.bf16.mxu1 %v5461_v27  ;;  %v1964_v26 = vld [vmem:[%s7285_s14 + $0x3320] sm:$0xff]  ;;  %v6505_v27 = vpack.c.bf16 %v1967_v20, %v1965_v19  ;;  %v5483_v33 = vpack.c.bf16 %v942_v25, %v940_v24  ;;  %v5501_v19 = vpack.c.bf16 %v963_v14, %v961_v13  ;;  %v1986_v24 = vld [vmem:[%s7285_s14 + $0x33d0] sm:$0xff]  ;;  %v965_v25 = vld [vmem:[%s7285_s14 + $0x13e8] sm:$0xff] }
 0x28d   : > { %6486 = vmatprep.subr.bf16.mxu0 %v6485_v31  ;;  %v1969_v31 = vld [vmem:[%s7285_s14 + $0x3348] sm:$0xff]  ;;  %v6507_v34 = vpack.c.bf16 %v1966_v28, %v1964_v26  ;;  %v960_v20 = vld [vmem:[%s7285_s14 + $0x13c0] sm:$0xff]  ;;  %v967_v26 = vld [vmem:[%s7285_s14 + $0x13f8] sm:$0xff] }
 0x28e   : > { %v1991_v28 = vld [vmem:[%s7285_s14 + $0x33f8] sm:$0xff]  ;;  %v981_v13 = vld [vmem:[%s7285_s14 + $0x1468] sm:$0xff] }
 0x28f   : > { %5464 = vmatpush1.bf16.msra.mxu1 %v5463_v37  ;;  %v946_v37 = vld [vmem:[%s7285_s14 + $0x1350] sm:$0xff]  ;;  %v983_v14 = vld [vmem:[%s7285_s14 + $0x1478] sm:$0xff] }
 0x290   : > { %6488 = vmatpush1.bf16.msra.mxu0 %v6487_v38  ;;  %5466 = vmatprep.subr.bf16.mxu1 %v5465_v39  ;;  %v1968_v38 = vld [vmem:[%s7285_s14 + $0x3340] sm:$0xff]  ;;  %v6509_v39 = vpack.c.bf16 %v1971_v32, %v1969_v31  ;;  %v5487_v45 = vpack.c.bf16 %v946_v37, %v944_v36  ;;  %v5505_v31 = vpack.c.bf16 %v967_v26, %v965_v25  ;;  %v1990_v36 = vld [vmem:[%s7285_s14 + $0x33f0] sm:$0xff]  ;;  %v969_v37 = vld [vmem:[%s7285_s14 + $0x1408] sm:$0xff] }
 0x291   : > { %6490 = vmatprep.subr.bf16.mxu0 %v6489_v43  ;;  %v1973_v43 = vld [vmem:[%s7285_s14 + $0x3368] sm:$0xff]  ;;  %v6511_v46 = vpack.c.bf16 %v1970_v40, %v1968_v38  ;;  %v964_v32 = vld [vmem:[%s7285_s14 + $0x13e0] sm:$0xff]  ;;  %v971_v38 = vld [vmem:[%s7285_s14 + $0x1418] sm:$0xff] }
 0x292   : > { %v1995_v40 = vld [vmem:[%s7285_s14 + $0x3418] sm:$0xff]  ;;  %v985_v25 = vld [vmem:[%s7285_s14 + $0x1488] sm:$0xff] }
 0x293   : > { %5468 = vmatpush1.bf16.msra.mxu1 %v5467_v49  ;;  %v950_v49 = vld [vmem:[%s7285_s14 + $0x1370] sm:$0xff]  ;;  %v987_v26 = vld [vmem:[%s7285_s14 + $0x1498] sm:$0xff] }
 0x294   : > { %6492 = vmatpush1.bf16.msra.mxu0 %v6491_v50  ;;  %5470 = vmatprep.subr.bf16.mxu1 %v5469_v51  ;;  %v1972_v50 = vld [vmem:[%s7285_s14 + $0x3360] sm:$0xff]  ;;  %v6513_v51 = vpack.c.bf16 %v1975_v44, %v1973_v43  ;;  %v5491_v57 = vpack.c.bf16 %v950_v49, %v948_v48  ;;  %v5509_v43 = vpack.c.bf16 %v971_v38, %v969_v37  ;;  %v1994_v48 = vld [vmem:[%s7285_s14 + $0x3410] sm:$0xff]  ;;  %v973_v49 = vld [vmem:[%s7285_s14 + $0x1428] sm:$0xff] }
 0x295   : > { %6494 = vmatprep.subr.bf16.mxu0 %v6493_v55  ;;  %v1977_v55 = vld [vmem:[%s7285_s14 + $0x3388] sm:$0xff]  ;;  %v6515_v58 = vpack.c.bf16 %v1974_v52, %v1972_v50  ;;  %v968_v44 = vld [vmem:[%s7285_s14 + $0x1400] sm:$0xff]  ;;  %v975_v50 = vld [vmem:[%s7285_s14 + $0x1438] sm:$0xff] }
 0x296   : > { %v1999_v52 = vld [vmem:[%s7285_s14 + $0x3438] sm:$0xff]  ;;  %v989_v37 = vld [vmem:[%s7285_s14 + $0x14a8] sm:$0xff] }
 0x297   : > { %5472 = vmatpush1.bf16.msra.mxu1 %v5471_v61  ;;  %v954_v61 = vld [vmem:[%s7285_s14 + $0x1390] sm:$0xff]  ;;  %v991_v38 = vld [vmem:[%s7285_s14 + $0x14b8] sm:$0xff] }
 0x298   : > { %6496 = vmatpush1.bf16.msra.mxu0 %v6495_v62  ;;  %5474 = vmatprep.subr.bf16.mxu1 %v5473_v63  ;;  %v1976_v62 = vld [vmem:[%s7285_s14 + $0x3380] sm:$0xff]  ;;  %v6517_v63 = vpack.c.bf16 %v1979_v56, %v1977_v55  ;;  %v5495_v5 = vpack.c.bf16 %v954_v61, %v952_v60 }
 0x299   : > { %6498 = vmatprep.subr.bf16.mxu0 %v6497_v3  ;;  %v1981_v3 = vld [vmem:[%s7285_s14 + $0x33a8] sm:$0xff]  ;;  %v6519_v6 = vpack.c.bf16 %v1978_v0, %v1976_v62  ;;  %v314_v55 = vld [vmem:[%s7295_s11 + $0x190] sm:$0xff]  ;;  %v1998_v62 = vld [vmem:[%s7285_s14 + $0x3430] sm:$0xff] }
 0x29a   : > { %v1996_v60 = vld [vmem:[%s7285_s14 + $0x3420] sm:$0xff]  ;;  %v979_v0 = vld [vmem:[%s7285_s14 + $0x1458] sm:$0xff] }
 0x29b   : > { %5476 = vmatpush1.bf16.msra.mxu1 %v5475_v9  ;;  %v958_v9 = vld [vmem:[%s7285_s14 + $0x13b0] sm:$0xff] }
 0x29c   : > { %6500 = vmatpush1.bf16.msra.mxu0 %v6499_v10  ;;  %5478 = vmatprep.subr.bf16.mxu1 %v5477_v11  ;;  %v1980_v10 = vld [vmem:[%s7285_s14 + $0x33a0] sm:$0xff]  ;;  %v6521_v11 = vpack.c.bf16 %v1983_v4, %v1981_v3  ;;  %v5499_v17 = vpack.c.bf16 %v958_v9, %v956_v8  ;;  %v285_v3 = vld [vmem:[%s7295_s11 + $0xa8] sm:$0xff]  ;;  %v978_v9 = vld [vmem:[%s7285_s14 + $0x1450] sm:$0xff] }
 0x29d   : > { %6502 = vmatprep.subr.bf16.mxu0 %v6501_v15  ;;  %v1985_v15 = vld [vmem:[%s7285_s14 + $0x33c8] sm:$0xff]  ;;  %v6523_v18 = vpack.c.bf16 %v1982_v12, %v1980_v10  ;;  %v976_v8 = vld [vmem:[%s7285_s14 + $0x1440] sm:$0xff]  ;;  %v2002_v12 = vld [vmem:[%s7285_s14 + $0x3450] sm:$0xff] }
 0x29e   : > { %v2000_v10 = vld [vmem:[%s7285_s14 + $0x3440] sm:$0xff] }
 0x29f   : > { %5480 = vmatpush1.bf16.msra.mxu1 %v5479_v21  ;;  %v962_v21 = vld [vmem:[%s7285_s14 + $0x13d0] sm:$0xff] }
 0x2a0   : > { %6504 = vmatpush1.bf16.msra.mxu0 %v6503_v22  ;;  %5482 = vmatprep.subr.bf16.mxu1 %v5481_v23  ;;  %v1984_v22 = vld [vmem:[%s7285_s14 + $0x33c0] sm:$0xff]  ;;  %v6525_v23 = vpack.c.bf16 %v1987_v16, %v1985_v15  ;;  %v5503_v29 = vpack.c.bf16 %v962_v21, %v960_v20  ;;  %v2005_v15 = vld [vmem:[%s7285_s14 + $0x3468] sm:$0xff]  ;;  %v2007_v16 = vld [vmem:[%s7285_s14 + $0x3478] sm:$0xff] }
 0x2a1   : > { %6506 = vmatprep.subr.bf16.mxu0 %v6505_v27  ;;  %v1989_v27 = vld [vmem:[%s7285_s14 + $0x33e8] sm:$0xff]  ;;  %v6527_v30 = vpack.c.bf16 %v1986_v24, %v1984_v22  ;;  %v980_v20 = vld [vmem:[%s7285_s14 + $0x1460] sm:$0xff]  ;;  %v982_v21 = vld [vmem:[%s7285_s14 + $0x1470] sm:$0xff] }
 0x2a2   : > { %v2004_v22 = vld [vmem:[%s7285_s14 + $0x3460] sm:$0xff]  ;;  %v2006_v24 = vld [vmem:[%s7285_s14 + $0x3470] sm:$0xff] }
 0x2a3   : > { %5484 = vmatpush1.bf16.msra.mxu1 %v5483_v33  ;;  %v966_v33 = vld [vmem:[%s7285_s14 + $0x13f0] sm:$0xff] }
 0x2a4   : > { %6508 = vmatpush1.bf16.msra.mxu0 %v6507_v34  ;;  %5486 = vmatprep.subr.bf16.mxu1 %v5485_v35  ;;  %v1988_v34 = vld [vmem:[%s7285_s14 + $0x33e0] sm:$0xff]  ;;  %v6529_v35 = vpack.c.bf16 %v1991_v28, %v1989_v27  ;;  %v5507_v41 = vpack.c.bf16 %v966_v33, %v964_v32  ;;  %v2009_v27 = vld [vmem:[%s7285_s14 + $0x3488] sm:$0xff]  ;;  %v2011_v28 = vld [vmem:[%s7285_s14 + $0x3498] sm:$0xff] }
 0x2a5   : > { %6510 = vmatprep.subr.bf16.mxu0 %v6509_v39  ;;  %v1993_v39 = vld [vmem:[%s7285_s14 + $0x3408] sm:$0xff]  ;;  %v6531_v42 = vpack.c.bf16 %v1990_v36, %v1988_v34  ;;  %v984_v32 = vld [vmem:[%s7285_s14 + $0x1480] sm:$0xff]  ;;  %v986_v33 = vld [vmem:[%s7285_s14 + $0x1490] sm:$0xff] }
 0x2a6   : > { %v2008_v34 = vld [vmem:[%s7285_s14 + $0x3480] sm:$0xff]  ;;  %v2010_v36 = vld [vmem:[%s7285_s14 + $0x3490] sm:$0xff] }
 0x2a7   : > { %5488 = vmatpush1.bf16.msra.mxu1 %v5487_v45  ;;  %v970_v45 = vld [vmem:[%s7285_s14 + $0x1410] sm:$0xff] }
 0x2a8   : > { %6512 = vmatpush1.bf16.msra.mxu0 %v6511_v46  ;;  %5490 = vmatprep.subr.bf16.mxu1 %v5489_v47  ;;  %v1992_v46 = vld [vmem:[%s7285_s14 + $0x3400] sm:$0xff]  ;;  %v6533_v47 = vpack.c.bf16 %v1995_v40, %v1993_v39  ;;  %v5511_v54 = vpack.c.bf16 %v970_v45, %v968_v44  ;;  %v2013_v39 = vld [vmem:[%s7285_s14 + $0x34a8] sm:$0xff]  ;;  %v2015_v40 = vld [vmem:[%s7285_s14 + $0x34b8] sm:$0xff] }
 0x2a9   : > { %6514 = vmatprep.subr.bf16.mxu0 %v6513_v51  ;;  %v1997_v51 = vld [vmem:[%s7285_s14 + $0x3428] sm:$0xff]  ;;  %v6535_v56 = vpack.c.bf16 %v1994_v48, %v1992_v46  ;;  %v988_v44 = vld [vmem:[%s7285_s14 + $0x14a0] sm:$0xff]  ;;  %v990_v45 = vld [vmem:[%s7285_s14 + $0x14b0] sm:$0xff] }
 0x2aa   : > { %v6537_v61 = vpack.c.bf16 %v1999_v52, %v1997_v51  ;;  %v2012_v46 = vld [vmem:[%s7285_s14 + $0x34a0] sm:$0xff]  ;;  %v2014_v48 = vld [vmem:[%s7285_s14 + $0x34b0] sm:$0xff]  ;;  %v2017_v51 = vld [vmem:[%s7285_s14 + $0x34c8] sm:$0xff] }
 0x2ab   : > { %5492 = vmatpush1.bf16.msra.mxu1 %v5491_v57  ;;  %v5513_v57 = vpack.c.bf16 %v975_v50, %v973_v49  ;;  %v993_v49 = vld [vmem:[%s7285_s14 + $0x14c8] sm:$0xff]  ;;  %v995_v50 = vld [vmem:[%s7285_s14 + $0x14d8] sm:$0xff] }
 0x2ac   : > { %6516 = vmatpush1.bf16.msra.mxu0 %v6515_v58  ;;  %5494 = vmatprep.subr.bf16.mxu1 %v5493_v59  ;;  %v972_v58 = vld [vmem:[%s7285_s14 + $0x1420] sm:$0xff]  ;;  %v974_v59 = vld [vmem:[%s7285_s14 + $0x1430] sm:$0xff]  ;;  %v2019_v52 = vld [vmem:[%s7285_s14 + $0x34d8] sm:$0xff] }
 0x2ad   : > { %6518 = vmatprep.subr.bf16.mxu0 %v6517_v63  ;;  %v977_v63 = vld [vmem:[%s7285_s14 + $0x1448] sm:$0xff]  ;;  %v5515_v4 = vpack.c.bf16 %v974_v59, %v972_v58  ;;  %v2016_v58 = vld [vmem:[%s7285_s14 + $0x34c0] sm:$0xff]  ;;  %v6557_v59 = vpack.c.bf16 %v2019_v52, %v2017_v51 }
 0x2ae   : > { %v1012_v52 = vld [vmem:[%s7285_s14 + $0x1560] sm:$0xff] }
 0x2af   : > { %5496 = vmatpush1.bf16.msra.mxu1 %v5495_v5  ;;  %v317_v5 = vld [vmem:[%s7295_s11 + $0x1a8] sm:$0xff] }
 0x2b0   : > { %6520 = vmatpush1.bf16.msra.mxu0 %v6519_v6  ;;  %5498 = vmatprep.subr.bf16.mxu1 %v5497_v7  ;;  %v6539_v6 = vpack.c.bf16 %v1998_v62, %v1996_v60  ;;  %v5517_v7 = vpack.c.bf16 %v979_v0, %v977_v63  ;;  %v2018_v60 = vld [vmem:[%s7285_s14 + $0x34d0] sm:$0xff]  ;;  %v999_v62 = vld [vmem:[%s7285_s14 + $0x14f8] sm:$0xff]  ;;  %v2021_v63 = vld [vmem:[%s7285_s14 + $0x34e8] sm:$0xff] }
 0x2b1   : > { %6522 = vmatprep.subr.bf16.mxu0 %v6521_v11  ;;  %v6541_v11 = vpack.c.bf16 %v2003_v2, %v2001_v1  ;;  %v2023_v0 = vld [vmem:[%s7285_s14 + $0x34f8] sm:$0xff]  ;;  %v6559_v2 = vpack.c.bf16 %v2018_v60, %v2016_v58 }
 0x2b2   : > { %v1019_v58 = vld [vmem:[%s7285_s14 + $0x1598] sm:$0xff] }
 0x2b3   : > { %5500 = vmatpush1.bf16.msra.mxu1 %v5499_v17  ;;  %v5519_v17 = vpack.c.bf16 %v978_v9, %v976_v8  ;;  %v2022_v8 = vld [vmem:[%s7285_s14 + $0x34f0] sm:$0xff]  ;;  %v1001_v9 = vld [vmem:[%s7285_s14 + $0x1508] sm:$0xff]  ;;  %v2043_v60 = vld [vmem:[%s7285_s14 + $0x3598] sm:$0xff] }
 0x2b4   : > { %6524 = vmatpush1.bf16.msra.mxu0 %v6523_v18  ;;  %5502 = vmatprep.subr.bf16.mxu1 %v5501_v19  ;;  %v6543_v18 = vpack.c.bf16 %v2002_v12, %v2000_v10  ;;  %v5521_v19 = vpack.c.bf16 %v983_v14, %v981_v13  ;;  %v1003_v10 = vld [vmem:[%s7285_s14 + $0x1518] sm:$0xff] }
 0x2b5   : > { %6526 = vmatprep.subr.bf16.mxu0 %v6525_v23  ;;  %v6545_v23 = vpack.c.bf16 %v2007_v16, %v2005_v15  ;;  %v2027_v12 = vld [vmem:[%s7285_s14 + $0x3518] sm:$0xff]  ;;  %v5541_v15 = vpack.c.bf16 %v1003_v10, %v1001_v9  ;;  %v1000_v16 = vld [vmem:[%s7285_s14 + $0x1500] sm:$0xff] }
 0x2b7   : > { %5504 = vmatpush1.bf16.msra.mxu1 %v5503_v29  ;;  %v5523_v29 = vpack.c.bf16 %v982_v21, %v980_v20  ;;  %v2026_v20 = vld [vmem:[%s7285_s14 + $0x3510] sm:$0xff]  ;;  %v1005_v21 = vld [vmem:[%s7285_s14 + $0x1528] sm:$0xff] }
 0x2b8   : > { %6528 = vmatpush1.bf16.msra.mxu0 %v6527_v30  ;;  %5506 = vmatprep.subr.bf16.mxu1 %v5505_v31  ;;  %v6547_v30 = vpack.c.bf16 %v2006_v24, %v2004_v22  ;;  %v5525_v31 = vpack.c.bf16 %v987_v26, %v985_v25  ;;  %v1007_v22 = vld [vmem:[%s7285_s14 + $0x1538] sm:$0xff] }
 0x2b9   : > { %6530 = vmatprep.subr.bf16.mxu0 %v6529_v35  ;;  %v6549_v35 = vpack.c.bf16 %v2011_v28, %v2009_v27  ;;  %v2031_v24 = vld [vmem:[%s7285_s14 + $0x3538] sm:$0xff]  ;;  %v5545_v27 = vpack.c.bf16 %v1007_v22, %v1005_v21  ;;  %v1004_v28 = vld [vmem:[%s7285_s14 + $0x1520] sm:$0xff] }
 0x2bb   : > { %5508 = vmatpush1.bf16.msra.mxu1 %v5507_v41  ;;  %v5527_v41 = vpack.c.bf16 %v986_v33, %v984_v32  ;;  %v2030_v32 = vld [vmem:[%s7285_s14 + $0x3530] sm:$0xff]  ;;  %v1009_v33 = vld [vmem:[%s7285_s14 + $0x1548] sm:$0xff] }
 0x2bc   : > { %6532 = vmatpush1.bf16.msra.mxu0 %v6531_v42  ;;  %5510 = vmatprep.subr.bf16.mxu1 %v5509_v43  ;;  %v6551_v42 = vpack.c.bf16 %v2010_v36, %v2008_v34  ;;  %v5529_v43 = vpack.c.bf16 %v991_v38, %v989_v37  ;;  %v1011_v34 = vld [vmem:[%s7285_s14 + $0x1558] sm:$0xff] }
 0x2bd   : > { %6534 = vmatprep.subr.bf16.mxu0 %v6533_v47  ;;  %v6553_v47 = vpack.c.bf16 %v2015_v40, %v2013_v39  ;;  %v2035_v36 = vld [vmem:[%s7285_s14 + $0x3558] sm:$0xff]  ;;  %v5549_v39 = vpack.c.bf16 %v1011_v34, %v1009_v33  ;;  %v1008_v40 = vld [vmem:[%s7285_s14 + $0x1540] sm:$0xff] }
 0x2be   : > { %3080 = vmatmul.mubr.f32.vlgmr.msra.gmra.mrb[0].mxu1 %v282_v53  ;;  %v5531_v53 = vpack.c.bf16 %v990_v45, %v988_v44  ;;  %v2034_v44 = vld [vmem:[%s7285_s14 + $0x3550] sm:$0xff]  ;;  %v1013_v45 = vld [vmem:[%s7285_s14 + $0x1568] sm:$0xff] }
 0x2bf   : > { %5512 = vmatpush1.bf16.msra.mxu1 %v5511_v54  ;;  %4216 = vmatmul.mubr.f32.vlgmr.msra.gmra.mrb[0].mxu0 %v314_v55  ;;  %v6555_v54 = vpack.c.bf16 %v2014_v48, %v2012_v46  ;;  %v5533_v55 = vpack.c.bf16 %v995_v50, %v993_v49  ;;  %v1015_v46 = vld [vmem:[%s7285_s14 + $0x1578] sm:$0xff] }
 0x2c0   : > { %6536 = vmatpush1.bf16.msra.mxu0 %v6535_v56  ;;  %5514 = vmatprep.subr.bf16.mxu1 %v5513_v57  ;;  %v992_v56 = vld [vmem:[%s7285_s14 + $0x14c0] sm:$0xff]  ;;  %v994_v57 = vld [vmem:[%s7285_s14 + $0x14d0] sm:$0xff]  ;;  %v2039_v48 = vld [vmem:[%s7285_s14 + $0x3578] sm:$0xff]  ;;  %v5553_v51 = vpack.c.bf16 %v1015_v46, %v1013_v45 }
 0x2c1   : > { %6538 = vmatprep.subr.bf16.mxu0 %v6537_v61  ;;  %3150 = vmatprep.mubr.f32.mxu1 %v285_v3  ;;  %v997_v61 = vld [vmem:[%s7285_s14 + $0x14e8] sm:$0xff]  ;;  %v5535_v1 = vpack.c.bf16 %v994_v57, %v992_v56  ;;  %v2038_v56 = vld [vmem:[%s7285_s14 + $0x3570] sm:$0xff] }
 0x2c2   : > { %4286 = vmatprep.mubr.f32.mxu0 %v317_v5  ;;  %v5537_v3 = vpack.c.bf16 %v999_v62, %v997_v61  ;;  %v998_v5 = vld [vmem:[%s7285_s14 + $0x14f0] sm:$0xff]  ;;  %v1017_v57 = vld [vmem:[%s7285_s14 + $0x1588] sm:$0xff] }
 0x2c3   : > { %5516 = vmatpush1.bf16.msra.mxu1 %v5515_v4  ;;  %v996_v4 = vld [vmem:[%s7285_s14 + $0x14e0] sm:$0xff] }
 0x2c4   : > { %6540 = vmatpush1.bf16.msra.mxu0 %v6539_v6  ;;  %5518 = vmatprep.subr.bf16.mxu1 %v5517_v7  ;;  %v2020_v6 = vld [vmem:[%s7285_s14 + $0x34e0] sm:$0xff]  ;;  %v6561_v7 = vpack.c.bf16 %v2023_v0, %v2021_v63  ;;  %v5539_v13 = vpack.c.bf16 %v998_v5, %v996_v4  ;;  %v5557_v63 = vpack.c.bf16 %v1019_v58, %v1017_v57  ;;  %v2042_v4 = vld [vmem:[%s7285_s14 + $0x3590] sm:$0xff]  ;;  %v1021_v5 = vld [vmem:[%s7285_s14 + $0x15a8] sm:$0xff] }
 0x2c5   : > { %6542 = vmatprep.subr.bf16.mxu0 %v6541_v11  ;;  %v2025_v11 = vld [vmem:[%s7285_s14 + $0x3508] sm:$0xff]  ;;  %v6563_v14 = vpack.c.bf16 %v2022_v8, %v2020_v6  ;;  %v1016_v0 = vld [vmem:[%s7285_s14 + $0x1580] sm:$0xff]  ;;  %v1023_v6 = vld [vmem:[%s7285_s14 + $0x15b8] sm:$0xff] }
 0x2c6   : > { %v2047_v8 = vld [vmem:[%s7285_s14 + $0x35b8] sm:$0xff]  ;;  %v284_v57 = vld [vmem:[%s7295_s11 + $0xa0] sm:$0xff] }
 0x2c7   : > { %5520 = vmatpush1.bf16.msra.mxu1 %v5519_v17  ;;  %v1002_v17 = vld [vmem:[%s7285_s14 + $0x1510] sm:$0xff] }
 0x2c8   : > { %6544 = vmatpush1.bf16.msra.mxu0 %v6543_v18  ;;  %5522 = vmatprep.subr.bf16.mxu1 %v5521_v19  ;;  %v2024_v18 = vld [vmem:[%s7285_s14 + $0x3500] sm:$0xff]  ;;  %v6565_v19 = vpack.c.bf16 %v2027_v12, %v2025_v11  ;;  %v5543_v25 = vpack.c.bf16 %v1002_v17, %v1000_v16  ;;  %v5561_v11 = vpack.c.bf16 %v1023_v6, %v1021_v5  ;;  %v2046_v16 = vld [vmem:[%s7285_s14 + $0x35b0] sm:$0xff]  ;;  %v1025_v17 = vld [vmem:[%s7285_s14 + $0x15c8] sm:$0xff] }
 0x2c9   : > { %6546 = vmatprep.subr.bf16.mxu0 %v6545_v23  ;;  %v2029_v23 = vld [vmem:[%s7285_s14 + $0x3528] sm:$0xff]  ;;  %v6567_v26 = vpack.c.bf16 %v2026_v20, %v2024_v18  ;;  %v1020_v12 = vld [vmem:[%s7285_s14 + $0x15a0] sm:$0xff]  ;;  %v1027_v18 = vld [vmem:[%s7285_s14 + $0x15d8] sm:$0xff] }
 0x2ca   : > { %v2051_v20 = vld [vmem:[%s7285_s14 + $0x35d8] sm:$0xff]  ;;  %v2065_v5 = vld [vmem:[%s7285_s14 + $0x3648] sm:$0xff] }
 0x2cb   : > { %5524 = vmatpush1.bf16.msra.mxu1 %v5523_v29  ;;  %v1006_v29 = vld [vmem:[%s7285_s14 + $0x1530] sm:$0xff]  ;;  %v2067_v6 = vld [vmem:[%s7285_s14 + $0x3658] sm:$0xff] }
 0x2cc   : > { %6548 = vmatpush1.bf16.msra.mxu0 %v6547_v30  ;;  %5526 = vmatprep.subr.bf16.mxu1 %v5525_v31  ;;  %v2028_v30 = vld [vmem:[%s7285_s14 + $0x3520] sm:$0xff]  ;;  %v6569_v31 = vpack.c.bf16 %v2031_v24, %v2029_v23  ;;  %v5547_v37 = vpack.c.bf16 %v1006_v29, %v1004_v28  ;;  %v5565_v23 = vpack.c.bf16 %v1027_v18, %v1025_v17  ;;  %v2050_v28 = vld [vmem:[%s7285_s14 + $0x35d0] sm:$0xff]  ;;  %v1029_v29 = vld [vmem:[%s7285_s14 + $0x15e8] sm:$0xff] }
 0x2cd   : > { %6550 = vmatprep.subr.bf16.mxu0 %v6549_v35  ;;  %v2033_v35 = vld [vmem:[%s7285_s14 + $0x3548] sm:$0xff]  ;;  %v6571_v38 = vpack.c.bf16 %v2030_v32, %v2028_v30  ;;  %v1024_v24 = vld [vmem:[%s7285_s14 + $0x15c0] sm:$0xff]  ;;  %v1031_v30 = vld [vmem:[%s7285_s14 + $0x15f8] sm:$0xff] }
 0x2ce   : > { %v2055_v32 = vld [vmem:[%s7285_s14 + $0x35f8] sm:$0xff]  ;;  %v1045_v17 = vld [vmem:[%s7285_s14 + $0x1668] sm:$0xff] }
 0x2cf   : > { %5528 = vmatpush1.bf16.msra.mxu1 %v5527_v41  ;;  %v1010_v41 = vld [vmem:[%s7285_s14 + $0x1550] sm:$0xff]  ;;  %v1047_v18 = vld [vmem:[%s7285_s14 + $0x1678] sm:$0xff] }
 0x2d0   : > { %6552 = vmatpush1.bf16.msra.mxu0 %v6551_v42  ;;  %5530 = vmatprep.subr.bf16.mxu1 %v5529_v43  ;;  %v2032_v42 = vld [vmem:[%s7285_s14 + $0x3540] sm:$0xff]  ;;  %v6573_v43 = vpack.c.bf16 %v2035_v36, %v2033_v35  ;;  %v5551_v49 = vpack.c.bf16 %v1010_v41, %v1008_v40  ;;  %v5569_v35 = vpack.c.bf16 %v1031_v30, %v1029_v29  ;;  %v2054_v40 = vld [vmem:[%s7285_s14 + $0x35f0] sm:$0xff]  ;;  %v1033_v41 = vld [vmem:[%s7285_s14 + $0x1608] sm:$0xff] }
 0x2d1   : > { %6554 = vmatprep.subr.bf16.mxu0 %v6553_v47  ;;  %v2037_v47 = vld [vmem:[%s7285_s14 + $0x3568] sm:$0xff]  ;;  %v6575_v50 = vpack.c.bf16 %v2034_v44, %v2032_v42  ;;  %v1028_v36 = vld [vmem:[%s7285_s14 + $0x15e0] sm:$0xff]  ;;  %v1035_v42 = vld [vmem:[%s7285_s14 + $0x1618] sm:$0xff] }
 0x2d2   : > { %v2059_v44 = vld [vmem:[%s7285_s14 + $0x3618] sm:$0xff]  ;;  %v1049_v29 = vld [vmem:[%s7285_s14 + $0x1688] sm:$0xff] }
 0x2d3   : > { %5532 = vmatpush1.bf16.msra.mxu1 %v5531_v53  ;;  %v1014_v53 = vld [vmem:[%s7285_s14 + $0x1570] sm:$0xff]  ;;  %v1051_v30 = vld [vmem:[%s7285_s14 + $0x1698] sm:$0xff] }
 0x2d4   : > { %6556 = vmatpush1.bf16.msra.mxu0 %v6555_v54  ;;  %5534 = vmatprep.subr.bf16.mxu1 %v5533_v55  ;;  %v2036_v54 = vld [vmem:[%s7285_s14 + $0x3560] sm:$0xff]  ;;  %v6577_v55 = vpack.c.bf16 %v2039_v48, %v2037_v47  ;;  %v5555_v61 = vpack.c.bf16 %v1014_v53, %v1012_v52  ;;  %v5573_v47 = vpack.c.bf16 %v1035_v42, %v1033_v41  ;;  %v2058_v52 = vld [vmem:[%s7285_s14 + $0x3610] sm:$0xff]  ;;  %v1037_v53 = vld [vmem:[%s7285_s14 + $0x1628] sm:$0xff] }
 0x2d5   : > { %6558 = vmatprep.subr.bf16.mxu0 %v6557_v59  ;;  %v2041_v59 = vld [vmem:[%s7285_s14 + $0x3588] sm:$0xff]  ;;  %v6579_v62 = vpack.c.bf16 %v2038_v56, %v2036_v54  ;;  %v1032_v48 = vld [vmem:[%s7285_s14 + $0x1600] sm:$0xff]  ;;  %v1039_v54 = vld [vmem:[%s7285_s14 + $0x1638] sm:$0xff] }
 0x2d6   : > { %v2063_v56 = vld [vmem:[%s7285_s14 + $0x3638] sm:$0xff]  ;;  %v1053_v41 = vld [vmem:[%s7285_s14 + $0x16a8] sm:$0xff] }
 0x2d7   : > { %5536 = vmatpush1.bf16.msra.mxu1 %v5535_v1  ;;  %v1018_v1 = vld [vmem:[%s7285_s14 + $0x1590] sm:$0xff]  ;;  %v1055_v42 = vld [vmem:[%s7285_s14 + $0x16b8] sm:$0xff] }
 0x2d8   : > { %6560 = vmatpush1.bf16.msra.mxu0 %v6559_v2  ;;  %5538 = vmatprep.subr.bf16.mxu1 %v5537_v3  ;;  %v2040_v2 = vld [vmem:[%s7285_s14 + $0x3580] sm:$0xff]  ;;  %v6581_v3 = vpack.c.bf16 %v2043_v60, %v2041_v59  ;;  %v5559_v9 = vpack.c.bf16 %v1018_v1, %v1016_v0  ;;  %v316_v59 = vld [vmem:[%s7295_s11 + $0x1a0] sm:$0xff] }
 0x2d9   : > { %6562 = vmatprep.subr.bf16.mxu0 %v6561_v7  ;;  %v2045_v7 = vld [vmem:[%s7285_s14 + $0x35a8] sm:$0xff]  ;;  %v6583_v10 = vpack.c.bf16 %v2042_v4, %v2040_v2  ;;  %v2060_v0 = vld [vmem:[%s7285_s14 + $0x3620] sm:$0xff]  ;;  %v2062_v2 = vld [vmem:[%s7285_s14 + $0x3630] sm:$0xff] }
 0x2da   : > { %v1043_v4 = vld [vmem:[%s7285_s14 + $0x1658] sm:$0xff] }
 0x2db   : > { %5540 = vmatpush1.bf16.msra.mxu1 %v5539_v13  ;;  %v1022_v13 = vld [vmem:[%s7285_s14 + $0x15b0] sm:$0xff] }
 0x2dc   : > { %6564 = vmatpush1.bf16.msra.mxu0 %v6563_v14  ;;  %5542 = vmatprep.subr.bf16.mxu1 %v5541_v15  ;;  %v2044_v14 = vld [vmem:[%s7285_s14 + $0x35a0] sm:$0xff]  ;;  %v6585_v15 = vpack.c.bf16 %v2047_v8, %v2045_v7  ;;  %v5563_v21 = vpack.c.bf16 %v1022_v13, %v1020_v12  ;;  %v287_v7 = vld [vmem:[%s7295_s11 + $0xb8] sm:$0xff]  ;;  %v1042_v13 = vld [vmem:[%s7285_s14 + $0x1650] sm:$0xff] }
 0x2dd   : > { %6566 = vmatprep.subr.bf16.mxu0 %v6565_v19  ;;  %v2049_v19 = vld [vmem:[%s7285_s14 + $0x35c8] sm:$0xff]  ;;  %v6587_v22 = vpack.c.bf16 %v2046_v16, %v2044_v14  ;;  %v1040_v12 = vld [vmem:[%s7285_s14 + $0x1640] sm:$0xff]  ;;  %v2066_v16 = vld [vmem:[%s7285_s14 + $0x3650] sm:$0xff] }
 0x2de   : > { %v2064_v14 = vld [vmem:[%s7285_s14 + $0x3640] sm:$0xff] }
 0x2df   : > { %5544 = vmatpush1.bf16.msra.mxu1 %v5543_v25  ;;  %v1026_v25 = vld [vmem:[%s7285_s14 + $0x15d0] sm:$0xff] }
 0x2e0   : > { %6568 = vmatpush1.bf16.msra.mxu0 %v6567_v26  ;;  %5546 = vmatprep.subr.bf16.mxu1 %v5545_v27  ;;  %v2048_v26 = vld [vmem:[%s7285_s14 + $0x35c0] sm:$0xff]  ;;  %v6589_v27 = vpack.c.bf16 %v2051_v20, %v2049_v19  ;;  %v5567_v33 = vpack.c.bf16 %v1026_v25, %v1024_v24  ;;  %v2069_v19 = vld [vmem:[%s7285_s14 + $0x3668] sm:$0xff]  ;;  %v2071_v20 = vld [vmem:[%s7285_s14 + $0x3678] sm:$0xff] }
 0x2e1   : > { %6570 = vmatprep.subr.bf16.mxu0 %v6569_v31  ;;  %v2053_v31 = vld [vmem:[%s7285_s14 + $0x35e8] sm:$0xff]  ;;  %v6591_v34 = vpack.c.bf16 %v2050_v28, %v2048_v26  ;;  %v1044_v24 = vld [vmem:[%s7285_s14 + $0x1660] sm:$0xff]  ;;  %v1046_v25 = vld [vmem:[%s7285_s14 + $0x1670] sm:$0xff] }
 0x2e2   : > { %v2068_v26 = vld [vmem:[%s7285_s14 + $0x3660] sm:$0xff]  ;;  %v2070_v28 = vld [vmem:[%s7285_s14 + $0x3670] sm:$0xff] }
 0x2e3   : > { %5548 = vmatpush1.bf16.msra.mxu1 %v5547_v37  ;;  %v1030_v37 = vld [vmem:[%s7285_s14 + $0x15f0] sm:$0xff] }
 0x2e4   : > { %6572 = vmatpush1.bf16.msra.mxu0 %v6571_v38  ;;  %5550 = vmatprep.subr.bf16.mxu1 %v5549_v39  ;;  %v2052_v38 = vld [vmem:[%s7285_s14 + $0x35e0] sm:$0xff]  ;;  %v6593_v39 = vpack.c.bf16 %v2055_v32, %v2053_v31  ;;  %v5571_v45 = vpack.c.bf16 %v1030_v37, %v1028_v36  ;;  %v2073_v31 = vld [vmem:[%s7285_s14 + $0x3688] sm:$0xff]  ;;  %v2075_v32 = vld [vmem:[%s7285_s14 + $0x3698] sm:$0xff] }
 0x2e5   : > { %6574 = vmatprep.subr.bf16.mxu0 %v6573_v43  ;;  %v2057_v43 = vld [vmem:[%s7285_s14 + $0x3608] sm:$0xff]  ;;  %v6595_v46 = vpack.c.bf16 %v2054_v40, %v2052_v38  ;;  %v1048_v36 = vld [vmem:[%s7285_s14 + $0x1680] sm:$0xff]  ;;  %v1050_v37 = vld [vmem:[%s7285_s14 + $0x1690] sm:$0xff] }
 0x2e6   : > { %v2072_v38 = vld [vmem:[%s7285_s14 + $0x3680] sm:$0xff]  ;;  %v2074_v40 = vld [vmem:[%s7285_s14 + $0x3690] sm:$0xff] }
 0x2e7   : > { %5552 = vmatpush1.bf16.msra.mxu1 %v5551_v49  ;;  %v1034_v49 = vld [vmem:[%s7285_s14 + $0x1610] sm:$0xff] }
 0x2e8   : > { %6576 = vmatpush1.bf16.msra.mxu0 %v6575_v50  ;;  %5554 = vmatprep.subr.bf16.mxu1 %v5553_v51  ;;  %v2056_v50 = vld [vmem:[%s7285_s14 + $0x3600] sm:$0xff]  ;;  %v6597_v51 = vpack.c.bf16 %v2059_v44, %v2057_v43  ;;  %v5575_v58 = vpack.c.bf16 %v1034_v49, %v1032_v48  ;;  %v2077_v43 = vld [vmem:[%s7285_s14 + $0x36a8] sm:$0xff]  ;;  %v2079_v44 = vld [vmem:[%s7285_s14 + $0x36b8] sm:$0xff] }
 0x2e9   : > { %6578 = vmatprep.subr.bf16.mxu0 %v6577_v55  ;;  %v2061_v55 = vld [vmem:[%s7285_s14 + $0x3628] sm:$0xff]  ;;  %v6599_v60 = vpack.c.bf16 %v2058_v52, %v2056_v50  ;;  %v1052_v48 = vld [vmem:[%s7285_s14 + $0x16a0] sm:$0xff]  ;;  %v1054_v49 = vld [vmem:[%s7285_s14 + $0x16b0] sm:$0xff] }
 0x2ea   : > { %v6601_v1 = vpack.c.bf16 %v2063_v56, %v2061_v55  ;;  %v2076_v50 = vld [vmem:[%s7285_s14 + $0x36a0] sm:$0xff]  ;;  %v2078_v52 = vld [vmem:[%s7285_s14 + $0x36b0] sm:$0xff]  ;;  %v2081_v55 = vld [vmem:[%s7285_s14 + $0x36c8] sm:$0xff] }
 0x2eb   : > { %5556 = vmatpush1.bf16.msra.mxu1 %v5555_v61  ;;  %v5577_v61 = vpack.c.bf16 %v1039_v54, %v1037_v53  ;;  %v1057_v53 = vld [vmem:[%s7285_s14 + $0x16c8] sm:$0xff]  ;;  %v1059_v54 = vld [vmem:[%s7285_s14 + $0x16d8] sm:$0xff] }
 0x2ec   : > { %6580 = vmatpush1.bf16.msra.mxu0 %v6579_v62  ;;  %5558 = vmatprep.subr.bf16.mxu1 %v5557_v63  ;;  %v1036_v62 = vld [vmem:[%s7285_s14 + $0x1620] sm:$0xff]  ;;  %v1038_v63 = vld [vmem:[%s7285_s14 + $0x1630] sm:$0xff]  ;;  %v2083_v56 = vld [vmem:[%s7285_s14 + $0x36d8] sm:$0xff] }
 0x2ed   : > { %6582 = vmatprep.subr.bf16.mxu0 %v6581_v3  ;;  %v1041_v3 = vld [vmem:[%s7285_s14 + $0x1648] sm:$0xff]  ;;  %v5579_v8 = vpack.c.bf16 %v1038_v63, %v1036_v62  ;;  %v2080_v62 = vld [vmem:[%s7285_s14 + $0x36c0] sm:$0xff]  ;;  %v6621_v63 = vpack.c.bf16 %v2083_v56, %v2081_v55 }
 0x2ee   : > { %v1076_v56 = vld [vmem:[%s7285_s14 + $0x1760] sm:$0xff] }
 0x2ef   : > { %5560 = vmatpush1.bf16.msra.mxu1 %v5559_v9  ;;  %v319_v9 = vld [vmem:[%s7295_s11 + $0x1b8] sm:$0xff] }
 0x2f0   : > { %6584 = vmatpush1.bf16.msra.mxu0 %v6583_v10  ;;  %5562 = vmatprep.subr.bf16.mxu1 %v5561_v11  ;;  %v6603_v10 = vpack.c.bf16 %v2062_v2, %v2060_v0  ;;  %v5581_v11 = vpack.c.bf16 %v1043_v4, %v1041_v3  ;;  %v2082_v0 = vld [vmem:[%s7285_s14 + $0x36d0] sm:$0xff]  ;;  %v1063_v2 = vld [vmem:[%s7285_s14 + $0x16f8] sm:$0xff]  ;;  %v2085_v3 = vld [vmem:[%s7285_s14 + $0x36e8] sm:$0xff] }
 0x2f1   : > { %6586 = vmatprep.subr.bf16.mxu0 %v6585_v15  ;;  %v6605_v15 = vpack.c.bf16 %v2067_v6, %v2065_v5  ;;  %v2087_v4 = vld [vmem:[%s7285_s14 + $0x36f8] sm:$0xff]  ;;  %v6623_v6 = vpack.c.bf16 %v2082_v0, %v2080_v62 }
 0x2f2   : > { %v1083_v62 = vld [vmem:[%s7285_s14 + $0x1798] sm:$0xff] }
 0x2f3   : > { %5564 = vmatpush1.bf16.msra.mxu1 %v5563_v21  ;;  %v5583_v21 = vpack.c.bf16 %v1042_v13, %v1040_v12  ;;  %v2086_v12 = vld [vmem:[%s7285_s14 + $0x36f0] sm:$0xff]  ;;  %v1065_v13 = vld [vmem:[%s7285_s14 + $0x1708] sm:$0xff]  ;;  %v2107_v0 = vld [vmem:[%s7285_s14 + $0x3798] sm:$0xff] }
 0x2f4   : > { %6588 = vmatpush1.bf16.msra.mxu0 %v6587_v22  ;;  %5566 = vmatprep.subr.bf16.mxu1 %v5565_v23  ;;  %v6607_v22 = vpack.c.bf16 %v2066_v16, %v2064_v14  ;;  %v5585_v23 = vpack.c.bf16 %v1047_v18, %v1045_v17  ;;  %v1067_v14 = vld [vmem:[%s7285_s14 + $0x1718] sm:$0xff] }
 0x2f5   : > { %6590 = vmatprep.subr.bf16.mxu0 %v6589_v27  ;;  %v6609_v27 = vpack.c.bf16 %v2071_v20, %v2069_v19  ;;  %v2091_v16 = vld [vmem:[%s7285_s14 + $0x3718] sm:$0xff]  ;;  %v5605_v19 = vpack.c.bf16 %v1067_v14, %v1065_v13  ;;  %v1064_v20 = vld [vmem:[%s7285_s14 + $0x1700] sm:$0xff] }
 0x2f7   : > { %5568 = vmatpush1.bf16.msra.mxu1 %v5567_v33  ;;  %v5587_v33 = vpack.c.bf16 %v1046_v25, %v1044_v24  ;;  %v2090_v24 = vld [vmem:[%s7285_s14 + $0x3710] sm:$0xff]  ;;  %v1069_v25 = vld [vmem:[%s7285_s14 + $0x1728] sm:$0xff] }
 0x2f8   : > { %6592 = vmatpush1.bf16.msra.mxu0 %v6591_v34  ;;  %5570 = vmatprep.subr.bf16.mxu1 %v5569_v35  ;;  %v6611_v34 = vpack.c.bf16 %v2070_v28, %v2068_v26  ;;  %v5589_v35 = vpack.c.bf16 %v1051_v30, %v1049_v29  ;;  %v1071_v26 = vld [vmem:[%s7285_s14 + $0x1738] sm:$0xff] }
 0x2f9   : > { %6594 = vmatprep.subr.bf16.mxu0 %v6593_v39  ;;  %v6613_v39 = vpack.c.bf16 %v2075_v32, %v2073_v31  ;;  %v2095_v28 = vld [vmem:[%s7285_s14 + $0x3738] sm:$0xff]  ;;  %v5609_v31 = vpack.c.bf16 %v1071_v26, %v1069_v25  ;;  %v1068_v32 = vld [vmem:[%s7285_s14 + $0x1720] sm:$0xff] }
 0x2fb   : > { %5572 = vmatpush1.bf16.msra.mxu1 %v5571_v45  ;;  %v5591_v45 = vpack.c.bf16 %v1050_v37, %v1048_v36  ;;  %v2094_v36 = vld [vmem:[%s7285_s14 + $0x3730] sm:$0xff]  ;;  %v1073_v37 = vld [vmem:[%s7285_s14 + $0x1748] sm:$0xff] }
 0x2fc   : > { %6596 = vmatpush1.bf16.msra.mxu0 %v6595_v46  ;;  %5574 = vmatprep.subr.bf16.mxu1 %v5573_v47  ;;  %v6615_v46 = vpack.c.bf16 %v2074_v40, %v2072_v38  ;;  %v5593_v47 = vpack.c.bf16 %v1055_v42, %v1053_v41  ;;  %v1075_v38 = vld [vmem:[%s7285_s14 + $0x1758] sm:$0xff] }
 0x2fd   : > { %6598 = vmatprep.subr.bf16.mxu0 %v6597_v51  ;;  %v6617_v51 = vpack.c.bf16 %v2079_v44, %v2077_v43  ;;  %v2099_v40 = vld [vmem:[%s7285_s14 + $0x3758] sm:$0xff]  ;;  %v5613_v43 = vpack.c.bf16 %v1075_v38, %v1073_v37  ;;  %v1072_v44 = vld [vmem:[%s7285_s14 + $0x1740] sm:$0xff] }
 0x2fe   : > { %3151 = vmatmul.mubr.f32.vlgmr.msra.gmra.mrb[0].mxu1 %v284_v57  ;;  %v5595_v57 = vpack.c.bf16 %v1054_v49, %v1052_v48  ;;  %v2098_v48 = vld [vmem:[%s7285_s14 + $0x3750] sm:$0xff]  ;;  %v1077_v49 = vld [vmem:[%s7285_s14 + $0x1768] sm:$0xff] }
 0x2ff   : > { %5576 = vmatpush1.bf16.msra.mxu1 %v5575_v58  ;;  %4287 = vmatmul.mubr.f32.vlgmr.msra.gmra.mrb[0].mxu0 %v316_v59  ;;  %v6619_v58 = vpack.c.bf16 %v2078_v52, %v2076_v50  ;;  %v5597_v59 = vpack.c.bf16 %v1059_v54, %v1057_v53  ;;  %v1079_v50 = vld [vmem:[%s7285_s14 + $0x1778] sm:$0xff] }
 0x300   : > { %6600 = vmatpush1.bf16.msra.mxu0 %v6599_v60  ;;  %5578 = vmatprep.subr.bf16.mxu1 %v5577_v61  ;;  %v1056_v60 = vld [vmem:[%s7285_s14 + $0x16c0] sm:$0xff]  ;;  %v1058_v61 = vld [vmem:[%s7285_s14 + $0x16d0] sm:$0xff]  ;;  %v2103_v52 = vld [vmem:[%s7285_s14 + $0x3778] sm:$0xff]  ;;  %v5617_v55 = vpack.c.bf16 %v1079_v50, %v1077_v49 }
 0x301   : > { %6602 = vmatprep.subr.bf16.mxu0 %v6601_v1  ;;  %3221 = vmatprep.mubr.f32.mxu1 %v287_v7  ;;  %v1061_v1 = vld [vmem:[%s7285_s14 + $0x16e8] sm:$0xff]  ;;  %v5599_v5 = vpack.c.bf16 %v1058_v61, %v1056_v60  ;;  %v2102_v60 = vld [vmem:[%s7285_s14 + $0x3770] sm:$0xff] }
 0x302   : > { %4357 = vmatprep.mubr.f32.mxu0 %v319_v9  ;;  %v5601_v7 = vpack.c.bf16 %v1063_v2, %v1061_v1  ;;  %v1062_v9 = vld [vmem:[%s7285_s14 + $0x16f0] sm:$0xff]  ;;  %v1081_v61 = vld [vmem:[%s7285_s14 + $0x1788] sm:$0xff] }
 0x303   : > { %5580 = vmatpush1.bf16.msra.mxu1 %v5579_v8  ;;  %v1060_v8 = vld [vmem:[%s7285_s14 + $0x16e0] sm:$0xff] }
 0x304   : > { %6604 = vmatpush1.bf16.msra.mxu0 %v6603_v10  ;;  %5582 = vmatprep.subr.bf16.mxu1 %v5581_v11  ;;  %v2084_v10 = vld [vmem:[%s7285_s14 + $0x36e0] sm:$0xff]  ;;  %v6625_v11 = vpack.c.bf16 %v2087_v4, %v2085_v3  ;;  %v5603_v17 = vpack.c.bf16 %v1062_v9, %v1060_v8  ;;  %v5621_v3 = vpack.c.bf16 %v1083_v62, %v1081_v61  ;;  %v2106_v8 = vld [vmem:[%s7285_s14 + $0x3790] sm:$0xff]  ;;  %v1085_v9 = vld [vmem:[%s7285_s14 + $0x17a8] sm:$0xff] }
 0x305   : > { %6606 = vmatprep.subr.bf16.mxu0 %v6605_v15  ;;  %v2089_v15 = vld [vmem:[%s7285_s14 + $0x3708] sm:$0xff]  ;;  %v6627_v18 = vpack.c.bf16 %v2086_v12, %v2084_v10  ;;  %v1080_v4 = vld [vmem:[%s7285_s14 + $0x1780] sm:$0xff]  ;;  %v1087_v10 = vld [vmem:[%s7285_s14 + $0x17b8] sm:$0xff] }
 0x306   : > { %v2111_v12 = vld [vmem:[%s7285_s14 + $0x37b8] sm:$0xff]  ;;  %v286_v61 = vld [vmem:[%s7295_s11 + $0xb0] sm:$0xff] }
 0x307   : > { %5584 = vmatpush1.bf16.msra.mxu1 %v5583_v21  ;;  %v1066_v21 = vld [vmem:[%s7285_s14 + $0x1710] sm:$0xff] }
 0x308   : > { %6608 = vmatpush1.bf16.msra.mxu0 %v6607_v22  ;;  %5586 = vmatprep.subr.bf16.mxu1 %v5585_v23  ;;  %v2088_v22 = vld [vmem:[%s7285_s14 + $0x3700] sm:$0xff]  ;;  %v6629_v23 = vpack.c.bf16 %v2091_v16, %v2089_v15  ;;  %v5607_v29 = vpack.c.bf16 %v1066_v21, %v1064_v20  ;;  %v5625_v15 = vpack.c.bf16 %v1087_v10, %v1085_v9  ;;  %v2110_v20 = vld [vmem:[%s7285_s14 + $0x37b0] sm:$0xff]  ;;  %v1089_v21 = vld [vmem:[%s7285_s14 + $0x17c8] sm:$0xff] }
 0x309   : > { %6610 = vmatprep.subr.bf16.mxu0 %v6609_v27  ;;  %v2093_v27 = vld [vmem:[%s7285_s14 + $0x3728] sm:$0xff]  ;;  %v6631_v30 = vpack.c.bf16 %v2090_v24, %v2088_v22  ;;  %v1084_v16 = vld [vmem:[%s7285_s14 + $0x17a0] sm:$0xff]  ;;  %v1091_v22 = vld [vmem:[%s7285_s14 + $0x17d8] sm:$0xff] }
 0x30a   : > { %v2115_v24 = vld [vmem:[%s7285_s14 + $0x37d8] sm:$0xff]  ;;  %v2129_v9 = vld [vmem:[%s7285_s14 + $0x3848] sm:$0xff] }
 0x30b   : > { %5588 = vmatpush1.bf16.msra.mxu1 %v5587_v33  ;;  %v1070_v33 = vld [vmem:[%s7285_s14 + $0x1730] sm:$0xff]  ;;  %v2131_v10 = vld [vmem:[%s7285_s14 + $0x3858] sm:$0xff] }
 0x30c   : > { %6612 = vmatpush1.bf16.msra.mxu0 %v6611_v34  ;;  %5590 = vmatprep.subr.bf16.mxu1 %v5589_v35  ;;  %v2092_v34 = vld [vmem:[%s7285_s14 + $0x3720] sm:$0xff]  ;;  %v6633_v35 = vpack.c.bf16 %v2095_v28, %v2093_v27  ;;  %v5611_v41 = vpack.c.bf16 %v1070_v33, %v1068_v32  ;;  %v5629_v27 = vpack.c.bf16 %v1091_v22, %v1089_v21  ;;  %v2114_v32 = vld [vmem:[%s7285_s14 + $0x37d0] sm:$0xff]  ;;  %v1093_v33 = vld [vmem:[%s7285_s14 + $0x17e8] sm:$0xff] }
 0x30d   : > { %6614 = vmatprep.subr.bf16.mxu0 %v6613_v39  ;;  %v2097_v39 = vld [vmem:[%s7285_s14 + $0x3748] sm:$0xff]  ;;  %v6635_v42 = vpack.c.bf16 %v2094_v36, %v2092_v34  ;;  %v1088_v28 = vld [vmem:[%s7285_s14 + $0x17c0] sm:$0xff]  ;;  %v1095_v34 = vld [vmem:[%s7285_s14 + $0x17f8] sm:$0xff] }
 0x30e   : > { %v2119_v36 = vld [vmem:[%s7285_s14 + $0x37f8] sm:$0xff]  ;;  %v1109_v21 = vld [vmem:[%s7285_s14 + $0x1868] sm:$0xff] }
 0x30f   : > { %5592 = vmatpush1.bf16.msra.mxu1 %v5591_v45  ;;  %v1074_v45 = vld [vmem:[%s7285_s14 + $0x1750] sm:$0xff]  ;;  %v1111_v22 = vld [vmem:[%s7285_s14 + $0x1878] sm:$0xff] }
 0x310   : > { %6616 = vmatpush1.bf16.msra.mxu0 %v6615_v46  ;;  %5594 = vmatprep.subr.bf16.mxu1 %v5593_v47  ;;  %v2096_v46 = vld [vmem:[%s7285_s14 + $0x3740] sm:$0xff]  ;;  %v6637_v47 = vpack.c.bf16 %v2099_v40, %v2097_v39  ;;  %v5615_v53 = vpack.c.bf16 %v1074_v45, %v1072_v44  ;;  %v5633_v39 = vpack.c.bf16 %v1095_v34, %v1093_v33  ;;  %v2118_v44 = vld [vmem:[%s7285_s14 + $0x37f0] sm:$0xff]  ;;  %v1097_v45 = vld [vmem:[%s7285_s14 + $0x1808] sm:$0xff] }
 0x311   : > { %6618 = vmatprep.subr.bf16.mxu0 %v6617_v51  ;;  %v2101_v51 = vld [vmem:[%s7285_s14 + $0x3768] sm:$0xff]  ;;  %v6639_v54 = vpack.c.bf16 %v2098_v48, %v2096_v46  ;;  %v1092_v40 = vld [vmem:[%s7285_s14 + $0x17e0] sm:$0xff]  ;;  %v1099_v46 = vld [vmem:[%s7285_s14 + $0x1818] sm:$0xff] }
 0x312   : > { %v2123_v48 = vld [vmem:[%s7285_s14 + $0x3818] sm:$0xff]  ;;  %v1113_v33 = vld [vmem:[%s7285_s14 + $0x1888] sm:$0xff] }
 0x313   : > { %5596 = vmatpush1.bf16.msra.mxu1 %v5595_v57  ;;  %v1078_v57 = vld [vmem:[%s7285_s14 + $0x1770] sm:$0xff]  ;;  %v1115_v34 = vld [vmem:[%s7285_s14 + $0x1898] sm:$0xff] }
 0x314   : > { %6620 = vmatpush1.bf16.msra.mxu0 %v6619_v58  ;;  %5598 = vmatprep.subr.bf16.mxu1 %v5597_v59  ;;  %v2100_v58 = vld [vmem:[%s7285_s14 + $0x3760] sm:$0xff]  ;;  %v6641_v59 = vpack.c.bf16 %v2103_v52, %v2101_v51  ;;  %v5619_v1 = vpack.c.bf16 %v1078_v57, %v1076_v56  ;;  %v5637_v51 = vpack.c.bf16 %v1099_v46, %v1097_v45  ;;  %v2122_v56 = vld [vmem:[%s7285_s14 + $0x3810] sm:$0xff]  ;;  %v1101_v57 = vld [vmem:[%s7285_s14 + $0x1828] sm:$0xff] }
 0x315   : > { %6622 = vmatprep.subr.bf16.mxu0 %v6621_v63  ;;  %v2105_v63 = vld [vmem:[%s7285_s14 + $0x3788] sm:$0xff]  ;;  %v6643_v2 = vpack.c.bf16 %v2102_v60, %v2100_v58  ;;  %v1096_v52 = vld [vmem:[%s7285_s14 + $0x1800] sm:$0xff]  ;;  %v1103_v58 = vld [vmem:[%s7285_s14 + $0x1838] sm:$0xff] }
 0x316   : > { %v2127_v60 = vld [vmem:[%s7285_s14 + $0x3838] sm:$0xff]  ;;  %v1117_v45 = vld [vmem:[%s7285_s14 + $0x18a8] sm:$0xff] }
 0x317   : > { %5600 = vmatpush1.bf16.msra.mxu1 %v5599_v5  ;;  %v1082_v5 = vld [vmem:[%s7285_s14 + $0x1790] sm:$0xff]  ;;  %v1119_v46 = vld [vmem:[%s7285_s14 + $0x18b8] sm:$0xff] }
 0x318   : > { %6624 = vmatpush1.bf16.msra.mxu0 %v6623_v6  ;;  %5602 = vmatprep.subr.bf16.mxu1 %v5601_v7  ;;  %v2104_v6 = vld [vmem:[%s7285_s14 + $0x3780] sm:$0xff]  ;;  %v6645_v7 = vpack.c.bf16 %v2107_v0, %v2105_v63  ;;  %v5623_v13 = vpack.c.bf16 %v1082_v5, %v1080_v4 }
 0x319   : > { %6626 = vmatprep.subr.bf16.mxu0 %v6625_v11  ;;  %v2109_v11 = vld [vmem:[%s7285_s14 + $0x37a8] sm:$0xff]  ;;  %v6647_v14 = vpack.c.bf16 %v2106_v8, %v2104_v6  ;;  %v318_v63 = vld [vmem:[%s7295_s11 + $0x1b0] sm:$0xff]  ;;  %v2126_v6 = vld [vmem:[%s7285_s14 + $0x3830] sm:$0xff] }
 0x31a   : > { %v2124_v4 = vld [vmem:[%s7285_s14 + $0x3820] sm:$0xff]  ;;  %v1107_v8 = vld [vmem:[%s7285_s14 + $0x1858] sm:$0xff] }
 0x31b   : > { %5604 = vmatpush1.bf16.msra.mxu1 %v5603_v17  ;;  %v1086_v17 = vld [vmem:[%s7285_s14 + $0x17b0] sm:$0xff] }
 0x31c   : > { %6628 = vmatpush1.bf16.msra.mxu0 %v6627_v18  ;;  %5606 = vmatprep.subr.bf16.mxu1 %v5605_v19  ;;  %v2108_v18 = vld [vmem:[%s7285_s14 + $0x37a0] sm:$0xff]  ;;  %v6649_v19 = vpack.c.bf16 %v2111_v12, %v2109_v11  ;;  %v5627_v25 = vpack.c.bf16 %v1086_v17, %v1084_v16  ;;  %v289_v11 = vld [vmem:[%s7295_s11 + $0xc8] sm:$0xff]  ;;  %v1106_v17 = vld [vmem:[%s7285_s14 + $0x1850] sm:$0xff] }
 0x31d   : > { %6630 = vmatprep.subr.bf16.mxu0 %v6629_v23  ;;  %v2113_v23 = vld [vmem:[%s7285_s14 + $0x37c8] sm:$0xff]  ;;  %v6651_v26 = vpack.c.bf16 %v2110_v20, %v2108_v18  ;;  %v1104_v16 = vld [vmem:[%s7285_s14 + $0x1840] sm:$0xff]  ;;  %v2130_v20 = vld [vmem:[%s7285_s14 + $0x3850] sm:$0xff] }
 0x31e   : > { %v2128_v18 = vld [vmem:[%s7285_s14 + $0x3840] sm:$0xff] }
 0x31f   : > { %5608 = vmatpush1.bf16.msra.mxu1 %v5607_v29  ;;  %v1090_v29 = vld [vmem:[%s7285_s14 + $0x17d0] sm:$0xff] }
 0x320   : > { %6632 = vmatpush1.bf16.msra.mxu0 %v6631_v30  ;;  %5610 = vmatprep.subr.bf16.mxu1 %v5609_v31  ;;  %v2112_v30 = vld [vmem:[%s7285_s14 + $0x37c0] sm:$0xff]  ;;  %v6653_v31 = vpack.c.bf16 %v2115_v24, %v2113_v23  ;;  %v5631_v37 = vpack.c.bf16 %v1090_v29, %v1088_v28  ;;  %v2133_v23 = vld [vmem:[%s7285_s14 + $0x3868] sm:$0xff]  ;;  %v2135_v24 = vld [vmem:[%s7285_s14 + $0x3878] sm:$0xff] }
 0x321   : > { %6634 = vmatprep.subr.bf16.mxu0 %v6633_v35  ;;  %v2117_v35 = vld [vmem:[%s7285_s14 + $0x37e8] sm:$0xff]  ;;  %v6655_v38 = vpack.c.bf16 %v2114_v32, %v2112_v30  ;;  %v1108_v28 = vld [vmem:[%s7285_s14 + $0x1860] sm:$0xff]  ;;  %v1110_v29 = vld [vmem:[%s7285_s14 + $0x1870] sm:$0xff] }
 0x322   : > { %v2132_v30 = vld [vmem:[%s7285_s14 + $0x3860] sm:$0xff]  ;;  %v2134_v32 = vld [vmem:[%s7285_s14 + $0x3870] sm:$0xff] }
 0x323   : > { %5612 = vmatpush1.bf16.msra.mxu1 %v5611_v41  ;;  %v1094_v41 = vld [vmem:[%s7285_s14 + $0x17f0] sm:$0xff] }
 0x324   : > { %6636 = vmatpush1.bf16.msra.mxu0 %v6635_v42  ;;  %5614 = vmatprep.subr.bf16.mxu1 %v5613_v43  ;;  %v2116_v42 = vld [vmem:[%s7285_s14 + $0x37e0] sm:$0xff]  ;;  %v6657_v43 = vpack.c.bf16 %v2119_v36, %v2117_v35  ;;  %v5635_v49 = vpack.c.bf16 %v1094_v41, %v1092_v40  ;;  %v2137_v35 = vld [vmem:[%s7285_s14 + $0x3888] sm:$0xff]  ;;  %v2139_v36 = vld [vmem:[%s7285_s14 + $0x3898] sm:$0xff] }
 0x325   : > { %6638 = vmatprep.subr.bf16.mxu0 %v6637_v47  ;;  %v2121_v47 = vld [vmem:[%s7285_s14 + $0x3808] sm:$0xff]  ;;  %v6659_v50 = vpack.c.bf16 %v2118_v44, %v2116_v42  ;;  %v1112_v40 = vld [vmem:[%s7285_s14 + $0x1880] sm:$0xff]  ;;  %v1114_v41 = vld [vmem:[%s7285_s14 + $0x1890] sm:$0xff] }
 0x326   : > { %v2136_v42 = vld [vmem:[%s7285_s14 + $0x3880] sm:$0xff]  ;;  %v2138_v44 = vld [vmem:[%s7285_s14 + $0x3890] sm:$0xff] }
 0x327   : > { %5616 = vmatpush1.bf16.msra.mxu1 %v5615_v53  ;;  %v1098_v53 = vld [vmem:[%s7285_s14 + $0x1810] sm:$0xff] }
 0x328   : > { %6640 = vmatpush1.bf16.msra.mxu0 %v6639_v54  ;;  %5618 = vmatprep.subr.bf16.mxu1 %v5617_v55  ;;  %v2120_v54 = vld [vmem:[%s7285_s14 + $0x3800] sm:$0xff]  ;;  %v6661_v55 = vpack.c.bf16 %v2123_v48, %v2121_v47  ;;  %v5639_v62 = vpack.c.bf16 %v1098_v53, %v1096_v52  ;;  %v2141_v47 = vld [vmem:[%s7285_s14 + $0x38a8] sm:$0xff]  ;;  %v2143_v48 = vld [vmem:[%s7285_s14 + $0x38b8] sm:$0xff] }
 0x329   : > { %6642 = vmatprep.subr.bf16.mxu0 %v6641_v59  ;;  %v2125_v59 = vld [vmem:[%s7285_s14 + $0x3828] sm:$0xff]  ;;  %v6663_v0 = vpack.c.bf16 %v2122_v56, %v2120_v54  ;;  %v1116_v52 = vld [vmem:[%s7285_s14 + $0x18a0] sm:$0xff]  ;;  %v1118_v53 = vld [vmem:[%s7285_s14 + $0x18b0] sm:$0xff] }
 0x32a   : > { %v6665_v5 = vpack.c.bf16 %v2127_v60, %v2125_v59  ;;  %v2140_v54 = vld [vmem:[%s7285_s14 + $0x38a0] sm:$0xff]  ;;  %v2142_v56 = vld [vmem:[%s7285_s14 + $0x38b0] sm:$0xff]  ;;  %v2145_v59 = vld [vmem:[%s7285_s14 + $0x38c8] sm:$0xff] }
 0x32b   : > { %5620 = vmatpush1.bf16.msra.mxu1 %v5619_v1  ;;  %v5641_v1 = vpack.c.bf16 %v1103_v58, %v1101_v57  ;;  %v1121_v57 = vld [vmem:[%s7285_s14 + $0x18c8] sm:$0xff]  ;;  %v1123_v58 = vld [vmem:[%s7285_s14 + $0x18d8] sm:$0xff] }
 0x32c   : > { %6644 = vmatpush1.bf16.msra.mxu0 %v6643_v2  ;;  %5622 = vmatprep.subr.bf16.mxu1 %v5621_v3  ;;  %v1100_v2 = vld [vmem:[%s7285_s14 + $0x1820] sm:$0xff]  ;;  %v1102_v3 = vld [vmem:[%s7285_s14 + $0x1830] sm:$0xff]  ;;  %v2147_v60 = vld [vmem:[%s7285_s14 + $0x38d8] sm:$0xff] }
 0x32d   : > { %6646 = vmatprep.subr.bf16.mxu0 %v6645_v7  ;;  %v1105_v7 = vld [vmem:[%s7285_s14 + $0x1848] sm:$0xff]  ;;  %v5643_v12 = vpack.c.bf16 %v1102_v3, %v1100_v2  ;;  %v2144_v2 = vld [vmem:[%s7285_s14 + $0x38c0] sm:$0xff]  ;;  %v6685_v3 = vpack.c.bf16 %v2147_v60, %v2145_v59 }
 0x32e   : > { %v1140_v60 = vld [vmem:[%s7285_s14 + $0x1960] sm:$0xff] }
 0x32f   : > { %5624 = vmatpush1.bf16.msra.mxu1 %v5623_v13  ;;  %v321_v13 = vld [vmem:[%s7295_s11 + $0x1c8] sm:$0xff] }
 0x330   : > { %6648 = vmatpush1.bf16.msra.mxu0 %v6647_v14  ;;  %5626 = vmatprep.subr.bf16.mxu1 %v5625_v15  ;;  %v6667_v14 = vpack.c.bf16 %v2126_v6, %v2124_v4  ;;  %v5645_v15 = vpack.c.bf16 %v1107_v8, %v1105_v7  ;;  %v2146_v4 = vld [vmem:[%s7285_s14 + $0x38d0] sm:$0xff]  ;;  %v1127_v6 = vld [vmem:[%s7285_s14 + $0x18f8] sm:$0xff]  ;;  %v2149_v7 = vld [vmem:[%s7285_s14 + $0x38e8] sm:$0xff] }
 0x331   : > { %6650 = vmatprep.subr.bf16.mxu0 %v6649_v19  ;;  %v6669_v19 = vpack.c.bf16 %v2131_v10, %v2129_v9  ;;  %v2151_v8 = vld [vmem:[%s7285_s14 + $0x38f8] sm:$0xff]  ;;  %v6687_v10 = vpack.c.bf16 %v2146_v4, %v2144_v2 }
 0x332   : > { %v1147_v2 = vld [vmem:[%s7285_s14 + $0x1998] sm:$0xff] }
 0x333   : > { %5628 = vmatpush1.bf16.msra.mxu1 %v5627_v25  ;;  %v5647_v25 = vpack.c.bf16 %v1106_v17, %v1104_v16  ;;  %v2150_v16 = vld [vmem:[%s7285_s14 + $0x38f0] sm:$0xff]  ;;  %v1129_v17 = vld [vmem:[%s7285_s14 + $0x1908] sm:$0xff]  ;;  %v2171_v4 = vld [vmem:[%s7285_s14 + $0x3998] sm:$0xff] }
 0x334   : > { %6652 = vmatpush1.bf16.msra.mxu0 %v6651_v26  ;;  %5630 = vmatprep.subr.bf16.mxu1 %v5629_v27  ;;  %v6671_v26 = vpack.c.bf16 %v2130_v20, %v2128_v18  ;;  %v5649_v27 = vpack.c.bf16 %v1111_v22, %v1109_v21  ;;  %v1131_v18 = vld [vmem:[%s7285_s14 + $0x1918] sm:$0xff] }
 0x335   : > { %6654 = vmatprep.subr.bf16.mxu0 %v6653_v31  ;;  %v6673_v31 = vpack.c.bf16 %v2135_v24, %v2133_v23  ;;  %v2155_v20 = vld [vmem:[%s7285_s14 + $0x3918] sm:$0xff]  ;;  %v5669_v23 = vpack.c.bf16 %v1131_v18, %v1129_v17  ;;  %v1128_v24 = vld [vmem:[%s7285_s14 + $0x1900] sm:$0xff] }
 0x337   : > { %5632 = vmatpush1.bf16.msra.mxu1 %v5631_v37  ;;  %v5651_v37 = vpack.c.bf16 %v1110_v29, %v1108_v28  ;;  %v2154_v28 = vld [vmem:[%s7285_s14 + $0x3910] sm:$0xff]  ;;  %v1133_v29 = vld [vmem:[%s7285_s14 + $0x1928] sm:$0xff] }
 0x338   : > { %6656 = vmatpush1.bf16.msra.mxu0 %v6655_v38  ;;  %5634 = vmatprep.subr.bf16.mxu1 %v5633_v39  ;;  %v6675_v38 = vpack.c.bf16 %v2134_v32, %v2132_v30  ;;  %v5653_v39 = vpack.c.bf16 %v1115_v34, %v1113_v33  ;;  %v1135_v30 = vld [vmem:[%s7285_s14 + $0x1938] sm:$0xff] }
 0x339   : > { %6658 = vmatprep.subr.bf16.mxu0 %v6657_v43  ;;  %v6677_v43 = vpack.c.bf16 %v2139_v36, %v2137_v35  ;;  %v2159_v32 = vld [vmem:[%s7285_s14 + $0x3938] sm:$0xff]  ;;  %v5673_v35 = vpack.c.bf16 %v1135_v30, %v1133_v29  ;;  %v1132_v36 = vld [vmem:[%s7285_s14 + $0x1920] sm:$0xff] }
 0x33b   : > { %5636 = vmatpush1.bf16.msra.mxu1 %v5635_v49  ;;  %v5655_v49 = vpack.c.bf16 %v1114_v41, %v1112_v40  ;;  %v2158_v40 = vld [vmem:[%s7285_s14 + $0x3930] sm:$0xff]  ;;  %v1137_v41 = vld [vmem:[%s7285_s14 + $0x1948] sm:$0xff] }
 0x33c   : > { %6660 = vmatpush1.bf16.msra.mxu0 %v6659_v50  ;;  %5638 = vmatprep.subr.bf16.mxu1 %v5637_v51  ;;  %v6679_v50 = vpack.c.bf16 %v2138_v44, %v2136_v42  ;;  %v5657_v51 = vpack.c.bf16 %v1119_v46, %v1117_v45  ;;  %v1139_v42 = vld [vmem:[%s7285_s14 + $0x1958] sm:$0xff] }
 0x33d   : > { %6662 = vmatprep.subr.bf16.mxu0 %v6661_v55  ;;  %v6681_v55 = vpack.c.bf16 %v2143_v48, %v2141_v47  ;;  %v2163_v44 = vld [vmem:[%s7285_s14 + $0x3958] sm:$0xff]  ;;  %v5677_v47 = vpack.c.bf16 %v1139_v42, %v1137_v41  ;;  %v1136_v48 = vld [vmem:[%s7285_s14 + $0x1940] sm:$0xff] }
 0x33e   : > { %3222 = vmatmul.mubr.f32.vlgmr.msra.gmra.mrb[0].mxu1 %v286_v61  ;;  %v5659_v61 = vpack.c.bf16 %v1118_v53, %v1116_v52  ;;  %v2162_v52 = vld [vmem:[%s7285_s14 + $0x3950] sm:$0xff]  ;;  %v1141_v53 = vld [vmem:[%s7285_s14 + $0x1968] sm:$0xff] }
 0x33f   : > { %5640 = vmatpush1.bf16.msra.mxu1 %v5639_v62  ;;  %4358 = vmatmul.mubr.f32.vlgmr.msra.gmra.mrb[0].mxu0 %v318_v63  ;;  %v6683_v62 = vpack.c.bf16 %v2142_v56, %v2140_v54  ;;  %v5661_v63 = vpack.c.bf16 %v1123_v58, %v1121_v57  ;;  %v1143_v54 = vld [vmem:[%s7285_s14 + $0x1978] sm:$0xff] }
 0x340   : > { %6664 = vmatpush1.bf16.msra.mxu0 %v6663_v0  ;;  %5642 = vmatprep.subr.bf16.mxu1 %v5641_v1  ;;  %v1120_v0 = vld [vmem:[%s7285_s14 + $0x18c0] sm:$0xff]  ;;  %v1122_v1 = vld [vmem:[%s7285_s14 + $0x18d0] sm:$0xff]  ;;  %v2167_v56 = vld [vmem:[%s7285_s14 + $0x3978] sm:$0xff]  ;;  %v5681_v59 = vpack.c.bf16 %v1143_v54, %v1141_v53 }
 0x341   : > { %6666 = vmatprep.subr.bf16.mxu0 %v6665_v5  ;;  %3292 = vmatprep.mubr.f32.mxu1 %v289_v11  ;;  %v1125_v5 = vld [vmem:[%s7285_s14 + $0x18e8] sm:$0xff]  ;;  %v5663_v9 = vpack.c.bf16 %v1122_v1, %v1120_v0  ;;  %v2166_v0 = vld [vmem:[%s7285_s14 + $0x3970] sm:$0xff] }
 0x342   : > { %4428 = vmatprep.mubr.f32.mxu0 %v321_v13  ;;  %v5665_v11 = vpack.c.bf16 %v1127_v6, %v1125_v5  ;;  %v1126_v13 = vld [vmem:[%s7285_s14 + $0x18f0] sm:$0xff]  ;;  %v1145_v1 = vld [vmem:[%s7285_s14 + $0x1988] sm:$0xff] }
 0x343   : > { %5644 = vmatpush1.bf16.msra.mxu1 %v5643_v12  ;;  %v1124_v12 = vld [vmem:[%s7285_s14 + $0x18e0] sm:$0xff] }
 0x344   : > { %6668 = vmatpush1.bf16.msra.mxu0 %v6667_v14  ;;  %5646 = vmatprep.subr.bf16.mxu1 %v5645_v15  ;;  %v2148_v14 = vld [vmem:[%s7285_s14 + $0x38e0] sm:$0xff]  ;;  %v6689_v15 = vpack.c.bf16 %v2151_v8, %v2149_v7  ;;  %v5667_v21 = vpack.c.bf16 %v1126_v13, %v1124_v12  ;;  %v5685_v7 = vpack.c.bf16 %v1147_v2, %v1145_v1  ;;  %v2170_v12 = vld [vmem:[%s7285_s14 + $0x3990] sm:$0xff]  ;;  %v1149_v13 = vld [vmem:[%s7285_s14 + $0x19a8] sm:$0xff] }
 0x345   : > { %6670 = vmatprep.subr.bf16.mxu0 %v6669_v19  ;;  %v2153_v19 = vld [vmem:[%s7285_s14 + $0x3908] sm:$0xff]  ;;  %v6691_v22 = vpack.c.bf16 %v2150_v16, %v2148_v14  ;;  %v1144_v8 = vld [vmem:[%s7285_s14 + $0x1980] sm:$0xff]  ;;  %v1151_v14 = vld [vmem:[%s7285_s14 + $0x19b8] sm:$0xff] }
 0x346   : > { %v2175_v16 = vld [vmem:[%s7285_s14 + $0x39b8] sm:$0xff]  ;;  %v288_v1 = vld [vmem:[%s7295_s11 + $0xc0] sm:$0xff] }
 0x347   : > { %5648 = vmatpush1.bf16.msra.mxu1 %v5647_v25  ;;  %v1130_v25 = vld [vmem:[%s7285_s14 + $0x1910] sm:$0xff] }
 0x348   : > { %6672 = vmatpush1.bf16.msra.mxu0 %v6671_v26  ;;  %5650 = vmatprep.subr.bf16.mxu1 %v5649_v27  ;;  %v2152_v26 = vld [vmem:[%s7285_s14 + $0x3900] sm:$0xff]  ;;  %v6693_v27 = vpack.c.bf16 %v2155_v20, %v2153_v19  ;;  %v5671_v33 = vpack.c.bf16 %v1130_v25, %v1128_v24  ;;  %v5689_v19 = vpack.c.bf16 %v1151_v14, %v1149_v13  ;;  %v2174_v24 = vld [vmem:[%s7285_s14 + $0x39b0] sm:$0xff]  ;;  %v1153_v25 = vld [vmem:[%s7285_s14 + $0x19c8] sm:$0xff] }
 0x349   : > { %6674 = vmatprep.subr.bf16.mxu0 %v6673_v31  ;;  %v2157_v31 = vld [vmem:[%s7285_s14 + $0x3928] sm:$0xff]  ;;  %v6695_v34 = vpack.c.bf16 %v2154_v28, %v2152_v26  ;;  %v1148_v20 = vld [vmem:[%s7285_s14 + $0x19a0] sm:$0xff]  ;;  %v1155_v26 = vld [vmem:[%s7285_s14 + $0x19d8] sm:$0xff] }
 0x34a   : > { %v2179_v28 = vld [vmem:[%s7285_s14 + $0x39d8] sm:$0xff]  ;;  %v2193_v13 = vld [vmem:[%s7285_s14 + $0x3a48] sm:$0xff] }
 0x34b   : > { %5652 = vmatpush1.bf16.msra.mxu1 %v5651_v37  ;;  %v1134_v37 = vld [vmem:[%s7285_s14 + $0x1930] sm:$0xff]  ;;  %v2195_v14 = vld [vmem:[%s7285_s14 + $0x3a58] sm:$0xff] }
 0x34c   : > { %6676 = vmatpush1.bf16.msra.mxu0 %v6675_v38  ;;  %5654 = vmatprep.subr.bf16.mxu1 %v5653_v39  ;;  %v2156_v38 = vld [vmem:[%s7285_s14 + $0x3920] sm:$0xff]  ;;  %v6697_v39 = vpack.c.bf16 %v2159_v32, %v2157_v31  ;;  %v5675_v45 = vpack.c.bf16 %v1134_v37, %v1132_v36  ;;  %v5693_v31 = vpack.c.bf16 %v1155_v26, %v1153_v25  ;;  %v2178_v36 = vld [vmem:[%s7285_s14 + $0x39d0] sm:$0xff]  ;;  %v1157_v37 = vld [vmem:[%s7285_s14 + $0x19e8] sm:$0xff] }
 0x34d   : > { %6678 = vmatprep.subr.bf16.mxu0 %v6677_v43  ;;  %v2161_v43 = vld [vmem:[%s7285_s14 + $0x3948] sm:$0xff]  ;;  %v6699_v46 = vpack.c.bf16 %v2158_v40, %v2156_v38  ;;  %v1152_v32 = vld [vmem:[%s7285_s14 + $0x19c0] sm:$0xff]  ;;  %v1159_v38 = vld [vmem:[%s7285_s14 + $0x19f8] sm:$0xff] }
 0x34e   : > { %v2183_v40 = vld [vmem:[%s7285_s14 + $0x39f8] sm:$0xff]  ;;  %v1173_v25 = vld [vmem:[%s7285_s14 + $0x1a68] sm:$0xff] }
 0x34f   : > { %5656 = vmatpush1.bf16.msra.mxu1 %v5655_v49  ;;  %v1138_v49 = vld [vmem:[%s7285_s14 + $0x1950] sm:$0xff]  ;;  %v1175_v26 = vld [vmem:[%s7285_s14 + $0x1a78] sm:$0xff] }
 0x350   : > { %6680 = vmatpush1.bf16.msra.mxu0 %v6679_v50  ;;  %5658 = vmatprep.subr.bf16.mxu1 %v5657_v51  ;;  %v2160_v50 = vld [vmem:[%s7285_s14 + $0x3940] sm:$0xff]  ;;  %v6701_v51 = vpack.c.bf16 %v2163_v44, %v2161_v43  ;;  %v5679_v57 = vpack.c.bf16 %v1138_v49, %v1136_v48  ;;  %v5697_v43 = vpack.c.bf16 %v1159_v38, %v1157_v37  ;;  %v2182_v48 = vld [vmem:[%s7285_s14 + $0x39f0] sm:$0xff]  ;;  %v1161_v49 = vld [vmem:[%s7285_s14 + $0x1a08] sm:$0xff] }
 0x351   : > { %6682 = vmatprep.subr.bf16.mxu0 %v6681_v55  ;;  %v2165_v55 = vld [vmem:[%s7285_s14 + $0x3968] sm:$0xff]  ;;  %v6703_v58 = vpack.c.bf16 %v2162_v52, %v2160_v50  ;;  %v1156_v44 = vld [vmem:[%s7285_s14 + $0x19e0] sm:$0xff]  ;;  %v1163_v50 = vld [vmem:[%s7285_s14 + $0x1a18] sm:$0xff] }
 0x352   : > { %v2187_v52 = vld [vmem:[%s7285_s14 + $0x3a18] sm:$0xff]  ;;  %v1177_v37 = vld [vmem:[%s7285_s14 + $0x1a88] sm:$0xff] }
 0x353   : > { %5660 = vmatpush1.bf16.msra.mxu1 %v5659_v61  ;;  %v1142_v61 = vld [vmem:[%s7285_s14 + $0x1970] sm:$0xff]  ;;  %v1179_v38 = vld [vmem:[%s7285_s14 + $0x1a98] sm:$0xff] }
 0x354   : > { %6684 = vmatpush1.bf16.msra.mxu0 %v6683_v62  ;;  %5662 = vmatprep.subr.bf16.mxu1 %v5661_v63  ;;  %v2164_v62 = vld [vmem:[%s7285_s14 + $0x3960] sm:$0xff]  ;;  %v6705_v63 = vpack.c.bf16 %v2167_v56, %v2165_v55  ;;  %v5683_v5 = vpack.c.bf16 %v1142_v61, %v1140_v60  ;;  %v5701_v55 = vpack.c.bf16 %v1163_v50, %v1161_v49  ;;  %v2186_v60 = vld [vmem:[%s7285_s14 + $0x3a10] sm:$0xff]  ;;  %v1165_v61 = vld [vmem:[%s7285_s14 + $0x1a28] sm:$0xff] }
 0x355   : > { %6686 = vmatprep.subr.bf16.mxu0 %v6685_v3  ;;  %v2169_v3 = vld [vmem:[%s7285_s14 + $0x3988] sm:$0xff]  ;;  %v6707_v6 = vpack.c.bf16 %v2166_v0, %v2164_v62  ;;  %v1160_v56 = vld [vmem:[%s7285_s14 + $0x1a00] sm:$0xff]  ;;  %v1167_v62 = vld [vmem:[%s7285_s14 + $0x1a38] sm:$0xff] }
 0x356   : > { %v2191_v0 = vld [vmem:[%s7285_s14 + $0x3a38] sm:$0xff]  ;;  %v1181_v49 = vld [vmem:[%s7285_s14 + $0x1aa8] sm:$0xff] }
 0x357   : > { %5664 = vmatpush1.bf16.msra.mxu1 %v5663_v9  ;;  %v1146_v9 = vld [vmem:[%s7285_s14 + $0x1990] sm:$0xff]  ;;  %v1183_v50 = vld [vmem:[%s7285_s14 + $0x1ab8] sm:$0xff] }
 0x358   : > { %6688 = vmatpush1.bf16.msra.mxu0 %v6687_v10  ;;  %5666 = vmatprep.subr.bf16.mxu1 %v5665_v11  ;;  %v2168_v10 = vld [vmem:[%s7285_s14 + $0x3980] sm:$0xff]  ;;  %v6709_v11 = vpack.c.bf16 %v2171_v4, %v2169_v3  ;;  %v5687_v17 = vpack.c.bf16 %v1146_v9, %v1144_v8  ;;  %v320_v3 = vld [vmem:[%s7295_s11 + $0x1c0] sm:$0xff] }
 0x359   : > { %6690 = vmatprep.subr.bf16.mxu0 %v6689_v15  ;;  %v2173_v15 = vld [vmem:[%s7285_s14 + $0x39a8] sm:$0xff]  ;;  %v6711_v18 = vpack.c.bf16 %v2170_v12, %v2168_v10  ;;  %v2188_v8 = vld [vmem:[%s7285_s14 + $0x3a20] sm:$0xff]  ;;  %v2190_v10 = vld [vmem:[%s7285_s14 + $0x3a30] sm:$0xff] }
 0x35a   : > { %v1171_v12 = vld [vmem:[%s7285_s14 + $0x1a58] sm:$0xff] }
 0x35b   : > { %5668 = vmatpush1.bf16.msra.mxu1 %v5667_v21  ;;  %v1150_v21 = vld [vmem:[%s7285_s14 + $0x19b0] sm:$0xff] }
 0x35c   : > { %6692 = vmatpush1.bf16.msra.mxu0 %v6691_v22  ;;  %5670 = vmatprep.subr.bf16.mxu1 %v5669_v23  ;;  %v2172_v22 = vld [vmem:[%s7285_s14 + $0x39a0] sm:$0xff]  ;;  %v6713_v23 = vpack.c.bf16 %v2175_v16, %v2173_v15  ;;  %v5691_v29 = vpack.c.bf16 %v1150_v21, %v1148_v20  ;;  %v291_v15 = vld [vmem:[%s7295_s11 + $0xd8] sm:$0xff]  ;;  %v1170_v21 = vld [vmem:[%s7285_s14 + $0x1a50] sm:$0xff] }
 0x35d   : > { %6694 = vmatprep.subr.bf16.mxu0 %v6693_v27  ;;  %v2177_v27 = vld [vmem:[%s7285_s14 + $0x39c8] sm:$0xff]  ;;  %v6715_v30 = vpack.c.bf16 %v2174_v24, %v2172_v22  ;;  %v1168_v20 = vld [vmem:[%s7285_s14 + $0x1a40] sm:$0xff]  ;;  %v2194_v24 = vld [vmem:[%s7285_s14 + $0x3a50] sm:$0xff] }
 0x35e   : > { %v2192_v22 = vld [vmem:[%s7285_s14 + $0x3a40] sm:$0xff] }
 0x35f   : > { %5672 = vmatpush1.bf16.msra.mxu1 %v5671_v33  ;;  %v1154_v33 = vld [vmem:[%s7285_s14 + $0x19d0] sm:$0xff] }
 0x360   : > { %6696 = vmatpush1.bf16.msra.mxu0 %v6695_v34  ;;  %5674 = vmatprep.subr.bf16.mxu1 %v5673_v35  ;;  %v2176_v34 = vld [vmem:[%s7285_s14 + $0x39c0] sm:$0xff]  ;;  %v6717_v35 = vpack.c.bf16 %v2179_v28, %v2177_v27  ;;  %v5695_v41 = vpack.c.bf16 %v1154_v33, %v1152_v32  ;;  %v2197_v27 = vld [vmem:[%s7285_s14 + $0x3a68] sm:$0xff]  ;;  %v2199_v28 = vld [vmem:[%s7285_s14 + $0x3a78] sm:$0xff] }
 0x361   : > { %6698 = vmatprep.subr.bf16.mxu0 %v6697_v39  ;;  %v2181_v39 = vld [vmem:[%s7285_s14 + $0x39e8] sm:$0xff]  ;;  %v6719_v42 = vpack.c.bf16 %v2178_v36, %v2176_v34  ;;  %v1172_v32 = vld [vmem:[%s7285_s14 + $0x1a60] sm:$0xff]  ;;  %v1174_v33 = vld [vmem:[%s7285_s14 + $0x1a70] sm:$0xff] }
 0x362   : > { %v2196_v34 = vld [vmem:[%s7285_s14 + $0x3a60] sm:$0xff]  ;;  %v2198_v36 = vld [vmem:[%s7285_s14 + $0x3a70] sm:$0xff] }
 0x363   : > { %5676 = vmatpush1.bf16.msra.mxu1 %v5675_v45  ;;  %v1158_v45 = vld [vmem:[%s7285_s14 + $0x19f0] sm:$0xff] }
 0x364   : > { %6700 = vmatpush1.bf16.msra.mxu0 %v6699_v46  ;;  %5678 = vmatprep.subr.bf16.mxu1 %v5677_v47  ;;  %v2180_v46 = vld [vmem:[%s7285_s14 + $0x39e0] sm:$0xff]  ;;  %v6721_v47 = vpack.c.bf16 %v2183_v40, %v2181_v39  ;;  %v5699_v53 = vpack.c.bf16 %v1158_v45, %v1156_v44  ;;  %v2201_v39 = vld [vmem:[%s7285_s14 + $0x3a88] sm:$0xff]  ;;  %v2203_v40 = vld [vmem:[%s7285_s14 + $0x3a98] sm:$0xff] }
 0x365   : > { %6702 = vmatprep.subr.bf16.mxu0 %v6701_v51  ;;  %v2185_v51 = vld [vmem:[%s7285_s14 + $0x3a08] sm:$0xff]  ;;  %v6723_v54 = vpack.c.bf16 %v2182_v48, %v2180_v46  ;;  %v1176_v44 = vld [vmem:[%s7285_s14 + $0x1a80] sm:$0xff]  ;;  %v1178_v45 = vld [vmem:[%s7285_s14 + $0x1a90] sm:$0xff] }
 0x366   : > { %v2200_v46 = vld [vmem:[%s7285_s14 + $0x3a80] sm:$0xff]  ;;  %v2202_v48 = vld [vmem:[%s7285_s14 + $0x3a90] sm:$0xff] }
 0x367   : > { %5680 = vmatpush1.bf16.msra.mxu1 %v5679_v57  ;;  %v1162_v57 = vld [vmem:[%s7285_s14 + $0x1a10] sm:$0xff] }
 0x368   : > { %6704 = vmatpush1.bf16.msra.mxu0 %v6703_v58  ;;  %5682 = vmatprep.subr.bf16.mxu1 %v5681_v59  ;;  %v2184_v58 = vld [vmem:[%s7285_s14 + $0x3a00] sm:$0xff]  ;;  %v6725_v59 = vpack.c.bf16 %v2187_v52, %v2185_v51  ;;  %v5703_v2 = vpack.c.bf16 %v1162_v57, %v1160_v56  ;;  %v2205_v51 = vld [vmem:[%s7285_s14 + $0x3aa8] sm:$0xff]  ;;  %v2207_v52 = vld [vmem:[%s7285_s14 + $0x3ab8] sm:$0xff] }
 0x369   : > { %6706 = vmatprep.subr.bf16.mxu0 %v6705_v63  ;;  %v2189_v63 = vld [vmem:[%s7285_s14 + $0x3a28] sm:$0xff]  ;;  %v6727_v4 = vpack.c.bf16 %v2186_v60, %v2184_v58  ;;  %v1180_v56 = vld [vmem:[%s7285_s14 + $0x1aa0] sm:$0xff]  ;;  %v1182_v57 = vld [vmem:[%s7285_s14 + $0x1ab0] sm:$0xff] }
 0x36a   : > { %v6729_v9 = vpack.c.bf16 %v2191_v0, %v2189_v63  ;;  %v2204_v58 = vld [vmem:[%s7285_s14 + $0x3aa0] sm:$0xff]  ;;  %v2206_v60 = vld [vmem:[%s7285_s14 + $0x3ab0] sm:$0xff]  ;;  %v2209_v63 = vld [vmem:[%s7285_s14 + $0x3ac8] sm:$0xff] }
 0x36b   : > { %5684 = vmatpush1.bf16.msra.mxu1 %v5683_v5  ;;  %v5705_v5 = vpack.c.bf16 %v1167_v62, %v1165_v61  ;;  %v1185_v61 = vld [vmem:[%s7285_s14 + $0x1ac8] sm:$0xff]  ;;  %v1187_v62 = vld [vmem:[%s7285_s14 + $0x1ad8] sm:$0xff] }
 0x36c   : > { %6708 = vmatpush1.bf16.msra.mxu0 %v6707_v6  ;;  %5686 = vmatprep.subr.bf16.mxu1 %v5685_v7  ;;  %v1164_v6 = vld [vmem:[%s7285_s14 + $0x1a20] sm:$0xff]  ;;  %v1166_v7 = vld [vmem:[%s7285_s14 + $0x1a30] sm:$0xff]  ;;  %v2211_v0 = vld [vmem:[%s7285_s14 + $0x3ad8] sm:$0xff] }
 0x36d   : > { %6710 = vmatprep.subr.bf16.mxu0 %v6709_v11  ;;  %v1169_v11 = vld [vmem:[%s7285_s14 + $0x1a48] sm:$0xff]  ;;  %v5707_v16 = vpack.c.bf16 %v1166_v7, %v1164_v6  ;;  %v2208_v6 = vld [vmem:[%s7285_s14 + $0x3ac0] sm:$0xff]  ;;  %v6749_v7 = vpack.c.bf16 %v2211_v0, %v2209_v63 }
 0x36e   : > { %v1204_v0 = vld [vmem:[%s7285_s14 + $0x1b60] sm:$0xff] }
 0x36f   : > { %5688 = vmatpush1.bf16.msra.mxu1 %v5687_v17  ;;  %v323_v17 = vld [vmem:[%s7295_s11 + $0x1d8] sm:$0xff] }
 0x370   : > { %6712 = vmatpush1.bf16.msra.mxu0 %v6711_v18  ;;  %5690 = vmatprep.subr.bf16.mxu1 %v5689_v19  ;;  %v6731_v18 = vpack.c.bf16 %v2190_v10, %v2188_v8  ;;  %v5709_v19 = vpack.c.bf16 %v1171_v12, %v1169_v11  ;;  %v2210_v8 = vld [vmem:[%s7285_s14 + $0x3ad0] sm:$0xff]  ;;  %v1191_v10 = vld [vmem:[%s7285_s14 + $0x1af8] sm:$0xff]  ;;  %v2213_v11 = vld [vmem:[%s7285_s14 + $0x3ae8] sm:$0xff] }
 0x371   : > { %6714 = vmatprep.subr.bf16.mxu0 %v6713_v23  ;;  %v6733_v23 = vpack.c.bf16 %v2195_v14, %v2193_v13  ;;  %v2215_v12 = vld [vmem:[%s7285_s14 + $0x3af8] sm:$0xff]  ;;  %v6751_v14 = vpack.c.bf16 %v2210_v8, %v2208_v6 }
 0x372   : > { %v1211_v6 = vld [vmem:[%s7285_s14 + $0x1b98] sm:$0xff] }
 0x373   : > { %5692 = vmatpush1.bf16.msra.mxu1 %v5691_v29  ;;  %v5711_v29 = vpack.c.bf16 %v1170_v21, %v1168_v20  ;;  %v2214_v20 = vld [vmem:[%s7285_s14 + $0x3af0] sm:$0xff]  ;;  %v1193_v21 = vld [vmem:[%s7285_s14 + $0x1b08] sm:$0xff]  ;;  %v2235_v8 = vld [vmem:[%s7285_s14 + $0x3b98] sm:$0xff] }
 0x374   : > { %6716 = vmatpush1.bf16.msra.mxu0 %v6715_v30  ;;  %5694 = vmatprep.subr.bf16.mxu1 %v5693_v31  ;;  %v6735_v30 = vpack.c.bf16 %v2194_v24, %v2192_v22  ;;  %v5713_v31 = vpack.c.bf16 %v1175_v26, %v1173_v25  ;;  %v1195_v22 = vld [vmem:[%s7285_s14 + $0x1b18] sm:$0xff] }
 0x375   : > { %6718 = vmatprep.subr.bf16.mxu0 %v6717_v35  ;;  %v6737_v35 = vpack.c.bf16 %v2199_v28, %v2197_v27  ;;  %v2219_v24 = vld [vmem:[%s7285_s14 + $0x3b18] sm:$0xff]  ;;  %v5733_v27 = vpack.c.bf16 %v1195_v22, %v1193_v21  ;;  %v1192_v28 = vld [vmem:[%s7285_s14 + $0x1b00] sm:$0xff] }
 0x377   : > { %5696 = vmatpush1.bf16.msra.mxu1 %v5695_v41  ;;  %v5715_v41 = vpack.c.bf16 %v1174_v33, %v1172_v32  ;;  %v2218_v32 = vld [vmem:[%s7285_s14 + $0x3b10] sm:$0xff]  ;;  %v1197_v33 = vld [vmem:[%s7285_s14 + $0x1b28] sm:$0xff] }
 0x378   : > { %6720 = vmatpush1.bf16.msra.mxu0 %v6719_v42  ;;  %5698 = vmatprep.subr.bf16.mxu1 %v5697_v43  ;;  %v6739_v42 = vpack.c.bf16 %v2198_v36, %v2196_v34  ;;  %v5717_v43 = vpack.c.bf16 %v1179_v38, %v1177_v37  ;;  %v1199_v34 = vld [vmem:[%s7285_s14 + $0x1b38] sm:$0xff] }
 0x379   : > { %6722 = vmatprep.subr.bf16.mxu0 %v6721_v47  ;;  %v6741_v47 = vpack.c.bf16 %v2203_v40, %v2201_v39  ;;  %v2223_v36 = vld [vmem:[%s7285_s14 + $0x3b38] sm:$0xff]  ;;  %v5737_v39 = vpack.c.bf16 %v1199_v34, %v1197_v33  ;;  %v1196_v40 = vld [vmem:[%s7285_s14 + $0x1b20] sm:$0xff] }
 0x37b   : > { %5700 = vmatpush1.bf16.msra.mxu1 %v5699_v53  ;;  %v5719_v53 = vpack.c.bf16 %v1178_v45, %v1176_v44  ;;  %v2222_v44 = vld [vmem:[%s7285_s14 + $0x3b30] sm:$0xff]  ;;  %v1201_v45 = vld [vmem:[%s7285_s14 + $0x1b48] sm:$0xff] }
 0x37c   : > { %6724 = vmatpush1.bf16.msra.mxu0 %v6723_v54  ;;  %5702 = vmatprep.subr.bf16.mxu1 %v5701_v55  ;;  %v6743_v54 = vpack.c.bf16 %v2202_v48, %v2200_v46  ;;  %v5721_v55 = vpack.c.bf16 %v1183_v50, %v1181_v49  ;;  %v1203_v46 = vld [vmem:[%s7285_s14 + $0x1b58] sm:$0xff] }
 0x37d   : > { %6726 = vmatprep.subr.bf16.mxu0 %v6725_v59  ;;  %v6745_v59 = vpack.c.bf16 %v2207_v52, %v2205_v51  ;;  %v2227_v48 = vld [vmem:[%s7285_s14 + $0x3b58] sm:$0xff]  ;;  %v5741_v51 = vpack.c.bf16 %v1203_v46, %v1201_v45  ;;  %v1200_v52 = vld [vmem:[%s7285_s14 + $0x1b40] sm:$0xff] }
 0x37e   : > { %3293 = vmatmul.mubr.f32.vlgmr.msra.gmra.mrb[0].mxu1 %v288_v1  ;;  %v5723_v1 = vpack.c.bf16 %v1182_v57, %v1180_v56  ;;  %v2226_v56 = vld [vmem:[%s7285_s14 + $0x3b50] sm:$0xff]  ;;  %v1205_v57 = vld [vmem:[%s7285_s14 + $0x1b68] sm:$0xff] }
 0x37f   : > { %5704 = vmatpush1.bf16.msra.mxu1 %v5703_v2  ;;  %4429 = vmatmul.mubr.f32.vlgmr.msra.gmra.mrb[0].mxu0 %v320_v3  ;;  %v6747_v2 = vpack.c.bf16 %v2206_v60, %v2204_v58  ;;  %v5725_v3 = vpack.c.bf16 %v1187_v62, %v1185_v61  ;;  %v1207_v58 = vld [vmem:[%s7285_s14 + $0x1b78] sm:$0xff] }
 0x380   : > { %6728 = vmatpush1.bf16.msra.mxu0 %v6727_v4  ;;  %5706 = vmatprep.subr.bf16.mxu1 %v5705_v5  ;;  %v1184_v4 = vld [vmem:[%s7285_s14 + $0x1ac0] sm:$0xff]  ;;  %v1186_v5 = vld [vmem:[%s7285_s14 + $0x1ad0] sm:$0xff]  ;;  %v2231_v60 = vld [vmem:[%s7285_s14 + $0x3b78] sm:$0xff]  ;;  %v5745_v63 = vpack.c.bf16 %v1207_v58, %v1205_v57 }
 0x381   : > { %6730 = vmatprep.subr.bf16.mxu0 %v6729_v9  ;;  %3363 = vmatprep.mubr.f32.mxu1 %v291_v15  ;;  %v1189_v9 = vld [vmem:[%s7285_s14 + $0x1ae8] sm:$0xff]  ;;  %v5727_v13 = vpack.c.bf16 %v1186_v5, %v1184_v4  ;;  %v2230_v4 = vld [vmem:[%s7285_s14 + $0x3b70] sm:$0xff] }
 0x382   : > { %4499 = vmatprep.mubr.f32.mxu0 %v323_v17  ;;  %v5729_v15 = vpack.c.bf16 %v1191_v10, %v1189_v9  ;;  %v1190_v17 = vld [vmem:[%s7285_s14 + $0x1af0] sm:$0xff]  ;;  %v1209_v5 = vld [vmem:[%s7285_s14 + $0x1b88] sm:$0xff] }
 0x383   : > { %5708 = vmatpush1.bf16.msra.mxu1 %v5707_v16  ;;  %v1188_v16 = vld [vmem:[%s7285_s14 + $0x1ae0] sm:$0xff] }
 0x384   : > { %6732 = vmatpush1.bf16.msra.mxu0 %v6731_v18  ;;  %5710 = vmatprep.subr.bf16.mxu1 %v5709_v19  ;;  %v2212_v18 = vld [vmem:[%s7285_s14 + $0x3ae0] sm:$0xff]  ;;  %v6753_v19 = vpack.c.bf16 %v2215_v12, %v2213_v11  ;;  %v5731_v25 = vpack.c.bf16 %v1190_v17, %v1188_v16  ;;  %v5749_v11 = vpack.c.bf16 %v1211_v6, %v1209_v5  ;;  %v2234_v16 = vld [vmem:[%s7285_s14 + $0x3b90] sm:$0xff]  ;;  %v1213_v17 = vld [vmem:[%s7285_s14 + $0x1ba8] sm:$0xff] }
 0x385   : > { %6734 = vmatprep.subr.bf16.mxu0 %v6733_v23  ;;  %v2217_v23 = vld [vmem:[%s7285_s14 + $0x3b08] sm:$0xff]  ;;  %v6755_v26 = vpack.c.bf16 %v2214_v20, %v2212_v18  ;;  %v1208_v12 = vld [vmem:[%s7285_s14 + $0x1b80] sm:$0xff]  ;;  %v1215_v18 = vld [vmem:[%s7285_s14 + $0x1bb8] sm:$0xff] }
 0x386   : > { %v2239_v20 = vld [vmem:[%s7285_s14 + $0x3bb8] sm:$0xff]  ;;  %v290_v5 = vld [vmem:[%s7295_s11 + $0xd0] sm:$0xff] }
 0x387   : > { %5712 = vmatpush1.bf16.msra.mxu1 %v5711_v29  ;;  %v1194_v29 = vld [vmem:[%s7285_s14 + $0x1b10] sm:$0xff] }
 0x388   : > { %6736 = vmatpush1.bf16.msra.mxu0 %v6735_v30  ;;  %5714 = vmatprep.subr.bf16.mxu1 %v5713_v31  ;;  %v2216_v30 = vld [vmem:[%s7285_s14 + $0x3b00] sm:$0xff]  ;;  %v6757_v31 = vpack.c.bf16 %v2219_v24, %v2217_v23  ;;  %v5735_v37 = vpack.c.bf16 %v1194_v29, %v1192_v28  ;;  %v5753_v23 = vpack.c.bf16 %v1215_v18, %v1213_v17  ;;  %v2238_v28 = vld [vmem:[%s7285_s14 + $0x3bb0] sm:$0xff]  ;;  %v1217_v29 = vld [vmem:[%s7285_s14 + $0x1bc8] sm:$0xff] }
 0x389   : > { %6738 = vmatprep.subr.bf16.mxu0 %v6737_v35  ;;  %v2221_v35 = vld [vmem:[%s7285_s14 + $0x3b28] sm:$0xff]  ;;  %v6759_v38 = vpack.c.bf16 %v2218_v32, %v2216_v30  ;;  %v1212_v24 = vld [vmem:[%s7285_s14 + $0x1ba0] sm:$0xff]  ;;  %v1219_v30 = vld [vmem:[%s7285_s14 + $0x1bd8] sm:$0xff] }
 0x38a   : > { %v2243_v32 = vld [vmem:[%s7285_s14 + $0x3bd8] sm:$0xff]  ;;  %v2257_v17 = vld [vmem:[%s7285_s14 + $0x3c48] sm:$0xff] }
 0x38b   : > { %5716 = vmatpush1.bf16.msra.mxu1 %v5715_v41  ;;  %v1198_v41 = vld [vmem:[%s7285_s14 + $0x1b30] sm:$0xff]  ;;  %v2259_v18 = vld [vmem:[%s7285_s14 + $0x3c58] sm:$0xff] }
 0x38c   : > { %6740 = vmatpush1.bf16.msra.mxu0 %v6739_v42  ;;  %5718 = vmatprep.subr.bf16.mxu1 %v5717_v43  ;;  %v2220_v42 = vld [vmem:[%s7285_s14 + $0x3b20] sm:$0xff]  ;;  %v6761_v43 = vpack.c.bf16 %v2223_v36, %v2221_v35  ;;  %v5739_v49 = vpack.c.bf16 %v1198_v41, %v1196_v40  ;;  %v5757_v35 = vpack.c.bf16 %v1219_v30, %v1217_v29  ;;  %v2242_v40 = vld [vmem:[%s7285_s14 + $0x3bd0] sm:$0xff]  ;;  %v1221_v41 = vld [vmem:[%s7285_s14 + $0x1be8] sm:$0xff] }
 0x38d   : > { %6742 = vmatprep.subr.bf16.mxu0 %v6741_v47  ;;  %v2225_v47 = vld [vmem:[%s7285_s14 + $0x3b48] sm:$0xff]  ;;  %v6763_v50 = vpack.c.bf16 %v2222_v44, %v2220_v42  ;;  %v1216_v36 = vld [vmem:[%s7285_s14 + $0x1bc0] sm:$0xff]  ;;  %v1223_v42 = vld [vmem:[%s7285_s14 + $0x1bf8] sm:$0xff] }
 0x38e   : > { %v2247_v44 = vld [vmem:[%s7285_s14 + $0x3bf8] sm:$0xff]  ;;  %v1237_v29 = vld [vmem:[%s7285_s14 + $0x1c68] sm:$0xff] }
 0x38f   : > { %5720 = vmatpush1.bf16.msra.mxu1 %v5719_v53  ;;  %v1202_v53 = vld [vmem:[%s7285_s14 + $0x1b50] sm:$0xff]  ;;  %v1239_v30 = vld [vmem:[%s7285_s14 + $0x1c78] sm:$0xff] }
 0x390   : > { %6744 = vmatpush1.bf16.msra.mxu0 %v6743_v54  ;;  %5722 = vmatprep.subr.bf16.mxu1 %v5721_v55  ;;  %v2224_v54 = vld [vmem:[%s7285_s14 + $0x3b40] sm:$0xff]  ;;  %v6765_v55 = vpack.c.bf16 %v2227_v48, %v2225_v47  ;;  %v5743_v61 = vpack.c.bf16 %v1202_v53, %v1200_v52  ;;  %v5761_v47 = vpack.c.bf16 %v1223_v42, %v1221_v41  ;;  %v2246_v52 = vld [vmem:[%s7285_s14 + $0x3bf0] sm:$0xff]  ;;  %v1225_v53 = vld [vmem:[%s7285_s14 + $0x1c08] sm:$0xff] }
 0x391   : > { %6746 = vmatprep.subr.bf16.mxu0 %v6745_v59  ;;  %v2229_v59 = vld [vmem:[%s7285_s14 + $0x3b68] sm:$0xff]  ;;  %v6767_v62 = vpack.c.bf16 %v2226_v56, %v2224_v54  ;;  %v1220_v48 = vld [vmem:[%s7285_s14 + $0x1be0] sm:$0xff]  ;;  %v1227_v54 = vld [vmem:[%s7285_s14 + $0x1c18] sm:$0xff] }
 0x392   : > { %v2251_v56 = vld [vmem:[%s7285_s14 + $0x3c18] sm:$0xff]  ;;  %v1241_v41 = vld [vmem:[%s7285_s14 + $0x1c88] sm:$0xff] }
 0x393   : > { %5724 = vmatpush1.bf16.msra.mxu1 %v5723_v1  ;;  %v1206_v1 = vld [vmem:[%s7285_s14 + $0x1b70] sm:$0xff]  ;;  %v1243_v42 = vld [vmem:[%s7285_s14 + $0x1c98] sm:$0xff] }
 0x394   : > { %6748 = vmatpush1.bf16.msra.mxu0 %v6747_v2  ;;  %5726 = vmatprep.subr.bf16.mxu1 %v5725_v3  ;;  %v2228_v2 = vld [vmem:[%s7285_s14 + $0x3b60] sm:$0xff]  ;;  %v6769_v3 = vpack.c.bf16 %v2231_v60, %v2229_v59  ;;  %v5747_v9 = vpack.c.bf16 %v1206_v1, %v1204_v0  ;;  %v5765_v59 = vpack.c.bf16 %v1227_v54, %v1225_v53  ;;  %v2250_v0 = vld [vmem:[%s7285_s14 + $0x3c10] sm:$0xff]  ;;  %v1229_v1 = vld [vmem:[%s7285_s14 + $0x1c28] sm:$0xff] }
 0x395   : > { %6750 = vmatprep.subr.bf16.mxu0 %v6749_v7  ;;  %v2233_v7 = vld [vmem:[%s7285_s14 + $0x3b88] sm:$0xff]  ;;  %v6771_v10 = vpack.c.bf16 %v2230_v4, %v2228_v2  ;;  %v1224_v60 = vld [vmem:[%s7285_s14 + $0x1c00] sm:$0xff]  ;;  %v1231_v2 = vld [vmem:[%s7285_s14 + $0x1c38] sm:$0xff] }
 0x396   : > { %v2255_v4 = vld [vmem:[%s7285_s14 + $0x3c38] sm:$0xff]  ;;  %v1245_v53 = vld [vmem:[%s7285_s14 + $0x1ca8] sm:$0xff] }
 0x397   : > { %5728 = vmatpush1.bf16.msra.mxu1 %v5727_v13  ;;  %v1210_v13 = vld [vmem:[%s7285_s14 + $0x1b90] sm:$0xff]  ;;  %v1247_v54 = vld [vmem:[%s7285_s14 + $0x1cb8] sm:$0xff] }
 0x398   : > { %6752 = vmatpush1.bf16.msra.mxu0 %v6751_v14  ;;  %5730 = vmatprep.subr.bf16.mxu1 %v5729_v15  ;;  %v2232_v14 = vld [vmem:[%s7285_s14 + $0x3b80] sm:$0xff]  ;;  %v6773_v15 = vpack.c.bf16 %v2235_v8, %v2233_v7  ;;  %v5751_v21 = vpack.c.bf16 %v1210_v13, %v1208_v12 }
 0x399   : > { %6754 = vmatprep.subr.bf16.mxu0 %v6753_v19  ;;  %v2237_v19 = vld [vmem:[%s7285_s14 + $0x3ba8] sm:$0xff]  ;;  %v6775_v22 = vpack.c.bf16 %v2234_v16, %v2232_v14  ;;  %v322_v7 = vld [vmem:[%s7295_s11 + $0x1d0] sm:$0xff]  ;;  %v2254_v14 = vld [vmem:[%s7285_s14 + $0x3c30] sm:$0xff] }
 0x39a   : > { %v2252_v12 = vld [vmem:[%s7285_s14 + $0x3c20] sm:$0xff]  ;;  %v1235_v16 = vld [vmem:[%s7285_s14 + $0x1c58] sm:$0xff] }
 0x39b   : > { %5732 = vmatpush1.bf16.msra.mxu1 %v5731_v25  ;;  %v1214_v25 = vld [vmem:[%s7285_s14 + $0x1bb0] sm:$0xff] }
 0x39c   : > { %6756 = vmatpush1.bf16.msra.mxu0 %v6755_v26  ;;  %5734 = vmatprep.subr.bf16.mxu1 %v5733_v27  ;;  %v2236_v26 = vld [vmem:[%s7285_s14 + $0x3ba0] sm:$0xff]  ;;  %v6777_v27 = vpack.c.bf16 %v2239_v20, %v2237_v19  ;;  %v5755_v33 = vpack.c.bf16 %v1214_v25, %v1212_v24  ;;  %v293_v19 = vld [vmem:[%s7295_s11 + $0xe8] sm:$0xff]  ;;  %v1234_v25 = vld [vmem:[%s7285_s14 + $0x1c50] sm:$0xff] }
 0x39d   : > { %6758 = vmatprep.subr.bf16.mxu0 %v6757_v31  ;;  %v2241_v31 = vld [vmem:[%s7285_s14 + $0x3bc8] sm:$0xff]  ;;  %v6779_v34 = vpack.c.bf16 %v2238_v28, %v2236_v26  ;;  %v1232_v24 = vld [vmem:[%s7285_s14 + $0x1c40] sm:$0xff]  ;;  %v2258_v28 = vld [vmem:[%s7285_s14 + $0x3c50] sm:$0xff] }
 0x39e   : > { %v2256_v26 = vld [vmem:[%s7285_s14 + $0x3c40] sm:$0xff] }
 0x39f   : > { %5736 = vmatpush1.bf16.msra.mxu1 %v5735_v37  ;;  %v1218_v37 = vld [vmem:[%s7285_s14 + $0x1bd0] sm:$0xff] }
 0x3a0   : > { %6760 = vmatpush1.bf16.msra.mxu0 %v6759_v38  ;;  %5738 = vmatprep.subr.bf16.mxu1 %v5737_v39  ;;  %v2240_v38 = vld [vmem:[%s7285_s14 + $0x3bc0] sm:$0xff]  ;;  %v6781_v39 = vpack.c.bf16 %v2243_v32, %v2241_v31  ;;  %v5759_v45 = vpack.c.bf16 %v1218_v37, %v1216_v36  ;;  %v2261_v31 = vld [vmem:[%s7285_s14 + $0x3c68] sm:$0xff]  ;;  %v2263_v32 = vld [vmem:[%s7285_s14 + $0x3c78] sm:$0xff] }
 0x3a1   : > { %6762 = vmatprep.subr.bf16.mxu0 %v6761_v43  ;;  %v2245_v43 = vld [vmem:[%s7285_s14 + $0x3be8] sm:$0xff]  ;;  %v6783_v46 = vpack.c.bf16 %v2242_v40, %v2240_v38  ;;  %v1236_v36 = vld [vmem:[%s7285_s14 + $0x1c60] sm:$0xff]  ;;  %v1238_v37 = vld [vmem:[%s7285_s14 + $0x1c70] sm:$0xff] }
 0x3a2   : > { %v2260_v38 = vld [vmem:[%s7285_s14 + $0x3c60] sm:$0xff]  ;;  %v2262_v40 = vld [vmem:[%s7285_s14 + $0x3c70] sm:$0xff] }
 0x3a3   : > { %5740 = vmatpush1.bf16.msra.mxu1 %v5739_v49  ;;  %v1222_v49 = vld [vmem:[%s7285_s14 + $0x1bf0] sm:$0xff] }
 0x3a4   : > { %6764 = vmatpush1.bf16.msra.mxu0 %v6763_v50  ;;  %5742 = vmatprep.subr.bf16.mxu1 %v5741_v51  ;;  %v2244_v50 = vld [vmem:[%s7285_s14 + $0x3be0] sm:$0xff]  ;;  %v6785_v51 = vpack.c.bf16 %v2247_v44, %v2245_v43  ;;  %v5763_v57 = vpack.c.bf16 %v1222_v49, %v1220_v48  ;;  %v2265_v43 = vld [vmem:[%s7285_s14 + $0x3c88] sm:$0xff]  ;;  %v2267_v44 = vld [vmem:[%s7285_s14 + $0x3c98] sm:$0xff] }
 0x3a5   : > { %6766 = vmatprep.subr.bf16.mxu0 %v6765_v55  ;;  %v2249_v55 = vld [vmem:[%s7285_s14 + $0x3c08] sm:$0xff]  ;;  %v6787_v58 = vpack.c.bf16 %v2246_v52, %v2244_v50  ;;  %v1240_v48 = vld [vmem:[%s7285_s14 + $0x1c80] sm:$0xff]  ;;  %v1242_v49 = vld [vmem:[%s7285_s14 + $0x1c90] sm:$0xff] }
 0x3a6   : > { %v2264_v50 = vld [vmem:[%s7285_s14 + $0x3c80] sm:$0xff]  ;;  %v2266_v52 = vld [vmem:[%s7285_s14 + $0x3c90] sm:$0xff] }
 0x3a7   : > { %5744 = vmatpush1.bf16.msra.mxu1 %v5743_v61  ;;  %v1226_v61 = vld [vmem:[%s7285_s14 + $0x1c10] sm:$0xff] }
 0x3a8   : > { %6768 = vmatpush1.bf16.msra.mxu0 %v6767_v62  ;;  %5746 = vmatprep.subr.bf16.mxu1 %v5745_v63  ;;  %v2248_v62 = vld [vmem:[%s7285_s14 + $0x3c00] sm:$0xff]  ;;  %v6789_v63 = vpack.c.bf16 %v2251_v56, %v2249_v55  ;;  %v5767_v6 = vpack.c.bf16 %v1226_v61, %v1224_v60  ;;  %v2269_v55 = vld [vmem:[%s7285_s14 + $0x3ca8] sm:$0xff]  ;;  %v2271_v56 = vld [vmem:[%s7285_s14 + $0x3cb8] sm:$0xff] }
 0x3a9   : > { %6770 = vmatprep.subr.bf16.mxu0 %v6769_v3  ;;  %v2253_v3 = vld [vmem:[%s7285_s14 + $0x3c28] sm:$0xff]  ;;  %v6791_v8 = vpack.c.bf16 %v2250_v0, %v2248_v62  ;;  %v1244_v60 = vld [vmem:[%s7285_s14 + $0x1ca0] sm:$0xff]  ;;  %v1246_v61 = vld [vmem:[%s7285_s14 + $0x1cb0] sm:$0xff] }
 0x3aa   : > { %v6793_v13 = vpack.c.bf16 %v2255_v4, %v2253_v3  ;;  %v2268_v62 = vld [vmem:[%s7285_s14 + $0x3ca0] sm:$0xff]  ;;  %v2270_v0 = vld [vmem:[%s7285_s14 + $0x3cb0] sm:$0xff]  ;;  %v2273_v3 = vld [vmem:[%s7285_s14 + $0x3cc8] sm:$0xff] }
 0x3ab   : > { %5748 = vmatpush1.bf16.msra.mxu1 %v5747_v9  ;;  %v5769_v9 = vpack.c.bf16 %v1231_v2, %v1229_v1  ;;  %v1249_v1 = vld [vmem:[%s7285_s14 + $0x1cc8] sm:$0xff]  ;;  %v1251_v2 = vld [vmem:[%s7285_s14 + $0x1cd8] sm:$0xff] }
 0x3ac   : > { %6772 = vmatpush1.bf16.msra.mxu0 %v6771_v10  ;;  %5750 = vmatprep.subr.bf16.mxu1 %v5749_v11  ;;  %v1228_v10 = vld [vmem:[%s7285_s14 + $0x1c20] sm:$0xff]  ;;  %v1230_v11 = vld [vmem:[%s7285_s14 + $0x1c30] sm:$0xff]  ;;  %v2275_v4 = vld [vmem:[%s7285_s14 + $0x3cd8] sm:$0xff] }
 0x3ad   : > { %6774 = vmatprep.subr.bf16.mxu0 %v6773_v15  ;;  %v1233_v15 = vld [vmem:[%s7285_s14 + $0x1c48] sm:$0xff]  ;;  %v5771_v20 = vpack.c.bf16 %v1230_v11, %v1228_v10  ;;  %v2272_v10 = vld [vmem:[%s7285_s14 + $0x3cc0] sm:$0xff]  ;;  %v6813_v11 = vpack.c.bf16 %v2275_v4, %v2273_v3 }
 0x3ae   : > { %v1268_v4 = vld [vmem:[%s7285_s14 + $0x1d60] sm:$0xff] }
 0x3af   : > { %5752 = vmatpush1.bf16.msra.mxu1 %v5751_v21  ;;  %v325_v21 = vld [vmem:[%s7295_s11 + $0x1e8] sm:$0xff] }
 0x3b0   : > { %6776 = vmatpush1.bf16.msra.mxu0 %v6775_v22  ;;  %5754 = vmatprep.subr.bf16.mxu1 %v5753_v23  ;;  %v6795_v22 = vpack.c.bf16 %v2254_v14, %v2252_v12  ;;  %v5773_v23 = vpack.c.bf16 %v1235_v16, %v1233_v15  ;;  %v2274_v12 = vld [vmem:[%s7285_s14 + $0x3cd0] sm:$0xff]  ;;  %v1255_v14 = vld [vmem:[%s7285_s14 + $0x1cf8] sm:$0xff]  ;;  %v2277_v15 = vld [vmem:[%s7285_s14 + $0x3ce8] sm:$0xff] }
 0x3b1   : > { %6778 = vmatprep.subr.bf16.mxu0 %v6777_v27  ;;  %v6797_v27 = vpack.c.bf16 %v2259_v18, %v2257_v17  ;;  %v2279_v16 = vld [vmem:[%s7285_s14 + $0x3cf8] sm:$0xff]  ;;  %v6815_v18 = vpack.c.bf16 %v2274_v12, %v2272_v10 }
 0x3b2   : > { %v1275_v10 = vld [vmem:[%s7285_s14 + $0x1d98] sm:$0xff] }
 0x3b3   : > { %5756 = vmatpush1.bf16.msra.mxu1 %v5755_v33  ;;  %v5775_v33 = vpack.c.bf16 %v1234_v25, %v1232_v24  ;;  %v2278_v24 = vld [vmem:[%s7285_s14 + $0x3cf0] sm:$0xff]  ;;  %v1257_v25 = vld [vmem:[%s7285_s14 + $0x1d08] sm:$0xff]  ;;  %v2299_v12 = vld [vmem:[%s7285_s14 + $0x3d98] sm:$0xff] }
 0x3b4   : > { %6780 = vmatpush1.bf16.msra.mxu0 %v6779_v34  ;;  %5758 = vmatprep.subr.bf16.mxu1 %v5757_v35  ;;  %v6799_v34 = vpack.c.bf16 %v2258_v28, %v2256_v26  ;;  %v5777_v35 = vpack.c.bf16 %v1239_v30, %v1237_v29  ;;  %v1259_v26 = vld [vmem:[%s7285_s14 + $0x1d18] sm:$0xff] }
 0x3b5   : > { %6782 = vmatprep.subr.bf16.mxu0 %v6781_v39  ;;  %v6801_v39 = vpack.c.bf16 %v2263_v32, %v2261_v31  ;;  %v2283_v28 = vld [vmem:[%s7285_s14 + $0x3d18] sm:$0xff]  ;;  %v5797_v31 = vpack.c.bf16 %v1259_v26, %v1257_v25  ;;  %v1256_v32 = vld [vmem:[%s7285_s14 + $0x1d00] sm:$0xff] }
 0x3b7   : > { %5760 = vmatpush1.bf16.msra.mxu1 %v5759_v45  ;;  %v5779_v45 = vpack.c.bf16 %v1238_v37, %v1236_v36  ;;  %v2282_v36 = vld [vmem:[%s7285_s14 + $0x3d10] sm:$0xff]  ;;  %v1261_v37 = vld [vmem:[%s7285_s14 + $0x1d28] sm:$0xff] }
 0x3b8   : > { %6784 = vmatpush1.bf16.msra.mxu0 %v6783_v46  ;;  %5762 = vmatprep.subr.bf16.mxu1 %v5761_v47  ;;  %v6803_v46 = vpack.c.bf16 %v2262_v40, %v2260_v38  ;;  %v5781_v47 = vpack.c.bf16 %v1243_v42, %v1241_v41  ;;  %v1263_v38 = vld [vmem:[%s7285_s14 + $0x1d38] sm:$0xff] }
 0x3b9   : > { %6786 = vmatprep.subr.bf16.mxu0 %v6785_v51  ;;  %v6805_v51 = vpack.c.bf16 %v2267_v44, %v2265_v43  ;;  %v2287_v40 = vld [vmem:[%s7285_s14 + $0x3d38] sm:$0xff]  ;;  %v5801_v43 = vpack.c.bf16 %v1263_v38, %v1261_v37  ;;  %v1260_v44 = vld [vmem:[%s7285_s14 + $0x1d20] sm:$0xff] }
 0x3bb   : > { %5764 = vmatpush1.bf16.msra.mxu1 %v5763_v57  ;;  %v5783_v57 = vpack.c.bf16 %v1242_v49, %v1240_v48  ;;  %v2286_v48 = vld [vmem:[%s7285_s14 + $0x3d30] sm:$0xff]  ;;  %v1265_v49 = vld [vmem:[%s7285_s14 + $0x1d48] sm:$0xff] }
 0x3bc   : > { %6788 = vmatpush1.bf16.msra.mxu0 %v6787_v58  ;;  %5766 = vmatprep.subr.bf16.mxu1 %v5765_v59  ;;  %v6807_v58 = vpack.c.bf16 %v2266_v52, %v2264_v50  ;;  %v5785_v59 = vpack.c.bf16 %v1247_v54, %v1245_v53  ;;  %v1267_v50 = vld [vmem:[%s7285_s14 + $0x1d58] sm:$0xff] }
 0x3bd   : > { %6790 = vmatprep.subr.bf16.mxu0 %v6789_v63  ;;  %v6809_v63 = vpack.c.bf16 %v2271_v56, %v2269_v55  ;;  %v2291_v52 = vld [vmem:[%s7285_s14 + $0x3d58] sm:$0xff]  ;;  %v5805_v55 = vpack.c.bf16 %v1267_v50, %v1265_v49  ;;  %v1264_v56 = vld [vmem:[%s7285_s14 + $0x1d40] sm:$0xff] }
 0x3be   : > { %3364 = vmatmul.mubr.f32.vlgmr.msra.gmra.mrb[0].mxu1 %v290_v5  ;;  %v5787_v5 = vpack.c.bf16 %v1246_v61, %v1244_v60  ;;  %v2290_v60 = vld [vmem:[%s7285_s14 + $0x3d50] sm:$0xff]  ;;  %v1269_v61 = vld [vmem:[%s7285_s14 + $0x1d68] sm:$0xff] }
 0x3bf   : > { %5768 = vmatpush1.bf16.msra.mxu1 %v5767_v6  ;;  %4500 = vmatmul.mubr.f32.vlgmr.msra.gmra.mrb[0].mxu0 %v322_v7  ;;  %v6811_v6 = vpack.c.bf16 %v2270_v0, %v2268_v62  ;;  %v5789_v7 = vpack.c.bf16 %v1251_v2, %v1249_v1  ;;  %v1271_v62 = vld [vmem:[%s7285_s14 + $0x1d78] sm:$0xff] }
 0x3c0   : > { %6792 = vmatpush1.bf16.msra.mxu0 %v6791_v8  ;;  %5770 = vmatprep.subr.bf16.mxu1 %v5769_v9  ;;  %v1248_v8 = vld [vmem:[%s7285_s14 + $0x1cc0] sm:$0xff]  ;;  %v1250_v9 = vld [vmem:[%s7285_s14 + $0x1cd0] sm:$0xff]  ;;  %v2295_v0 = vld [vmem:[%s7285_s14 + $0x3d78] sm:$0xff]  ;;  %v5809_v3 = vpack.c.bf16 %v1271_v62, %v1269_v61 }
 0x3c1   : > { %6794 = vmatprep.subr.bf16.mxu0 %v6793_v13  ;;  %3434 = vmatprep.mubr.f32.mxu1 %v293_v19  ;;  %v1253_v13 = vld [vmem:[%s7285_s14 + $0x1ce8] sm:$0xff]  ;;  %v5791_v17 = vpack.c.bf16 %v1250_v9, %v1248_v8  ;;  %v2294_v8 = vld [vmem:[%s7285_s14 + $0x3d70] sm:$0xff] }
 0x3c2   : > { %4570 = vmatprep.mubr.f32.mxu0 %v325_v21  ;;  %v5793_v19 = vpack.c.bf16 %v1255_v14, %v1253_v13  ;;  %v1254_v21 = vld [vmem:[%s7285_s14 + $0x1cf0] sm:$0xff]  ;;  %v1273_v9 = vld [vmem:[%s7285_s14 + $0x1d88] sm:$0xff] }
 0x3c3   : > { %5772 = vmatpush1.bf16.msra.mxu1 %v5771_v20  ;;  %v1252_v20 = vld [vmem:[%s7285_s14 + $0x1ce0] sm:$0xff] }
 0x3c4   : > { %6796 = vmatpush1.bf16.msra.mxu0 %v6795_v22  ;;  %5774 = vmatprep.subr.bf16.mxu1 %v5773_v23  ;;  %v2276_v22 = vld [vmem:[%s7285_s14 + $0x3ce0] sm:$0xff]  ;;  %v6817_v23 = vpack.c.bf16 %v2279_v16, %v2277_v15  ;;  %v5795_v29 = vpack.c.bf16 %v1254_v21, %v1252_v20  ;;  %v5813_v15 = vpack.c.bf16 %v1275_v10, %v1273_v9  ;;  %v2298_v20 = vld [vmem:[%s7285_s14 + $0x3d90] sm:$0xff]  ;;  %v1277_v21 = vld [vmem:[%s7285_s14 + $0x1da8] sm:$0xff] }
 0x3c5   : > { %6798 = vmatprep.subr.bf16.mxu0 %v6797_v27  ;;  %v2281_v27 = vld [vmem:[%s7285_s14 + $0x3d08] sm:$0xff]  ;;  %v6819_v30 = vpack.c.bf16 %v2278_v24, %v2276_v22  ;;  %v1272_v16 = vld [vmem:[%s7285_s14 + $0x1d80] sm:$0xff]  ;;  %v1279_v22 = vld [vmem:[%s7285_s14 + $0x1db8] sm:$0xff] }
 0x3c6   : > { %v2303_v24 = vld [vmem:[%s7285_s14 + $0x3db8] sm:$0xff]  ;;  %v292_v9 = vld [vmem:[%s7295_s11 + $0xe0] sm:$0xff] }
 0x3c7   : > { %5776 = vmatpush1.bf16.msra.mxu1 %v5775_v33  ;;  %v1258_v33 = vld [vmem:[%s7285_s14 + $0x1d10] sm:$0xff] }
 0x3c8   : > { %6800 = vmatpush1.bf16.msra.mxu0 %v6799_v34  ;;  %5778 = vmatprep.subr.bf16.mxu1 %v5777_v35  ;;  %v2280_v34 = vld [vmem:[%s7285_s14 + $0x3d00] sm:$0xff]  ;;  %v6821_v35 = vpack.c.bf16 %v2283_v28, %v2281_v27  ;;  %v5799_v41 = vpack.c.bf16 %v1258_v33, %v1256_v32  ;;  %v5817_v27 = vpack.c.bf16 %v1279_v22, %v1277_v21  ;;  %v2302_v32 = vld [vmem:[%s7285_s14 + $0x3db0] sm:$0xff]  ;;  %v1281_v33 = vld [vmem:[%s7285_s14 + $0x1dc8] sm:$0xff] }
 0x3c9   : > { %6802 = vmatprep.subr.bf16.mxu0 %v6801_v39  ;;  %v2285_v39 = vld [vmem:[%s7285_s14 + $0x3d28] sm:$0xff]  ;;  %v6823_v42 = vpack.c.bf16 %v2282_v36, %v2280_v34  ;;  %v1276_v28 = vld [vmem:[%s7285_s14 + $0x1da0] sm:$0xff]  ;;  %v1283_v34 = vld [vmem:[%s7285_s14 + $0x1dd8] sm:$0xff] }
 0x3ca   : > { %v2307_v36 = vld [vmem:[%s7285_s14 + $0x3dd8] sm:$0xff]  ;;  %v2321_v21 = vld [vmem:[%s7285_s14 + $0x3e48] sm:$0xff] }
 0x3cb   : > { %5780 = vmatpush1.bf16.msra.mxu1 %v5779_v45  ;;  %v1262_v45 = vld [vmem:[%s7285_s14 + $0x1d30] sm:$0xff]  ;;  %v2323_v22 = vld [vmem:[%s7285_s14 + $0x3e58] sm:$0xff] }
 0x3cc   : > { %6804 = vmatpush1.bf16.msra.mxu0 %v6803_v46  ;;  %5782 = vmatprep.subr.bf16.mxu1 %v5781_v47  ;;  %v2284_v46 = vld [vmem:[%s7285_s14 + $0x3d20] sm:$0xff]  ;;  %v6825_v47 = vpack.c.bf16 %v2287_v40, %v2285_v39  ;;  %v5803_v53 = vpack.c.bf16 %v1262_v45, %v1260_v44  ;;  %v5821_v39 = vpack.c.bf16 %v1283_v34, %v1281_v33  ;;  %v2306_v44 = vld [vmem:[%s7285_s14 + $0x3dd0] sm:$0xff]  ;;  %v1285_v45 = vld [vmem:[%s7285_s14 + $0x1de8] sm:$0xff] }
 0x3cd   : > { %6806 = vmatprep.subr.bf16.mxu0 %v6805_v51  ;;  %v2289_v51 = vld [vmem:[%s7285_s14 + $0x3d48] sm:$0xff]  ;;  %v6827_v54 = vpack.c.bf16 %v2286_v48, %v2284_v46  ;;  %v1280_v40 = vld [vmem:[%s7285_s14 + $0x1dc0] sm:$0xff]  ;;  %v1287_v46 = vld [vmem:[%s7285_s14 + $0x1df8] sm:$0xff] }
 0x3ce   : > { %v2311_v48 = vld [vmem:[%s7285_s14 + $0x3df8] sm:$0xff]  ;;  %v1301_v33 = vld [vmem:[%s7285_s14 + $0x1e68] sm:$0xff] }
 0x3cf   : > { %5784 = vmatpush1.bf16.msra.mxu1 %v5783_v57  ;;  %v1266_v57 = vld [vmem:[%s7285_s14 + $0x1d50] sm:$0xff]  ;;  %v1303_v34 = vld [vmem:[%s7285_s14 + $0x1e78] sm:$0xff] }
 0x3d0   : > { %6808 = vmatpush1.bf16.msra.mxu0 %v6807_v58  ;;  %5786 = vmatprep.subr.bf16.mxu1 %v5785_v59  ;;  %v2288_v58 = vld [vmem:[%s7285_s14 + $0x3d40] sm:$0xff]  ;;  %v6829_v59 = vpack.c.bf16 %v2291_v52, %v2289_v51  ;;  %v5807_v1 = vpack.c.bf16 %v1266_v57, %v1264_v56  ;;  %v5825_v51 = vpack.c.bf16 %v1287_v46, %v1285_v45  ;;  %v2310_v56 = vld [vmem:[%s7285_s14 + $0x3df0] sm:$0xff]  ;;  %v1289_v57 = vld [vmem:[%s7285_s14 + $0x1e08] sm:$0xff] }
 0x3d1   : > { %6810 = vmatprep.subr.bf16.mxu0 %v6809_v63  ;;  %v2293_v63 = vld [vmem:[%s7285_s14 + $0x3d68] sm:$0xff]  ;;  %v6831_v2 = vpack.c.bf16 %v2290_v60, %v2288_v58  ;;  %v1284_v52 = vld [vmem:[%s7285_s14 + $0x1de0] sm:$0xff]  ;;  %v1291_v58 = vld [vmem:[%s7285_s14 + $0x1e18] sm:$0xff] }
 0x3d2   : > { %v2315_v60 = vld [vmem:[%s7285_s14 + $0x3e18] sm:$0xff]  ;;  %v1305_v45 = vld [vmem:[%s7285_s14 + $0x1e88] sm:$0xff] }
 0x3d3   : > { %5788 = vmatpush1.bf16.msra.mxu1 %v5787_v5  ;;  %v1270_v5 = vld [vmem:[%s7285_s14 + $0x1d70] sm:$0xff]  ;;  %v1307_v46 = vld [vmem:[%s7285_s14 + $0x1e98] sm:$0xff] }
 0x3d4   : > { %6812 = vmatpush1.bf16.msra.mxu0 %v6811_v6  ;;  %5790 = vmatprep.subr.bf16.mxu1 %v5789_v7  ;;  %v2292_v6 = vld [vmem:[%s7285_s14 + $0x3d60] sm:$0xff]  ;;  %v6833_v7 = vpack.c.bf16 %v2295_v0, %v2293_v63  ;;  %v5811_v13 = vpack.c.bf16 %v1270_v5, %v1268_v4  ;;  %v5829_v63 = vpack.c.bf16 %v1291_v58, %v1289_v57  ;;  %v2314_v4 = vld [vmem:[%s7285_s14 + $0x3e10] sm:$0xff]  ;;  %v1293_v5 = vld [vmem:[%s7285_s14 + $0x1e28] sm:$0xff] }
 0x3d5   : > { %6814 = vmatprep.subr.bf16.mxu0 %v6813_v11  ;;  %v2297_v11 = vld [vmem:[%s7285_s14 + $0x3d88] sm:$0xff]  ;;  %v6835_v14 = vpack.c.bf16 %v2294_v8, %v2292_v6  ;;  %v1288_v0 = vld [vmem:[%s7285_s14 + $0x1e00] sm:$0xff]  ;;  %v1295_v6 = vld [vmem:[%s7285_s14 + $0x1e38] sm:$0xff] }
 0x3d6   : > { %v2319_v8 = vld [vmem:[%s7285_s14 + $0x3e38] sm:$0xff]  ;;  %v1309_v57 = vld [vmem:[%s7285_s14 + $0x1ea8] sm:$0xff] }
 0x3d7   : > { %5792 = vmatpush1.bf16.msra.mxu1 %v5791_v17  ;;  %v1274_v17 = vld [vmem:[%s7285_s14 + $0x1d90] sm:$0xff]  ;;  %v1311_v58 = vld [vmem:[%s7285_s14 + $0x1eb8] sm:$0xff] }
 0x3d8   : > { %6816 = vmatpush1.bf16.msra.mxu0 %v6815_v18  ;;  %5794 = vmatprep.subr.bf16.mxu1 %v5793_v19  ;;  %v2296_v18 = vld [vmem:[%s7285_s14 + $0x3d80] sm:$0xff]  ;;  %v6837_v19 = vpack.c.bf16 %v2299_v12, %v2297_v11  ;;  %v5815_v25 = vpack.c.bf16 %v1274_v17, %v1272_v16  ;;  %v324_v11 = vld [vmem:[%s7295_s11 + $0x1e0] sm:$0xff] }
 0x3d9   : > { %6818 = vmatprep.subr.bf16.mxu0 %v6817_v23  ;;  %v2301_v23 = vld [vmem:[%s7285_s14 + $0x3da8] sm:$0xff]  ;;  %v6839_v26 = vpack.c.bf16 %v2298_v20, %v2296_v18  ;;  %v2316_v16 = vld [vmem:[%s7285_s14 + $0x3e20] sm:$0xff]  ;;  %v2318_v18 = vld [vmem:[%s7285_s14 + $0x3e30] sm:$0xff] }
 0x3da   : > { %v1299_v20 = vld [vmem:[%s7285_s14 + $0x1e58] sm:$0xff] }
 0x3db   : > { %5796 = vmatpush1.bf16.msra.mxu1 %v5795_v29  ;;  %v1278_v29 = vld [vmem:[%s7285_s14 + $0x1db0] sm:$0xff] }
 0x3dc   : > { %6820 = vmatpush1.bf16.msra.mxu0 %v6819_v30  ;;  %5798 = vmatprep.subr.bf16.mxu1 %v5797_v31  ;;  %v2300_v30 = vld [vmem:[%s7285_s14 + $0x3da0] sm:$0xff]  ;;  %v6841_v31 = vpack.c.bf16 %v2303_v24, %v2301_v23  ;;  %v5819_v37 = vpack.c.bf16 %v1278_v29, %v1276_v28  ;;  %v295_v23 = vld [vmem:[%s7295_s11 + $0xf8] sm:$0xff]  ;;  %v1298_v29 = vld [vmem:[%s7285_s14 + $0x1e50] sm:$0xff] }
 0x3dd   : > { %6822 = vmatprep.subr.bf16.mxu0 %v6821_v35  ;;  %v2305_v35 = vld [vmem:[%s7285_s14 + $0x3dc8] sm:$0xff]  ;;  %v6843_v38 = vpack.c.bf16 %v2302_v32, %v2300_v30  ;;  %v1296_v28 = vld [vmem:[%s7285_s14 + $0x1e40] sm:$0xff]  ;;  %v2322_v32 = vld [vmem:[%s7285_s14 + $0x3e50] sm:$0xff] }
 0x3de   : > { %v2320_v30 = vld [vmem:[%s7285_s14 + $0x3e40] sm:$0xff] }
 0x3df   : > { %5800 = vmatpush1.bf16.msra.mxu1 %v5799_v41  ;;  %v1282_v41 = vld [vmem:[%s7285_s14 + $0x1dd0] sm:$0xff] }
 0x3e0   : > { %6824 = vmatpush1.bf16.msra.mxu0 %v6823_v42  ;;  %5802 = vmatprep.subr.bf16.mxu1 %v5801_v43  ;;  %v2304_v42 = vld [vmem:[%s7285_s14 + $0x3dc0] sm:$0xff]  ;;  %v6845_v43 = vpack.c.bf16 %v2307_v36, %v2305_v35  ;;  %v5823_v49 = vpack.c.bf16 %v1282_v41, %v1280_v40  ;;  %v2325_v35 = vld [vmem:[%s7285_s14 + $0x3e68] sm:$0xff]  ;;  %v2327_v36 = vld [vmem:[%s7285_s14 + $0x3e78] sm:$0xff] }
 0x3e1   : > { %6826 = vmatprep.subr.bf16.mxu0 %v6825_v47  ;;  %v2309_v47 = vld [vmem:[%s7285_s14 + $0x3de8] sm:$0xff]  ;;  %v6847_v50 = vpack.c.bf16 %v2306_v44, %v2304_v42  ;;  %v1300_v40 = vld [vmem:[%s7285_s14 + $0x1e60] sm:$0xff]  ;;  %v1302_v41 = vld [vmem:[%s7285_s14 + $0x1e70] sm:$0xff] }
 0x3e2   : > { %v2324_v42 = vld [vmem:[%s7285_s14 + $0x3e60] sm:$0xff]  ;;  %v2326_v44 = vld [vmem:[%s7285_s14 + $0x3e70] sm:$0xff] }
 0x3e3   : > { %5804 = vmatpush1.bf16.msra.mxu1 %v5803_v53  ;;  %v1286_v53 = vld [vmem:[%s7285_s14 + $0x1df0] sm:$0xff] }
 0x3e4   : > { %6828 = vmatpush1.bf16.msra.mxu0 %v6827_v54  ;;  %5806 = vmatprep.subr.bf16.mxu1 %v5805_v55  ;;  %v2308_v54 = vld [vmem:[%s7285_s14 + $0x3de0] sm:$0xff]  ;;  %v6849_v55 = vpack.c.bf16 %v2311_v48, %v2309_v47  ;;  %v5827_v61 = vpack.c.bf16 %v1286_v53, %v1284_v52  ;;  %v2329_v47 = vld [vmem:[%s7285_s14 + $0x3e88] sm:$0xff]  ;;  %v2331_v48 = vld [vmem:[%s7285_s14 + $0x3e98] sm:$0xff] }
 0x3e5   : > { %6830 = vmatprep.subr.bf16.mxu0 %v6829_v59  ;;  %v2313_v59 = vld [vmem:[%s7285_s14 + $0x3e08] sm:$0xff]  ;;  %v6851_v62 = vpack.c.bf16 %v2310_v56, %v2308_v54  ;;  %v1304_v52 = vld [vmem:[%s7285_s14 + $0x1e80] sm:$0xff]  ;;  %v1306_v53 = vld [vmem:[%s7285_s14 + $0x1e90] sm:$0xff] }
 0x3e6   : > { %v2328_v54 = vld [vmem:[%s7285_s14 + $0x3e80] sm:$0xff]  ;;  %v2330_v56 = vld [vmem:[%s7285_s14 + $0x3e90] sm:$0xff] }
 0x3e7   : > { %5808 = vmatpush1.bf16.msra.mxu1 %v5807_v1  ;;  %v1290_v1 = vld [vmem:[%s7285_s14 + $0x1e10] sm:$0xff] }
 0x3e8   : > { %6832 = vmatpush1.bf16.msra.mxu0 %v6831_v2  ;;  %5810 = vmatprep.subr.bf16.mxu1 %v5809_v3  ;;  %v2312_v2 = vld [vmem:[%s7285_s14 + $0x3e00] sm:$0xff]  ;;  %v6853_v3 = vpack.c.bf16 %v2315_v60, %v2313_v59  ;;  %v5831_v10 = vpack.c.bf16 %v1290_v1, %v1288_v0  ;;  %v2333_v59 = vld [vmem:[%s7285_s14 + $0x3ea8] sm:$0xff]  ;;  %v2335_v60 = vld [vmem:[%s7285_s14 + $0x3eb8] sm:$0xff] }
 0x3e9   : > { %6834 = vmatprep.subr.bf16.mxu0 %v6833_v7  ;;  %v2317_v7 = vld [vmem:[%s7285_s14 + $0x3e28] sm:$0xff]  ;;  %v6855_v12 = vpack.c.bf16 %v2314_v4, %v2312_v2  ;;  %v1308_v0 = vld [vmem:[%s7285_s14 + $0x1ea0] sm:$0xff]  ;;  %v1310_v1 = vld [vmem:[%s7285_s14 + $0x1eb0] sm:$0xff] }
 0x3ea   : > { %v6857_v17 = vpack.c.bf16 %v2319_v8, %v2317_v7  ;;  %v2332_v2 = vld [vmem:[%s7285_s14 + $0x3ea0] sm:$0xff]  ;;  %v2334_v4 = vld [vmem:[%s7285_s14 + $0x3eb0] sm:$0xff]  ;;  %v2337_v7 = vld [vmem:[%s7285_s14 + $0x3ec8] sm:$0xff] }
 0x3eb   : > { %5812 = vmatpush1.bf16.msra.mxu1 %v5811_v13  ;;  %v5833_v13 = vpack.c.bf16 %v1295_v6, %v1293_v5  ;;  %v1313_v5 = vld [vmem:[%s7285_s14 + $0x1ec8] sm:$0xff]  ;;  %v1315_v6 = vld [vmem:[%s7285_s14 + $0x1ed8] sm:$0xff] }
 0x3ec   : > { %6836 = vmatpush1.bf16.msra.mxu0 %v6835_v14  ;;  %5814 = vmatprep.subr.bf16.mxu1 %v5813_v15  ;;  %v1292_v14 = vld [vmem:[%s7285_s14 + $0x1e20] sm:$0xff]  ;;  %v1294_v15 = vld [vmem:[%s7285_s14 + $0x1e30] sm:$0xff]  ;;  %v2339_v8 = vld [vmem:[%s7285_s14 + $0x3ed8] sm:$0xff] }
 0x3ed   : > { %6838 = vmatprep.subr.bf16.mxu0 %v6837_v19  ;;  %v1297_v19 = vld [vmem:[%s7285_s14 + $0x1e48] sm:$0xff]  ;;  %v5835_v24 = vpack.c.bf16 %v1294_v15, %v1292_v14  ;;  %v2336_v14 = vld [vmem:[%s7285_s14 + $0x3ec0] sm:$0xff]  ;;  %v6877_v15 = vpack.c.bf16 %v2339_v8, %v2337_v7 }
 0x3ee   : > { %v1332_v8 = vld [vmem:[%s7285_s14 + $0x1f60] sm:$0xff] }
 0x3ef   : > { %5816 = vmatpush1.bf16.msra.mxu1 %v5815_v25  ;;  %v327_v25 = vld [vmem:[%s7295_s11 + $0x1f8] sm:$0xff] }
 0x3f0   : > { %6840 = vmatpush1.bf16.msra.mxu0 %v6839_v26  ;;  %5818 = vmatprep.subr.bf16.mxu1 %v5817_v27  ;;  %v6859_v26 = vpack.c.bf16 %v2318_v18, %v2316_v16  ;;  %v5837_v27 = vpack.c.bf16 %v1299_v20, %v1297_v19  ;;  %v2338_v16 = vld [vmem:[%s7285_s14 + $0x3ed0] sm:$0xff]  ;;  %v1319_v18 = vld [vmem:[%s7285_s14 + $0x1ef8] sm:$0xff]  ;;  %v2341_v19 = vld [vmem:[%s7285_s14 + $0x3ee8] sm:$0xff] }
 0x3f1   : > { %6842 = vmatprep.subr.bf16.mxu0 %v6841_v31  ;;  %v6861_v31 = vpack.c.bf16 %v2323_v22, %v2321_v21  ;;  %v2343_v20 = vld [vmem:[%s7285_s14 + $0x3ef8] sm:$0xff]  ;;  %v6879_v22 = vpack.c.bf16 %v2338_v16, %v2336_v14 }
 0x3f2   : > { %v1339_v14 = vld [vmem:[%s7285_s14 + $0x1f98] sm:$0xff] }
 0x3f3   : > { %5820 = vmatpush1.bf16.msra.mxu1 %v5819_v37  ;;  %v5839_v37 = vpack.c.bf16 %v1298_v29, %v1296_v28  ;;  %v2342_v28 = vld [vmem:[%s7285_s14 + $0x3ef0] sm:$0xff]  ;;  %v1321_v29 = vld [vmem:[%s7285_s14 + $0x1f08] sm:$0xff]  ;;  %v2363_v16 = vld [vmem:[%s7285_s14 + $0x3f98] sm:$0xff] }
 0x3f4   : > { %6844 = vmatpush1.bf16.msra.mxu0 %v6843_v38  ;;  %5822 = vmatprep.subr.bf16.mxu1 %v5821_v39  ;;  %v6863_v38 = vpack.c.bf16 %v2322_v32, %v2320_v30  ;;  %v5841_v39 = vpack.c.bf16 %v1303_v34, %v1301_v33  ;;  %v1323_v30 = vld [vmem:[%s7285_s14 + $0x1f18] sm:$0xff] }
 0x3f5   : > { %6846 = vmatprep.subr.bf16.mxu0 %v6845_v43  ;;  %v6865_v43 = vpack.c.bf16 %v2327_v36, %v2325_v35  ;;  %v2347_v32 = vld [vmem:[%s7285_s14 + $0x3f18] sm:$0xff]  ;;  %v5861_v35 = vpack.c.bf16 %v1323_v30, %v1321_v29  ;;  %v1320_v36 = vld [vmem:[%s7285_s14 + $0x1f00] sm:$0xff] }
 0x3f7   : > { %5824 = vmatpush1.bf16.msra.mxu1 %v5823_v49  ;;  %v5843_v49 = vpack.c.bf16 %v1302_v41, %v1300_v40  ;;  %v2346_v40 = vld [vmem:[%s7285_s14 + $0x3f10] sm:$0xff]  ;;  %v1325_v41 = vld [vmem:[%s7285_s14 + $0x1f28] sm:$0xff] }
 0x3f8   : > { %6848 = vmatpush1.bf16.msra.mxu0 %v6847_v50  ;;  %5826 = vmatprep.subr.bf16.mxu1 %v5825_v51  ;;  %v6867_v50 = vpack.c.bf16 %v2326_v44, %v2324_v42  ;;  %v5845_v51 = vpack.c.bf16 %v1307_v46, %v1305_v45  ;;  %v1327_v42 = vld [vmem:[%s7285_s14 + $0x1f38] sm:$0xff] }
 0x3f9   : > { %6850 = vmatprep.subr.bf16.mxu0 %v6849_v55  ;;  %v6869_v55 = vpack.c.bf16 %v2331_v48, %v2329_v47  ;;  %v2351_v44 = vld [vmem:[%s7285_s14 + $0x3f38] sm:$0xff]  ;;  %v5865_v47 = vpack.c.bf16 %v1327_v42, %v1325_v41  ;;  %v1324_v48 = vld [vmem:[%s7285_s14 + $0x1f20] sm:$0xff] }
 0x3fb   : > { %5828 = vmatpush1.bf16.msra.mxu1 %v5827_v61  ;;  %v5847_v61 = vpack.c.bf16 %v1306_v53, %v1304_v52  ;;  %v2350_v52 = vld [vmem:[%s7285_s14 + $0x3f30] sm:$0xff]  ;;  %v1329_v53 = vld [vmem:[%s7285_s14 + $0x1f48] sm:$0xff] }
 0x3fc   : > { %6852 = vmatpush1.bf16.msra.mxu0 %v6851_v62  ;;  %5830 = vmatprep.subr.bf16.mxu1 %v5829_v63  ;;  %v6871_v62 = vpack.c.bf16 %v2330_v56, %v2328_v54  ;;  %v5849_v63 = vpack.c.bf16 %v1311_v58, %v1309_v57  ;;  %v1331_v54 = vld [vmem:[%s7285_s14 + $0x1f58] sm:$0xff] }
 0x3fd   : > { %6854 = vmatprep.subr.bf16.mxu0 %v6853_v3  ;;  %v6873_v3 = vpack.c.bf16 %v2335_v60, %v2333_v59  ;;  %v2355_v56 = vld [vmem:[%s7285_s14 + $0x3f58] sm:$0xff]  ;;  %v5869_v59 = vpack.c.bf16 %v1331_v54, %v1329_v53  ;;  %v1328_v60 = vld [vmem:[%s7285_s14 + $0x1f40] sm:$0xff] }
 0x3fe   : > { %3435 = vmatmul.mubr.f32.vlgmr.msra.gmra.mrb[0].mxu1 %v292_v9  ;;  %v5851_v9 = vpack.c.bf16 %v1310_v1, %v1308_v0  ;;  %v2354_v0 = vld [vmem:[%s7285_s14 + $0x3f50] sm:$0xff]  ;;  %v1333_v1 = vld [vmem:[%s7285_s14 + $0x1f68] sm:$0xff] }
 0x3ff   : > { %5832 = vmatpush1.bf16.msra.mxu1 %v5831_v10  ;;  %4571 = vmatmul.mubr.f32.vlgmr.msra.gmra.mrb[0].mxu0 %v324_v11  ;;  %v6875_v10 = vpack.c.bf16 %v2334_v4, %v2332_v2  ;;  %v5853_v11 = vpack.c.bf16 %v1315_v6, %v1313_v5  ;;  %v1335_v2 = vld [vmem:[%s7285_s14 + $0x1f78] sm:$0xff] }
 0x400   : > { %6856 = vmatpush1.bf16.msra.mxu0 %v6855_v12  ;;  %5834 = vmatprep.subr.bf16.mxu1 %v5833_v13  ;;  %v1312_v12 = vld [vmem:[%s7285_s14 + $0x1ec0] sm:$0xff]  ;;  %v1314_v13 = vld [vmem:[%s7285_s14 + $0x1ed0] sm:$0xff]  ;;  %v2359_v4 = vld [vmem:[%s7285_s14 + $0x3f78] sm:$0xff]  ;;  %v5873_v7 = vpack.c.bf16 %v1335_v2, %v1333_v1 }
 0x401   : > { %6858 = vmatprep.subr.bf16.mxu0 %v6857_v17  ;;  %3505 = vmatprep.mubr.f32.mxu1 %v295_v23  ;;  %v1317_v17 = vld [vmem:[%s7285_s14 + $0x1ee8] sm:$0xff]  ;;  %v5855_v21 = vpack.c.bf16 %v1314_v13, %v1312_v12  ;;  %v2358_v12 = vld [vmem:[%s7285_s14 + $0x3f70] sm:$0xff] }
 0x402   : > { %4641 = vmatprep.mubr.f32.mxu0 %v327_v25  ;;  %v5857_v23 = vpack.c.bf16 %v1319_v18, %v1317_v17  ;;  %v1318_v25 = vld [vmem:[%s7285_s14 + $0x1ef0] sm:$0xff]  ;;  %v1337_v13 = vld [vmem:[%s7285_s14 + $0x1f88] sm:$0xff] }
 0x403   : > { %5836 = vmatpush1.bf16.msra.mxu1 %v5835_v24  ;;  %v1316_v24 = vld [vmem:[%s7285_s14 + $0x1ee0] sm:$0xff]  ;;  %v262_v2 = vld [vmem:[#allocation2] sm:$0xff] }
 0x404   : > { %6860 = vmatpush1.bf16.msra.mxu0 %v6859_v26  ;;  %5838 = vmatprep.subr.bf16.mxu1 %v5837_v27  ;;  %v2340_v26 = vld [vmem:[%s7285_s14 + $0x3ee0] sm:$0xff]  ;;  %v6881_v27 = vpack.c.bf16 %v2343_v20, %v2341_v19  ;;  %v5859_v33 = vpack.c.bf16 %v1318_v25, %v1316_v24  ;;  %v5877_v19 = vpack.c.bf16 %v1339_v14, %v1337_v13  ;;  %v2362_v24 = vld [vmem:[%s7285_s14 + $0x3f90] sm:$0xff]  ;;  %v1341_v25 = vld [vmem:[%s7285_s14 + $0x1fa8] sm:$0xff]  ;;  %v4661_v14 = vlaneseq (!%p4860_p7) }
 0x405   : > { %6862 = vmatprep.subr.bf16.mxu0 %v6861_v31  ;;  %v2345_v31 = vld [vmem:[%s7285_s14 + $0x3f08] sm:$0xff]  ;;  %v6883_v34 = vpack.c.bf16 %v2342_v28, %v2340_v26  ;;  %v1336_v20 = vld [vmem:[%s7285_s14 + $0x1f80] sm:$0xff]  ;;  %v1343_v26 = vld [vmem:[%s7285_s14 + $0x1fb8] sm:$0xff] }
 0x406   : > { %v2367_v28 = vld [vmem:[%s7285_s14 + $0x3fb8] sm:$0xff]  ;;  %v4675_v13 = vld [vmem:[%s9545_s3 + $0x10] sm:$0xff] (!%p4860_p7) }
 0x407   : > { %5840 = vmatpush1.bf16.msra.mxu1 %v5839_v37  ;;  %v1322_v37 = vld [vmem:[%s7285_s14 + $0x1f10] sm:$0xff] }
 0x408   : > { %6864 = vmatpush1.bf16.msra.mxu0 %v6863_v38  ;;  %5842 = vmatprep.subr.bf16.mxu1 %v5841_v39  ;;  %v2344_v38 = vld [vmem:[%s7285_s14 + $0x3f00] sm:$0xff]  ;;  %v6885_v39 = vpack.c.bf16 %v2347_v32, %v2345_v31  ;;  %v5863_v45 = vpack.c.bf16 %v1322_v37, %v1320_v36  ;;  %v5881_v31 = vpack.c.bf16 %v1343_v26, %v1341_v25  ;;  %v2366_v36 = vld [vmem:[%s7285_s14 + $0x3fb0] sm:$0xff]  ;;  %v1345_v37 = vld [vmem:[%s7285_s14 + $0x1fc8] sm:$0xff] }
 0x409   : > { %6866 = vmatprep.subr.bf16.mxu0 %v6865_v43  ;;  %v2349_v43 = vld [vmem:[%s7285_s14 + $0x3f28] sm:$0xff]  ;;  %v6887_v46 = vpack.c.bf16 %v2346_v40, %v2344_v38  ;;  %v1340_v32 = vld [vmem:[%s7285_s14 + $0x1fa0] sm:$0xff]  ;;  %v1347_v38 = vld [vmem:[%s7285_s14 + $0x1fd8] sm:$0xff] }
 0x40a   : > { %v2371_v40 = vld [vmem:[%s7285_s14 + $0x3fd8] sm:$0xff]  ;;  %v4680_v25 = vld [vmem:[%s9545_s3 + $0x38] sm:$0xff] (!%p4860_p7) }
 0x40b   : > { %5844 = vmatpush1.bf16.msra.mxu1 %v5843_v49  ;;  %v1326_v49 = vld [vmem:[%s7285_s14 + $0x1f30] sm:$0xff] }
 0x40c   : > { %6868 = vmatpush1.bf16.msra.mxu0 %v6867_v50  ;;  %5846 = vmatprep.subr.bf16.mxu1 %v5845_v51  ;;  %v2348_v50 = vld [vmem:[%s7285_s14 + $0x3f20] sm:$0xff]  ;;  %v6889_v51 = vpack.c.bf16 %v2351_v44, %v2349_v43  ;;  %v5867_v57 = vpack.c.bf16 %v1326_v49, %v1324_v48  ;;  %v5885_v43 = vpack.c.bf16 %v1347_v38, %v1345_v37  ;;  %v2370_v48 = vld [vmem:[%s7285_s14 + $0x3fd0] sm:$0xff]  ;;  %v1349_v49 = vld [vmem:[%s7285_s14 + $0x1fe8] sm:$0xff] }
 0x40d   : > { %6870 = vmatprep.subr.bf16.mxu0 %v6869_v55  ;;  %v2353_v55 = vld [vmem:[%s7285_s14 + $0x3f48] sm:$0xff]  ;;  %v6891_v58 = vpack.c.bf16 %v2350_v52, %v2348_v50  ;;  %v1344_v44 = vld [vmem:[%s7285_s14 + $0x1fc0] sm:$0xff]  ;;  %v1351_v50 = vld [vmem:[%s7285_s14 + $0x1ff8] sm:$0xff] }
 0x40e   : > { %v2375_v52 = vld [vmem:[%s7285_s14 + $0x3ff8] sm:$0xff]  ;;  %v4685_v37 = vld [vmem:[%s9545_s3 + $0x60] sm:$0xff] (!%p4860_p7) }
 0x40f   : > { %5848 = vmatpush1.bf16.msra.mxu1 %v5847_v61  ;;  %v1330_v61 = vld [vmem:[%s7285_s14 + $0x1f50] sm:$0xff]  ;;  %v4686_v38 = vld [vmem:[%s9545_s3 + $0x68] sm:$0xff] (!%p4860_p7) }
 0x410   : > { %6872 = vmatpush1.bf16.msra.mxu0 %v6871_v62  ;;  %5850 = vmatprep.subr.bf16.mxu1 %v5849_v63  ;;  %v2352_v62 = vld [vmem:[%s7285_s14 + $0x3f40] sm:$0xff]  ;;  %v6893_v63 = vpack.c.bf16 %v2355_v56, %v2353_v55  ;;  %v5871_v5 = vpack.c.bf16 %v1330_v61, %v1328_v60  ;;  %v5889_v55 = vpack.c.bf16 %v1351_v50, %v1349_v49  ;;  %v2374_v60 = vld [vmem:[%s7285_s14 + $0x3ff0] sm:$0xff]  ;;  %v4694_v50 = vld [vmem:[%s9545_s3 + $0xa8] sm:$0xff] (!%p4860_p7) }
 0x411   : > { %6874 = vmatprep.subr.bf16.mxu0 %v6873_v3  ;;  %v2357_v3 = vld [vmem:[%s7285_s14 + $0x3f68] sm:$0xff]  ;;  %v6895_v6 = vpack.c.bf16 %v2354_v0, %v2352_v62  ;;  %v1348_v56 = vld [vmem:[%s7285_s14 + $0x1fe0] sm:$0xff]  ;;  %v4693_v49 = vld [vmem:[%s9545_s3 + $0xa0] sm:$0xff] (!%p4860_p7) }
 0x412   : > { %v326_v0 = vld [vmem:[%s7295_s11 + $0x1f0] sm:$0xff] }
 0x413   : > { %5852 = vmatpush1.bf16.msra.mxu1 %v5851_v9  ;;  %v1334_v9 = vld [vmem:[%s7285_s14 + $0x1f70] sm:$0xff] }
 0x414   : > { %6876 = vmatpush1.bf16.msra.mxu0 %v6875_v10  ;;  %5854 = vmatprep.subr.bf16.mxu1 %v5853_v11  ;;  %v2356_v10 = vld [vmem:[%s7285_s14 + $0x3f60] sm:$0xff]  ;;  %v6897_v11 = vpack.c.bf16 %v2359_v4, %v2357_v3  ;;  %v5875_v17 = vpack.c.bf16 %v1334_v9, %v1332_v8 }
 0x415   : > { %6878 = vmatprep.subr.bf16.mxu0 %v6877_v15  ;;  %v2361_v15 = vld [vmem:[%s7285_s14 + $0x3f88] sm:$0xff]  ;;  %v6899_v18 = vpack.c.bf16 %v2358_v12, %v2356_v10  ;;  %v4674_v12 = vld [vmem:[%s9545_s3 + $0x8] sm:$0xff] (!%p4860_p7) }
 0x417   : > { %5856 = vmatpush1.bf16.msra.mxu1 %v5855_v21  ;;  %v1338_v21 = vld [vmem:[%s7285_s14 + $0x1f90] sm:$0xff] }
 0x418   : > { %6880 = vmatpush1.bf16.msra.mxu0 %v6879_v22  ;;  %5858 = vmatprep.subr.bf16.mxu1 %v5857_v23  ;;  %v2360_v22 = vld [vmem:[%s7285_s14 + $0x3f80] sm:$0xff]  ;;  %v6901_v23 = vpack.c.bf16 %v2363_v16, %v2361_v15  ;;  %v5879_v29 = vpack.c.bf16 %v1338_v21, %v1336_v20  ;;  %v7166_v15 = vmov (!%p4860_p7), 0.0|0.0   ;;  %v4677_v20 = vld [vmem:[%s9545_s3 + $0x20] sm:$0xff] (!%p4860_p7)  ;;  %v4678_v21 = vld [vmem:[%s9545_s3 + $0x28] sm:$0xff] (!%p4860_p7) }
 0x419   : > { %6882 = vmatprep.subr.bf16.mxu0 %v6881_v27  ;;  %v2365_v27 = vld [vmem:[%s7285_s14 + $0x3fa8] sm:$0xff]  ;;  %v6903_v30 = vpack.c.bf16 %v2362_v24, %v2360_v22  ;;  %v4679_v24 = vld [vmem:[%s9545_s3 + $0x30] sm:$0xff] (!%p4860_p7) }
 0x41b   : > { %5860 = vmatpush1.bf16.msra.mxu1 %v5859_v33  ;;  %v1342_v33 = vld [vmem:[%s7285_s14 + $0x1fb0] sm:$0xff] }
 0x41c   : > { %6884 = vmatpush1.bf16.msra.mxu0 %v6883_v34  ;;  %5862 = vmatprep.subr.bf16.mxu1 %v5861_v35  ;;  %v2364_v34 = vld [vmem:[%s7285_s14 + $0x3fa0] sm:$0xff]  ;;  %v6905_v35 = vpack.c.bf16 %v2367_v28, %v2365_v27  ;;  %v5883_v41 = vpack.c.bf16 %v1342_v33, %v1340_v32  ;;  %v4659_v27 = vld [vmem:[%s9544_s2] sm:$0x3] (!%p4860_p7)  ;;  %v4682_v32 = vld [vmem:[%s9545_s3 + $0x48] sm:$0xff] (!%p4860_p7) }
 0x41d   : > { %6886 = vmatprep.subr.bf16.mxu0 %v6885_v39  ;;  %v2369_v39 = vld [vmem:[%s7285_s14 + $0x3fc8] sm:$0xff]  ;;  %v6907_v42 = vpack.c.bf16 %v2366_v36, %v2364_v34  ;;  %v4683_v34 = vld [vmem:[%s9545_s3 + $0x50] sm:$0xff] (!%p4860_p7) }
 0x41f   : > { %5864 = vmatpush1.bf16.msra.mxu1 %v5863_v45  ;;  %v1346_v45 = vld [vmem:[%s7285_s14 + $0x1fd0] sm:$0xff] }
 0x420   : > { %6888 = vmatpush1.bf16.msra.mxu0 %v6887_v46  ;;  %5866 = vmatprep.subr.bf16.mxu1 %v5865_v47  ;;  %v2368_v46 = vld [vmem:[%s7285_s14 + $0x3fc0] sm:$0xff]  ;;  %v6909_v47 = vpack.c.bf16 %v2371_v40, %v2369_v39  ;;  %v5887_v53 = vpack.c.bf16 %v1346_v45, %v1344_v44  ;;  %v6936_v39 = vpack.c.bf16 (!%p4860_p7), %v4686_v38, %v4685_v37  ;;  %v4690_v44 = vld [vmem:[%s9545_s3 + $0x88] sm:$0xff] (!%p4860_p7) }
 0x421   : > { %6890 = vmatprep.subr.bf16.mxu0 %v6889_v51  ;;  %v2373_v51 = vld [vmem:[%s7285_s14 + $0x3fe8] sm:$0xff]  ;;  %v6911_v54 = vpack.c.bf16 %v2370_v48, %v2368_v46  ;;  %v4687_v40 = vld [vmem:[%s9545_s3 + $0x70] sm:$0xff] (!%p4860_p7) }
 0x422   : > { %v4691_v46 = vld [vmem:[%s9545_s3 + $0x90] sm:$0xff] (!%p4860_p7) }
 0x423   : > { %5868 = vmatpush1.bf16.msra.mxu1 %v5867_v57  ;;  %v1350_v57 = vld [vmem:[%s7285_s14 + $0x1ff0] sm:$0xff] }
 0x424   : > { %6892 = vmatpush1.bf16.msra.mxu0 %v6891_v58  ;;  %5870 = vmatprep.subr.bf16.mxu1 %v5869_v59  ;;  %v6913_v58 = vpack.c.bf16 %v2375_v52, %v2373_v51  ;;  %v2372_v59 = vld [vmem:[%s7285_s14 + $0x3fe0] sm:$0xff]  ;;  %v5891_v61 = vpack.c.bf16 %v1350_v57, %v1348_v56  ;;  %v6948_v51 = vpack.c.bf16 (!%p4860_p7), %v4694_v50, %v4693_v49 }
 0x425   : > { %6894 = vmatprep.subr.bf16.mxu0 %v6893_v63  ;;  %v6915_v62 = vpack.c.bf16 %v2374_v60, %v2372_v59  ;;  %v294_v63 = vld [vmem:[%s7295_s11 + $0xf0] sm:$0xff]  ;;  %v4697_v59 = vld [vmem:[%s9545_s3 + $0xc0] sm:$0xff] (!%p4860_p7) }
 0x426   : > { %v4695_v52 = vld [vmem:[%s9545_s3 + $0xb0] sm:$0xff] (!%p4860_p7) }
 0x427   : > { %5872 = vmatpush1.bf16.msra.mxu1 %v5871_v5 }
 0x428   : > { %6896 = vmatpush1.bf16.msra.mxu0 %v6895_v6  ;;  %5874 = vmatprep.subr.bf16.mxu1 %v5873_v7  ;;  %v263_v6 = vld [vmem:[#allocation2 + $0x8] sm:$0xff] }
 0x429   : > { %6898 = vmatprep.subr.bf16.mxu0 %v6897_v11  ;;  %v4673_v11 = vld [vmem:[%s9545_s3] sm:$0xff] (!%p4860_p7) }
 0x42a   : > { %v6918_v16 = vpack.c.bf16 (!%p4860_p7), %v4674_v12, %v4673_v11 }
 0x42b   : > { %5876 = vmatpush1.bf16.msra.mxu1 %v5875_v17  ;;  %v4676_v17 = vld [vmem:[%s9545_s3 + $0x18] sm:$0xff] (!%p4860_p7) }
 0x42c   : > { %6900 = vmatpush1.bf16.msra.mxu0 %v6899_v18  ;;  %5878 = vmatprep.subr.bf16.mxu1 %v5877_v19  ;;  %v4662_v18 = vshrl.u32 (!%p4860_p7), %v4661_v14, 7  ;;  %v6921_v19 = vpack.c.bf16 (!%p4860_p7), %v4676_v17, %v4675_v13 }
 0x42d   : > { %6902 = vmatprep.subr.bf16.mxu0 %v6901_v23  ;;  %v6924_v23 = vpack.c.bf16 (!%p4860_p7), %v4678_v21, %v4677_v20 }
 0x42e   : > { %v4667_v22 = vsub.s32 (!%p4860_p7), 1, %v4662_v18 }
 0x42f   : > { %5880 = vmatpush1.bf16.msra.mxu1 %v5879_v29  ;;  %v6927_v29 = vpack.c.bf16 (!%p4860_p7), %v4680_v25, %v4679_v24 }
 0x430   : > { %6904 = vmatpush1.bf16.msra.mxu0 %v6903_v30  ;;  %5882 = vmatprep.subr.bf16.mxu1 %v5881_v31  ;;  %v4668_v28 = vrot.slane (!%p4860_p7), %v4659_v27, %v4667_v22  ;;  %v4681_v31 = vld [vmem:[%s9545_s3 + $0x40] sm:$0xff] (!%p4860_p7) }
 0x431   : > { %6906 = vmatprep.subr.bf16.mxu0 %v6905_v35  ;;  %v6930_v33 = vpack.c.bf16 (!%p4860_p7), %v4682_v32, %v4681_v31  ;;  %v4684_v35 = vld [vmem:[%s9545_s3 + $0x58] sm:$0xff] (!%p4860_p7) }
 0x432   : > { %v6933_v36 = vpack.c.bf16 (!%p4860_p7), %v4684_v35, %v4683_v34 }
 0x433   : > { %5884 = vmatpush1.bf16.msra.mxu1 %v5883_v41  ;;  %v4688_v41 = vld [vmem:[%s9545_s3 + $0x78] sm:$0xff] (!%p4860_p7) }
 0x434   : > { %6908 = vmatpush1.bf16.msra.mxu0 %v6907_v42  ;;  %5886 = vmatprep.subr.bf16.mxu1 %v5885_v43  ;;  %v6939_v42 = vpack.c.bf16 (!%p4860_p7), %v4688_v41, %v4687_v40  ;;  %v4689_v43 = vld [vmem:[%s9545_s3 + $0x80] sm:$0xff] (!%p4860_p7) }
 0x435   : > { %6910 = vmatprep.subr.bf16.mxu0 %v6909_v47  ;;  %v6942_v45 = vpack.c.bf16 (!%p4860_p7), %v4690_v44, %v4689_v43  ;;  %v4692_v47 = vld [vmem:[%s9545_s3 + $0x98] sm:$0xff] (!%p4860_p7) }
 0x436   : > { %v6945_v48 = vpack.c.bf16 (!%p4860_p7), %v4692_v47, %v4691_v46 }
 0x437   : > { %5888 = vmatpush1.bf16.msra.mxu1 %v5887_v53  ;;  %v4696_v53 = vld [vmem:[%s9545_s3 + $0xb8] sm:$0xff] (!%p4860_p7) }
 0x438   : > { %6912 = vmatpush1.bf16.msra.mxu0 %v6911_v54  ;;  %5890 = vmatprep.subr.bf16.mxu1 %v5889_v55  ;;  %v4663_v54 = vsub.s32 (!%p4860_p7), 0, %v4662_v18  ;;  %v6951_v55 = vpack.c.bf16 (!%p4860_p7), %v4696_v53, %v4695_v52 }
 0x439   : > { %6914 = vmatprep.subr.bf16.mxu0 %v6913_v58  ;;  %v7167_v58 = vmov (!%p4860_p7), 0.0  }
 0x43a   : > { %v4664_v56 = vrot.slane (!%p4860_p7), %v4659_v27, %v4663_v54 }
 0x43b   : > { %5892 = vmatpush1.bf16.msra.mxu1 %v5891_v61  ;;  %v4861_v61 = vld [vmem:[%s9546_s4] ss:$0 sm:$0xff] (!%p4860_p7) }
 0x43c   : > { %6916 = vmatpush1.bf16.msra.mxu0 %v6915_v62 }
 0x43d   : > { %6917 = vmatprep.subr.bf16.mxu0 (!%p4860_p7), %v7166_v15 }
 0x43e   : > { %3506 = vmatmul.mubr.f32.vlgmr.msra.gmra.mrb[0].mxu1 %v294_v63 }
 0x43f   : > { %4642 = vmatmul.mubr.f32.vlgmr.msra.gmra.mrb[0].mxu0 %v326_v0 }
 0x440   : > { %6919 = vmatpush1.bf16.msra.mxu0 (!%p4860_p7), %v6918_v16 }
 0x441   : > { %6920 = vmatprep.subr.bf16.mxu0 (!%p4860_p7), %v7166_v15 }
 0x444   : > { %6922 = vmatpush1.bf16.msra.mxu0 (!%p4860_p7), %v6921_v19 }
 0x445   : > { %6923 = vmatprep.subr.bf16.mxu0 (!%p4860_p7), %v7166_v15 }
 0x448   : > { %6925 = vmatpush1.bf16.msra.mxu0 (!%p4860_p7), %v6924_v23 }
 0x449   : > { %6926 = vmatprep.subr.bf16.mxu0 (!%p4860_p7), %v7166_v15 }
 0x44c   : > { %6928 = vmatpush1.bf16.msra.mxu0 (!%p4860_p7), %v6927_v29 }
 0x44d   : > { %6929 = vmatprep.subr.bf16.mxu0 (!%p4860_p7), %v7166_v15 }
 0x450   : > { %6931 = vmatpush1.bf16.msra.mxu0 (!%p4860_p7), %v6930_v33 }
 0x451   : > { %6932 = vmatprep.subr.bf16.mxu0 (!%p4860_p7), %v7166_v15 }
 0x454   : > { %6934 = vmatpush1.bf16.msra.mxu0 (!%p4860_p7), %v6933_v36 }
 0x455   : > { %6935 = vmatprep.subr.bf16.mxu0 (!%p4860_p7), %v7166_v15 }
 0x458   : > { %6937 = vmatpush1.bf16.msra.mxu0 (!%p4860_p7), %v6936_v39 }
 0x459   : > { %6938 = vmatprep.subr.bf16.mxu0 (!%p4860_p7), %v7166_v15 }
 0x45c   : > { %6940 = vmatpush1.bf16.msra.mxu0 (!%p4860_p7), %v6939_v42 }
 0x45d   : > { %6941 = vmatprep.subr.bf16.mxu0 (!%p4860_p7), %v7166_v15 }
 0x460   : > { %6943 = vmatpush1.bf16.msra.mxu0 (!%p4860_p7), %v6942_v45 }
 0x461   : > { %6944 = vmatprep.subr.bf16.mxu0 (!%p4860_p7), %v7166_v15 }
 0x464   : > { %6946 = vmatpush1.bf16.msra.mxu0 (!%p4860_p7), %v6945_v48 }
 0x465   : > { %6947 = vmatprep.subr.bf16.mxu0 (!%p4860_p7), %v7166_v15 }
 0x468   : > { %6949 = vmatpush1.bf16.msra.mxu0 (!%p4860_p7), %v6948_v51 }
 0x469   : > { %6950 = vmatprep.subr.bf16.mxu0 (!%p4860_p7), %v7166_v15 }
 0x46c   : > { %6952 = vmatpush1.bf16.msra.mxu0 (!%p4860_p7), %v6951_v55 }
 0x46d   : > { %4756 = vmatprep.subr.mxu0 (!%p4860_p7), %v7167_v58 }
 0x470   : > { %4757 = vmatpush1.msra.mxu0 (!%p4860_p7), %v4697_v59 }
 0x511   : > { %v3507_v1 = vpop.f32.mrb[0].mxu1 }
 0x512   : > { %v4643_v3 = vpop.f32.mrb[0].mxu0  ;;  %v3509_v4 = vpop.f32.mrb[1].mxu1  ;;  %4656 = sbr.rel (%p4860_p7) target bundleno = 1530 (0x5fa), region = 52 }
 0x513   : > { %v6953_v5 = vadd.f32 %v4643_v3, %v3507_v1  ;;  %v4645_v7 = vpop.f32.mrb[1].mxu0 }
 0x514   : > { %v6954_v8 = vadd.f32 %v4645_v7, %v3509_v4 }
 0x515   : > { %v4648_v9 = vadd.f32 %v6953_v5, %v262_v2 }
 0x516   : > { %v4649_v10 = vadd.f32 %v6954_v8, %v263_v6 }
 0x517   : > { %4650 = vst [vmem:[#allocation2] sm:$0xff] %v4648_v9 }
 0x518   : > { %4652 = vst.msk [vmem:[#allocation2 + $0x8] sm:$0xff] %vm4651_vm1, %v4649_v10 }
 0x51e   : > { %v4657_v57 = vld [vmem:[#allocation2] sm:$0xff] }
 0x51f   : > { %v4658_v26 = vld [vmem:[#allocation2 + $0x8] sm:$0xff]  ;;  %v4671_v60 = vadd.f32 %v4664_v56, %v4657_v57 }
 0x520   : > { %v4672_v30 = vadd.f32 %v4668_v28, %v4658_v26 }
 0x522   : > { %4862 = vmatprep.mubr.msk.f32.mxu0 %vm4651_vm1, %v4672_v30 }
 0x523   : > { %4773 = vmatmul.mubr.f32.vlgmr.msra.gmra.mrb[0].mxu0 %v4671_v60 }
 0x5f6   : > { %v4774_v62 = vpop.f32.mrb[0].mxu0 }
 0x5f7   : > { %v4775_v63 = vadd.f32 %v4861_v61, %v4774_v62  ;;  %v4776_v0 = vpop.f32.mrb[1].mxu0 }
 0x5f9   : > { %4778 = vst [vmem:[#allocation6] sm:$0xff] %v4775_v63 }
 0x5fa PF: > { %p7026_p4 = scmp.eq.s32.totalorder %s7218_s22, 9  ;;  %s7168_s14 = smov [#allocation6]  }
 0x5fb   : > { %s4786_s15 = sshll.u32 %s7168_s14, 4  ;;  %s4787_s15 = int_to_ptr.vmem [resolvable:$true] %s4786_s15 }
 0x5fc   : > { %s7096_s8 = scalar_lea.vmem %s4787_s15, 128  ;;  %p7103_p12 = scmp.lt.s32.totalorder %s4787_s15, %s4787_s15 }
 0x5fd   : > { %p7097_p5 = scmp.ne.s32.totalorder %s4787_s15, %s7096_s8  ;;  %p7104_p0 = scmp.lt.s32.totalorder %s7096_s8, %s7096_s8 }
 0x5ff   : > { %p7098_p6 = pnand %p7097_p5, %p7026_p4  ;;  %p7105_p1 = por %p7104_p0, %p7103_p12 }
 0x601   : > { %p7099_p10 = pneg %p7098_p6 }
 0x603   : > { %p7106_p2 = pnand %p7105_p1, %p7099_p10 }
 0x605   : > { %7109 = shalt.err (!%p7106_p2)
}
 0x606   : > { %s7110_s11 = scalar_lea.hbm %s9547_s5, 128 }
 0x607   : > { %p7111_p11 = scmp.ne.s32.totalorder %s9547_s5, %s7110_s11  ;;  %p7116_p9 = scmp.lt.u32.totalorder %s7110_s11, %s9547_s5 }
 0x609   : > { %p7112_p13 = pnand %p7111_p11, %p7026_p4 }
 0x60b   : > { %p7113_p3 = pneg %p7112_p13 }
 0x60d   : > { %p7118_p8 = pnand %p7116_p9, %p7113_p3 }
 0x60f   : > { %7121 = shalt.err (!%p7118_p8)
}
 0x610   : > { %7018 = dma.vmem_to_hbm [thread:$0]  (%p7026_p4), %s4787_s15, 128, %s9547_s5, [#allocation5]  }
 0x611   : > { %7143 = dma.done.wait (%p7026_p4), [#allocation5], 128  }
 0x612   : > { %7145 = vsyncadd (%p7026_p4), [#allocation5], 4294967168 }
 0x613 PF: > { %p16_p7 = scmp.ge.s32.totalorder %s7221_s23, 12   ;;  %s9551_s18 = smov %s7152_s19 }
 0x614   : > { %s9552_s19 = smov %s7156_s20  ;;  %s9553_s20 = smov %s7231_s26 }
 0x615   : > { %s9554_s21 = smov %s7221_s23  ;;  %18 = sbr.rel (!%p16_p7) target bundleno = 4 (0x4), region = 88 }
 0x61c   :  { %4799 = vsyncpa [#allocation4], 1 }
 0x61d   :  { %4801 = vsyncpa [#allocation4 + $0x1], 1 }
 0x61e   :  { %4802 = vsyncpa [#allocation5], 1 }
 0x61f   :  { %4804 = vsyncpa [#allocation5 + $0x1], 1 }

</bundles_post_ra>
